<compile_context>
chip_gen: v7x
topology: tpu7x:2x2x1
jax: 0.10.0
libtpu: 0.0.40
codegen_flags: <defaults>
</compile_context>

<pallas_src>
import math

import jax
import jax.numpy as jnp
from jax import lax
from jax.experimental import pallas as pl
from jax.experimental.pallas import tpu as pltpu


# MXU operand dtype.  jnp.bfloat16 runs at the native MXU rate on v6e/v7x and
# halves HBM traffic on the wide im2col reads; default stays f32 for exact
# parity with the f32 PyTorch reference (accumulation is f32 either way).
MATMUL_DTYPE = jnp.float32

_BN_EPS = 1e-5

_PARALLEL = pltpu.CompilerParams(dimension_semantics=("parallel",))
_ARBITRARY = pltpu.CompilerParams(dimension_semantics=("arbitrary",))


# ----------------------------------------------------------------------------
# Tiling helper
# ----------------------------------------------------------------------------
def _row_tile(n_rows, widest_cols, *, max_rows=512, budget_bytes=3 << 20):
    """Row tile that divides n_rows, is a multiple of 8 (TPU sublane) unless it
    is the whole array, and keeps a (tile, widest_cols) f32 block under
    `budget_bytes` so the double-buffered pipeline fits every TPU generation
    (v5e 16 MiB scoped VMEM, v7x 64 MiB physical VMEM)."""
    target = max(8, min(max_rows, n_rows, budget_bytes // max(1, widest_cols * 4)))
    for t in range(min(target, n_rows), 0, -1):
        if n_rows % t == 0 and (t % 8 == 0 or t == n_rows):
            return t
    return n_rows


# ----------------------------------------------------------------------------
# In-kernel math helpers
# ----------------------------------------------------------------------------
def _erf(x):
    # Abramowitz & Stegun 7.1.26 polynomial erf (max abs err ~1.5e-7): keeps
    # parity with torch.nn.GELU() (exact erf) without relying on a Mosaic erf
    # primitive.  The VALU work hides under the MXU matmuls it is fused with.
    a1, a2, a3, a4, a5 = 0.254829592, -0.284496736, 1.421413741, -1.453152027, 1.061405429
    p = 0.3275911
    sgn = jnp.where(x < 0.0, -1.0, 1.0)
    ax = jnp.abs(x)
    t = 1.0 / (1.0 + p * ax)
    poly = ((((a5 * t + a4) * t + a3) * t + a2) * t + a1) * t
    return sgn * (1.0 - poly * jnp.exp(-ax * ax))


def _gelu(x):
    return 0.5 * x * (1.0 + _erf(x * (1.0 / math.sqrt(2.0))))


# ----------------------------------------------------------------------------
# Pallas kernels
# ----------------------------------------------------------------------------
def _bn_stats_kernel(x_ref, sum_ref, sq_ref):
    # Per-channel sum / sum-of-squares, accumulated across the row-tile grid.
    @pl.when(pl.program_id(0) == 0)
    def _():
        sum_ref[...] = jnp.zeros_like(sum_ref)
        sq_ref[...] = jnp.zeros_like(sq_ref)

    x = x_ref[...]
    sum_ref[...] += jnp.sum(x, axis=0, keepdims=True)
    sq_ref[...] += jnp.sum(x * x, axis=0, keepdims=True)


def _qkv_kernel(p_ref, wq_ref, wk_ref, wv_ref, q_ref, k_ref, v_ref):
    # Shared im2col tile read once; three MXU matmuls against resident weights.
    p = p_ref[...].astype(MATMUL_DTYPE)
    q_ref[...] = jnp.dot(p, wq_ref[...].astype(MATMUL_DTYPE),
                         preferred_element_type=jnp.float32)
    k_ref[...] = jnp.dot(p, wk_ref[...].astype(MATMUL_DTYPE),
                         preferred_element_type=jnp.float32)
    v_ref[...] = jnp.dot(p, wv_ref[...].astype(MATMUL_DTYPE),
                         preferred_element_type=jnp.float32)


def _gdfn_kernel(p_ref, wg_ref, wi_ref, wr_ref, res_ref, o_ref):
    # Whole GDFN (post-BN) for one row tile:
    #   out = GELU(patch @ Wg) * (patch @ Wi) @ Wrec + residual
    p = p_ref[...].astype(MATMUL_DTYPE)
    g = jnp.dot(p, wg_ref[...].astype(MATMUL_DTYPE), preferred_element_type=jnp.float32)
    info = jnp.dot(p, wi_ref[...].astype(MATMUL_DTYPE), preferred_element_type=jnp.float32)
    gated = _gelu(g) * info
    o_ref[...] = (
        jnp.dot(gated.astype(MATMUL_DTYPE), wr_ref[...].astype(MATMUL_DTYPE),
                preferred_element_type=jnp.float32)
        + res_ref[...]
    )


def _conv1x1_residual_kernel(a_ref, w_ref, res_ref, o_ref):
    o_ref[...] = (
        jnp.dot(a_ref[...].astype(MATMUL_DTYPE), w_ref[...].astype(MATMUL_DTYPE),
                preferred_element_type=jnp.float32)
        + res_ref[...]
    )


def _attn_kernel(inv_scale_ref, q_ref, k_ref, v_ref, o_ref):
    # Per grid step: `hpg` (batch, head) pairs.  Q, K, V blocks are (hpg, HW, d)
    # in the reference module's layout; the output block is (hpg, d, HW), i.e.
    # already transposed per head (lane-dense stores, HW on the lane axis),
    # which is exactly what torch's .permute(0,1,3,2) wants downstream.
    inv_scale = inv_scale_ref[0]
    hpg = q_ref.shape[0]
    for h in range(hpg):
        q = q_ref[h]  # (HW, d)
        k = k_ref[h]  # (HW, d)
        v = v_ref[h]  # (HW, d)
        # St[c, i] = sum_hw Q[hw, c] K[hw, i]  ==  (torch scores S)[i, c]
        # ("TN" contraction over HW -- no materialized transpose of K).
        st = lax.dot_general(q, k, (((0,), (0,)), ((), ())),
                             preferred_element_type=jnp.float32)
        st = st * inv_scale                         # torch: scores / scale
        # Softmax over torch's last dim (= axis 0 of St).
        m = jnp.max(st, axis=0, keepdims=True)      # (1, d)
        e = jnp.exp(st - m)
        l = jnp.sum(e, axis=0, keepdims=True)       # (1, d)
        pt = e * pl.reciprocal(l)                   # pt[c, i] = P[i, c]
        # out^T[c, hw] = sum_i P[i, c] V[hw, i]   ("NT" contraction).
        o_ref[h] = lax.dot_general(pt, v, (((1,), (1,)), ((), ())),
                                   preferred_element_type=jnp.float32)


# ----------------------------------------------------------------------------
# pallas_call wrappers
# ----------------------------------------------------------------------------
def bn_batch_stats(x2):
    """Per-channel (mean, biased var) of the (B*H*W, C) pixel matrix."""
    n, c = x2.shape
    tm = _row_tile(n, c)
    s, sq = pl.pallas_call(
        _bn_stats_kernel,
        out_shape=(jax.ShapeDtypeStruct((1, c), jnp.float32),
                   jax.ShapeDtypeStruct((1, c), jnp.float32)),
        grid=(n // tm,),
        in_specs=[pl.BlockSpec((tm, c), lambda i: (i, 0))],
        out_specs=(pl.BlockSpec((1, c), lambda i: (0, 0)),
                   pl.BlockSpec((1, c), lambda i: (0, 0))),
        compiler_params=_ARBITRARY,   # reduction axis: output block is revisited
    )(x2)
    mean = s[0] / n
    var = jnp.maximum(sq[0] / n - mean * mean, 0.0)
    return mean, var


def qkv_project(patches, wq, wk, wv):
    n, kc = patches.shape
    c = wq.shape[1]
    tm = _row_tile(n, kc)
    w_spec = pl.BlockSpec((kc, c), lambda i: (0, 0))      # resident across grid
    out_sds = jax.ShapeDtypeStruct((n, c), jnp.float32)
    out_spec = pl.BlockSpec((tm, c), lambda i: (i, 0))
    return pl.pallas_call(
        _qkv_kernel,
        out_shape=(out_sds, out_sds, out_sds),
        grid=(n // tm,),
        in_specs=[pl.BlockSpec((tm, kc), lambda i: (i, 0)), w_spec, w_spec, w_spec],
        out_specs=(out_spec, out_spec, out_spec),
        compiler_params=_PARALLEL,
    )(patches, wq, wk, wv)


def gdfn_fused(patches, wg, wi, wrec, residual):
    n, kc = patches.shape
    ce = wg.shape[1]
    c = wrec.shape[1]
    # Widest per-row footprint: patch tile (kc) plus the two (tm, ce)
    # intermediates the compiler keeps in VMEM scratch.
    tm = _row_tile(n, kc + 2 * ce)
    # TODO(synk): for very large channel counts (C >= 384) the composed
    # (9C, CE) weights stop being "tiny"; a K-axis grid tile would be needed.
    return pl.pallas_call(
        _gdfn_kernel,
        out_shape=jax.ShapeDtypeStruct((n, c), jnp.float32),
        grid=(n // tm,),
        in_specs=[pl.BlockSpec((tm, kc), lambda i: (i, 0)),
                  pl.BlockSpec((kc, ce), lambda i: (0, 0)),
                  pl.BlockSpec((kc, ce), lambda i: (0, 0)),
                  pl.BlockSpec((ce, c), lambda i: (0, 0)),
                  pl.BlockSpec((tm, c), lambda i: (i, 0))],
        out_specs=pl.BlockSpec((tm, c), lambda i: (i, 0)),
        compiler_params=_PARALLEL,
    )(patches, wg, wi, wrec, residual)


def conv1x1_residual(x2, w, residual):
    n, cin = x2.shape
    cout = w.shape[1]
    tm = _row_tile(n, cin + cout)
    return pl.pallas_call(
        _conv1x1_residual_kernel,
        out_shape=jax.ShapeDtypeStruct((n, cout), jnp.float32),
        grid=(n // tm,),
        in_specs=[pl.BlockSpec((tm, cin), lambda i: (i, 0)),
                  pl.BlockSpec((cin, cout), lambda i: (0, 0)),
                  pl.BlockSpec((tm, cout), lambda i: (i, 0))],
        out_specs=pl.BlockSpec((tm, cout), lambda i: (i, 0)),
        compiler_params=_PARALLEL,
    )(x2, w, residual)


def attention(qf, kf, vf, inv_scale, heads):
    """qf/kf/vf: (B*heads, HW, d).  Returns per-head transposed output
    (B*heads, d, HW)."""
    bh, hw, d = qf.shape
    per_head_bytes = 4 * hw * d * 4                 # q, k, v, out blocks (f32)
    hpg = 1
    for cand in range(heads, 0, -1):                # several heads per grid step
        if bh % cand == 0 and cand * per_head_bytes <= (4 << 20):
            hpg = cand
            break
    return pl.pallas_call(
        _attn_kernel,
        out_shape=jax.ShapeDtypeStruct((bh, d, hw), jnp.float32),
        grid=(bh // hpg,),
        in_specs=[
            pl.BlockSpec(memory_space=pltpu.MemorySpace.SMEM),   # 1/scale scalar
            pl.BlockSpec((hpg, hw, d), lambda i: (i, 0, 0)),
            pl.BlockSpec((hpg, hw, d), lambda i: (i, 0, 0)),
            pl.BlockSpec((hpg, hw, d), lambda i: (i, 0, 0)),
        ],
        out_specs=pl.BlockSpec((hpg, d, hw), lambda i: (i, 0, 0)),
        compiler_params=_PARALLEL,                  # shards (b, h) pairs on v7x megacore
    )(inv_scale, qf, kf, vf)


# ----------------------------------------------------------------------------
# Glue: weight composition, im2col (with folded BN affine), params, forward
# ----------------------------------------------------------------------------
def compose_1x1_into_3x3(w1, w3):
    """conv3x3(conv1x1(x)) == conv3x3 with Wc[o,c,ky,kx] = sum_m w3[o,m,ky,kx]*w1[m,c].
    Exact (both bias-free; zero padding commutes with the 1x1).  Returned in
    im2col-matmul layout (9*Cin, Cout) with (ky, kx, cin) row ordering."""
    wc = jnp.einsum("omyx,mc->ocyx", w3, w1[:, :, 0, 0])
    cout, cin = wc.shape[0], wc.shape[1]
    return jnp.transpose(wc, (2, 3, 1, 0)).reshape(9 * cin, cout)


def im2col3x3_affine(x2, scale, shift, B, H, W, C):
    """(B*H*W, 9*C) patches of xn = x*scale + shift, zero-padded AFTER the
    affine (exactly Conv2d(padding=1) applied to the BatchNorm output).
    Column order (ky, kx, cin) matches compose_1x1_into_3x3."""
    x4 = x2.reshape(B, H, W, C) * scale + shift
    xp = jnp.pad(x4, ((0, 0), (1, 1), (1, 1), (0, 0)))
    cols = [xp[:, ky:ky + H, kx:kx + W, :] for ky in range(3) for kx in range(3)]
    p = jnp.stack(cols, axis=3)                     # (B, H, W, 9, C)
    return p.reshape(B * H * W, 9 * C)


def init_params(key, C, expansion_factor, heads):
    del heads  # head count does not change parameter shapes
    CE = C * expansion_factor
    ks = jax.random.split(key, 12)

    def conv_w(k, cout, cin, kh, kw):
        # PyTorch conv weight layout (Cout, Cin, kh, kw)
        return 0.1 * jax.random.normal(k, (cout, cin, kh, kw), jnp.float32)

    return {
        # MDTA
        "mdta_bn_gamma": jnp.ones((C,), jnp.float32),
        "mdta_bn_beta": jnp.zeros((C,), jnp.float32),
        "scale": jnp.ones((1,), jnp.float32),       # scale_parameter = ones(1)
        "q1": conv_w(ks[0], C, C, 1, 1), "q3": conv_w(ks[1], C, C, 3, 3),
        "k1": conv_w(ks[2], C, C, 1, 1), "k3": conv_w(ks[3], C, C, 3, 3),
        "v1": conv_w(ks[4], C, C, 1, 1), "v3": conv_w(ks[5], C, C, 3, 3),
        "o":  conv_w(ks[6], C, C, 1, 1),
        # GDFN
        "gdfn_bn_gamma": jnp.ones((C,), jnp.float32),
        "gdfn_bn_beta": jnp.zeros((C,), jnp.float32),
        "g1": conv_w(ks[7], CE, C, 1, 1), "g3": conv_w(ks[8], CE, CE, 3, 3),
        "i1": conv_w(ks[9], CE, C, 1, 1), "i3": conv_w(ks[10], CE, CE, 3, 3),
        "rec": conv_w(ks[11], C, CE, 1, 1),
    }


def transformer_block(x, params, heads):
    # x: NCHW (B, C, H, W), float32
    B, C, H, W = x.shape
    HW = H * W
    BHW = B * HW
    d = C // heads

    x2 = jnp.transpose(x, (0, 2, 3, 1)).reshape(BHW, C)  # channels-last pixel matrix

    def to_heads(y2):
        # Exact replica of torch `.reshape(B, heads, H*W, C//heads)` applied to
        # the NCHW projection output (it interleaves channel/spatial inside a
        # head exactly as the reference module does).
        y_nchw = jnp.transpose(y2.reshape(B, H, W, C), (0, 3, 1, 2))
        return y_nchw.reshape(B * heads, HW, d)

    # -------------------- MDTA --------------------
    mean, var = bn_batch_stats(x2)
    bn_s = params["mdta_bn_gamma"] * lax.rsqrt(var + _BN_EPS)
    bn_t = params["mdta_bn_beta"] - mean * bn_s
    patches = im2col3x3_affine(x2, bn_s, bn_t, B, H, W, C)       # (BHW, 9C)

    wq = compose_1x1_into_3x3(params["q1"], params["q3"])        # (9C, C)
    wk = compose_1x1_into_3x3(params["k1"], params["k3"])
    wv = compose_1x1_into_3x3(params["v1"], params["v3"])
    q2, k2, v2 = qkv_project(patches, wq, wk, wv)                # each (BHW, C)

    Q, K, V = to_heads(q2), to_heads(k2), to_heads(v2)           # (B*heads, HW, d)
    inv_scale = (1.0 / params["scale"]).astype(jnp.float32)      # (1,)
    aoT = attention(Q, K, V, inv_scale, heads)                   # (B*heads, d, HW)

    # torch: out.permute(0,1,3,2).reshape(B, C, H, W) — the permute was done
    # inside the attention kernel (lane-dense store), so this is a free reshape.
    ao_nchw = aoT.reshape(B, C, H, W)
    ao2 = jnp.transpose(ao_nchw, (0, 2, 3, 1)).reshape(BHW, C)

    # O (1x1 conv) + residual fused in one tiled kernel
    x2 = conv1x1_residual(ao2, params["o"][:, :, 0, 0].T, x2)

    # -------------------- GDFN --------------------
    mean, var = bn_batch_stats(x2)
    bn_s = params["gdfn_bn_gamma"] * lax.rsqrt(var + _BN_EPS)
    bn_t = params["gdfn_bn_beta"] - mean * bn_s
    patches = im2col3x3_affine(x2, bn_s, bn_t, B, H, W, C)       # (BHW, 9C)

    wg = compose_1x1_into_3x3(params["g1"], params["g3"])        # (9C, CE)
    wi = compose_1x1_into_3x3(params["i1"], params["i3"])
    wrec = params["rec"][:, :, 0, 0].T                           # (CE, C)
    x2 = gdfn_fused(patches, wg, wi, wrec, x2)                   # gate+info+GELU+rec+res

    return jnp.transpose(x2.reshape(B, H, W, C), (0, 3, 1, 2))   # back to NCHW


if __name__ == "__main__":
    key = jax.random.PRNGKey(0)
    kx, kp = jax.random.split(key)

    # Small but multi-tile: B*H*W = 2048 rows -> row-tile grids of 4 steps,
    # attention grid of 2 steps, so accumulation / pipelining paths are exercised.
    B, C, H, W = 2, 4, 32, 32
    expansion_factor, num_heads = 2, 2

    x = jax.random.normal(kx, (B, C, H, W), jnp.float32)
    params = init_params(kp, C, expansion_factor, num_heads)

    fwd = jax.jit(lambda inp: transformer_block(inp, params, num_heads))
    out = fwd(x)
    jax.block_until_ready(out)

    assert out.shape == (B, C, H, W) and out.dtype == jnp.float32
    assert bool(jnp.all(jnp.isfinite(out)))
    print("KERNEL_OK")
</pallas_src>

<mosaic_0001>
module attributes {stable_mosaic.version = 11 : i64} {
  func.func @_bn_stats_kernel(%arg0: i32, %arg1: memref<512x4xf32, #tpu.memory_space<vmem>>, %arg2: memref<1x4xf32, #tpu.memory_space<vmem>>, %arg3: memref<1x4xf32, #tpu.memory_space<vmem>>) attributes {dimension_semantics = [#tpu.dimension_semantics<arbitrary>], iteration_bounds = array<i64: 4>, scalar_prefetch = 0 : i64, scratch_operands = 0 : i64, tpu.core_type = #tpu.core_type<tc>, window_params = [{transform_indices = @transform_0, window_bounds = array<i64: 512, 4>}, {pipeline_mode = #tpu.pipeline_mode<synchronous>, transform_indices = @transform_1, window_bounds = array<i64: 1, 4>}, {pipeline_mode = #tpu.pipeline_mode<synchronous>, transform_indices = @transform_2, window_bounds = array<i64: 1, 4>}]} {
    %c0_i32 = arith.constant 0 : i32
    %0 = arith.cmpi eq, %arg0, %c0_i32 : i32
    %1 = arith.extui %0 : i1 to i32
    %c0_i32_0 = arith.constant 0 : i32
    %2 = arith.cmpi ne, %1, %c0_i32_0 : i32
    scf.if %2 {
      %cst_11 = arith.constant 0.000000e+00 : f32
      %15 = vector.broadcast %cst_11 : f32 to vector<1x4xf32>
      %c0_12 = arith.constant 0 : index
      %c0_13 = arith.constant 0 : index
      %16 = vector.load %arg2[%c0_12, %c0_13] : memref<1x4xf32, #tpu.memory_space<vmem>>, vector<1x4xf32>
      tpu.vector_store %arg2[%c0_12, %c0_13], %15 {strides = array<i32>} : memref<1x4xf32, #tpu.memory_space<vmem>>, vector<1x4xf32>,
      %cst_14 = arith.constant 0.000000e+00 : f32
      %17 = vector.broadcast %cst_14 : f32 to vector<1x4xf32>
      %c0_15 = arith.constant 0 : index
      %c0_16 = arith.constant 0 : index
      %18 = vector.load %arg3[%c0_15, %c0_16] : memref<1x4xf32, #tpu.memory_space<vmem>>, vector<1x4xf32>
      tpu.vector_store %arg3[%c0_15, %c0_16], %17 {strides = array<i32>} : memref<1x4xf32, #tpu.memory_space<vmem>>, vector<1x4xf32>,
    } else {
    }
    %c0 = arith.constant 0 : index
    %c0_1 = arith.constant 0 : index
    %3 = vector.load %arg1[%c0, %c0_1] : memref<512x4xf32, #tpu.memory_space<vmem>>, vector<512x4xf32>
    %c0_2 = arith.constant 0 : index
    %c0_3 = arith.constant 0 : index
    %4 = vector.load %arg2[%c0_2, %c0_3] : memref<1x4xf32, #tpu.memory_space<vmem>>, vector<1x4xf32>
    %cst = arith.constant dense<0.000000e+00> : vector<4xf32>
    %5 = vector.multi_reduction <add>, %3, %cst [0] : vector<512x4xf32> to vector<4xf32>
    %6 = vector.shape_cast %5 : vector<4xf32> to vector<1x4xf32>
    %7 = arith.addf %4, %6 : vector<1x4xf32>
    %c0_4 = arith.constant 0 : index
    %c0_5 = arith.constant 0 : index
    %8 = vector.load %arg2[%c0_4, %c0_5] : memref<1x4xf32, #tpu.memory_space<vmem>>, vector<1x4xf32>
    tpu.vector_store %arg2[%c0_4, %c0_5], %7 {strides = array<i32>} : memref<1x4xf32, #tpu.memory_space<vmem>>, vector<1x4xf32>,
    %c0_6 = arith.constant 0 : index
    %c0_7 = arith.constant 0 : index
    %9 = vector.load %arg3[%c0_6, %c0_7] : memref<1x4xf32, #tpu.memory_space<vmem>>, vector<1x4xf32>
    %10 = arith.mulf %3, %3 : vector<512x4xf32>
    %cst_8 = arith.constant dense<0.000000e+00> : vector<4xf32>
    %11 = vector.multi_reduction <add>, %10, %cst_8 [0] : vector<512x4xf32> to vector<4xf32>
    %12 = vector.shape_cast %11 : vector<4xf32> to vector<1x4xf32>
    %13 = arith.addf %9, %12 : vector<1x4xf32>
    %c0_9 = arith.constant 0 : index
    %c0_10 = arith.constant 0 : index
    %14 = vector.load %arg3[%c0_9, %c0_10] : memref<1x4xf32, #tpu.memory_space<vmem>>, vector<1x4xf32>
    tpu.vector_store %arg3[%c0_9, %c0_10], %13 {strides = array<i32>} : memref<1x4xf32, #tpu.memory_space<vmem>>, vector<1x4xf32>,
    return
  }
  func.func @transform_0(%arg0: i32) -> (i32, i32) {
    %c0_i32 = arith.constant 0 : i32
    %c0_i32_0 = arith.constant 0 : i32
    return %arg0, %c0_i32 : i32, i32
  }
  func.func @transform_1(%arg0: i32) -> (i32, i32) {
    %c0_i32 = arith.constant 0 : i32
    %c0_i32_0 = arith.constant 0 : i32
    %c0_i32_1 = arith.constant 0 : i32
    return %c0_i32, %c0_i32_0 : i32, i32
  }
  func.func @transform_2(%arg0: i32) -> (i32, i32) {
    %c0_i32 = arith.constant 0 : i32
    %c0_i32_0 = arith.constant 0 : i32
    %c0_i32_1 = arith.constant 0 : i32
    return %c0_i32, %c0_i32_0 : i32, i32
  }
}

module attributes {stable_mosaic.version = 11 : i64} {
  func.func @_qkv_kernel(%arg0: i32, %arg1: memref<512x36xf32, #tpu.memory_space<vmem>>, %arg2: memref<36x4xf32, #tpu.memory_space<vmem>>, %arg3: memref<36x4xf32, #tpu.memory_space<vmem>>, %arg4: memref<36x4xf32, #tpu.memory_space<vmem>>, %arg5: memref<512x4xf32, #tpu.memory_space<vmem>>, %arg6: memref<512x4xf32, #tpu.memory_space<vmem>>, %arg7: memref<512x4xf32, #tpu.memory_space<vmem>>) attributes {dimension_semantics = [#tpu.dimension_semantics<parallel>], iteration_bounds = array<i64: 4>, scalar_prefetch = 0 : i64, scratch_operands = 0 : i64, tpu.core_type = #tpu.core_type<tc>, window_params = [{transform_indices = @transform_0, window_bounds = array<i64: 512, 36>}, {pipeline_mode = #tpu.pipeline_mode<synchronous>, transform_indices = @transform_1, window_bounds = array<i64: 36, 4>}, {pipeline_mode = #tpu.pipeline_mode<synchronous>, transform_indices = @transform_2, window_bounds = array<i64: 36, 4>}, {pipeline_mode = #tpu.pipeline_mode<synchronous>, transform_indices = @transform_3, window_bounds = array<i64: 36, 4>}, {transform_indices = @transform_4, window_bounds = array<i64: 512, 4>}, {transform_indices = @transform_5, window_bounds = array<i64: 512, 4>}, {transform_indices = @transform_6, window_bounds = array<i64: 512, 4>}]} {
    %c0 = arith.constant 0 : index
    %c0_0 = arith.constant 0 : index
    %0 = vector.load %arg1[%c0, %c0_0] : memref<512x36xf32, #tpu.memory_space<vmem>>, vector<512x36xf32>
    %c0_1 = arith.constant 0 : index
    %c0_2 = arith.constant 0 : index
    %1 = vector.load %arg2[%c0_1, %c0_2] : memref<36x4xf32, #tpu.memory_space<vmem>>, vector<36x4xf32>
    %cst = arith.constant dense<0.000000e+00> : vector<512x4xf32>
    %2 = tpu.matmul %0, %1, %cst {dimension_numbers = #tpu.dot_dimension_numbers<[1], [0], [0], [1], [0, 0, 1, 1], [], []>} : vector<512x36xf32>, vector<36x4xf32>, vector<512x4xf32> -> vector<512x4xf32>
    %c0_3 = arith.constant 0 : index
    %c0_4 = arith.constant 0 : index
    %3 = vector.load %arg5[%c0_3, %c0_4] : memref<512x4xf32, #tpu.memory_space<vmem>>, vector<512x4xf32>
    tpu.vector_store %arg5[%c0_3, %c0_4], %2 {strides = array<i32>} : memref<512x4xf32, #tpu.memory_space<vmem>>, vector<512x4xf32>,
    %c0_5 = arith.constant 0 : index
    %c0_6 = arith.constant 0 : index
    %4 = vector.load %arg3[%c0_5, %c0_6] : memref<36x4xf32, #tpu.memory_space<vmem>>, vector<36x4xf32>
    %cst_7 = arith.constant dense<0.000000e+00> : vector<512x4xf32>
    %5 = tpu.matmul %0, %4, %cst_7 {dimension_numbers = #tpu.dot_dimension_numbers<[1], [0], [0], [1], [0, 0, 1, 1], [], []>} : vector<512x36xf32>, vector<36x4xf32>, vector<512x4xf32> -> vector<512x4xf32>
    %c0_8 = arith.constant 0 : index
    %c0_9 = arith.constant 0 : index
    %6 = vector.load %arg6[%c0_8, %c0_9] : memref<512x4xf32, #tpu.memory_space<vmem>>, vector<512x4xf32>
    tpu.vector_store %arg6[%c0_8, %c0_9], %5 {strides = array<i32>} : memref<512x4xf32, #tpu.memory_space<vmem>>, vector<512x4xf32>,
    %c0_10 = arith.constant 0 : index
    %c0_11 = arith.constant 0 : index
    %7 = vector.load %arg4[%c0_10, %c0_11] : memref<36x4xf32, #tpu.memory_space<vmem>>, vector<36x4xf32>
    %cst_12 = arith.constant dense<0.000000e+00> : vector<512x4xf32>
    %8 = tpu.matmul %0, %7, %cst_12 {dimension_numbers = #tpu.dot_dimension_numbers<[1], [0], [0], [1], [0, 0, 1, 1], [], []>} : vector<512x36xf32>, vector<36x4xf32>, vector<512x4xf32> -> vector<512x4xf32>
    %c0_13 = arith.constant 0 : index
    %c0_14 = arith.constant 0 : index
    %9 = vector.load %arg7[%c0_13, %c0_14] : memref<512x4xf32, #tpu.memory_space<vmem>>, vector<512x4xf32>
    tpu.vector_store %arg7[%c0_13, %c0_14], %8 {strides = array<i32>} : memref<512x4xf32, #tpu.memory_space<vmem>>, vector<512x4xf32>,
    return
  }
  func.func @transform_0(%arg0: i32) -> (i32, i32) {
    %c0_i32 = arith.constant 0 : i32
    %c0_i32_0 = arith.constant 0 : i32
    return %arg0, %c0_i32 : i32, i32
  }
  func.func @transform_1(%arg0: i32) -> (i32, i32) {
    %c0_i32 = arith.constant 0 : i32
    %c0_i32_0 = arith.constant 0 : i32
    %c0_i32_1 = arith.constant 0 : i32
    return %c0_i32, %c0_i32_0 : i32, i32
  }
  func.func @transform_2(%arg0: i32) -> (i32, i32) {
    %c0_i32 = arith.constant 0 : i32
    %c0_i32_0 = arith.constant 0 : i32
    %c0_i32_1 = arith.constant 0 : i32
    return %c0_i32, %c0_i32_0 : i32, i32
  }
  func.func @transform_3(%arg0: i32) -> (i32, i32) {
    %c0_i32 = arith.constant 0 : i32
    %c0_i32_0 = arith.constant 0 : i32
    %c0_i32_1 = arith.constant 0 : i32
    return %c0_i32, %c0_i32_0 : i32, i32
  }
  func.func @transform_4(%arg0: i32) -> (i32, i32) {
    %c0_i32 = arith.constant 0 : i32
    %c0_i32_0 = arith.constant 0 : i32
    return %arg0, %c0_i32 : i32, i32
  }
  func.func @transform_5(%arg0: i32) -> (i32, i32) {
    %c0_i32 = arith.constant 0 : i32
    %c0_i32_0 = arith.constant 0 : i32
    return %arg0, %c0_i32 : i32, i32
  }
  func.func @transform_6(%arg0: i32) -> (i32, i32) {
    %c0_i32 = arith.constant 0 : i32
    %c0_i32_0 = arith.constant 0 : i32
    return %arg0, %c0_i32 : i32, i32
  }
}

module attributes {stable_mosaic.version = 11 : i64} {
  func.func @_attn_kernel(%arg0: i32, %arg1: memref<1xf32, #tpu.memory_space<smem>>, %arg2: memref<2x1024x2xf32, #tpu.memory_space<vmem>>, %arg3: memref<2x1024x2xf32, #tpu.memory_space<vmem>>, %arg4: memref<2x1024x2xf32, #tpu.memory_space<vmem>>, %arg5: memref<2x2x1024xf32, #tpu.memory_space<vmem>>) attributes {dimension_semantics = [#tpu.dimension_semantics<parallel>], iteration_bounds = array<i64: 2>, scalar_prefetch = 0 : i64, scratch_operands = 0 : i64, tpu.core_type = #tpu.core_type<tc>, window_params = [{transform_indices = @transform_0, window_bounds = array<i64: 1>}, {transform_indices = @transform_1, window_bounds = array<i64: 2, 1024, 2>}, {transform_indices = @transform_2, window_bounds = array<i64: 2, 1024, 2>}, {transform_indices = @transform_3, window_bounds = array<i64: 2, 1024, 2>}, {transform_indices = @transform_4, window_bounds = array<i64: 2, 2, 1024>}]} {
    %c0 = arith.constant 0 : index
    %0 = memref.load %arg1[%c0] : memref<1xf32, #tpu.memory_space<smem>>
    %c0_0 = arith.constant 0 : index
    %c0_1 = arith.constant 0 : index
    %c0_2 = arith.constant 0 : index
    %1 = vector.load %arg2[%c0_0, %c0_1, %c0_2] : memref<2x1024x2xf32, #tpu.memory_space<vmem>>, vector<1x1024x2xf32>
    %2 = vector.shape_cast %1 : vector<1x1024x2xf32> to vector<1024x2xf32>
    %c0_3 = arith.constant 0 : index
    %c0_4 = arith.constant 0 : index
    %c0_5 = arith.constant 0 : index
    %3 = vector.load %arg3[%c0_3, %c0_4, %c0_5] : memref<2x1024x2xf32, #tpu.memory_space<vmem>>, vector<1x1024x2xf32>
    %4 = vector.shape_cast %3 : vector<1x1024x2xf32> to vector<1024x2xf32>
    %c0_6 = arith.constant 0 : index
    %c0_7 = arith.constant 0 : index
    %c0_8 = arith.constant 0 : index
    %5 = vector.load %arg4[%c0_6, %c0_7, %c0_8] : memref<2x1024x2xf32, #tpu.memory_space<vmem>>, vector<1x1024x2xf32>
    %6 = vector.shape_cast %5 : vector<1x1024x2xf32> to vector<1024x2xf32>
    %cst = arith.constant dense<0.000000e+00> : vector<2x2xf32>
    %7 = tpu.matmul %2, %4, %cst {dimension_numbers = #tpu.dot_dimension_numbers<[0], [0], [1], [1], [0, 1, 1, 1], [], []>} : vector<1024x2xf32>, vector<1024x2xf32>, vector<2x2xf32> -> vector<2x2xf32>
    %8 = vector.broadcast %0 : f32 to vector<2x2xf32>
    %9 = arith.mulf %7, %8 : vector<2x2xf32>
    %cst_9 = arith.constant dense<0xFF800000> : vector<2xf32>
    %10 = vector.multi_reduction <maximumf>, %9, %cst_9 [0] : vector<2x2xf32> to vector<2xf32>
    %11 = vector.shape_cast %10 : vector<2xf32> to vector<1x2xf32>
    %12 = vector.broadcast %11 : vector<1x2xf32> to vector<2x2xf32>
    %13 = arith.subf %9, %12 : vector<2x2xf32>
    %14 = math.exp %13 : vector<2x2xf32>
    %cst_10 = arith.constant dense<0.000000e+00> : vector<2xf32>
    %15 = vector.multi_reduction <add>, %14, %cst_10 [0] : vector<2x2xf32> to vector<2xf32>
    %16 = vector.shape_cast %15 : vector<2xf32> to vector<1x2xf32>
    %17 = tpu.reciprocal %16 : vector<1x2xf32> -> vector<1x2xf32>
    %18 = vector.broadcast %17 : vector<1x2xf32> to vector<2x2xf32>
    %19 = arith.mulf %14, %18 : vector<2x2xf32>
    %cst_11 = arith.constant dense<0.000000e+00> : vector<2x1024xf32>
    %20 = tpu.matmul %19, %6, %cst_11 {dimension_numbers = #tpu.dot_dimension_numbers<[1], [1], [0], [0], [0, 0, 1, 0], [], []>} : vector<2x2xf32>, vector<1024x2xf32>, vector<2x1024xf32> -> vector<2x1024xf32>
    %c0_12 = arith.constant 0 : index
    %c0_13 = arith.constant 0 : index
    %c0_14 = arith.constant 0 : index
    %21 = vector.load %arg5[%c0_12, %c0_13, %c0_14] : memref<2x2x1024xf32, #tpu.memory_space<vmem>>, vector<1x2x1024xf32>
    %22 = vector.shape_cast %21 : vector<1x2x1024xf32> to vector<2x1024xf32>
    %23 = vector.shape_cast %20 : vector<2x1024xf32> to vector<1x2x1024xf32>
    tpu.vector_store %arg5[%c0_12, %c0_13, %c0_14], %23 {strides = array<i32>} : memref<2x2x1024xf32, #tpu.memory_space<vmem>>, vector<1x2x1024xf32>,
    %c1 = arith.constant 1 : index
    %c0_15 = arith.constant 0 : index
    %c0_16 = arith.constant 0 : index
    %24 = vector.load %arg2[%c1, %c0_15, %c0_16] : memref<2x1024x2xf32, #tpu.memory_space<vmem>>, vector<1x1024x2xf32>
    %25 = vector.shape_cast %24 : vector<1x1024x2xf32> to vector<1024x2xf32>
    %c1_17 = arith.constant 1 : index
    %c0_18 = arith.constant 0 : index
    %c0_19 = arith.constant 0 : index
    %26 = vector.load %arg3[%c1_17, %c0_18, %c0_19] : memref<2x1024x2xf32, #tpu.memory_space<vmem>>, vector<1x1024x2xf32>
    %27 = vector.shape_cast %26 : vector<1x1024x2xf32> to vector<1024x2xf32>
    %c1_20 = arith.constant 1 : index
    %c0_21 = arith.constant 0 : index
    %c0_22 = arith.constant 0 : index
    %28 = vector.load %arg4[%c1_20, %c0_21, %c0_22] : memref<2x1024x2xf32, #tpu.memory_space<vmem>>, vector<1x1024x2xf32>
    %29 = vector.shape_cast %28 : vector<1x1024x2xf32> to vector<1024x2xf32>
    %cst_23 = arith.constant dense<0.000000e+00> : vector<2x2xf32>
    %30 = tpu.matmul %25, %27, %cst_23 {dimension_numbers = #tpu.dot_dimension_numbers<[0], [0], [1], [1], [0, 1, 1, 1], [], []>} : vector<1024x2xf32>, vector<1024x2xf32>, vector<2x2xf32> -> vector<2x2xf32>
    %31 = vector.broadcast %0 : f32 to vector<2x2xf32>
    %32 = arith.mulf %30, %31 : vector<2x2xf32>
    %cst_24 = arith.constant dense<0xFF800000> : vector<2xf32>
    %33 = vector.multi_reduction <maximumf>, %32, %cst_24 [0] : vector<2x2xf32> to vector<2xf32>
    %34 = vector.shape_cast %33 : vector<2xf32> to vector<1x2xf32>
    %35 = vector.broadcast %34 : vector<1x2xf32> to vector<2x2xf32>
    %36 = arith.subf %32, %35 : vector<2x2xf32>
    %37 = math.exp %36 : vector<2x2xf32>
    %cst_25 = arith.constant dense<0.000000e+00> : vector<2xf32>
    %38 = vector.multi_reduction <add>, %37, %cst_25 [0] : vector<2x2xf32> to vector<2xf32>
    %39 = vector.shape_cast %38 : vector<2xf32> to vector<1x2xf32>
    %40 = tpu.reciprocal %39 : vector<1x2xf32> -> vector<1x2xf32>
    %41 = vector.broadcast %40 : vector<1x2xf32> to vector<2x2xf32>
    %42 = arith.mulf %37, %41 : vector<2x2xf32>
    %cst_26 = arith.constant dense<0.000000e+00> : vector<2x1024xf32>
    %43 = tpu.matmul %42, %29, %cst_26 {dimension_numbers = #tpu.dot_dimension_numbers<[1], [1], [0], [0], [0, 0, 1, 0], [], []>} : vector<2x2xf32>, vector<1024x2xf32>, vector<2x1024xf32> -> vector<2x1024xf32>
    %c1_27 = arith.constant 1 : index
    %c0_28 = arith.constant 0 : index
    %c0_29 = arith.constant 0 : index
    %44 = vector.load %arg5[%c1_27, %c0_28, %c0_29] : memref<2x2x1024xf32, #tpu.memory_space<vmem>>, vector<1x2x1024xf32>
    %45 = vector.shape_cast %44 : vector<1x2x1024xf32> to vector<2x1024xf32>
    %46 = vector.shape_cast %43 : vector<2x1024xf32> to vector<1x2x1024xf32>
    tpu.vector_store %arg5[%c1_27, %c0_28, %c0_29], %46 {strides = array<i32>} : memref<2x2x1024xf32, #tpu.memory_space<vmem>>, vector<1x2x1024xf32>,
    return
  }
  func.func @transform_0(%arg0: i32) -> i32 {
    %c0_i32 = arith.constant 0 : i32
    %c0_i32_0 = arith.constant 0 : i32
    return %c0_i32 : i32
  }
  func.func @transform_1(%arg0: i32) -> (i32, i32, i32) {
    %c0_i32 = arith.constant 0 : i32
    %c0_i32_0 = arith.constant 0 : i32
    %c0_i32_1 = arith.constant 0 : i32
    return %arg0, %c0_i32, %c0_i32_0 : i32, i32, i32
  }
  func.func @transform_2(%arg0: i32) -> (i32, i32, i32) {
    %c0_i32 = arith.constant 0 : i32
    %c0_i32_0 = arith.constant 0 : i32
    %c0_i32_1 = arith.constant 0 : i32
    return %arg0, %c0_i32, %c0_i32_0 : i32, i32, i32
  }
  func.func @transform_3(%arg0: i32) -> (i32, i32, i32) {
    %c0_i32 = arith.constant 0 : i32
    %c0_i32_0 = arith.constant 0 : i32
    %c0_i32_1 = arith.constant 0 : i32
    return %arg0, %c0_i32, %c0_i32_0 : i32, i32, i32
  }
  func.func @transform_4(%arg0: i32) -> (i32, i32, i32) {
    %c0_i32 = arith.constant 0 : i32
    %c0_i32_0 = arith.constant 0 : i32
    %c0_i32_1 = arith.constant 0 : i32
    return %arg0, %c0_i32, %c0_i32_0 : i32, i32, i32
  }
}

module attributes {stable_mosaic.version = 11 : i64} {
  func.func @_conv1x1_residual_kernel(%arg0: i32, %arg1: memref<512x4xf32, #tpu.memory_space<vmem>>, %arg2: memref<4x4xf32, #tpu.memory_space<vmem>>, %arg3: memref<512x4xf32, #tpu.memory_space<vmem>>, %arg4: memref<512x4xf32, #tpu.memory_space<vmem>>) attributes {dimension_semantics = [#tpu.dimension_semantics<parallel>], iteration_bounds = array<i64: 4>, scalar_prefetch = 0 : i64, scratch_operands = 0 : i64, tpu.core_type = #tpu.core_type<tc>, window_params = [{transform_indices = @transform_0, window_bounds = array<i64: 512, 4>}, {pipeline_mode = #tpu.pipeline_mode<synchronous>, transform_indices = @transform_1, window_bounds = array<i64: 4, 4>}, {transform_indices = @transform_2, window_bounds = array<i64: 512, 4>}, {transform_indices = @transform_3, window_bounds = array<i64: 512, 4>}]} {
    %c0 = arith.constant 0 : index
    %c0_0 = arith.constant 0 : index
    %0 = vector.load %arg1[%c0, %c0_0] : memref<512x4xf32, #tpu.memory_space<vmem>>, vector<512x4xf32>
    %c0_1 = arith.constant 0 : index
    %c0_2 = arith.constant 0 : index
    %1 = vector.load %arg2[%c0_1, %c0_2] : memref<4x4xf32, #tpu.memory_space<vmem>>, vector<4x4xf32>
    %cst = arith.constant dense<0.000000e+00> : vector<512x4xf32>
    %2 = tpu.matmul %0, %1, %cst {dimension_numbers = #tpu.dot_dimension_numbers<[1], [0], [0], [1], [0, 0, 1, 1], [], []>} : vector<512x4xf32>, vector<4x4xf32>, vector<512x4xf32> -> vector<512x4xf32>
    %c0_3 = arith.constant 0 : index
    %c0_4 = arith.constant 0 : index
    %3 = vector.load %arg3[%c0_3, %c0_4] : memref<512x4xf32, #tpu.memory_space<vmem>>, vector<512x4xf32>
    %4 = arith.addf %2, %3 : vector<512x4xf32>
    %c0_5 = arith.constant 0 : index
    %c0_6 = arith.constant 0 : index
    %5 = vector.load %arg4[%c0_5, %c0_6] : memref<512x4xf32, #tpu.memory_space<vmem>>, vector<512x4xf32>
    tpu.vector_store %arg4[%c0_5, %c0_6], %4 {strides = array<i32>} : memref<512x4xf32, #tpu.memory_space<vmem>>, vector<512x4xf32>,
    return
  }
  func.func @transform_0(%arg0: i32) -> (i32, i32) {
    %c0_i32 = arith.constant 0 : i32
    %c0_i32_0 = arith.constant 0 : i32
    return %arg0, %c0_i32 : i32, i32
  }
  func.func @transform_1(%arg0: i32) -> (i32, i32) {
    %c0_i32 = arith.constant 0 : i32
    %c0_i32_0 = arith.constant 0 : i32
    %c0_i32_1 = arith.constant 0 : i32
    return %c0_i32, %c0_i32_0 : i32, i32
  }
  func.func @transform_2(%arg0: i32) -> (i32, i32) {
    %c0_i32 = arith.constant 0 : i32
    %c0_i32_0 = arith.constant 0 : i32
    return %arg0, %c0_i32 : i32, i32
  }
  func.func @transform_3(%arg0: i32) -> (i32, i32) {
    %c0_i32 = arith.constant 0 : i32
    %c0_i32_0 = arith.constant 0 : i32
    return %arg0, %c0_i32 : i32, i32
  }
}

module attributes {stable_mosaic.version = 11 : i64} {
  func.func @_gdfn_kernel(%arg0: i32, %arg1: memref<512x36xf32, #tpu.memory_space<vmem>>, %arg2: memref<36x8xf32, #tpu.memory_space<vmem>>, %arg3: memref<36x8xf32, #tpu.memory_space<vmem>>, %arg4: memref<8x4xf32, #tpu.memory_space<vmem>>, %arg5: memref<512x4xf32, #tpu.memory_space<vmem>>, %arg6: memref<512x4xf32, #tpu.memory_space<vmem>>) attributes {dimension_semantics = [#tpu.dimension_semantics<parallel>], iteration_bounds = array<i64: 4>, scalar_prefetch = 0 : i64, scratch_operands = 0 : i64, tpu.core_type = #tpu.core_type<tc>, window_params = [{transform_indices = @transform_0, window_bounds = array<i64: 512, 36>}, {pipeline_mode = #tpu.pipeline_mode<synchronous>, transform_indices = @transform_1, window_bounds = array<i64: 36, 8>}, {pipeline_mode = #tpu.pipeline_mode<synchronous>, transform_indices = @transform_2, window_bounds = array<i64: 36, 8>}, {pipeline_mode = #tpu.pipeline_mode<synchronous>, transform_indices = @transform_3, window_bounds = array<i64: 8, 4>}, {transform_indices = @transform_4, window_bounds = array<i64: 512, 4>}, {transform_indices = @transform_5, window_bounds = array<i64: 512, 4>}]} {
    %c0 = arith.constant 0 : index
    %c0_0 = arith.constant 0 : index
    %0 = vector.load %arg1[%c0, %c0_0] : memref<512x36xf32, #tpu.memory_space<vmem>>, vector<512x36xf32>
    %c0_1 = arith.constant 0 : index
    %c0_2 = arith.constant 0 : index
    %1 = vector.load %arg2[%c0_1, %c0_2] : memref<36x8xf32, #tpu.memory_space<vmem>>, vector<36x8xf32>
    %cst = arith.constant dense<0.000000e+00> : vector<512x8xf32>
    %2 = tpu.matmul %0, %1, %cst {dimension_numbers = #tpu.dot_dimension_numbers<[1], [0], [0], [1], [0, 0, 1, 1], [], []>} : vector<512x36xf32>, vector<36x8xf32>, vector<512x8xf32> -> vector<512x8xf32>
    %c0_3 = arith.constant 0 : index
    %c0_4 = arith.constant 0 : index
    %3 = vector.load %arg3[%c0_3, %c0_4] : memref<36x8xf32, #tpu.memory_space<vmem>>, vector<36x8xf32>
    %cst_5 = arith.constant dense<0.000000e+00> : vector<512x8xf32>
    %4 = tpu.matmul %0, %3, %cst_5 {dimension_numbers = #tpu.dot_dimension_numbers<[1], [0], [0], [1], [0, 0, 1, 1], [], []>} : vector<512x36xf32>, vector<36x8xf32>, vector<512x8xf32> -> vector<512x8xf32>
    %cst_6 = arith.constant 5.000000e-01 : f32
    %5 = vector.broadcast %cst_6 : f32 to vector<512x8xf32>
    %6 = arith.mulf %5, %2 : vector<512x8xf32>
    %cst_7 = arith.constant 0.707106769 : f32
    %7 = vector.broadcast %cst_7 : f32 to vector<512x8xf32>
    %8 = arith.mulf %2, %7 : vector<512x8xf32>
    %cst_8 = arith.constant 0.000000e+00 : f32
    %9 = vector.broadcast %cst_8 : f32 to vector<512x8xf32>
    %10 = arith.cmpf olt, %8, %9 : vector<512x8xf32>
    %cst_9 = arith.constant -1.000000e+00 : f32
    %cst_10 = arith.constant 1.000000e+00 : f32
    %11 = vector.broadcast %cst_9 : f32 to vector<512x8xf32>
    %12 = vector.broadcast %cst_10 : f32 to vector<512x8xf32>
    %13 = arith.select %10, %11, %12 : vector<512x8xi1>, vector<512x8xf32>
    %14 = math.absf %8 : vector<512x8xf32>
    %cst_11 = arith.constant 0.327591091 : f32
    %15 = vector.broadcast %cst_11 : f32 to vector<512x8xf32>
    %16 = arith.mulf %15, %14 : vector<512x8xf32>
    %cst_12 = arith.constant 1.000000e+00 : f32
    %17 = vector.broadcast %cst_12 : f32 to vector<512x8xf32>
    %18 = arith.addf %17, %16 : vector<512x8xf32>
    %cst_13 = arith.constant 1.000000e+00 : f32
    %19 = vector.broadcast %cst_13 : f32 to vector<512x8xf32>
    %20 = arith.divf %19, %18 : vector<512x8xf32>
    %cst_14 = arith.constant 1.06140542 : f32
    %21 = vector.broadcast %cst_14 : f32 to vector<512x8xf32>
    %22 = arith.mulf %21, %20 : vector<512x8xf32>
    %cst_15 = arith.constant -1.45315206 : f32
    %23 = vector.broadcast %cst_15 : f32 to vector<512x8xf32>
    %24 = arith.addf %22, %23 : vector<512x8xf32>
    %25 = arith.mulf %24, %20 : vector<512x8xf32>
    %cst_16 = arith.constant 1.42141378 : f32
    %26 = vector.broadcast %cst_16 : f32 to vector<512x8xf32>
    %27 = arith.addf %25, %26 : vector<512x8xf32>
    %28 = arith.mulf %27, %20 : vector<512x8xf32>
    %cst_17 = arith.constant -0.284496725 : f32
    %29 = vector.broadcast %cst_17 : f32 to vector<512x8xf32>
    %30 = arith.addf %28, %29 : vector<512x8xf32>
    %31 = arith.mulf %30, %20 : vector<512x8xf32>
    %cst_18 = arith.constant 0.254829586 : f32
    %32 = vector.broadcast %cst_18 : f32 to vector<512x8xf32>
    %33 = arith.addf %31, %32 : vector<512x8xf32>
    %34 = arith.mulf %33, %20 : vector<512x8xf32>
    %cst_19 = arith.constant 0.000000e+00 : f32
    %35 = vector.broadcast %cst_19 : f32 to vector<512x8xf32>
    %36 = arith.subf %35, %14 : vector<512x8xf32>
    %37 = arith.mulf %36, %14 : vector<512x8xf32>
    %38 = math.exp %37 : vector<512x8xf32>
    %39 = arith.mulf %34, %38 : vector<512x8xf32>
    %cst_20 = arith.constant 1.000000e+00 : f32
    %40 = vector.broadcast %cst_20 : f32 to vector<512x8xf32>
    %41 = arith.subf %40, %39 : vector<512x8xf32>
    %42 = arith.mulf %13, %41 : vector<512x8xf32>
    %cst_21 = arith.constant 1.000000e+00 : f32
    %43 = vector.broadcast %cst_21 : f32 to vector<512x8xf32>
    %44 = arith.addf %43, %42 : vector<512x8xf32>
    %45 = arith.mulf %6, %44 : vector<512x8xf32>
    %46 = arith.mulf %45, %4 : vector<512x8xf32>
    %c0_22 = arith.constant 0 : index
    %c0_23 = arith.constant 0 : index
    %47 = vector.load %arg4[%c0_22, %c0_23] : memref<8x4xf32, #tpu.memory_space<vmem>>, vector<8x4xf32>
    %cst_24 = arith.constant dense<0.000000e+00> : vector<512x4xf32>
    %48 = tpu.matmul %46, %47, %cst_24 {dimension_numbers = #tpu.dot_dimension_numbers<[1], [0], [0], [1], [0, 0, 1, 1], [], []>} : vector<512x8xf32>, vector<8x4xf32>, vector<512x4xf32> -> vector<512x4xf32>
    %c0_25 = arith.constant 0 : index
    %c0_26 = arith.constant 0 : index
    %49 = vector.load %arg5[%c0_25, %c0_26] : memref<512x4xf32, #tpu.memory_space<vmem>>, vector<512x4xf32>
    %50 = arith.addf %48, %49 : vector<512x4xf32>
    %c0_27 = arith.constant 0 : index
    %c0_28 = arith.constant 0 : index
    %51 = vector.load %arg6[%c0_27, %c0_28] : memref<512x4xf32, #tpu.memory_space<vmem>>, vector<512x4xf32>
    tpu.vector_store %arg6[%c0_27, %c0_28], %50 {strides = array<i32>} : memref<512x4xf32, #tpu.memory_space<vmem>>, vector<512x4xf32>,
    return
  }
  func.func @transform_0(%arg0: i32) -> (i32, i32) {
    %c0_i32 = arith.constant 0 : i32
    %c0_i32_0 = arith.constant 0 : i32
    return %arg0, %c0_i32 : i32, i32
  }
  func.func @transform_1(%arg0: i32) -> (i32, i32) {
    %c0_i32 = arith.constant 0 : i32
    %c0_i32_0 = arith.constant 0 : i32
    %c0_i32_1 = arith.constant 0 : i32
    return %c0_i32, %c0_i32_0 : i32, i32
  }
  func.func @transform_2(%arg0: i32) -> (i32, i32) {
    %c0_i32 = arith.constant 0 : i32
    %c0_i32_0 = arith.constant 0 : i32
    %c0_i32_1 = arith.constant 0 : i32
    return %c0_i32, %c0_i32_0 : i32, i32
  }
  func.func @transform_3(%arg0: i32) -> (i32, i32) {
    %c0_i32 = arith.constant 0 : i32
    %c0_i32_0 = arith.constant 0 : i32
    %c0_i32_1 = arith.constant 0 : i32
    return %c0_i32, %c0_i32_0 : i32, i32
  }
  func.func @transform_4(%arg0: i32) -> (i32, i32) {
    %c0_i32 = arith.constant 0 : i32
    %c0_i32_0 = arith.constant 0 : i32
    return %arg0, %c0_i32 : i32, i32
  }
  func.func @transform_5(%arg0: i32) -> (i32, i32) {
    %c0_i32 = arith.constant 0 : i32
    %c0_i32_0 = arith.constant 0 : i32
    return %arg0, %c0_i32 : i32, i32
  }
}

</mosaic_0001>

<bundles_post_ra>
// kernel: _lambda_.6
= control target key start
LH: loop header
LB: loop body
LE: loop exit
PB: predicated region body
PF: predicated region fallthrough
CT: control target
= control target key end

     0   :  { %s614_s9 = smov 0   ;;  %s1132_s0 = inlined_call_operand.vmem [shape: f32[2048,4], index: 0, kind: input, shape index: {}]   ;;  %s1133_s1 = inlined_call_operand.vmem [shape: f32[1,4], index: 1, kind: output, shape index: {0}]   ;;  %s1134_s2 = inlined_call_operand.vmem [shape: f32[1,4], index: 2, kind: output, shape index: {1}]  }
   0x1 LB: > { %s572_s10 = sadd.s32 4294967295, %s596_s9   ;;  %p575_p0 = scmp.ge.s32.totalorder %s596_s9, 1  ;;  %s596_s9 = sphi %s614_s9, %s13_s9  }
   0x2   : > { %p106_p1 = scmp.lt.s32.totalorder %s596_s9, 5 }
   0x4   : > { %p107_p2 = pnand %p575_p0, %p106_p1 }
   0x5   : > { %s576_s11 = sshll.u32 (!%p107_p2), %s572_s10, 6  ;;  %p578_p4 = scmp.ne.s32.totalorder (!%p107_p2), %s572_s10, 0 }
   0x6   : > { %110 = sbr.rel (%p107_p2) target bundleno = 184 (0xb8), region = 24  ;;  %p124_p3 = scmp.lt.s32.totalorder (!%p107_p2), %s576_s11, 255 }
   0xd   : > { %s1136_s11 = smov (!%p124_p3, %s576_s11), 255  ;;  %132 = sbr.rel (%p578_p4) target bundleno = 20 (0x14), region = 28 }
   0xe   : > { %s577_s12 = sshll.u32 %s1136_s11, 3  ;;  %vm133_vm0 = vcmask (!%p578_p4), 24576   ;;  %v598_v0 = vmov (!%p578_p4), 0.0  }
   0xf   : > { %s625_s15 = scalar_lea.vmem %s1132_s0, %s577_s12  ;;  %134 = vst.msk [vmem:[%s1133_s1] sm:$0x1] (!%p578_p4), %vm133_vm0, %v598_v0  ;;  %135 = vst.msk [vmem:[%s1134_s2] sm:$0x1] (!%p578_p4), %vm133_vm0, %v598_v0 }
  0x14 PF: > { %v136_v1 = vld [vmem:[%s625_s15] sm:$0xff]  ;;  %v137_v2 = vld [vmem:[%s625_s15 + $0x8] sm:$0xff]  ;;  %v138_v3 = vld [vmem:[%s625_s15 + $0x10] sm:$0xff]  ;;  %vm201_vm1 = vcmask 31744   ;;  %vm336_vm2 = vcmask 24576  }
  0x15   : > { %v202_v4 = vsel %vm201_vm1, %v136_v1, 0.0  ;;  %v203_v5 = vsel %vm201_vm1, %v137_v2, 0.0  ;;  %v205_v6 = vsel %vm201_vm1, %v138_v3, 0.0  ;;  %v139_v7 = vld [vmem:[%s625_s15 + $0x18] sm:$0xff]  ;;  %v140_v10 = vld [vmem:[%s625_s15 + $0x20] sm:$0xff]  ;;  %v141_v13 = vld [vmem:[%s625_s15 + $0x28] sm:$0xff]  ;;  %v339_v55 = vmul.f32 %v136_v1, %v136_v1 }
  0x16   : > { %v204_v8 = vadd.f32 %v203_v5, %v202_v4  ;;  %v207_v9 = vsel %vm201_vm1, %v139_v7, 0.0  ;;  %v209_v12 = vsel %vm201_vm1, %v140_v10, 0.0  ;;  %v211_v15 = vsel %vm201_vm1, %v141_v13, 0.0  ;;  %v646_v16 = vld [vmem:[%s625_s15 + $0x30] sm:$0xff]  ;;  %v651_v19 = vld [vmem:[%s625_s15 + $0x38] sm:$0xff]  ;;  %v656_v22 = vld [vmem:[%s625_s15 + $0x40] sm:$0xff] }
  0x17   : > { %v213_v18 = vsel %vm201_vm1, %v646_v16, 0.0  ;;  %v215_v21 = vsel %vm201_vm1, %v651_v19, 0.0  ;;  %v217_v24 = vsel %vm201_vm1, %v656_v22, 0.0  ;;  %v661_v25 = vld [vmem:[%s625_s15 + $0x48] sm:$0xff]  ;;  %v666_v28 = vld [vmem:[%s625_s15 + $0x50] sm:$0xff]  ;;  %v671_v31 = vld [vmem:[%s625_s15 + $0x58] sm:$0xff]  ;;  %v340_v58 = vmul.f32 %v137_v2, %v137_v2 }
  0x18   : > { %v206_v11 = vadd.f32 %v205_v6, %v204_v8  ;;  %v219_v27 = vsel %vm201_vm1, %v661_v25, 0.0  ;;  %v221_v30 = vsel %vm201_vm1, %v666_v28, 0.0  ;;  %v223_v33 = vsel %vm201_vm1, %v671_v31, 0.0  ;;  %v676_v34 = vld [vmem:[%s625_s15 + $0x60] sm:$0xff]  ;;  %v681_v37 = vld [vmem:[%s625_s15 + $0x68] sm:$0xff]  ;;  %v686_v40 = vld [vmem:[%s625_s15 + $0x70] sm:$0xff] }
  0x19   : > { %v225_v36 = vsel %vm201_vm1, %v676_v34, 0.0  ;;  %v227_v39 = vsel %vm201_vm1, %v681_v37, 0.0  ;;  %v229_v42 = vsel %vm201_vm1, %v686_v40, 0.0  ;;  %v691_v43 = vld [vmem:[%s625_s15 + $0x78] sm:$0xff]  ;;  %v696_v46 = vld [vmem:[%s625_s15 + $0x80] sm:$0xff]  ;;  %v701_v49 = vld [vmem:[%s625_s15 + $0x88] sm:$0xff]  ;;  %v341_v59 = vmul.f32 %v138_v3, %v138_v3 }
  0x1a   : > { %v208_v14 = vadd.f32 %v207_v9, %v206_v11  ;;  %v231_v45 = vsel %vm201_vm1, %v691_v43, 0.0  ;;  %v233_v48 = vsel %vm201_vm1, %v696_v46, 0.0  ;;  %v235_v51 = vsel %vm201_vm1, %v701_v49, 0.0  ;;  %v706_v52 = vld [vmem:[%s625_s15 + $0x90] sm:$0xff]  ;;  %v711_v56 = vld [vmem:[%s625_s15 + $0x98] sm:$0xff]  ;;  %v716_v61 = vld [vmem:[%s625_s15 + $0xa0] sm:$0xff] }
  0x1b   : > { %v237_v54 = vsel %vm201_vm1, %v706_v52, 0.0  ;;  %v239_v60 = vsel %vm201_vm1, %v711_v56, 0.0  ;;  %v342_v63 = vmul.f32 %v139_v7, %v139_v7  ;;  %v241_v0 = vsel %vm201_vm1, %v716_v61, 0.0  ;;  %v722_v1 = vld [vmem:[%s625_s15 + $0xa8] sm:$0xff]  ;;  %v729_v7 = vld [vmem:[%s625_s15 + $0xb0] sm:$0xff] }
  0x1c   : > { %v210_v17 = vadd.f32 %v209_v12, %v208_v14  ;;  %v403_v4 = vsel %vm201_vm1, %v339_v55, 0.0  ;;  %v343_v6 = vmul.f32 %v140_v10, %v140_v10  ;;  %v404_v2 = vsel %vm201_vm1, %v340_v58, 0.0 }
  0x1d   : > { %v406_v3 = vsel %vm201_vm1, %v341_v59, 0.0  ;;  %v243_v8 = vsel %vm201_vm1, %v722_v1, 0.0  ;;  %v405_v9 = vadd.f32 %v404_v2, %v403_v4  ;;  %v344_v12 = vmul.f32 %v141_v13, %v141_v13 }
  0x1e   : > { %v212_v20 = vadd.f32 %v211_v15, %v210_v17  ;;  %v408_v14 = vsel %vm201_vm1, %v342_v63, 0.0  ;;  %v245_v15 = vsel %vm201_vm1, %v729_v7, 0.0  ;;  %v735_v17 = vld [vmem:[%s625_s15 + $0xb8] sm:$0xff]  ;;  %v351_v63 = vmul.f32 %v676_v34, %v676_v34 }
  0x1f   : > { %v407_v10 = vadd.f32 %v406_v3, %v405_v9  ;;  %v352_v2 = vmul.f32 %v681_v37, %v681_v37  ;;  %v799_v9 = vld [vmem:[%s625_s15 + $0xf8] sm:$0xff] }
  0x20   : > { %v214_v23 = vadd.f32 %v213_v18, %v212_v20  ;;  %v345_v20 = vmul.f32 %v646_v16, %v646_v16 }
  0x21   : > { %v409_v13 = vadd.f32 %v408_v14, %v407_v10  ;;  %v426_v14 = vsel %vm201_vm1, %v351_v63, 0.0  ;;  %v807_v10 = vld [vmem:[%s625_s15 + $0x100] sm:$0xff]  ;;  %v360_v63 = vmul.f32 %v722_v1, %v722_v1 }
  0x22   : > { %v216_v26 = vadd.f32 %v215_v21, %v214_v23  ;;  %v410_v21 = vsel %vm201_vm1, %v343_v6, 0.0  ;;  %v247_v23 = vsel %vm201_vm1, %v735_v17, 0.0 }
  0x23   : > { %v411_v16 = vadd.f32 %v410_v21, %v409_v13  ;;  %v428_v21 = vsel %vm201_vm1, %v352_v2, 0.0  ;;  %v815_v13 = vld [vmem:[%s625_s15 + $0x108] sm:$0xff]  ;;  %v361_v2 = vmul.f32 %v729_v7, %v729_v7 }
  0x24   : > { %v218_v29 = vadd.f32 %v217_v24, %v216_v26  ;;  %v743_v24 = vld [vmem:[%s625_s15 + $0xc0] sm:$0xff] }
  0x26   : > { %v220_v32 = vadd.f32 %v219_v27, %v218_v29  ;;  %v346_v27 = vmul.f32 %v651_v19, %v651_v19  ;;  %v412_v29 = vsel %vm201_vm1, %v344_v12, 0.0  ;;  %v353_v12 = vmul.f32 %v686_v40, %v686_v40 }
  0x27   : > { %v413_v19 = vadd.f32 %v412_v29, %v411_v16  ;;  %v823_v16 = vld [vmem:[%s625_s15 + $0x110] sm:$0xff] }
  0x28   : > { %v222_v35 = vadd.f32 %v221_v30, %v220_v32  ;;  %v249_v30 = vsel %vm201_vm1, %v743_v24, 0.0  ;;  %v751_v32 = vld [vmem:[%s625_s15 + $0xc8] sm:$0xff]  ;;  %v430_v29 = vsel %vm201_vm1, %v353_v12, 0.0  ;;  %v362_v12 = vmul.f32 %v735_v17, %v735_v17 }
  0x2a   : > { %v224_v38 = vadd.f32 %v223_v33, %v222_v35  ;;  %v347_v35 = vmul.f32 %v656_v22, %v656_v22 }
  0x2c   : > { %v226_v41 = vadd.f32 %v225_v36, %v224_v38  ;;  %v414_v36 = vsel %vm201_vm1, %v345_v20, 0.0  ;;  %v251_v38 = vsel %vm201_vm1, %v751_v32, 0.0  ;;  %v354_v20 = vmul.f32 %v691_v43, %v691_v43 }
  0x2d   : > { %v415_v22 = vadd.f32 %v414_v36, %v413_v19  ;;  %v831_v19 = vld [vmem:[%s625_s15 + $0x118] sm:$0xff] }
  0x2e   : > { %v228_v44 = vadd.f32 %v227_v39, %v226_v41  ;;  %v759_v39 = vld [vmem:[%s625_s15 + $0xd0] sm:$0xff]  ;;  %v432_v36 = vsel %vm201_vm1, %v354_v20, 0.0  ;;  %v363_v20 = vmul.f32 %v743_v24, %v743_v24 }
  0x30   : > { %v230_v47 = vadd.f32 %v229_v42, %v228_v44  ;;  %v348_v42 = vmul.f32 %v661_v25, %v661_v25  ;;  %v416_v44 = vsel %vm201_vm1, %v346_v27, 0.0  ;;  %v355_v27 = vmul.f32 %v696_v46, %v696_v46 }
  0x31   : > { %v417_v25 = vadd.f32 %v416_v44, %v415_v22  ;;  %v839_v22 = vld [vmem:[%s625_s15 + $0x120] sm:$0xff] }
  0x32   : > { %v232_v50 = vadd.f32 %v231_v45, %v230_v47  ;;  %v253_v45 = vsel %vm201_vm1, %v759_v39, 0.0  ;;  %v767_v47 = vld [vmem:[%s625_s15 + $0xd8] sm:$0xff]  ;;  %v420_v58 = vsel %vm201_vm1, %v348_v42, 0.0  ;;  %v357_v42 = vmul.f32 %v706_v52, %v706_v52 }
  0x33   : > { %v434_v44 = vsel %vm201_vm1, %v355_v27, 0.0  ;;  %v364_v27 = vmul.f32 %v751_v32, %v751_v32 }
  0x34   : > { %v234_v53 = vadd.f32 %v233_v48, %v232_v50  ;;  %v349_v50 = vmul.f32 %v666_v28, %v666_v28 }
  0x36   : > { %v236_v57 = vadd.f32 %v235_v51, %v234_v53  ;;  %v418_v51 = vsel %vm201_vm1, %v347_v35, 0.0  ;;  %v255_v53 = vsel %vm201_vm1, %v767_v47, 0.0  ;;  %v356_v35 = vmul.f32 %v701_v49, %v701_v49 }
  0x37   : > { %v419_v28 = vadd.f32 %v418_v51, %v417_v25  ;;  %v847_v25 = vld [vmem:[%s625_s15 + $0x128] sm:$0xff] }
  0x38   : > { %v238_v62 = vadd.f32 %v237_v54, %v236_v57  ;;  %v775_v54 = vld [vmem:[%s625_s15 + $0xe0] sm:$0xff]  ;;  %v350_v57 = vmul.f32 %v671_v31, %v671_v31  ;;  %v436_v51 = vsel %vm201_vm1, %v356_v35, 0.0  ;;  %v365_v35 = vmul.f32 %v759_v39, %v759_v39 }
  0x39   : > { %v257_v59 = vsel %vm201_vm1, %v775_v54, 0.0  ;;  %v421_v31 = vadd.f32 %v420_v58, %v419_v28  ;;  %v438_v58 = vsel %vm201_vm1, %v357_v42, 0.0  ;;  %v855_v28 = vld [vmem:[%s625_s15 + $0x130] sm:$0xff]  ;;  %v366_v42 = vmul.f32 %v767_v47, %v767_v47 }
  0x3a   : > { %v240_v5 = vadd.f32 %v239_v60, %v238_v62  ;;  %v783_v60 = vld [vmem:[%s625_s15 + $0xe8] sm:$0xff]  ;;  %v424_v3 = vsel %vm201_vm1, %v350_v57, 0.0  ;;  %v359_v57 = vmul.f32 %v716_v61, %v716_v61 }
  0x3b   : > { %v259_v4 = vsel %vm201_vm1, %v783_v60, 0.0 }
  0x3c   : > { %v242_v11 = vadd.f32 %v241_v0, %v240_v5  ;;  %v422_v0 = vsel %vm201_vm1, %v349_v50, 0.0  ;;  %v791_v5 = vld [vmem:[%s625_s15 + $0xf0] sm:$0xff]  ;;  %v358_v50 = vmul.f32 %v711_v56, %v711_v56 }
  0x3d   : > { %v423_v34 = vadd.f32 %v422_v0, %v421_v31  ;;  %v863_v31 = vld [vmem:[%s625_s15 + $0x138] sm:$0xff] }
  0x3e   : > { %v244_v18 = vadd.f32 %v243_v8, %v242_v11  ;;  %v261_v8 = vsel %vm201_vm1, %v791_v5, 0.0  ;;  %v440_v0 = vsel %vm201_vm1, %v358_v50, 0.0  ;;  %v367_v50 = vmul.f32 %v775_v54, %v775_v54 }
  0x3f   : > { %v425_v37 = vadd.f32 %v424_v3, %v423_v34  ;;  %v442_v3 = vsel %vm201_vm1, %v359_v57, 0.0  ;;  %v871_v34 = vld [vmem:[%s625_s15 + $0x140] sm:$0xff]  ;;  %v368_v57 = vmul.f32 %v783_v60, %v783_v60 }
  0x40   : > { %v246_v26 = vadd.f32 %v245_v15, %v244_v18  ;;  %v263_v15 = vsel %vm201_vm1, %v799_v9, 0.0 }
  0x41   : > { %v427_v40 = vadd.f32 %v426_v14, %v425_v37  ;;  %v444_v14 = vsel %vm201_vm1, %v360_v63, 0.0  ;;  %v879_v37 = vld [vmem:[%s625_s15 + $0x148] sm:$0xff]  ;;  %v369_v63 = vmul.f32 %v791_v5, %v791_v5 }
  0x42   : > { %v248_v33 = vadd.f32 %v247_v23, %v246_v26  ;;  %v265_v23 = vsel %vm201_vm1, %v807_v10, 0.0 }
  0x43   : > { %v429_v43 = vadd.f32 %v428_v21, %v427_v40  ;;  %v446_v21 = vsel %vm201_vm1, %v361_v2, 0.0  ;;  %v887_v40 = vld [vmem:[%s625_s15 + $0x150] sm:$0xff]  ;;  %v370_v2 = vmul.f32 %v799_v9, %v799_v9 }
  0x44   : > { %v250_v41 = vadd.f32 %v249_v30, %v248_v33  ;;  %v267_v30 = vsel %vm201_vm1, %v815_v13, 0.0 }
  0x45   : > { %v431_v46 = vadd.f32 %v430_v29, %v429_v43  ;;  %v448_v29 = vsel %vm201_vm1, %v362_v12, 0.0  ;;  %v895_v43 = vld [vmem:[%s625_s15 + $0x158] sm:$0xff]  ;;  %v371_v12 = vmul.f32 %v807_v10, %v807_v10 }
  0x46   : > { %v252_v48 = vadd.f32 %v251_v38, %v250_v41  ;;  %v269_v38 = vsel %vm201_vm1, %v823_v16, 0.0 }
  0x47   : > { %v433_v49 = vadd.f32 %v432_v36, %v431_v46  ;;  %v450_v36 = vsel %vm201_vm1, %v363_v20, 0.0  ;;  %v903_v46 = vld [vmem:[%s625_s15 + $0x160] sm:$0xff]  ;;  %v372_v20 = vmul.f32 %v815_v13, %v815_v13 }
  0x48   : > { %v254_v55 = vadd.f32 %v253_v45, %v252_v48  ;;  %v271_v45 = vsel %vm201_vm1, %v831_v19, 0.0 }
  0x49   : > { %v435_v52 = vadd.f32 %v434_v44, %v433_v49  ;;  %v452_v44 = vsel %vm201_vm1, %v364_v27, 0.0  ;;  %v911_v49 = vld [vmem:[%s625_s15 + $0x168] sm:$0xff]  ;;  %v373_v27 = vmul.f32 %v823_v16, %v823_v16 }
  0x4a   : > { %v256_v62 = vadd.f32 %v255_v53, %v254_v55  ;;  %v273_v53 = vsel %vm201_vm1, %v839_v22, 0.0 }
  0x4b   : > { %v437_v56 = vadd.f32 %v436_v51, %v435_v52  ;;  %v454_v51 = vsel %vm201_vm1, %v365_v35, 0.0  ;;  %v919_v52 = vld [vmem:[%s625_s15 + $0x170] sm:$0xff]  ;;  %v374_v35 = vmul.f32 %v831_v19, %v831_v19 }
  0x4c   : > { %v258_v6 = vadd.f32 %v257_v59, %v256_v62  ;;  %v275_v59 = vsel %vm201_vm1, %v847_v25, 0.0 }
  0x4d   : > { %v439_v61 = vadd.f32 %v438_v58, %v437_v56  ;;  %v456_v58 = vsel %vm201_vm1, %v366_v42, 0.0  ;;  %v927_v56 = vld [vmem:[%s625_s15 + $0x178] sm:$0xff]  ;;  %v375_v42 = vmul.f32 %v839_v22, %v839_v22 }
  0x4e   : > { %v260_v11 = vadd.f32 %v259_v4, %v258_v6  ;;  %v277_v4 = vsel %vm201_vm1, %v855_v28, 0.0 }
  0x4f   : > { %v441_v1 = vadd.f32 %v440_v0, %v439_v61  ;;  %v458_v0 = vsel %vm201_vm1, %v367_v50, 0.0  ;;  %v935_v61 = vld [vmem:[%s625_s15 + $0x180] sm:$0xff]  ;;  %v376_v50 = vmul.f32 %v847_v25, %v847_v25 }
  0x50   : > { %v262_v18 = vadd.f32 %v261_v8, %v260_v11  ;;  %v279_v8 = vsel %vm201_vm1, %v863_v31, 0.0 }
  0x51   : > { %v443_v7 = vadd.f32 %v442_v3, %v441_v1  ;;  %v460_v3 = vsel %vm201_vm1, %v368_v57, 0.0  ;;  %v943_v1 = vld [vmem:[%s625_s15 + $0x188] sm:$0xff]  ;;  %v377_v57 = vmul.f32 %v855_v28, %v855_v28 }
  0x52   : > { %v264_v26 = vadd.f32 %v263_v15, %v262_v18  ;;  %v281_v15 = vsel %vm201_vm1, %v871_v34, 0.0 }
  0x53   : > { %v445_v17 = vadd.f32 %v444_v14, %v443_v7  ;;  %v462_v14 = vsel %vm201_vm1, %v369_v63, 0.0  ;;  %v951_v7 = vld [vmem:[%s625_s15 + $0x190] sm:$0xff]  ;;  %v378_v63 = vmul.f32 %v863_v31, %v863_v31 }
  0x54   : > { %v266_v33 = vadd.f32 %v265_v23, %v264_v26  ;;  %v283_v23 = vsel %vm201_vm1, %v879_v37, 0.0 }
  0x55   : > { %v447_v24 = vadd.f32 %v446_v21, %v445_v17  ;;  %v464_v21 = vsel %vm201_vm1, %v370_v2, 0.0  ;;  %v959_v17 = vld [vmem:[%s625_s15 + $0x198] sm:$0xff]  ;;  %v379_v2 = vmul.f32 %v871_v34, %v871_v34 }
  0x56   : > { %v268_v41 = vadd.f32 %v267_v30, %v266_v33  ;;  %v285_v30 = vsel %vm201_vm1, %v887_v40, 0.0 }
  0x57   : > { %v449_v32 = vadd.f32 %v448_v29, %v447_v24  ;;  %v466_v29 = vsel %vm201_vm1, %v371_v12, 0.0  ;;  %v967_v24 = vld [vmem:[%s625_s15 + $0x1a0] sm:$0xff]  ;;  %v380_v12 = vmul.f32 %v879_v37, %v879_v37 }
  0x58   : > { %v270_v48 = vadd.f32 %v269_v38, %v268_v41  ;;  %v287_v38 = vsel %vm201_vm1, %v895_v43, 0.0 }
  0x59   : > { %v451_v39 = vadd.f32 %v450_v36, %v449_v32  ;;  %v468_v36 = vsel %vm201_vm1, %v372_v20, 0.0  ;;  %v975_v32 = vld [vmem:[%s625_s15 + $0x1a8] sm:$0xff]  ;;  %v381_v20 = vmul.f32 %v887_v40, %v887_v40 }
  0x5a   : > { %v272_v55 = vadd.f32 %v271_v45, %v270_v48  ;;  %v289_v45 = vsel %vm201_vm1, %v903_v46, 0.0 }
  0x5b   : > { %v453_v47 = vadd.f32 %v452_v44, %v451_v39  ;;  %v470_v44 = vsel %vm201_vm1, %v373_v27, 0.0  ;;  %v983_v39 = vld [vmem:[%s625_s15 + $0x1b0] sm:$0xff]  ;;  %v382_v27 = vmul.f32 %v895_v43, %v895_v43 }
  0x5c   : > { %v274_v62 = vadd.f32 %v273_v53, %v272_v55  ;;  %v291_v53 = vsel %vm201_vm1, %v911_v49, 0.0  ;;  %v1047_v43 = vld [vmem:[%s625_s15 + $0x1f0] sm:$0xff] }
  0x5d   : > { %v455_v54 = vadd.f32 %v454_v51, %v453_v47  ;;  %v472_v51 = vsel %vm201_vm1, %v374_v35, 0.0  ;;  %v991_v47 = vld [vmem:[%s625_s15 + $0x1b8] sm:$0xff]  ;;  %v383_v35 = vmul.f32 %v903_v46, %v903_v46 }
  0x5e   : > { %v276_v6 = vadd.f32 %v275_v59, %v274_v62  ;;  %v293_v59 = vsel %vm201_vm1, %v919_v52, 0.0 }
  0x5f   : > { %v457_v60 = vadd.f32 %v456_v58, %v455_v54  ;;  %v474_v58 = vsel %vm201_vm1, %v375_v42, 0.0  ;;  %v999_v54 = vld [vmem:[%s625_s15 + $0x1c0] sm:$0xff]  ;;  %v384_v42 = vmul.f32 %v911_v49, %v911_v49  ;;  %v386_v49 = vmul.f32 %v927_v56, %v927_v56 }
  0x60   : > { %v278_v11 = vadd.f32 %v277_v4, %v276_v6  ;;  %v295_v4 = vsel %vm201_vm1, %v927_v56, 0.0  ;;  %v389_v56 = vmul.f32 %v951_v7, %v951_v7 }
  0x61   : > { %v459_v5 = vadd.f32 %v458_v0, %v457_v60  ;;  %v476_v0 = vsel %vm201_vm1, %v376_v50, 0.0  ;;  %v1007_v60 = vld [vmem:[%s625_s15 + $0x1c8] sm:$0xff]  ;;  %v385_v50 = vmul.f32 %v919_v52, %v919_v52 }
  0x62   : > { %v280_v18 = vadd.f32 %v279_v8, %v278_v11  ;;  %v297_v8 = vsel %vm201_vm1, %v935_v61, 0.0 }
  0x63   : > { %v461_v9 = vadd.f32 %v460_v3, %v459_v5  ;;  %v478_v3 = vsel %vm201_vm1, %v377_v57, 0.0  ;;  %v1015_v5 = vld [vmem:[%s625_s15 + $0x1d0] sm:$0xff]  ;;  %v492_v57 = vsel %vm201_vm1, %v384_v42, 0.0 }
  0x64   : > { %v282_v26 = vadd.f32 %v281_v15, %v280_v18  ;;  %v299_v15 = vsel %vm201_vm1, %v943_v1, 0.0 }
  0x65   : > { %v463_v10 = vadd.f32 %v462_v14, %v461_v9  ;;  %v480_v14 = vsel %vm201_vm1, %v378_v63, 0.0  ;;  %v1023_v9 = vld [vmem:[%s625_s15 + $0x1d8] sm:$0xff] }
  0x66   : > { %v284_v33 = vadd.f32 %v283_v23, %v282_v26  ;;  %v301_v23 = vsel %vm201_vm1, %v951_v7, 0.0  ;;  %v392_v7 = vmul.f32 %v975_v32, %v975_v32 }
  0x67   : > { %v465_v13 = vadd.f32 %v464_v21, %v463_v10  ;;  %v482_v21 = vsel %vm201_vm1, %v379_v2, 0.0  ;;  %v1031_v10 = vld [vmem:[%s625_s15 + $0x1e0] sm:$0xff] }
  0x68   : > { %v286_v41 = vadd.f32 %v285_v30, %v284_v33  ;;  %v303_v30 = vsel %vm201_vm1, %v959_v17, 0.0 }
  0x69   : > { %v467_v16 = vadd.f32 %v466_v29, %v465_v13  ;;  %v484_v29 = vsel %vm201_vm1, %v380_v12, 0.0  ;;  %v1039_v13 = vld [vmem:[%s625_s15 + $0x1e8] sm:$0xff] }
  0x6a   : > { %v288_v48 = vadd.f32 %v287_v38, %v286_v41  ;;  %v305_v38 = vsel %vm201_vm1, %v967_v24, 0.0 }
  0x6b   : > { %v469_v19 = vadd.f32 %v468_v36, %v467_v16  ;;  %v486_v36 = vsel %vm201_vm1, %v381_v20, 0.0 }
  0x6c   : > { %v290_v55 = vadd.f32 %v289_v45, %v288_v48  ;;  %v307_v45 = vsel %vm201_vm1, %v975_v32, 0.0  ;;  %v508_v32 = vsel %vm201_vm1, %v392_v7, 0.0 }
  0x6d   : > { %v471_v22 = vadd.f32 %v470_v44, %v469_v19  ;;  %v488_v44 = vsel %vm201_vm1, %v382_v27, 0.0  ;;  %v394_v27 = vmul.f32 %v991_v47, %v991_v47 }
  0x6e   : > { %v292_v62 = vadd.f32 %v291_v53, %v290_v55  ;;  %v309_v53 = vsel %vm201_vm1, %v983_v39, 0.0 }
  0x6f   : > { %v473_v25 = vadd.f32 %v472_v51, %v471_v22  ;;  %v490_v51 = vsel %vm201_vm1, %v383_v35, 0.0  ;;  %v512_v35 = vsel %vm201_vm1, %v394_v27, 0.0 }
  0x70   : > { %v294_v6 = vadd.f32 %v293_v59, %v292_v62  ;;  %v311_v59 = vsel %vm201_vm1, %v991_v47, 0.0 }
  0x71   : > { %v475_v28 = vadd.f32 %v474_v58, %v473_v25  ;;  %v387_v25 = vmul.f32 %v935_v61, %v935_v61  ;;  %v390_v61 = vmul.f32 %v959_v17, %v959_v17  ;;  %v200_v17 = vld [vmem:[%s1133_s1] sm:$0x1] }
  0x72   : > { %v296_v11 = vadd.f32 %v295_v4, %v294_v6  ;;  %v313_v4 = vsel %vm201_vm1, %v999_v54, 0.0 }
  0x73   : > { %v477_v31 = vadd.f32 %v476_v0, %v475_v28  ;;  %v388_v0 = vmul.f32 %v943_v1, %v943_v1  ;;  %v498_v2 = vsel %vm201_vm1, %v387_v25, 0.0  ;;  %v391_v1 = vmul.f32 %v967_v24, %v967_v24 }
  0x74   : > { %v298_v18 = vadd.f32 %v297_v8, %v296_v11  ;;  %v315_v8 = vsel %vm201_vm1, %v1007_v60, 0.0 }
  0x75   : > { %v479_v34 = vadd.f32 %v478_v3, %v477_v31  ;;  %v500_v31 = vsel %vm201_vm1, %v388_v0, 0.0  ;;  %v506_v24 = vsel %vm201_vm1, %v391_v1, 0.0 }
  0x76   : > { %v300_v26 = vadd.f32 %v299_v15, %v298_v18  ;;  %v317_v15 = vsel %vm201_vm1, %v1015_v5, 0.0 }
  0x77   : > { %v481_v37 = vadd.f32 %v480_v14, %v479_v34  ;;  %v502_v14 = vsel %vm201_vm1, %v389_v56, 0.0 }
  0x78   : > { %v302_v33 = vadd.f32 %v301_v23, %v300_v26  ;;  %v319_v23 = vsel %vm201_vm1, %v1023_v9, 0.0 }
  0x79   : > { %v483_v40 = vadd.f32 %v482_v21, %v481_v37 }
  0x7a   : > { %v304_v41 = vadd.f32 %v303_v30, %v302_v33  ;;  %v321_v30 = vsel %vm201_vm1, %v1031_v10, 0.0 }
  0x7b   : > { %v485_v16 = vadd.f32 %v484_v29, %v483_v40 }
  0x7c   : > { %v306_v48 = vadd.f32 %v305_v38, %v304_v41  ;;  %v323_v38 = vsel %vm201_vm1, %v1039_v13, 0.0 }
  0x7d   : > { %v487_v19 = vadd.f32 %v486_v36, %v485_v16  ;;  %v397_v36 = vmul.f32 %v1015_v5, %v1015_v5 }
  0x7e   : > { %v308_v55 = vadd.f32 %v307_v45, %v306_v48  ;;  %v325_v45 = vsel %vm201_vm1, %v1047_v43, 0.0  ;;  %v1055_v48 = vld [vmem:[%s625_s15 + $0x1f8] sm:$0xff] }
  0x7f   : > { %v489_v22 = vadd.f32 %v488_v44, %v487_v19  ;;  %v399_v44 = vmul.f32 %v1031_v10, %v1031_v10  ;;  %v400_v19 = vmul.f32 %v1039_v13, %v1039_v13 }
  0x80   : > { %v310_v62 = vadd.f32 %v309_v53, %v308_v55  ;;  %v327_v53 = vsel %vm201_vm1, %v1055_v48, 0.0 }
  0x81   : > { %v491_v58 = vadd.f32 %v490_v51, %v489_v22  ;;  %v524_v10 = vsel %vm201_vm1, %v400_v19, 0.0 }
  0x82   : > { %v312_v6 = vadd.f32 %v311_v59, %v310_v62  ;;  %v494_v62 = vsel %vm201_vm1, %v385_v50, 0.0  ;;  %v401_v50 = vmul.f32 %v1047_v43, %v1047_v43 }
  0x83   : > { %v493_v52 = vadd.f32 %v492_v57, %v491_v58 }
  0x84   : > { %v314_v11 = vadd.f32 %v313_v4, %v312_v6  ;;  %v496_v4 = vsel %vm201_vm1, %v386_v49, 0.0 }
  0x85   : > { %v495_v28 = vadd.f32 %v494_v62, %v493_v52 }
  0x86   : > { %v316_v18 = vadd.f32 %v315_v8, %v314_v11 }
  0x87   : > { %v497_v3 = vadd.f32 %v496_v4, %v495_v28 }
  0x88   : > { %v318_v26 = vadd.f32 %v317_v15, %v316_v18  ;;  %v504_v18 = vsel %vm201_vm1, %v390_v61, 0.0 }
  0x89   : > { %v499_v11 = vadd.f32 %v498_v2, %v497_v3 }
  0x8a   : > { %v320_v33 = vadd.f32 %v319_v23, %v318_v26  ;;  %v393_v23 = vmul.f32 %v983_v39, %v983_v39 }
  0x8b   : > { %v501_v15 = vadd.f32 %v500_v31, %v499_v11 }
  0x8c   : > { %v322_v41 = vadd.f32 %v321_v30, %v320_v33  ;;  %v395_v30 = vmul.f32 %v999_v54, %v999_v54  ;;  %v510_v39 = vsel %vm201_vm1, %v393_v23, 0.0  ;;  %v396_v33 = vmul.f32 %v1007_v60, %v1007_v60 }
  0x8d   : > { %v503_v20 = vadd.f32 %v502_v14, %v501_v15  ;;  %v518_v60 = vsel %vm201_vm1, %v397_v36, 0.0 }
  0x8e   : > { %v324_v46 = vadd.f32 %v323_v38, %v322_v41  ;;  %v514_v38 = vsel %vm201_vm1, %v395_v30, 0.0  ;;  %v398_v41 = vmul.f32 %v1023_v9, %v1023_v9  ;;  %v516_v54 = vsel %vm201_vm1, %v396_v33, 0.0 }
  0x8f   : > { %v505_v37 = vadd.f32 %v504_v18, %v503_v20  ;;  %v522_v9 = vsel %vm201_vm1, %v399_v44, 0.0 }
  0x90   : > { %v326_v55 = vadd.f32 %v325_v45, %v324_v46  ;;  %v520_v5 = vsel %vm201_vm1, %v398_v41, 0.0 }
  0x91   : > { %v507_v29 = vadd.f32 %v506_v24, %v505_v37 }
  0x92   : > { %v328_v59 = vadd.f32 %v327_v53, %v326_v55  ;;  %v402_v53 = vmul.f32 %v1055_v48, %v1055_v48  ;;  %v526_v55 = vsel %vm201_vm1, %v401_v50, 0.0 }
  0x93   : > { %v509_v40 = vadd.f32 %v508_v32, %v507_v29 }
  0x94   : > { %v329_v63 = vrot.slane %v328_v59, 4  ;;  %v528_v13 = vsel %vm201_vm1, %v402_v53, 0.0 }
  0x95   : > { %v511_v47 = vadd.f32 %v510_v39, %v509_v40 }
  0x96   : > { %v330_v6 = vadd.f32 %v329_v63, %v328_v59  ;;  %v338_v63 = vld [vmem:[%s1134_s2] sm:$0x1] }
  0x97   : > { %v513_v16 = vadd.f32 %v512_v35, %v511_v47 }
  0x98   : > { %v331_v8 = vrot.slane %v330_v6, 2 }
  0x99   : > { %v515_v42 = vadd.f32 %v514_v38, %v513_v16 }
  0x9a   : > { %v332_v12 = vadd.f32 %v331_v8, %v330_v6 }
  0x9b   : > { %v517_v45 = vadd.f32 %v516_v54, %v515_v42 }
  0x9c   : > { %v333_v34 = vrot.slane %v332_v12, 1 }
  0x9d   : > { %v519_v46 = vadd.f32 %v518_v60, %v517_v45 }
  0x9e   : > { %v334_v21 = vadd.f32 %v333_v34, %v332_v12 }
  0x9f   : > { %v521_v51 = vadd.f32 %v520_v5, %v519_v46 }
  0xa0   : > { %v335_v26 = vadd.f32 %v334_v21, %v200_v17 }
  0xa1   : > { %v523_v22 = vadd.f32 %v522_v9, %v521_v51 }
  0xa2   : > { %337 = vst.msk [vmem:[%s1133_s1] sm:$0x1] %vm336_vm2, %v335_v26 }
  0xa3   : > { %v525_v49 = vadd.f32 %v524_v10, %v523_v22 }
  0xa5   : > { %v527_v57 = vadd.f32 %v526_v55, %v525_v49 }
  0xa7   : > { %v529_v58 = vadd.f32 %v528_v13, %v527_v57 }
  0xa9   : > { %v530_v59 = vrot.slane %v529_v58, 4 }
  0xab   : > { %v531_v25 = vadd.f32 %v530_v59, %v529_v58 }
  0xad   : > { %v532_v62 = vrot.slane %v531_v25, 2 }
  0xaf   : > { %v533_v43 = vadd.f32 %v532_v62, %v531_v25 }
  0xb1   : > { %v534_v52 = vrot.slane %v533_v43, 1 }
  0xb3   : > { %v535_v48 = vadd.f32 %v534_v52, %v533_v43 }
  0xb5   : > { %v536_v0 = vadd.f32 %v535_v48, %v338_v63 }
  0xb7   : > { %537 = vst.msk [vmem:[%s1134_s2] sm:$0x1] %vm336_vm2, %v536_v0 }
  0xb8 PF: > { %s13_s9 = sadd.s32 1, %s596_s9  }
  0xb9   : > { %p10_p5 = scmp.ge.s32.totalorder %s13_s9, 6  }
  0xbb   :  { %12 = sbr.rel (!%p10_p5) target bundleno = 1 (0x1), region = 62 }

// kernel: _lambda_.7
= control target key start
LH: loop header
LB: loop body
LE: loop exit
PB: predicated region body
PF: predicated region fallthrough
CT: control target
= control target key end

     0   :  { %s2852_s21 = smov 0   ;;  %s3902_s0 = inlined_call_operand.vmem [shape: f32[2048,36], index: 0, kind: input, shape index: {}]   ;;  %s3903_s1 = inlined_call_operand.vmem [shape: f32[36,4], index: 1, kind: input, shape index: {}]   ;;  %s3904_s2 = inlined_call_operand.vmem [shape: f32[36,4], index: 2, kind: input, shape index: {}]   ;;  %s3905_s3 = inlined_call_operand.vmem [shape: f32[36,4], index: 3, kind: input, shape index: {}]   ;;  %s3906_s4 = inlined_call_operand.vmem [shape: f32[2048,4], index: 4, kind: output, shape index: {0}]   ;;  %s3907_s5 = inlined_call_operand.vmem [shape: f32[2048,4], index: 5, kind: output, shape index: {1}]   ;;  %s3908_s6 = inlined_call_operand.vmem [shape: f32[2048,4], index: 6, kind: output, shape index: {2}]  }
   0x1 LB: > { %s2036_s22 = sadd.s32 4294967295, %s2815_s21   ;;  %p2040_p0 = scmp.ge.s32.totalorder %s2815_s21, 1  ;;  %s2815_s21 = sphi %s2852_s21, %s17_s21  }
   0x2   : > { %p218_p1 = scmp.lt.s32.totalorder %s2815_s21, 5 }
   0x4   : > { %p219_p2 = pnand %p2040_p0, %p218_p1 }
   0x5   : > { %v346_v0 = vld [vmem:[%s3903_s1] sm:$0xff] (!%p219_p2)  ;;  %v347_v1 = vld [vmem:[%s3903_s1 + $0x8] sm:$0xff] (!%p219_p2)  ;;  %v348_v2 = vld [vmem:[%s3903_s1 + $0x10] sm:$0xff] (!%p219_p2)  ;;  %s2041_s29 = sshll.u32 (!%p219_p2), %s2036_s22, 6  ;;  %vm544_vm0 = vcmask (!%p219_p2), 1043456   ;;  %vm351_vm1 = vcmask (!%p219_p2), 293888  }
   0x6   : > { %222 = sbr.rel (%p219_p2) target bundleno = 421 (0x1a5), region = 36  ;;  %v2771_v3 = vpack.c.bf16 (!%p219_p2), %v347_v1, %v346_v0  ;;  %v349_v4 = vld [vmem:[%s3903_s1 + $0x18] sm:$0xff] (!%p219_p2)  ;;  %p259_p3 = scmp.lt.s32.totalorder (!%p219_p2), %s2041_s29, 255  ;;  %v350_v6 = vld [vmem:[%s3903_s1 + $0x20] sm:$0xf] (!%p219_p2)  ;;  %v999_v8 = vld [vmem:[%s3904_s2 + $0x8] sm:$0xff] (!%p219_p2) }
   0x7   : > { %v2775_v5 = vpack.c.bf16 (!%p219_p2), %v349_v4, %v348_v2  ;;  %v998_v7 = vld [vmem:[%s3904_s2] sm:$0xff] (!%p219_p2)  ;;  %v1456_v12 = vld [vmem:[%s3905_s3 + $0x8] sm:$0xff] (!%p219_p2)  ;;  %v1000_v17 = vld [vmem:[%s3904_s2 + $0x10] sm:$0xff] (!%p219_p2)  ;;  %vm933_vm2 = vcmask (!%p219_p2), 31744  }
   0x8   : > { %2772 = vmatprep.subr.bf16.mxu0 (!%p219_p2), %v2771_v3  ;;  %2795 = vmatprep.subr.bf16.mxu1 (!%p219_p2), %v2771_v3  ;;  %v1455_v9 = vld [vmem:[%s3905_s3] sm:$0xff] (!%p219_p2)  ;;  %v2779_v15 = vpack.c.bf16 (!%p219_p2), %v999_v8, %v998_v7  ;;  %v1001_v18 = vld [vmem:[%s3904_s2 + $0x18] sm:$0xff] (!%p219_p2)  ;;  %v1457_v19 = vld [vmem:[%s3905_s3 + $0x10] sm:$0xff] (!%p219_p2) }
   0x9   : > { %2774 = vmatpush3.bf16.msra.mxu0 (!%p219_p2), %v2771_v3  ;;  %2798 = vmatpush3.bf16.msra.mxu1 (!%p219_p2), %v2771_v3  ;;  %v2787_v16 = vpack.c.bf16 (!%p219_p2), %v1456_v12, %v1455_v9  ;;  %v1458_v20 = vld [vmem:[%s3905_s3 + $0x18] sm:$0xff] (!%p219_p2)  ;;  %v2783_v27 = vpack.c.bf16 (!%p219_p2), %v1001_v18, %v1000_v17  ;;  %v1002_v33 = vld [vmem:[%s3904_s2 + $0x20] sm:$0xf] (!%p219_p2) }
   0xa   : > { %2776 = vmatprep.subr.bf16.mxu0 (!%p219_p2), %v2775_v5  ;;  %2796 = vmatprep.subr.bf16.mxu1 (!%p219_p2), %v2775_v5  ;;  %v2791_v28 = vpack.c.bf16 (!%p219_p2), %v1458_v20, %v1457_v19  ;;  %v1459_v34 = vld [vmem:[%s3905_s3 + $0x20] sm:$0xf] (!%p219_p2) }
   0xd   : > { %s3910_s29 = smov (!%p259_p3, %s2041_s29), 255  ;;  %2778 = vmatpush3.bf16.msra.mxu0 %v2775_v5  ;;  %2799 = vmatpush3.bf16.msra.mxu1 %v2775_v5 }
   0xe   : > { %s2875_s10 = sshll.u32 %s3910_s29, 3  ;;  %2461 = vmatprep.subr.msk.mxu0 %vm544_vm0, %v350_v6  ;;  %2797 = vmatprep.subr.msk.mxu1 %vm544_vm0, %v350_v6 }
   0xf   : > { %s2881_s13 = scalar_lea.vmem %s3902_s0, %s2875_s10  ;;  %s3501_s14 = scalar_lea.vmem %s3906_s4, %s2875_s10 }
  0x10   : > { %v2893_v10 = vld [vmem:[%s2881_s13] sm:$0xff]  ;;  %v2908_v13 = vld [vmem:[%s2881_s13 + $0x8] sm:$0xff]  ;;  %v2932_v21 = vld [vmem:[%s2881_s13 + $0x10] sm:$0xff]  ;;  %s3635_s17 = scalar_lea.vmem %s3907_s5, %s2875_s10  ;;  %s3641_s20 = scalar_lea.vmem %s3908_s6, %s2875_s10 }
  0x11   : > { %v2896_v11 = vld [vmem:[%s2881_s13 + $0x100] sm:$0xff]  ;;  %2463 = vmatprep.mubr.msk.f32.mxu0 %vm351_vm1, %v2893_v10  ;;  %v2911_v14 = vld [vmem:[%s2881_s13 + $0x108] sm:$0xff]  ;;  %2462 = vmatpush3.msk.msra.mxu0 %vm544_vm0, %v350_v6  ;;  %v2935_v22 = vld [vmem:[%s2881_s13 + $0x110] sm:$0xff] }
  0x12   : > { %2511 = vmatprep.mubr.msk.f32.mxu1 %vm351_vm1, %v2896_v11  ;;  %2800 = vmatpush3.msk.msra.mxu1 %vm544_vm0, %v350_v6  ;;  %v2938_v23 = vld [vmem:[%s2881_s13 + $0x18] sm:$0xff]  ;;  %v2944_v25 = vld [vmem:[%s2881_s13 + $0x20] sm:$0xff]  ;;  %v2962_v29 = vld [vmem:[%s2881_s13 + $0x28] sm:$0xff] }
  0x13   : > { %2464 = vmatmul.mubr.msk.f32.vlgmr.msra.gmra.mrb[0].mxu0 %vm351_vm1, %v2908_v13  ;;  %2512 = vmatmul.mubr.msk.f32.vlgmr.msra.gmra.mrb[0].mxu1 %vm351_vm1, %v2911_v14  ;;  %v2941_v24 = vld [vmem:[%s2881_s13 + $0x118] sm:$0xff]  ;;  %v2947_v26 = vld [vmem:[%s2881_s13 + $0x120] sm:$0xff]  ;;  %v2965_v30 = vld [vmem:[%s2881_s13 + $0x128] sm:$0xff] }
  0x14   : > { %2780 = vmatprep.subr.bf16.mxu1 %v2779_v15  ;;  %2788 = vmatprep.subr.bf16.mxu0 %v2787_v16  ;;  %v2968_v31 = vld [vmem:[%s2881_s13 + $0x30] sm:$0xff]  ;;  %v2988_v35 = vld [vmem:[%s2881_s13 + $0x38] sm:$0xff]  ;;  %v2994_v37 = vld [vmem:[%s2881_s13 + $0x40] sm:$0xff] }
  0x15   : > { %2782 = vmatpush3.bf16.msra.mxu1 %v2779_v15  ;;  %2790 = vmatpush3.bf16.msra.mxu0 %v2787_v16  ;;  %v2971_v32 = vld [vmem:[%s2881_s13 + $0x130] sm:$0xff]  ;;  %v2991_v36 = vld [vmem:[%s2881_s13 + $0x138] sm:$0xff]  ;;  %v2997_v38 = vld [vmem:[%s2881_s13 + $0x140] sm:$0xff] }
  0x16   : > { %2466 = vmatprep.mubr.msk.f32.mxu0 %vm351_vm1, %v2932_v21  ;;  %2514 = vmatprep.mubr.msk.f32.mxu1 %vm351_vm1, %v2935_v22  ;;  %v3012_v39 = vld [vmem:[%s2881_s13 + $0x48] sm:$0xff]  ;;  %v3018_v41 = vld [vmem:[%s2881_s13 + $0x50] sm:$0xff]  ;;  %v3032_v43 = vld [vmem:[%s2881_s13 + $0x58] sm:$0xff] }
  0x17   : > { %2467 = vmatmul.mubr.msk.f32.gmra.mrb[2].mxu0 %vm351_vm1, %v2938_v23  ;;  %2515 = vmatmul.mubr.msk.f32.gmra.mrb[2].mxu1 %vm351_vm1, %v2941_v24  ;;  %v3015_v40 = vld [vmem:[%s2881_s13 + $0x148] sm:$0xff]  ;;  %v3021_v42 = vld [vmem:[%s2881_s13 + $0x150] sm:$0xff]  ;;  %v3035_v44 = vld [vmem:[%s2881_s13 + $0x158] sm:$0xff] }
  0x18   : > { %2469 = vmatprep.mubr.msk.f32.mxu0 %vm351_vm1, %v2944_v25  ;;  %2517 = vmatprep.mubr.msk.f32.mxu1 %vm351_vm1, %v2947_v26  ;;  %v3038_v45 = vld [vmem:[%s2881_s13 + $0x60] sm:$0xff]  ;;  %v3052_v47 = vld [vmem:[%s2881_s13 + $0x68] sm:$0xff]  ;;  %v3058_v49 = vld [vmem:[%s2881_s13 + $0x70] sm:$0xff] }
  0x19   : > { %2784 = vmatprep.subr.bf16.mxu1 %v2783_v27  ;;  %2792 = vmatprep.subr.bf16.mxu0 %v2791_v28  ;;  %v3041_v46 = vld [vmem:[%s2881_s13 + $0x160] sm:$0xff]  ;;  %v3055_v48 = vld [vmem:[%s2881_s13 + $0x168] sm:$0xff]  ;;  %v3061_v50 = vld [vmem:[%s2881_s13 + $0x170] sm:$0xff] }
  0x1a   : > { %2786 = vmatpush3.bf16.msra.mxu1 %v2783_v27  ;;  %2794 = vmatpush3.bf16.msra.mxu0 %v2791_v28  ;;  %v3072_v51 = vld [vmem:[%s2881_s13 + $0x78] sm:$0xff]  ;;  %v3078_v53 = vld [vmem:[%s2881_s13 + $0x80] sm:$0xff]  ;;  %v3092_v55 = vld [vmem:[%s2881_s13 + $0x88] sm:$0xff] }
  0x1b   : > { %2470 = vmatmul.mubr.msk.f32.gmra.mrb[4].mxu0 %vm351_vm1, %v2962_v29  ;;  %2518 = vmatmul.mubr.msk.f32.gmra.mrb[4].mxu1 %vm351_vm1, %v2965_v30  ;;  %v3075_v52 = vld [vmem:[%s2881_s13 + $0x178] sm:$0xff]  ;;  %v3081_v54 = vld [vmem:[%s2881_s13 + $0x180] sm:$0xff]  ;;  %v3095_v56 = vld [vmem:[%s2881_s13 + $0x188] sm:$0xff] }
  0x1c   : > { %2472 = vmatprep.mubr.msk.f32.mxu0 %vm351_vm1, %v2968_v31  ;;  %2520 = vmatprep.mubr.msk.f32.mxu1 %vm351_vm1, %v2971_v32  ;;  %v3098_v57 = vld [vmem:[%s2881_s13 + $0x90] sm:$0xff]  ;;  %v3112_v59 = vld [vmem:[%s2881_s13 + $0x98] sm:$0xff]  ;;  %v3118_v61 = vld [vmem:[%s2881_s13 + $0xa0] sm:$0xff] }
  0x1d   : > { %2567 = vmatprep.subr.msk.mxu1 %vm544_vm0, %v1002_v33  ;;  %2673 = vmatprep.subr.msk.mxu0 %vm544_vm0, %v1459_v34  ;;  %v3101_v58 = vld [vmem:[%s2881_s13 + $0x190] sm:$0xff]  ;;  %v3115_v60 = vld [vmem:[%s2881_s13 + $0x198] sm:$0xff]  ;;  %v3121_v62 = vld [vmem:[%s2881_s13 + $0x1a0] sm:$0xff] }
  0x1e   : > { %2568 = vmatpush3.msk.msra.mxu1 %vm544_vm0, %v1002_v33  ;;  %2674 = vmatpush3.msk.msra.mxu0 %vm544_vm0, %v1459_v34  ;;  %v3132_v63 = vld [vmem:[%s2881_s13 + $0xa8] sm:$0xff]  ;;  %v3138_v1 = vld [vmem:[%s2881_s13 + $0xb0] sm:$0xff]  ;;  %v3152_v3 = vld [vmem:[%s2881_s13 + $0xb8] sm:$0xff] }
  0x1f   : > { %2473 = vmatmul.mubr.msk.f32.gmra.mrb[6].mxu0 %vm351_vm1, %v2988_v35  ;;  %2521 = vmatmul.mubr.msk.f32.gmra.mrb[6].mxu1 %vm351_vm1, %v2991_v36  ;;  %v3135_v0 = vld [vmem:[%s2881_s13 + $0x1a8] sm:$0xff]  ;;  %v3141_v2 = vld [vmem:[%s2881_s13 + $0x1b0] sm:$0xff]  ;;  %v3155_v4 = vld [vmem:[%s2881_s13 + $0x1b8] sm:$0xff] }
  0x20   : > { %2475 = vmatprep.mubr.msk.f32.mxu0 %vm351_vm1, %v2994_v37  ;;  %2523 = vmatprep.mubr.msk.f32.mxu1 %vm351_vm1, %v2997_v38  ;;  %v3158_v5 = vld [vmem:[%s2881_s13 + $0xc0] sm:$0xff]  ;;  %v3172_v7 = vld [vmem:[%s2881_s13 + $0xc8] sm:$0xff]  ;;  %v3178_v9 = vld [vmem:[%s2881_s13 + $0xd0] sm:$0xff] }
  0x21   : > { %v3161_v6 = vld [vmem:[%s2881_s13 + $0x1c0] sm:$0xff]  ;;  %v3175_v8 = vld [vmem:[%s2881_s13 + $0x1c8] sm:$0xff]  ;;  %v3181_v12 = vld [vmem:[%s2881_s13 + $0x1d0] sm:$0xff] }
  0x22   : > { %v3192_v15 = vld [vmem:[%s2881_s13 + $0xd8] sm:$0xff]  ;;  %v3198_v17 = vld [vmem:[%s2881_s13 + $0xe0] sm:$0xff]  ;;  %v3212_v19 = vld [vmem:[%s2881_s13 + $0xe8] sm:$0xff] }
  0x23   : > { %2476 = vmatmul.mubr.msk.f32.gmra.mrb[8].mxu0 %vm351_vm1, %v3012_v39  ;;  %2524 = vmatmul.mubr.msk.f32.gmra.mrb[8].mxu1 %vm351_vm1, %v3015_v40  ;;  %v3195_v16 = vld [vmem:[%s2881_s13 + $0x1d8] sm:$0xff]  ;;  %v3201_v18 = vld [vmem:[%s2881_s13 + $0x1e0] sm:$0xff]  ;;  %v3215_v20 = vld [vmem:[%s2881_s13 + $0x1e8] sm:$0xff] }
  0x24   : > { %2478 = vmatprep.mubr.msk.f32.mxu0 %vm351_vm1, %v3018_v41  ;;  %2526 = vmatprep.mubr.msk.f32.mxu1 %vm351_vm1, %v3021_v42  ;;  %v3218_v27 = vld [vmem:[%s2881_s13 + $0xf0] sm:$0xff]  ;;  %v3232_v33 = vld [vmem:[%s2881_s13 + $0xf8] sm:$0xff] }
  0x25   : > { %v3221_v28 = vld [vmem:[%s2881_s13 + $0x1f0] sm:$0xff]  ;;  %v3235_v34 = vld [vmem:[%s2881_s13 + $0x1f8] sm:$0xff] }
  0x27   : > { %2479 = vmatmul.mubr.msk.f32.gmra.mrb[10].mxu0 %vm351_vm1, %v3032_v43  ;;  %2527 = vmatmul.mubr.msk.f32.gmra.mrb[10].mxu1 %vm351_vm1, %v3035_v44 }
  0x28   : > { %2481 = vmatprep.mubr.msk.f32.mxu0 %vm351_vm1, %v3038_v45  ;;  %2529 = vmatprep.mubr.msk.f32.mxu1 %vm351_vm1, %v3041_v46 }
  0x2b   : > { %2482 = vmatmul.mubr.msk.f32.gmra.mrb[12].mxu0 %vm351_vm1, %v3052_v47  ;;  %2530 = vmatmul.mubr.msk.f32.gmra.mrb[12].mxu1 %vm351_vm1, %v3055_v48 }
  0x2c   : > { %2484 = vmatprep.mubr.msk.f32.mxu0 %vm351_vm1, %v3058_v49  ;;  %2532 = vmatprep.mubr.msk.f32.mxu1 %vm351_vm1, %v3061_v50 }
  0x2f   : > { %2485 = vmatmul.mubr.msk.f32.gmra.mrb[14].mxu0 %vm351_vm1, %v3072_v51  ;;  %2533 = vmatmul.mubr.msk.f32.gmra.mrb[14].mxu1 %vm351_vm1, %v3075_v52 }
  0x30   : > { %2487 = vmatprep.mubr.msk.f32.mxu0 %vm351_vm1, %v3078_v53  ;;  %2535 = vmatprep.mubr.msk.f32.mxu1 %vm351_vm1, %v3081_v54 }
  0x33   : > { %2488 = vmatmul.mubr.msk.f32.gmra.mrb[16].mxu0 %vm351_vm1, %v3092_v55  ;;  %2536 = vmatmul.mubr.msk.f32.gmra.mrb[16].mxu1 %vm351_vm1, %v3095_v56 }
  0x34   : > { %2490 = vmatprep.mubr.msk.f32.mxu0 %vm351_vm1, %v3098_v57  ;;  %2538 = vmatprep.mubr.msk.f32.mxu1 %vm351_vm1, %v3101_v58 }
  0x37   : > { %2491 = vmatmul.mubr.msk.f32.gmra.mrb[18].mxu0 %vm351_vm1, %v3112_v59  ;;  %2539 = vmatmul.mubr.msk.f32.gmra.mrb[18].mxu1 %vm351_vm1, %v3115_v60 }
  0x38   : > { %2493 = vmatprep.mubr.msk.f32.mxu0 %vm351_vm1, %v3118_v61  ;;  %2541 = vmatprep.mubr.msk.f32.mxu1 %vm351_vm1, %v3121_v62 }
  0x3b   : > { %2494 = vmatmul.mubr.msk.f32.gmra.mrb[20].mxu0 %vm351_vm1, %v3132_v63  ;;  %2542 = vmatmul.mubr.msk.f32.gmra.mrb[20].mxu1 %vm351_vm1, %v3135_v0 }
  0x3c   : > { %2496 = vmatprep.mubr.msk.f32.mxu0 %vm351_vm1, %v3138_v1  ;;  %2544 = vmatprep.mubr.msk.f32.mxu1 %vm351_vm1, %v3141_v2 }
  0x3f   : > { %2497 = vmatmul.mubr.msk.f32.gmra.mrb[22].mxu0 %vm351_vm1, %v3152_v3  ;;  %2545 = vmatmul.mubr.msk.f32.gmra.mrb[22].mxu1 %vm351_vm1, %v3155_v4 }
  0x40   : > { %2499 = vmatprep.mubr.msk.f32.mxu0 %vm351_vm1, %v3158_v5  ;;  %2547 = vmatprep.mubr.msk.f32.mxu1 %vm351_vm1, %v3161_v6 }
  0x43   : > { %2500 = vmatmul.mubr.msk.f32.gmra.mrb[24].mxu0 %vm351_vm1, %v3172_v7  ;;  %2548 = vmatmul.mubr.msk.f32.gmra.mrb[24].mxu1 %vm351_vm1, %v3175_v8 }
  0x44   : > { %2502 = vmatprep.mubr.msk.f32.mxu0 %vm351_vm1, %v3178_v9  ;;  %2550 = vmatprep.mubr.msk.f32.mxu1 %vm351_vm1, %v3181_v12 }
  0x47   : > { %2503 = vmatmul.mubr.msk.f32.gmra.mrb[26].mxu0 %vm351_vm1, %v3192_v15  ;;  %2551 = vmatmul.mubr.msk.f32.gmra.mrb[26].mxu1 %vm351_vm1, %v3195_v16 }
  0x48   : > { %2505 = vmatprep.mubr.msk.f32.mxu0 %vm351_vm1, %v3198_v17  ;;  %2553 = vmatprep.mubr.msk.f32.mxu1 %vm351_vm1, %v3201_v18 }
  0x4b   : > { %2506 = vmatmul.mubr.msk.f32.gmra.mrb[28].mxu0 %vm351_vm1, %v3212_v19  ;;  %2554 = vmatmul.mubr.msk.f32.gmra.mrb[28].mxu1 %vm351_vm1, %v3215_v20 }
  0x4c   : > { %2508 = vmatprep.mubr.msk.f32.mxu0 %vm351_vm1, %v3218_v27  ;;  %2556 = vmatprep.mubr.msk.f32.mxu1 %vm351_vm1, %v3221_v28 }
  0x4f   : > { %2509 = vmatmul.mubr.msk.f32.gmra.mrb[30].mxu0 %vm351_vm1, %v3232_v33  ;;  %2557 = vmatmul.mubr.msk.f32.gmra.mrb[30].mxu1 %vm351_vm1, %v3235_v34 }
  0x50   : > { %2569 = vmatprep.mubr.msk.f32.mxu1 %vm351_vm1, %v2893_v10  ;;  %2675 = vmatprep.mubr.msk.f32.mxu0 %vm351_vm1, %v2893_v10 }
  0x53   : > { %2570 = vmatmul.mubr.msk.f32.vlgmr.msra.gmra.mrb[32].mxu1 %vm351_vm1, %v2908_v13  ;;  %2676 = vmatmul.mubr.msk.f32.vlgmr.msra.gmra.mrb[32].mxu0 %vm351_vm1, %v2908_v13 }
  0x54   : > { %2572 = vmatprep.mubr.msk.f32.mxu1 %vm351_vm1, %v2932_v21  ;;  %2678 = vmatprep.mubr.msk.f32.mxu0 %vm351_vm1, %v2932_v21 }
  0x57   : > { %2573 = vmatmul.mubr.msk.f32.gmra.mrb[34].mxu1 %vm351_vm1, %v2938_v23  ;;  %2679 = vmatmul.mubr.msk.f32.gmra.mrb[34].mxu0 %vm351_vm1, %v2938_v23 }
  0x58   : > { %2575 = vmatprep.mubr.msk.f32.mxu1 %vm351_vm1, %v2944_v25  ;;  %2681 = vmatprep.mubr.msk.f32.mxu0 %vm351_vm1, %v2944_v25 }
  0x5b   : > { %2576 = vmatmul.mubr.msk.f32.gmra.mrb[36].mxu1 %vm351_vm1, %v2962_v29  ;;  %2682 = vmatmul.mubr.msk.f32.gmra.mrb[36].mxu0 %vm351_vm1, %v2962_v29 }
  0x5c   : > { %2578 = vmatprep.mubr.msk.f32.mxu1 %vm351_vm1, %v2968_v31  ;;  %2684 = vmatprep.mubr.msk.f32.mxu0 %vm351_vm1, %v2968_v31 }
  0x5f   : > { %2579 = vmatmul.mubr.msk.f32.gmra.mrb[38].mxu1 %vm351_vm1, %v2988_v35  ;;  %2685 = vmatmul.mubr.msk.f32.gmra.mrb[38].mxu0 %vm351_vm1, %v2988_v35 }
  0x60   : > { %2581 = vmatprep.mubr.msk.f32.mxu1 %vm351_vm1, %v2994_v37  ;;  %2687 = vmatprep.mubr.msk.f32.mxu0 %vm351_vm1, %v2994_v37 }
  0x63   : > { %2582 = vmatmul.mubr.msk.f32.gmra.mrb[40].mxu1 %vm351_vm1, %v3012_v39  ;;  %2688 = vmatmul.mubr.msk.f32.gmra.mrb[40].mxu0 %vm351_vm1, %v3012_v39 }
  0x64   : > { %2584 = vmatprep.mubr.msk.f32.mxu1 %vm351_vm1, %v3018_v41  ;;  %2690 = vmatprep.mubr.msk.f32.mxu0 %vm351_vm1, %v3018_v41 }
  0x67   : > { %2585 = vmatmul.mubr.msk.f32.gmra.mrb[42].mxu1 %vm351_vm1, %v3032_v43  ;;  %2691 = vmatmul.mubr.msk.f32.gmra.mrb[42].mxu0 %vm351_vm1, %v3032_v43 }
  0x68   : > { %2587 = vmatprep.mubr.msk.f32.mxu1 %vm351_vm1, %v3038_v45  ;;  %2693 = vmatprep.mubr.msk.f32.mxu0 %vm351_vm1, %v3038_v45 }
  0x6b   : > { %2588 = vmatmul.mubr.msk.f32.gmra.mrb[44].mxu1 %vm351_vm1, %v3052_v47  ;;  %2694 = vmatmul.mubr.msk.f32.gmra.mrb[44].mxu0 %vm351_vm1, %v3052_v47 }
  0x6c   : > { %2590 = vmatprep.mubr.msk.f32.mxu1 %vm351_vm1, %v3058_v49  ;;  %2696 = vmatprep.mubr.msk.f32.mxu0 %vm351_vm1, %v3058_v49 }
  0x6f   : > { %2591 = vmatmul.mubr.msk.f32.gmra.mrb[46].mxu1 %vm351_vm1, %v3072_v51  ;;  %2697 = vmatmul.mubr.msk.f32.gmra.mrb[46].mxu0 %vm351_vm1, %v3072_v51 }
  0x70   : > { %2593 = vmatprep.mubr.msk.f32.mxu1 %vm351_vm1, %v3078_v53  ;;  %2699 = vmatprep.mubr.msk.f32.mxu0 %vm351_vm1, %v3078_v53 }
  0x73   : > { %2594 = vmatmul.mubr.msk.f32.gmra.mrb[48].mxu1 %vm351_vm1, %v3092_v55  ;;  %2700 = vmatmul.mubr.msk.f32.gmra.mrb[48].mxu0 %vm351_vm1, %v3092_v55 }
  0x74   : > { %2596 = vmatprep.mubr.msk.f32.mxu1 %vm351_vm1, %v3098_v57  ;;  %2702 = vmatprep.mubr.msk.f32.mxu0 %vm351_vm1, %v3098_v57 }
  0x77   : > { %2597 = vmatmul.mubr.msk.f32.gmra.mrb[50].mxu1 %vm351_vm1, %v3112_v59  ;;  %2703 = vmatmul.mubr.msk.f32.gmra.mrb[50].mxu0 %vm351_vm1, %v3112_v59 }
  0x78   : > { %2599 = vmatprep.mubr.msk.f32.mxu1 %vm351_vm1, %v3118_v61  ;;  %2705 = vmatprep.mubr.msk.f32.mxu0 %vm351_vm1, %v3118_v61 }
  0x7b   : > { %2600 = vmatmul.mubr.msk.f32.gmra.mrb[52].mxu1 %vm351_vm1, %v3132_v63  ;;  %2706 = vmatmul.mubr.msk.f32.gmra.mrb[52].mxu0 %vm351_vm1, %v3132_v63 }
  0x7c   : > { %2602 = vmatprep.mubr.msk.f32.mxu1 %vm351_vm1, %v3138_v1  ;;  %2708 = vmatprep.mubr.msk.f32.mxu0 %vm351_vm1, %v3138_v1 }
  0x7f   : > { %2603 = vmatmul.mubr.msk.f32.gmra.mrb[54].mxu1 %vm351_vm1, %v3152_v3  ;;  %2709 = vmatmul.mubr.msk.f32.gmra.mrb[54].mxu0 %vm351_vm1, %v3152_v3 }
  0x80   : > { %2605 = vmatprep.mubr.msk.f32.mxu1 %vm351_vm1, %v3158_v5  ;;  %2711 = vmatprep.mubr.msk.f32.mxu0 %vm351_vm1, %v3158_v5 }
  0x83   : > { %2606 = vmatmul.mubr.msk.f32.gmra.mrb[56].mxu1 %vm351_vm1, %v3172_v7  ;;  %2712 = vmatmul.mubr.msk.f32.gmra.mrb[56].mxu0 %vm351_vm1, %v3172_v7 }
  0x84   : > { %2608 = vmatprep.mubr.msk.f32.mxu1 %vm351_vm1, %v3178_v9  ;;  %2714 = vmatprep.mubr.msk.f32.mxu0 %vm351_vm1, %v3178_v9 }
  0x87   : > { %2609 = vmatmul.mubr.msk.f32.gmra.mrb[58].mxu1 %vm351_vm1, %v3192_v15  ;;  %2715 = vmatmul.mubr.msk.f32.gmra.mrb[58].mxu0 %vm351_vm1, %v3192_v15 }
  0x88   : > { %2611 = vmatprep.mubr.msk.f32.mxu1 %vm351_vm1, %v3198_v17  ;;  %2717 = vmatprep.mubr.msk.f32.mxu0 %vm351_vm1, %v3198_v17 }
  0x8b   : > { %2612 = vmatmul.mubr.msk.f32.gmra.mrb[60].mxu1 %vm351_vm1, %v3212_v19  ;;  %2718 = vmatmul.mubr.msk.f32.gmra.mrb[60].mxu0 %vm351_vm1, %v3212_v19 }
  0x8c   : > { %2614 = vmatprep.mubr.msk.f32.mxu1 %vm351_vm1, %v3218_v27  ;;  %2720 = vmatprep.mubr.msk.f32.mxu0 %vm351_vm1, %v3218_v27 }
  0x8f   : > { %2615 = vmatmul.mubr.msk.f32.gmra.mrb[62].mxu1 %vm351_vm1, %v3232_v33  ;;  %2721 = vmatmul.mubr.msk.f32.gmra.mrb[62].mxu0 %vm351_vm1, %v3232_v33 }
  0x90   : > { %2617 = vmatprep.mubr.msk.f32.mxu1 %vm351_vm1, %v2896_v11  ;;  %2723 = vmatprep.mubr.msk.f32.mxu0 %vm351_vm1, %v2896_v11 }
  0x93   : > { %2618 = vmatmul.mubr.msk.f32.gmra.mrb[64].mxu1 %vm351_vm1, %v2911_v14  ;;  %2724 = vmatmul.mubr.msk.f32.gmra.mrb[64].mxu0 %vm351_vm1, %v2911_v14 }
  0x94   : > { %2620 = vmatprep.mubr.msk.f32.mxu1 %vm351_vm1, %v2935_v22  ;;  %2726 = vmatprep.mubr.msk.f32.mxu0 %vm351_vm1, %v2935_v22 }
  0x97   : > { %2621 = vmatmul.mubr.msk.f32.gmra.mrb[66].mxu1 %vm351_vm1, %v2941_v24  ;;  %2727 = vmatmul.mubr.msk.f32.gmra.mrb[66].mxu0 %vm351_vm1, %v2941_v24 }
  0x98   : > { %2623 = vmatprep.mubr.msk.f32.mxu1 %vm351_vm1, %v2947_v26  ;;  %2729 = vmatprep.mubr.msk.f32.mxu0 %vm351_vm1, %v2947_v26 }
  0x9b   : > { %2624 = vmatmul.mubr.msk.f32.gmra.mrb[68].mxu1 %vm351_vm1, %v2965_v30  ;;  %2730 = vmatmul.mubr.msk.f32.gmra.mrb[68].mxu0 %vm351_vm1, %v2965_v30 }
  0x9c   : > { %2626 = vmatprep.mubr.msk.f32.mxu1 %vm351_vm1, %v2971_v32  ;;  %2732 = vmatprep.mubr.msk.f32.mxu0 %vm351_vm1, %v2971_v32 }
  0x9f   : > { %2627 = vmatmul.mubr.msk.f32.gmra.mrb[70].mxu1 %vm351_vm1, %v2991_v36  ;;  %2733 = vmatmul.mubr.msk.f32.gmra.mrb[70].mxu0 %vm351_vm1, %v2991_v36 }
  0xa0   : > { %2629 = vmatprep.mubr.msk.f32.mxu1 %vm351_vm1, %v2997_v38  ;;  %2735 = vmatprep.mubr.msk.f32.mxu0 %vm351_vm1, %v2997_v38 }
  0xa3   : > { %2630 = vmatmul.mubr.msk.f32.gmra.mrb[72].mxu1 %vm351_vm1, %v3015_v40  ;;  %2736 = vmatmul.mubr.msk.f32.gmra.mrb[72].mxu0 %vm351_vm1, %v3015_v40 }
  0xa4   : > { %2632 = vmatprep.mubr.msk.f32.mxu1 %vm351_vm1, %v3021_v42  ;;  %2738 = vmatprep.mubr.msk.f32.mxu0 %vm351_vm1, %v3021_v42 }
  0xa7   : > { %2633 = vmatmul.mubr.msk.f32.gmra.mrb[74].mxu1 %vm351_vm1, %v3035_v44  ;;  %2739 = vmatmul.mubr.msk.f32.gmra.mrb[74].mxu0 %vm351_vm1, %v3035_v44 }
  0xa8   : > { %2635 = vmatprep.mubr.msk.f32.mxu1 %vm351_vm1, %v3041_v46  ;;  %2741 = vmatprep.mubr.msk.f32.mxu0 %vm351_vm1, %v3041_v46 }
  0xab   : > { %2636 = vmatmul.mubr.msk.f32.gmra.mrb[76].mxu1 %vm351_vm1, %v3055_v48  ;;  %2742 = vmatmul.mubr.msk.f32.gmra.mrb[76].mxu0 %vm351_vm1, %v3055_v48 }
  0xac   : > { %2638 = vmatprep.mubr.msk.f32.mxu1 %vm351_vm1, %v3061_v50  ;;  %2744 = vmatprep.mubr.msk.f32.mxu0 %vm351_vm1, %v3061_v50 }
  0xaf   : > { %2639 = vmatmul.mubr.msk.f32.gmra.mrb[78].mxu1 %vm351_vm1, %v3075_v52  ;;  %2745 = vmatmul.mubr.msk.f32.gmra.mrb[78].mxu0 %vm351_vm1, %v3075_v52 }
  0xb0   : > { %2641 = vmatprep.mubr.msk.f32.mxu1 %vm351_vm1, %v3081_v54  ;;  %2747 = vmatprep.mubr.msk.f32.mxu0 %vm351_vm1, %v3081_v54 }
  0xb3   : > { %2642 = vmatmul.mubr.msk.f32.gmra.mrb[80].mxu1 %vm351_vm1, %v3095_v56  ;;  %2748 = vmatmul.mubr.msk.f32.gmra.mrb[80].mxu0 %vm351_vm1, %v3095_v56 }
  0xb4   : > { %2644 = vmatprep.mubr.msk.f32.mxu1 %vm351_vm1, %v3101_v58  ;;  %2750 = vmatprep.mubr.msk.f32.mxu0 %vm351_vm1, %v3101_v58 }
  0xb7   : > { %2645 = vmatmul.mubr.msk.f32.gmra.mrb[82].mxu1 %vm351_vm1, %v3115_v60  ;;  %2751 = vmatmul.mubr.msk.f32.gmra.mrb[82].mxu0 %vm351_vm1, %v3115_v60 }
  0xb8   : > { %2647 = vmatprep.mubr.msk.f32.mxu1 %vm351_vm1, %v3121_v62  ;;  %2753 = vmatprep.mubr.msk.f32.mxu0 %vm351_vm1, %v3121_v62 }
  0xbb   : > { %2648 = vmatmul.mubr.msk.f32.gmra.mrb[84].mxu1 %vm351_vm1, %v3135_v0  ;;  %2754 = vmatmul.mubr.msk.f32.gmra.mrb[84].mxu0 %vm351_vm1, %v3135_v0 }
  0xbc   : > { %2650 = vmatprep.mubr.msk.f32.mxu1 %vm351_vm1, %v3141_v2  ;;  %2756 = vmatprep.mubr.msk.f32.mxu0 %vm351_vm1, %v3141_v2 }
  0xbf   : > { %2651 = vmatmul.mubr.msk.f32.gmra.mrb[86].mxu1 %vm351_vm1, %v3155_v4  ;;  %2757 = vmatmul.mubr.msk.f32.gmra.mrb[86].mxu0 %vm351_vm1, %v3155_v4 }
  0xc0   : > { %2653 = vmatprep.mubr.msk.f32.mxu1 %vm351_vm1, %v3161_v6  ;;  %2759 = vmatprep.mubr.msk.f32.mxu0 %vm351_vm1, %v3161_v6 }
  0xc3   : > { %2654 = vmatmul.mubr.msk.f32.gmra.mrb[88].mxu1 %vm351_vm1, %v3175_v8  ;;  %2760 = vmatmul.mubr.msk.f32.gmra.mrb[88].mxu0 %vm351_vm1, %v3175_v8 }
  0xc4   : > { %2656 = vmatprep.mubr.msk.f32.mxu1 %vm351_vm1, %v3181_v12  ;;  %2762 = vmatprep.mubr.msk.f32.mxu0 %vm351_vm1, %v3181_v12 }
  0xc7   : > { %2657 = vmatmul.mubr.msk.f32.gmra.mrb[90].mxu1 %vm351_vm1, %v3195_v16  ;;  %2763 = vmatmul.mubr.msk.f32.gmra.mrb[90].mxu0 %vm351_vm1, %v3195_v16 }
  0xc8   : > { %2659 = vmatprep.mubr.msk.f32.mxu1 %vm351_vm1, %v3201_v18  ;;  %2765 = vmatprep.mubr.msk.f32.mxu0 %vm351_vm1, %v3201_v18 }
  0xcb   : > { %2660 = vmatmul.mubr.msk.f32.gmra.mrb[92].mxu1 %vm351_vm1, %v3215_v20  ;;  %2766 = vmatmul.mubr.msk.f32.gmra.mrb[92].mxu0 %vm351_vm1, %v3215_v20 }
  0xcc   : > { %2662 = vmatprep.mubr.msk.f32.mxu1 %vm351_vm1, %v3221_v28  ;;  %2768 = vmatprep.mubr.msk.f32.mxu0 %vm351_vm1, %v3221_v28 }
  0xcf   : > { %2663 = vmatmul.mubr.msk.f32.gmra.mrb[94].mxu1 %vm351_vm1, %v3235_v34  ;;  %2769 = vmatmul.mubr.msk.f32.gmra.mrb[94].mxu0 %vm351_vm1, %v3235_v34 }
  0xe6   : > { %v2465_v10 = vpop.f32.mrb[0].mxu0  ;;  %v2513_v11 = vpop.f32.mrb[0].mxu1 }
  0xe7   : > { %935 = vst.msk [vmem:[%s3501_s14 + $0x8] sm:$0xff] %vm933_vm2, %v2465_v10  ;;  %967 = vst.msk [vmem:[%s3501_s14 + $0x108] sm:$0xff] %vm933_vm2, %v2513_v11  ;;  %v614_v13 = vpop.f32.mrb[1].mxu0  ;;  %v774_v14 = vpop.f32.mrb[1].mxu1 }
  0xe8   : > { %934 = vst.msk [vmem:[%s3501_s14] sm:$0xff] %vm933_vm2, %v614_v13  ;;  %966 = vst.msk [vmem:[%s3501_s14 + $0x100] sm:$0xff] %vm933_vm2, %v774_v14 }
  0xea   : > { %v2468_v21 = vpop.f32.mrb[2].mxu0  ;;  %v2516_v22 = vpop.f32.mrb[2].mxu1 }
  0xeb   : > { %937 = vst.msk [vmem:[%s3501_s14 + $0x18] sm:$0xff] %vm933_vm2, %v2468_v21  ;;  %969 = vst.msk [vmem:[%s3501_s14 + $0x118] sm:$0xff] %vm933_vm2, %v2516_v22  ;;  %v624_v23 = vpop.f32.mrb[3].mxu0  ;;  %v784_v24 = vpop.f32.mrb[3].mxu1 }
  0xec   : > { %936 = vst.msk [vmem:[%s3501_s14 + $0x10] sm:$0xff] %vm933_vm2, %v624_v23  ;;  %968 = vst.msk [vmem:[%s3501_s14 + $0x110] sm:$0xff] %vm933_vm2, %v784_v24 }
  0xee   : > { %v2471_v25 = vpop.f32.mrb[4].mxu0  ;;  %v2519_v26 = vpop.f32.mrb[4].mxu1 }
  0xef   : > { %939 = vst.msk [vmem:[%s3501_s14 + $0x28] sm:$0xff] %vm933_vm2, %v2471_v25  ;;  %971 = vst.msk [vmem:[%s3501_s14 + $0x128] sm:$0xff] %vm933_vm2, %v2519_v26  ;;  %v634_v29 = vpop.f32.mrb[5].mxu0  ;;  %v794_v30 = vpop.f32.mrb[5].mxu1 }
  0xf0   : > { %938 = vst.msk [vmem:[%s3501_s14 + $0x20] sm:$0xff] %vm933_vm2, %v634_v29  ;;  %970 = vst.msk [vmem:[%s3501_s14 + $0x120] sm:$0xff] %vm933_vm2, %v794_v30 }
  0xf2   : > { %v2474_v31 = vpop.f32.mrb[6].mxu0  ;;  %v2522_v32 = vpop.f32.mrb[6].mxu1 }
  0xf3   : > { %941 = vst.msk [vmem:[%s3501_s14 + $0x38] sm:$0xff] %vm933_vm2, %v2474_v31  ;;  %973 = vst.msk [vmem:[%s3501_s14 + $0x138] sm:$0xff] %vm933_vm2, %v2522_v32  ;;  %v644_v35 = vpop.f32.mrb[7].mxu0  ;;  %v804_v36 = vpop.f32.mrb[7].mxu1 }
  0xf4   : > { %940 = vst.msk [vmem:[%s3501_s14 + $0x30] sm:$0xff] %vm933_vm2, %v644_v35  ;;  %972 = vst.msk [vmem:[%s3501_s14 + $0x130] sm:$0xff] %vm933_vm2, %v804_v36 }
  0xf6   : > { %v2477_v37 = vpop.f32.mrb[8].mxu0  ;;  %v2525_v38 = vpop.f32.mrb[8].mxu1 }
  0xf7   : > { %943 = vst.msk [vmem:[%s3501_s14 + $0x48] sm:$0xff] %vm933_vm2, %v2477_v37  ;;  %975 = vst.msk [vmem:[%s3501_s14 + $0x148] sm:$0xff] %vm933_vm2, %v2525_v38  ;;  %v654_v39 = vpop.f32.mrb[9].mxu0  ;;  %v814_v40 = vpop.f32.mrb[9].mxu1 }
  0xf8   : > { %942 = vst.msk [vmem:[%s3501_s14 + $0x40] sm:$0xff] %vm933_vm2, %v654_v39  ;;  %974 = vst.msk [vmem:[%s3501_s14 + $0x140] sm:$0xff] %vm933_vm2, %v814_v40 }
  0xfa   : > { %v2480_v41 = vpop.f32.mrb[10].mxu0  ;;  %v2528_v42 = vpop.f32.mrb[10].mxu1 }
  0xfb   : > { %945 = vst.msk [vmem:[%s3501_s14 + $0x58] sm:$0xff] %vm933_vm2, %v2480_v41  ;;  %977 = vst.msk [vmem:[%s3501_s14 + $0x158] sm:$0xff] %vm933_vm2, %v2528_v42  ;;  %v664_v43 = vpop.f32.mrb[11].mxu0  ;;  %v824_v44 = vpop.f32.mrb[11].mxu1 }
  0xfc   : > { %944 = vst.msk [vmem:[%s3501_s14 + $0x50] sm:$0xff] %vm933_vm2, %v664_v43  ;;  %976 = vst.msk [vmem:[%s3501_s14 + $0x150] sm:$0xff] %vm933_vm2, %v824_v44 }
  0xfe   : > { %v2483_v45 = vpop.f32.mrb[12].mxu0  ;;  %v2531_v46 = vpop.f32.mrb[12].mxu1 }
  0xff   : > { %947 = vst.msk [vmem:[%s3501_s14 + $0x68] sm:$0xff] %vm933_vm2, %v2483_v45  ;;  %979 = vst.msk [vmem:[%s3501_s14 + $0x168] sm:$0xff] %vm933_vm2, %v2531_v46  ;;  %v674_v47 = vpop.f32.mrb[13].mxu0  ;;  %v834_v48 = vpop.f32.mrb[13].mxu1 }
 0x100   : > { %946 = vst.msk [vmem:[%s3501_s14 + $0x60] sm:$0xff] %vm933_vm2, %v674_v47  ;;  %978 = vst.msk [vmem:[%s3501_s14 + $0x160] sm:$0xff] %vm933_vm2, %v834_v48 }
 0x102   : > { %v2486_v49 = vpop.f32.mrb[14].mxu0  ;;  %v2534_v50 = vpop.f32.mrb[14].mxu1 }
 0x103   : > { %949 = vst.msk [vmem:[%s3501_s14 + $0x78] sm:$0xff] %vm933_vm2, %v2486_v49  ;;  %981 = vst.msk [vmem:[%s3501_s14 + $0x178] sm:$0xff] %vm933_vm2, %v2534_v50  ;;  %v684_v51 = vpop.f32.mrb[15].mxu0  ;;  %v844_v52 = vpop.f32.mrb[15].mxu1 }
 0x104   : > { %948 = vst.msk [vmem:[%s3501_s14 + $0x70] sm:$0xff] %vm933_vm2, %v684_v51  ;;  %980 = vst.msk [vmem:[%s3501_s14 + $0x170] sm:$0xff] %vm933_vm2, %v844_v52 }
 0x106   : > { %v2489_v53 = vpop.f32.mrb[16].mxu0  ;;  %v2537_v54 = vpop.f32.mrb[16].mxu1 }
 0x107   : > { %951 = vst.msk [vmem:[%s3501_s14 + $0x88] sm:$0xff] %vm933_vm2, %v2489_v53  ;;  %983 = vst.msk [vmem:[%s3501_s14 + $0x188] sm:$0xff] %vm933_vm2, %v2537_v54  ;;  %v694_v55 = vpop.f32.mrb[17].mxu0  ;;  %v854_v56 = vpop.f32.mrb[17].mxu1 }
 0x108   : > { %950 = vst.msk [vmem:[%s3501_s14 + $0x80] sm:$0xff] %vm933_vm2, %v694_v55  ;;  %982 = vst.msk [vmem:[%s3501_s14 + $0x180] sm:$0xff] %vm933_vm2, %v854_v56 }
 0x10a   : > { %v2492_v57 = vpop.f32.mrb[18].mxu0  ;;  %v2540_v58 = vpop.f32.mrb[18].mxu1 }
 0x10b   : > { %953 = vst.msk [vmem:[%s3501_s14 + $0x98] sm:$0xff] %vm933_vm2, %v2492_v57  ;;  %985 = vst.msk [vmem:[%s3501_s14 + $0x198] sm:$0xff] %vm933_vm2, %v2540_v58  ;;  %v704_v59 = vpop.f32.mrb[19].mxu0  ;;  %v864_v60 = vpop.f32.mrb[19].mxu1 }
 0x10c   : > { %952 = vst.msk [vmem:[%s3501_s14 + $0x90] sm:$0xff] %vm933_vm2, %v704_v59  ;;  %984 = vst.msk [vmem:[%s3501_s14 + $0x190] sm:$0xff] %vm933_vm2, %v864_v60 }
 0x10e   : > { %v2495_v61 = vpop.f32.mrb[20].mxu0  ;;  %v2543_v62 = vpop.f32.mrb[20].mxu1 }
 0x10f   : > { %955 = vst.msk [vmem:[%s3501_s14 + $0xa8] sm:$0xff] %vm933_vm2, %v2495_v61  ;;  %987 = vst.msk [vmem:[%s3501_s14 + $0x1a8] sm:$0xff] %vm933_vm2, %v2543_v62  ;;  %v714_v63 = vpop.f32.mrb[21].mxu0  ;;  %v874_v0 = vpop.f32.mrb[21].mxu1 }
 0x110   : > { %954 = vst.msk [vmem:[%s3501_s14 + $0xa0] sm:$0xff] %vm933_vm2, %v714_v63  ;;  %986 = vst.msk [vmem:[%s3501_s14 + $0x1a0] sm:$0xff] %vm933_vm2, %v874_v0 }
 0x112   : > { %v2498_v1 = vpop.f32.mrb[22].mxu0  ;;  %v2546_v2 = vpop.f32.mrb[22].mxu1 }
 0x113   : > { %957 = vst.msk [vmem:[%s3501_s14 + $0xb8] sm:$0xff] %vm933_vm2, %v2498_v1  ;;  %989 = vst.msk [vmem:[%s3501_s14 + $0x1b8] sm:$0xff] %vm933_vm2, %v2546_v2  ;;  %v724_v3 = vpop.f32.mrb[23].mxu0  ;;  %v884_v4 = vpop.f32.mrb[23].mxu1 }
 0x114   : > { %956 = vst.msk [vmem:[%s3501_s14 + $0xb0] sm:$0xff] %vm933_vm2, %v724_v3  ;;  %988 = vst.msk [vmem:[%s3501_s14 + $0x1b0] sm:$0xff] %vm933_vm2, %v884_v4 }
 0x116   : > { %v2501_v5 = vpop.f32.mrb[24].mxu0  ;;  %v2549_v6 = vpop.f32.mrb[24].mxu1 }
 0x117   : > { %959 = vst.msk [vmem:[%s3501_s14 + $0xc8] sm:$0xff] %vm933_vm2, %v2501_v5  ;;  %991 = vst.msk [vmem:[%s3501_s14 + $0x1c8] sm:$0xff] %vm933_vm2, %v2549_v6  ;;  %v734_v7 = vpop.f32.mrb[25].mxu0  ;;  %v894_v8 = vpop.f32.mrb[25].mxu1 }
 0x118   : > { %958 = vst.msk [vmem:[%s3501_s14 + $0xc0] sm:$0xff] %vm933_vm2, %v734_v7  ;;  %990 = vst.msk [vmem:[%s3501_s14 + $0x1c0] sm:$0xff] %vm933_vm2, %v894_v8 }
 0x11a   : > { %v2504_v9 = vpop.f32.mrb[26].mxu0  ;;  %v2552_v12 = vpop.f32.mrb[26].mxu1 }
 0x11b   : > { %961 = vst.msk [vmem:[%s3501_s14 + $0xd8] sm:$0xff] %vm933_vm2, %v2504_v9  ;;  %993 = vst.msk [vmem:[%s3501_s14 + $0x1d8] sm:$0xff] %vm933_vm2, %v2552_v12  ;;  %v744_v15 = vpop.f32.mrb[27].mxu0  ;;  %v904_v16 = vpop.f32.mrb[27].mxu1 }
 0x11c   : > { %960 = vst.msk [vmem:[%s3501_s14 + $0xd0] sm:$0xff] %vm933_vm2, %v744_v15  ;;  %992 = vst.msk [vmem:[%s3501_s14 + $0x1d0] sm:$0xff] %vm933_vm2, %v904_v16 }
 0x11e   : > { %v2507_v17 = vpop.f32.mrb[28].mxu0  ;;  %v2555_v18 = vpop.f32.mrb[28].mxu1 }
 0x11f   : > { %963 = vst.msk [vmem:[%s3501_s14 + $0xe8] sm:$0xff] %vm933_vm2, %v2507_v17  ;;  %995 = vst.msk [vmem:[%s3501_s14 + $0x1e8] sm:$0xff] %vm933_vm2, %v2555_v18  ;;  %v754_v19 = vpop.f32.mrb[29].mxu0  ;;  %v914_v20 = vpop.f32.mrb[29].mxu1 }
 0x120   : > { %962 = vst.msk [vmem:[%s3501_s14 + $0xe0] sm:$0xff] %vm933_vm2, %v754_v19  ;;  %994 = vst.msk [vmem:[%s3501_s14 + $0x1e0] sm:$0xff] %vm933_vm2, %v914_v20 }
 0x122   : > { %v2510_v27 = vpop.f32.mrb[30].mxu0  ;;  %v2558_v28 = vpop.f32.mrb[30].mxu1 }
 0x123   : > { %965 = vst.msk [vmem:[%s3501_s14 + $0xf8] sm:$0xff] %vm933_vm2, %v2510_v27  ;;  %997 = vst.msk [vmem:[%s3501_s14 + $0x1f8] sm:$0xff] %vm933_vm2, %v2558_v28  ;;  %v764_v33 = vpop.f32.mrb[31].mxu0  ;;  %v924_v34 = vpop.f32.mrb[31].mxu1 }
 0x124   : > { %964 = vst.msk [vmem:[%s3501_s14 + $0xf0] sm:$0xff] %vm933_vm2, %v764_v33  ;;  %996 = vst.msk [vmem:[%s3501_s14 + $0x1f0] sm:$0xff] %vm933_vm2, %v924_v34 }
 0x126   : > { %v2571_v10 = vpop.f32.mrb[32].mxu1  ;;  %v2677_v11 = vpop.f32.mrb[32].mxu0 }
 0x127   : > { %1392 = vst.msk [vmem:[%s3635_s17 + $0x8] sm:$0xff] %vm933_vm2, %v2571_v10  ;;  %1849 = vst.msk [vmem:[%s3641_s20 + $0x8] sm:$0xff] %vm933_vm2, %v2677_v11  ;;  %v1072_v13 = vpop.f32.mrb[33].mxu1  ;;  %v1529_v14 = vpop.f32.mrb[33].mxu0 }
 0x128   : > { %1391 = vst.msk [vmem:[%s3635_s17] sm:$0xff] %vm933_vm2, %v1072_v13  ;;  %1848 = vst.msk [vmem:[%s3641_s20] sm:$0xff] %vm933_vm2, %v1529_v14 }
 0x12a   : > { %v2574_v21 = vpop.f32.mrb[34].mxu1  ;;  %v2680_v22 = vpop.f32.mrb[34].mxu0 }
 0x12b   : > { %1394 = vst.msk [vmem:[%s3635_s17 + $0x18] sm:$0xff] %vm933_vm2, %v2574_v21  ;;  %1851 = vst.msk [vmem:[%s3641_s20 + $0x18] sm:$0xff] %vm933_vm2, %v2680_v22  ;;  %v1082_v23 = vpop.f32.mrb[35].mxu1  ;;  %v1539_v24 = vpop.f32.mrb[35].mxu0 }
 0x12c   : > { %1393 = vst.msk [vmem:[%s3635_s17 + $0x10] sm:$0xff] %vm933_vm2, %v1082_v23  ;;  %1850 = vst.msk [vmem:[%s3641_s20 + $0x10] sm:$0xff] %vm933_vm2, %v1539_v24 }
 0x12e   : > { %v2577_v25 = vpop.f32.mrb[36].mxu1  ;;  %v2683_v26 = vpop.f32.mrb[36].mxu0 }
 0x12f   : > { %1396 = vst.msk [vmem:[%s3635_s17 + $0x28] sm:$0xff] %vm933_vm2, %v2577_v25  ;;  %1853 = vst.msk [vmem:[%s3641_s20 + $0x28] sm:$0xff] %vm933_vm2, %v2683_v26  ;;  %v1092_v29 = vpop.f32.mrb[37].mxu1  ;;  %v1549_v30 = vpop.f32.mrb[37].mxu0 }
 0x130   : > { %1395 = vst.msk [vmem:[%s3635_s17 + $0x20] sm:$0xff] %vm933_vm2, %v1092_v29  ;;  %1852 = vst.msk [vmem:[%s3641_s20 + $0x20] sm:$0xff] %vm933_vm2, %v1549_v30 }
 0x132   : > { %v2580_v31 = vpop.f32.mrb[38].mxu1  ;;  %v2686_v32 = vpop.f32.mrb[38].mxu0 }
 0x133   : > { %1398 = vst.msk [vmem:[%s3635_s17 + $0x38] sm:$0xff] %vm933_vm2, %v2580_v31  ;;  %1855 = vst.msk [vmem:[%s3641_s20 + $0x38] sm:$0xff] %vm933_vm2, %v2686_v32  ;;  %v1102_v35 = vpop.f32.mrb[39].mxu1  ;;  %v1559_v36 = vpop.f32.mrb[39].mxu0 }
 0x134   : > { %1397 = vst.msk [vmem:[%s3635_s17 + $0x30] sm:$0xff] %vm933_vm2, %v1102_v35  ;;  %1854 = vst.msk [vmem:[%s3641_s20 + $0x30] sm:$0xff] %vm933_vm2, %v1559_v36 }
 0x136   : > { %v2583_v37 = vpop.f32.mrb[40].mxu1  ;;  %v2689_v38 = vpop.f32.mrb[40].mxu0 }
 0x137   : > { %1400 = vst.msk [vmem:[%s3635_s17 + $0x48] sm:$0xff] %vm933_vm2, %v2583_v37  ;;  %1857 = vst.msk [vmem:[%s3641_s20 + $0x48] sm:$0xff] %vm933_vm2, %v2689_v38  ;;  %v1112_v39 = vpop.f32.mrb[41].mxu1  ;;  %v1569_v40 = vpop.f32.mrb[41].mxu0 }
 0x138   : > { %1399 = vst.msk [vmem:[%s3635_s17 + $0x40] sm:$0xff] %vm933_vm2, %v1112_v39  ;;  %1856 = vst.msk [vmem:[%s3641_s20 + $0x40] sm:$0xff] %vm933_vm2, %v1569_v40 }
 0x13a   : > { %v2586_v41 = vpop.f32.mrb[42].mxu1  ;;  %v2692_v42 = vpop.f32.mrb[42].mxu0 }
 0x13b   : > { %1402 = vst.msk [vmem:[%s3635_s17 + $0x58] sm:$0xff] %vm933_vm2, %v2586_v41  ;;  %1859 = vst.msk [vmem:[%s3641_s20 + $0x58] sm:$0xff] %vm933_vm2, %v2692_v42  ;;  %v1122_v43 = vpop.f32.mrb[43].mxu1  ;;  %v1579_v44 = vpop.f32.mrb[43].mxu0 }
 0x13c   : > { %1401 = vst.msk [vmem:[%s3635_s17 + $0x50] sm:$0xff] %vm933_vm2, %v1122_v43  ;;  %1858 = vst.msk [vmem:[%s3641_s20 + $0x50] sm:$0xff] %vm933_vm2, %v1579_v44 }
 0x13e   : > { %v2589_v45 = vpop.f32.mrb[44].mxu1  ;;  %v2695_v46 = vpop.f32.mrb[44].mxu0 }
 0x13f   : > { %1404 = vst.msk [vmem:[%s3635_s17 + $0x68] sm:$0xff] %vm933_vm2, %v2589_v45  ;;  %1861 = vst.msk [vmem:[%s3641_s20 + $0x68] sm:$0xff] %vm933_vm2, %v2695_v46  ;;  %v1132_v47 = vpop.f32.mrb[45].mxu1  ;;  %v1589_v48 = vpop.f32.mrb[45].mxu0 }
 0x140   : > { %1403 = vst.msk [vmem:[%s3635_s17 + $0x60] sm:$0xff] %vm933_vm2, %v1132_v47  ;;  %1860 = vst.msk [vmem:[%s3641_s20 + $0x60] sm:$0xff] %vm933_vm2, %v1589_v48 }
 0x142   : > { %v2592_v49 = vpop.f32.mrb[46].mxu1  ;;  %v2698_v50 = vpop.f32.mrb[46].mxu0 }
 0x143   : > { %1406 = vst.msk [vmem:[%s3635_s17 + $0x78] sm:$0xff] %vm933_vm2, %v2592_v49  ;;  %1863 = vst.msk [vmem:[%s3641_s20 + $0x78] sm:$0xff] %vm933_vm2, %v2698_v50  ;;  %v1142_v51 = vpop.f32.mrb[47].mxu1  ;;  %v1599_v52 = vpop.f32.mrb[47].mxu0 }
 0x144   : > { %1405 = vst.msk [vmem:[%s3635_s17 + $0x70] sm:$0xff] %vm933_vm2, %v1142_v51  ;;  %1862 = vst.msk [vmem:[%s3641_s20 + $0x70] sm:$0xff] %vm933_vm2, %v1599_v52 }
 0x146   : > { %v2595_v53 = vpop.f32.mrb[48].mxu1  ;;  %v2701_v54 = vpop.f32.mrb[48].mxu0 }
 0x147   : > { %1408 = vst.msk [vmem:[%s3635_s17 + $0x88] sm:$0xff] %vm933_vm2, %v2595_v53  ;;  %1865 = vst.msk [vmem:[%s3641_s20 + $0x88] sm:$0xff] %vm933_vm2, %v2701_v54  ;;  %v1152_v55 = vpop.f32.mrb[49].mxu1  ;;  %v1609_v56 = vpop.f32.mrb[49].mxu0 }
 0x148   : > { %1407 = vst.msk [vmem:[%s3635_s17 + $0x80] sm:$0xff] %vm933_vm2, %v1152_v55  ;;  %1864 = vst.msk [vmem:[%s3641_s20 + $0x80] sm:$0xff] %vm933_vm2, %v1609_v56 }
 0x14a   : > { %v2598_v57 = vpop.f32.mrb[50].mxu1  ;;  %v2704_v58 = vpop.f32.mrb[50].mxu0 }
 0x14b   : > { %1410 = vst.msk [vmem:[%s3635_s17 + $0x98] sm:$0xff] %vm933_vm2, %v2598_v57  ;;  %1867 = vst.msk [vmem:[%s3641_s20 + $0x98] sm:$0xff] %vm933_vm2, %v2704_v58  ;;  %v1162_v59 = vpop.f32.mrb[51].mxu1  ;;  %v1619_v60 = vpop.f32.mrb[51].mxu0 }
 0x14c   : > { %1409 = vst.msk [vmem:[%s3635_s17 + $0x90] sm:$0xff] %vm933_vm2, %v1162_v59  ;;  %1866 = vst.msk [vmem:[%s3641_s20 + $0x90] sm:$0xff] %vm933_vm2, %v1619_v60 }
 0x14e   : > { %v2601_v61 = vpop.f32.mrb[52].mxu1  ;;  %v2707_v62 = vpop.f32.mrb[52].mxu0 }
 0x14f   : > { %1412 = vst.msk [vmem:[%s3635_s17 + $0xa8] sm:$0xff] %vm933_vm2, %v2601_v61  ;;  %1869 = vst.msk [vmem:[%s3641_s20 + $0xa8] sm:$0xff] %vm933_vm2, %v2707_v62  ;;  %v1172_v63 = vpop.f32.mrb[53].mxu1  ;;  %v1629_v0 = vpop.f32.mrb[53].mxu0 }
 0x150   : > { %1411 = vst.msk [vmem:[%s3635_s17 + $0xa0] sm:$0xff] %vm933_vm2, %v1172_v63  ;;  %1868 = vst.msk [vmem:[%s3641_s20 + $0xa0] sm:$0xff] %vm933_vm2, %v1629_v0 }
 0x152   : > { %v2604_v1 = vpop.f32.mrb[54].mxu1  ;;  %v2710_v2 = vpop.f32.mrb[54].mxu0 }
 0x153   : > { %1414 = vst.msk [vmem:[%s3635_s17 + $0xb8] sm:$0xff] %vm933_vm2, %v2604_v1  ;;  %1871 = vst.msk [vmem:[%s3641_s20 + $0xb8] sm:$0xff] %vm933_vm2, %v2710_v2  ;;  %v1182_v3 = vpop.f32.mrb[55].mxu1  ;;  %v1639_v4 = vpop.f32.mrb[55].mxu0 }
 0x154   : > { %1413 = vst.msk [vmem:[%s3635_s17 + $0xb0] sm:$0xff] %vm933_vm2, %v1182_v3  ;;  %1870 = vst.msk [vmem:[%s3641_s20 + $0xb0] sm:$0xff] %vm933_vm2, %v1639_v4 }
 0x156   : > { %v2607_v5 = vpop.f32.mrb[56].mxu1  ;;  %v2713_v6 = vpop.f32.mrb[56].mxu0 }
 0x157   : > { %1416 = vst.msk [vmem:[%s3635_s17 + $0xc8] sm:$0xff] %vm933_vm2, %v2607_v5  ;;  %1873 = vst.msk [vmem:[%s3641_s20 + $0xc8] sm:$0xff] %vm933_vm2, %v2713_v6  ;;  %v1192_v7 = vpop.f32.mrb[57].mxu1  ;;  %v1649_v8 = vpop.f32.mrb[57].mxu0 }
 0x158   : > { %1415 = vst.msk [vmem:[%s3635_s17 + $0xc0] sm:$0xff] %vm933_vm2, %v1192_v7  ;;  %1872 = vst.msk [vmem:[%s3641_s20 + $0xc0] sm:$0xff] %vm933_vm2, %v1649_v8 }
 0x15a   : > { %v2610_v9 = vpop.f32.mrb[58].mxu1  ;;  %v2716_v12 = vpop.f32.mrb[58].mxu0 }
 0x15b   : > { %1418 = vst.msk [vmem:[%s3635_s17 + $0xd8] sm:$0xff] %vm933_vm2, %v2610_v9  ;;  %1875 = vst.msk [vmem:[%s3641_s20 + $0xd8] sm:$0xff] %vm933_vm2, %v2716_v12  ;;  %v1202_v15 = vpop.f32.mrb[59].mxu1  ;;  %v1659_v16 = vpop.f32.mrb[59].mxu0 }
 0x15c   : > { %1417 = vst.msk [vmem:[%s3635_s17 + $0xd0] sm:$0xff] %vm933_vm2, %v1202_v15  ;;  %1874 = vst.msk [vmem:[%s3641_s20 + $0xd0] sm:$0xff] %vm933_vm2, %v1659_v16 }
 0x15e   : > { %v2613_v17 = vpop.f32.mrb[60].mxu1  ;;  %v2719_v18 = vpop.f32.mrb[60].mxu0 }
 0x15f   : > { %1420 = vst.msk [vmem:[%s3635_s17 + $0xe8] sm:$0xff] %vm933_vm2, %v2613_v17  ;;  %1877 = vst.msk [vmem:[%s3641_s20 + $0xe8] sm:$0xff] %vm933_vm2, %v2719_v18  ;;  %v1212_v19 = vpop.f32.mrb[61].mxu1  ;;  %v1669_v20 = vpop.f32.mrb[61].mxu0 }
 0x160   : > { %1419 = vst.msk [vmem:[%s3635_s17 + $0xe0] sm:$0xff] %vm933_vm2, %v1212_v19  ;;  %1876 = vst.msk [vmem:[%s3641_s20 + $0xe0] sm:$0xff] %vm933_vm2, %v1669_v20 }
 0x162   : > { %v2616_v27 = vpop.f32.mrb[62].mxu1  ;;  %v2722_v28 = vpop.f32.mrb[62].mxu0 }
 0x163   : > { %1422 = vst.msk [vmem:[%s3635_s17 + $0xf8] sm:$0xff] %vm933_vm2, %v2616_v27  ;;  %1879 = vst.msk [vmem:[%s3641_s20 + $0xf8] sm:$0xff] %vm933_vm2, %v2722_v28  ;;  %v1222_v33 = vpop.f32.mrb[63].mxu1  ;;  %v1679_v34 = vpop.f32.mrb[63].mxu0 }
 0x164   : > { %1421 = vst.msk [vmem:[%s3635_s17 + $0xf0] sm:$0xff] %vm933_vm2, %v1222_v33  ;;  %1878 = vst.msk [vmem:[%s3641_s20 + $0xf0] sm:$0xff] %vm933_vm2, %v1679_v34 }
 0x166   : > { %v2619_v10 = vpop.f32.mrb[64].mxu1  ;;  %v2725_v11 = vpop.f32.mrb[64].mxu0 }
 0x167   : > { %1424 = vst.msk [vmem:[%s3635_s17 + $0x108] sm:$0xff] %vm933_vm2, %v2619_v10  ;;  %1881 = vst.msk [vmem:[%s3641_s20 + $0x108] sm:$0xff] %vm933_vm2, %v2725_v11  ;;  %v1232_v13 = vpop.f32.mrb[65].mxu1  ;;  %v1689_v14 = vpop.f32.mrb[65].mxu0 }
 0x168   : > { %1423 = vst.msk [vmem:[%s3635_s17 + $0x100] sm:$0xff] %vm933_vm2, %v1232_v13  ;;  %1880 = vst.msk [vmem:[%s3641_s20 + $0x100] sm:$0xff] %vm933_vm2, %v1689_v14 }
 0x16a   : > { %v2622_v21 = vpop.f32.mrb[66].mxu1  ;;  %v2728_v22 = vpop.f32.mrb[66].mxu0 }
 0x16b   : > { %1426 = vst.msk [vmem:[%s3635_s17 + $0x118] sm:$0xff] %vm933_vm2, %v2622_v21  ;;  %1883 = vst.msk [vmem:[%s3641_s20 + $0x118] sm:$0xff] %vm933_vm2, %v2728_v22  ;;  %v1242_v23 = vpop.f32.mrb[67].mxu1  ;;  %v1699_v24 = vpop.f32.mrb[67].mxu0 }
 0x16c   : > { %1425 = vst.msk [vmem:[%s3635_s17 + $0x110] sm:$0xff] %vm933_vm2, %v1242_v23  ;;  %1882 = vst.msk [vmem:[%s3641_s20 + $0x110] sm:$0xff] %vm933_vm2, %v1699_v24 }
 0x16e   : > { %v2625_v25 = vpop.f32.mrb[68].mxu1  ;;  %v2731_v26 = vpop.f32.mrb[68].mxu0 }
 0x16f   : > { %1428 = vst.msk [vmem:[%s3635_s17 + $0x128] sm:$0xff] %vm933_vm2, %v2625_v25  ;;  %1885 = vst.msk [vmem:[%s3641_s20 + $0x128] sm:$0xff] %vm933_vm2, %v2731_v26  ;;  %v1252_v29 = vpop.f32.mrb[69].mxu1  ;;  %v1709_v30 = vpop.f32.mrb[69].mxu0 }
 0x170   : > { %1427 = vst.msk [vmem:[%s3635_s17 + $0x120] sm:$0xff] %vm933_vm2, %v1252_v29  ;;  %1884 = vst.msk [vmem:[%s3641_s20 + $0x120] sm:$0xff] %vm933_vm2, %v1709_v30 }
 0x172   : > { %v2628_v31 = vpop.f32.mrb[70].mxu1  ;;  %v2734_v32 = vpop.f32.mrb[70].mxu0 }
 0x173   : > { %1430 = vst.msk [vmem:[%s3635_s17 + $0x138] sm:$0xff] %vm933_vm2, %v2628_v31  ;;  %1887 = vst.msk [vmem:[%s3641_s20 + $0x138] sm:$0xff] %vm933_vm2, %v2734_v32  ;;  %v1262_v35 = vpop.f32.mrb[71].mxu1  ;;  %v1719_v36 = vpop.f32.mrb[71].mxu0 }
 0x174   : > { %1429 = vst.msk [vmem:[%s3635_s17 + $0x130] sm:$0xff] %vm933_vm2, %v1262_v35  ;;  %1886 = vst.msk [vmem:[%s3641_s20 + $0x130] sm:$0xff] %vm933_vm2, %v1719_v36 }
 0x176   : > { %v2631_v37 = vpop.f32.mrb[72].mxu1  ;;  %v2737_v38 = vpop.f32.mrb[72].mxu0 }
 0x177   : > { %1432 = vst.msk [vmem:[%s3635_s17 + $0x148] sm:$0xff] %vm933_vm2, %v2631_v37  ;;  %1889 = vst.msk [vmem:[%s3641_s20 + $0x148] sm:$0xff] %vm933_vm2, %v2737_v38  ;;  %v1272_v39 = vpop.f32.mrb[73].mxu1  ;;  %v1729_v40 = vpop.f32.mrb[73].mxu0 }
 0x178   : > { %1431 = vst.msk [vmem:[%s3635_s17 + $0x140] sm:$0xff] %vm933_vm2, %v1272_v39  ;;  %1888 = vst.msk [vmem:[%s3641_s20 + $0x140] sm:$0xff] %vm933_vm2, %v1729_v40 }
 0x17a   : > { %v2634_v41 = vpop.f32.mrb[74].mxu1  ;;  %v2740_v42 = vpop.f32.mrb[74].mxu0 }
 0x17b   : > { %1434 = vst.msk [vmem:[%s3635_s17 + $0x158] sm:$0xff] %vm933_vm2, %v2634_v41  ;;  %1891 = vst.msk [vmem:[%s3641_s20 + $0x158] sm:$0xff] %vm933_vm2, %v2740_v42  ;;  %v1282_v43 = vpop.f32.mrb[75].mxu1  ;;  %v1739_v44 = vpop.f32.mrb[75].mxu0 }
 0x17c   : > { %1433 = vst.msk [vmem:[%s3635_s17 + $0x150] sm:$0xff] %vm933_vm2, %v1282_v43  ;;  %1890 = vst.msk [vmem:[%s3641_s20 + $0x150] sm:$0xff] %vm933_vm2, %v1739_v44 }
 0x17e   : > { %v2637_v45 = vpop.f32.mrb[76].mxu1  ;;  %v2743_v46 = vpop.f32.mrb[76].mxu0 }
 0x17f   : > { %1436 = vst.msk [vmem:[%s3635_s17 + $0x168] sm:$0xff] %vm933_vm2, %v2637_v45  ;;  %1893 = vst.msk [vmem:[%s3641_s20 + $0x168] sm:$0xff] %vm933_vm2, %v2743_v46  ;;  %v1292_v47 = vpop.f32.mrb[77].mxu1  ;;  %v1749_v48 = vpop.f32.mrb[77].mxu0 }
 0x180   : > { %1435 = vst.msk [vmem:[%s3635_s17 + $0x160] sm:$0xff] %vm933_vm2, %v1292_v47  ;;  %1892 = vst.msk [vmem:[%s3641_s20 + $0x160] sm:$0xff] %vm933_vm2, %v1749_v48 }
 0x182   : > { %v2640_v49 = vpop.f32.mrb[78].mxu1  ;;  %v2746_v50 = vpop.f32.mrb[78].mxu0 }
 0x183   : > { %1438 = vst.msk [vmem:[%s3635_s17 + $0x178] sm:$0xff] %vm933_vm2, %v2640_v49  ;;  %1895 = vst.msk [vmem:[%s3641_s20 + $0x178] sm:$0xff] %vm933_vm2, %v2746_v50  ;;  %v1302_v51 = vpop.f32.mrb[79].mxu1  ;;  %v1759_v52 = vpop.f32.mrb[79].mxu0 }
 0x184   : > { %1437 = vst.msk [vmem:[%s3635_s17 + $0x170] sm:$0xff] %vm933_vm2, %v1302_v51  ;;  %1894 = vst.msk [vmem:[%s3641_s20 + $0x170] sm:$0xff] %vm933_vm2, %v1759_v52 }
 0x186   : > { %v2643_v53 = vpop.f32.mrb[80].mxu1  ;;  %v2749_v54 = vpop.f32.mrb[80].mxu0 }
 0x187   : > { %1440 = vst.msk [vmem:[%s3635_s17 + $0x188] sm:$0xff] %vm933_vm2, %v2643_v53  ;;  %1897 = vst.msk [vmem:[%s3641_s20 + $0x188] sm:$0xff] %vm933_vm2, %v2749_v54  ;;  %v1312_v55 = vpop.f32.mrb[81].mxu1  ;;  %v1769_v56 = vpop.f32.mrb[81].mxu0 }
 0x188   : > { %1439 = vst.msk [vmem:[%s3635_s17 + $0x180] sm:$0xff] %vm933_vm2, %v1312_v55  ;;  %1896 = vst.msk [vmem:[%s3641_s20 + $0x180] sm:$0xff] %vm933_vm2, %v1769_v56 }
 0x18a   : > { %v2646_v57 = vpop.f32.mrb[82].mxu1  ;;  %v2752_v58 = vpop.f32.mrb[82].mxu0 }
 0x18b   : > { %1442 = vst.msk [vmem:[%s3635_s17 + $0x198] sm:$0xff] %vm933_vm2, %v2646_v57  ;;  %1899 = vst.msk [vmem:[%s3641_s20 + $0x198] sm:$0xff] %vm933_vm2, %v2752_v58  ;;  %v1322_v59 = vpop.f32.mrb[83].mxu1  ;;  %v1779_v60 = vpop.f32.mrb[83].mxu0 }
 0x18c   : > { %1441 = vst.msk [vmem:[%s3635_s17 + $0x190] sm:$0xff] %vm933_vm2, %v1322_v59  ;;  %1898 = vst.msk [vmem:[%s3641_s20 + $0x190] sm:$0xff] %vm933_vm2, %v1779_v60 }
 0x18e   : > { %v2649_v61 = vpop.f32.mrb[84].mxu1  ;;  %v2755_v62 = vpop.f32.mrb[84].mxu0 }
 0x18f   : > { %1444 = vst.msk [vmem:[%s3635_s17 + $0x1a8] sm:$0xff] %vm933_vm2, %v2649_v61  ;;  %1901 = vst.msk [vmem:[%s3641_s20 + $0x1a8] sm:$0xff] %vm933_vm2, %v2755_v62  ;;  %v1332_v63 = vpop.f32.mrb[85].mxu1  ;;  %v1789_v0 = vpop.f32.mrb[85].mxu0 }
 0x190   : > { %1443 = vst.msk [vmem:[%s3635_s17 + $0x1a0] sm:$0xff] %vm933_vm2, %v1332_v63  ;;  %1900 = vst.msk [vmem:[%s3641_s20 + $0x1a0] sm:$0xff] %vm933_vm2, %v1789_v0 }
 0x192   : > { %v2652_v1 = vpop.f32.mrb[86].mxu1  ;;  %v2758_v2 = vpop.f32.mrb[86].mxu0 }
 0x193   : > { %1446 = vst.msk [vmem:[%s3635_s17 + $0x1b8] sm:$0xff] %vm933_vm2, %v2652_v1  ;;  %1903 = vst.msk [vmem:[%s3641_s20 + $0x1b8] sm:$0xff] %vm933_vm2, %v2758_v2  ;;  %v1342_v3 = vpop.f32.mrb[87].mxu1  ;;  %v1799_v4 = vpop.f32.mrb[87].mxu0 }
 0x194   : > { %1445 = vst.msk [vmem:[%s3635_s17 + $0x1b0] sm:$0xff] %vm933_vm2, %v1342_v3  ;;  %1902 = vst.msk [vmem:[%s3641_s20 + $0x1b0] sm:$0xff] %vm933_vm2, %v1799_v4 }
 0x196   : > { %v2655_v5 = vpop.f32.mrb[88].mxu1  ;;  %v2761_v6 = vpop.f32.mrb[88].mxu0 }
 0x197   : > { %1448 = vst.msk [vmem:[%s3635_s17 + $0x1c8] sm:$0xff] %vm933_vm2, %v2655_v5  ;;  %1905 = vst.msk [vmem:[%s3641_s20 + $0x1c8] sm:$0xff] %vm933_vm2, %v2761_v6  ;;  %v1352_v7 = vpop.f32.mrb[89].mxu1  ;;  %v1809_v8 = vpop.f32.mrb[89].mxu0 }
 0x198   : > { %1447 = vst.msk [vmem:[%s3635_s17 + $0x1c0] sm:$0xff] %vm933_vm2, %v1352_v7  ;;  %1904 = vst.msk [vmem:[%s3641_s20 + $0x1c0] sm:$0xff] %vm933_vm2, %v1809_v8 }
 0x19a   : > { %v2658_v9 = vpop.f32.mrb[90].mxu1  ;;  %v2764_v12 = vpop.f32.mrb[90].mxu0 }
 0x19b   : > { %1450 = vst.msk [vmem:[%s3635_s17 + $0x1d8] sm:$0xff] %vm933_vm2, %v2658_v9  ;;  %1907 = vst.msk [vmem:[%s3641_s20 + $0x1d8] sm:$0xff] %vm933_vm2, %v2764_v12  ;;  %v1362_v15 = vpop.f32.mrb[91].mxu1  ;;  %v1819_v16 = vpop.f32.mrb[91].mxu0 }
 0x19c   : > { %1449 = vst.msk [vmem:[%s3635_s17 + $0x1d0] sm:$0xff] %vm933_vm2, %v1362_v15  ;;  %1906 = vst.msk [vmem:[%s3641_s20 + $0x1d0] sm:$0xff] %vm933_vm2, %v1819_v16 }
 0x19e   : > { %v2661_v17 = vpop.f32.mrb[92].mxu1  ;;  %v2767_v18 = vpop.f32.mrb[92].mxu0 }
 0x19f   : > { %1452 = vst.msk [vmem:[%s3635_s17 + $0x1e8] sm:$0xff] %vm933_vm2, %v2661_v17  ;;  %1909 = vst.msk [vmem:[%s3641_s20 + $0x1e8] sm:$0xff] %vm933_vm2, %v2767_v18  ;;  %v1372_v19 = vpop.f32.mrb[93].mxu1  ;;  %v1829_v20 = vpop.f32.mrb[93].mxu0 }
 0x1a0   : > { %1451 = vst.msk [vmem:[%s3635_s17 + $0x1e0] sm:$0xff] %vm933_vm2, %v1372_v19  ;;  %1908 = vst.msk [vmem:[%s3641_s20 + $0x1e0] sm:$0xff] %vm933_vm2, %v1829_v20 }
 0x1a2   : > { %v2664_v27 = vpop.f32.mrb[94].mxu1  ;;  %v2770_v28 = vpop.f32.mrb[94].mxu0 }
 0x1a3   : > { %1454 = vst.msk [vmem:[%s3635_s17 + $0x1f8] sm:$0xff] %vm933_vm2, %v2664_v27  ;;  %1911 = vst.msk [vmem:[%s3641_s20 + $0x1f8] sm:$0xff] %vm933_vm2, %v2770_v28  ;;  %v1382_v33 = vpop.f32.mrb[95].mxu1  ;;  %v1839_v34 = vpop.f32.mrb[95].mxu0 }
 0x1a4   : > { %1453 = vst.msk [vmem:[%s3635_s17 + $0x1f0] sm:$0xff] %vm933_vm2, %v1382_v33  ;;  %1910 = vst.msk [vmem:[%s3641_s20 + $0x1f0] sm:$0xff] %vm933_vm2, %v1839_v34 }
 0x1a5 PF: > { %s17_s21 = sadd.s32 1, %s2815_s21  }
 0x1a6   : > { %p14_p4 = scmp.ge.s32.totalorder %s17_s21, 6  }
 0x1a8   :  { %16 = sbr.rel (!%p14_p4) target bundleno = 1 (0x1), region = 90 }

// kernel: _lambda_.8
= control target key start
LH: loop header
LB: loop body
LE: loop exit
PB: predicated region body
PF: predicated region fallthrough
CT: control target
= control target key end

     0   :  { %s5876_s17 = smov 0   ;;  %s7029_s0 = inlined_call_operand.<no memory space> [shape: f32[1], index: 0, kind: input, shape index: {}]   ;;  %s7030_s1 = inlined_call_operand.vmem [shape: f32[4,1024,2], index: 1, kind: input, shape index: {}]   ;;  %s7031_s2 = inlined_call_operand.vmem [shape: f32[4,1024,2], index: 2, kind: input, shape index: {}]   ;;  %s7032_s3 = inlined_call_operand.vmem [shape: f32[4,1024,2], index: 3, kind: input, shape index: {}]   ;;  %s7033_s4 = inlined_call_operand.vmem [shape: f32[4,2,1024], index: 4, kind: output, shape index: {}]  }
   0x1   :  { %9 = sst [smem:[#allocation2]] %s7029_s0 }
   0x2 LB: > { %s3661_s18 = sadd.s32 4294967295, %s5845_s17   ;;  %p3665_p0 = scmp.ge.s32.totalorder %s5845_s17, 1  ;;  %s5845_s17 = sphi %s5876_s17, %s15_s17  }
   0x3   : > { %p189_p1 = scmp.lt.s32.totalorder %s5845_s17, 3 }
   0x5   : > { %p190_p2 = pnand %p3665_p0, %p189_p1 }
   0x6   : > { %s3666_s19 = sshll.u32 (!%p190_p2), %s3661_s18, 1  ;;  %vm1200_vm0 = vcmask (!%p190_p2), 15360   ;;  %s6438_s29 = sld [smem:[#allocation2]] (!%p190_p2)  ;;  %vm1180_vm2 = vcmask (!%p190_p2), 9216  }
   0x7   : > { %193 = sbr.rel (%p190_p2) target bundleno = 1183 (0x49f), region = 36  ;;  %p230_p3 = scmp.lt.s32.totalorder (!%p190_p2), %s3666_s19, 3  ;;  %vm6180_vm1 = vmpackc.low (!%p190_p2), %vm1200_vm0, %vm1200_vm0 }
   0xe   : > { %s7037_s19 = smov (!%p230_p3, %s3666_s19), 3 }
   0xf   : > { %s5887_s0 = sshll.u32 %s7037_s19, 10  ;;  %s4333_s30 = sshll.u32 %s7037_s19, 4 }
  0x10   : > { %s5893_s22 = scalar_lea.vmem %s7030_s1, %s5887_s0  ;;  %s5943_s25 = scalar_lea.vmem %s7031_s2, %s5887_s0 }
  0x11   : > { %v290_v0 = vld [vmem:[%s5893_s22 + $0x100] sm:$0xff]  ;;  %v291_v5 = vld [vmem:[%s5893_s22 + $0x108] sm:$0xff]  ;;  %v292_v12 = vld [vmem:[%s5893_s22 + $0x110] sm:$0xff]  ;;  %s6170_s28 = scalar_lea.vmem %s7032_s3, %s5887_s0  ;;  %s6752_s7 = scalar_lea.vmem %s7033_s4, %s4333_s30 }
  0x12   : > { %v306_v1 = vld [vmem:[%s5893_s22 + $0x180] sm:$0xff]  ;;  %v307_v6 = vld [vmem:[%s5893_s22 + $0x188] sm:$0xff]  ;;  %v308_v13 = vld [vmem:[%s5893_s22 + $0x190] sm:$0xff] }
  0x13   : > { %v258_v2 = vld [vmem:[%s5893_s22] sm:$0xff]  ;;  %v5572_v3 = vpack.i.bf16 %v290_v0, %v306_v1  ;;  %v259_v8 = vld [vmem:[%s5893_s22 + $0x8] sm:$0xff]  ;;  %v5574_v10 = vpack.i.bf16 %v291_v5, %v307_v6  ;;  %v260_v14 = vld [vmem:[%s5893_s22 + $0x10] sm:$0xff]  ;;  %v5576_v16 = vpack.i.bf16 %v292_v12, %v308_v13 }
  0x14   : > { %v274_v4 = vld [vmem:[%s5893_s22 + $0x80] sm:$0xff]  ;;  %v275_v9 = vld [vmem:[%s5893_s22 + $0x88] sm:$0xff]  ;;  %v276_v15 = vld [vmem:[%s5893_s22 + $0x90] sm:$0xff] }
  0x15   : > { %v5535_v7 = vpack.i.bf16 %v258_v2, %v274_v4  ;;  %5573 = vxpose.xlu1.b32.start [1/16] (narrow) %v5572_v3, 8  ;;  %v5537_v11 = vpack.i.bf16 %v259_v8, %v275_v9  ;;  %v5539_v17 = vpack.i.bf16 %v260_v14, %v276_v15  ;;  %v293_v18 = vld [vmem:[%s5893_s22 + $0x118] sm:$0xff]  ;;  %v294_v24 = vld [vmem:[%s5893_s22 + $0x120] sm:$0xff]  ;;  %v295_v30 = vld [vmem:[%s5893_s22 + $0x128] sm:$0xff] }
  0x16   : > { %v309_v19 = vld [vmem:[%s5893_s22 + $0x198] sm:$0xff]  ;;  %v310_v25 = vld [vmem:[%s5893_s22 + $0x1a0] sm:$0xff]  ;;  %v311_v31 = vld [vmem:[%s5893_s22 + $0x1a8] sm:$0xff] }
  0x17   : > { %5536 = vxpose.xlu0.b32.start [1/16] (narrow) %v5535_v7, 8  ;;  %v261_v20 = vld [vmem:[%s5893_s22 + $0x18] sm:$0xff]  ;;  %v5578_v22 = vpack.i.bf16 %v293_v18, %v309_v19  ;;  %v262_v26 = vld [vmem:[%s5893_s22 + $0x20] sm:$0xff]  ;;  %v5580_v28 = vpack.i.bf16 %v294_v24, %v310_v25  ;;  %v263_v32 = vld [vmem:[%s5893_s22 + $0x28] sm:$0xff]  ;;  %v5582_v34 = vpack.i.bf16 %v295_v30, %v311_v31 }
  0x18   : > { %v277_v21 = vld [vmem:[%s5893_s22 + $0x98] sm:$0xff]  ;;  %v278_v27 = vld [vmem:[%s5893_s22 + $0xa0] sm:$0xff]  ;;  %v279_v33 = vld [vmem:[%s5893_s22 + $0xa8] sm:$0xff] }
  0x19   : > { %5575 = vxpose.xlu1.b32.cont [2/16] (narrow) %v5574_v10, 8  ;;  %v5541_v23 = vpack.i.bf16 %v261_v20, %v277_v21  ;;  %v5543_v29 = vpack.i.bf16 %v262_v26, %v278_v27  ;;  %v5545_v35 = vpack.i.bf16 %v263_v32, %v279_v33  ;;  %v296_v36 = vld [vmem:[%s5893_s22 + $0x130] sm:$0xff]  ;;  %v297_v42 = vld [vmem:[%s5893_s22 + $0x138] sm:$0xff]  ;;  %v298_v48 = vld [vmem:[%s5893_s22 + $0x140] sm:$0xff] }
  0x1a   : > { %v312_v37 = vld [vmem:[%s5893_s22 + $0x1b0] sm:$0xff]  ;;  %v313_v43 = vld [vmem:[%s5893_s22 + $0x1b8] sm:$0xff]  ;;  %v314_v49 = vld [vmem:[%s5893_s22 + $0x1c0] sm:$0xff] }
  0x1b   : > { %5538 = vxpose.xlu0.b32.cont [2/16] (narrow) %v5537_v11, 8  ;;  %v264_v38 = vld [vmem:[%s5893_s22 + $0x30] sm:$0xff]  ;;  %v5584_v40 = vpack.i.bf16 %v296_v36, %v312_v37  ;;  %v265_v44 = vld [vmem:[%s5893_s22 + $0x38] sm:$0xff]  ;;  %v5586_v46 = vpack.i.bf16 %v297_v42, %v313_v43  ;;  %v266_v50 = vld [vmem:[%s5893_s22 + $0x40] sm:$0xff]  ;;  %v5588_v52 = vpack.i.bf16 %v298_v48, %v314_v49 }
  0x1c   : > { %v280_v39 = vld [vmem:[%s5893_s22 + $0xb0] sm:$0xff]  ;;  %v281_v45 = vld [vmem:[%s5893_s22 + $0xb8] sm:$0xff]  ;;  %v282_v51 = vld [vmem:[%s5893_s22 + $0xc0] sm:$0xff] }
  0x1d   : > { %5577 = vxpose.xlu1.b32.cont [3/16] (narrow) %v5576_v16, 8  ;;  %v5547_v41 = vpack.i.bf16 %v264_v38, %v280_v39  ;;  %v5549_v47 = vpack.i.bf16 %v265_v44, %v281_v45  ;;  %v5551_v53 = vpack.i.bf16 %v266_v50, %v282_v51  ;;  %v299_v54 = vld [vmem:[%s5893_s22 + $0x148] sm:$0xff]  ;;  %v300_v60 = vld [vmem:[%s5893_s22 + $0x150] sm:$0xff]  ;;  %v301_v2 = vld [vmem:[%s5893_s22 + $0x158] sm:$0xff] }
  0x1e   : > { %v315_v55 = vld [vmem:[%s5893_s22 + $0x1c8] sm:$0xff]  ;;  %v316_v61 = vld [vmem:[%s5893_s22 + $0x1d0] sm:$0xff]  ;;  %v317_v3 = vld [vmem:[%s5893_s22 + $0x1d8] sm:$0xff] }
  0x1f   : > { %5540 = vxpose.xlu0.b32.cont [3/16] (narrow) %v5539_v17, 8  ;;  %v267_v56 = vld [vmem:[%s5893_s22 + $0x48] sm:$0xff]  ;;  %v5590_v58 = vpack.i.bf16 %v299_v54, %v315_v55  ;;  %v268_v62 = vld [vmem:[%s5893_s22 + $0x50] sm:$0xff]  ;;  %v5592_v0 = vpack.i.bf16 %v300_v60, %v316_v61  ;;  %v269_v4 = vld [vmem:[%s5893_s22 + $0x58] sm:$0xff]  ;;  %v5594_v9 = vpack.i.bf16 %v301_v2, %v317_v3 }
  0x20   : > { %v283_v57 = vld [vmem:[%s5893_s22 + $0xc8] sm:$0xff]  ;;  %v284_v63 = vld [vmem:[%s5893_s22 + $0xd0] sm:$0xff]  ;;  %v285_v5 = vld [vmem:[%s5893_s22 + $0xd8] sm:$0xff] }
  0x21   : > { %5579 = vxpose.xlu1.b32.cont [4/16] (narrow) %v5578_v22, 8  ;;  %v5553_v59 = vpack.i.bf16 %v267_v56, %v283_v57  ;;  %v5555_v1 = vpack.i.bf16 %v268_v62, %v284_v63  ;;  %v302_v6 = vld [vmem:[%s5893_s22 + $0x160] sm:$0xff]  ;;  %v403_v12 = vld [vmem:[%s5943_s25 + $0x88] sm:$0xff]  ;;  %v5557_v15 = vpack.i.bf16 %v269_v4, %v285_v5  ;;  %v405_v24 = vld [vmem:[%s5943_s25 + $0x98] sm:$0xff] }
  0x22   : > { %v318_v7 = vld [vmem:[%s5893_s22 + $0x1e0] sm:$0xff]  ;;  %v435_v14 = vld [vmem:[%s5943_s25 + $0x188] sm:$0xff]  ;;  %v437_v30 = vld [vmem:[%s5943_s25 + $0x198] sm:$0xff] }
  0x23   : > { %5542 = vxpose.xlu0.b32.cont [4/16] (narrow) %v5541_v23, 8  ;;  %v402_v8 = vld [vmem:[%s5943_s25 + $0x80] sm:$0xff]  ;;  %v387_v19 = vld [vmem:[%s5943_s25 + $0x8] sm:$0xff]  ;;  %v404_v23 = vld [vmem:[%s5943_s25 + $0x90] sm:$0xff]  ;;  %v5596_v32 = vpack.i.bf16 %v302_v6, %v318_v7 }
  0x24   : > { %v270_v10 = vld [vmem:[%s5893_s22 + $0x60] sm:$0xff]  ;;  %v4886_v16 = vpack.c.bf16 %v403_v12, %v402_v8  ;;  %v419_v22 = vld [vmem:[%s5943_s25 + $0x108] sm:$0xff]  ;;  %v388_v31 = vld [vmem:[%s5943_s25 + $0x10] sm:$0xff] }
  0x25   : > { %5581 = vxpose.xlu1.b32.cont [5/16] (narrow) %v5580_v28, 8  ;;  %v286_v11 = vld [vmem:[%s5893_s22 + $0xe0] sm:$0xff]  ;;  %v5964_v25 = vld [vmem:[%s5893_s22 + $0x168] sm:$0xff]  ;;  %v4890_v28 = vpack.c.bf16 %v405_v24, %v404_v23  ;;  %v389_v36 = vld [vmem:[%s5943_s25 + $0x18] sm:$0xff] }
  0x26   : > { %v434_v13 = vld [vmem:[%s5943_s25 + $0x180] sm:$0xff]  ;;  %v319_v26 = vld [vmem:[%s5893_s22 + $0x1e8] sm:$0xff]  ;;  %4887 = vmatprep.subr.bf16.mxu0 %v4886_v16  ;;  %v420_v37 = vld [vmem:[%s5943_s25 + $0x110] sm:$0xff]  ;;  %v5559_v39 = vpack.i.bf16 %v270_v10, %v286_v11 }
  0x27   : > { %5544 = vxpose.xlu0.b32.cont [5/16] (narrow) %v5543_v29, 8  ;;  %v4918_v17 = vpack.c.bf16 %v435_v14, %v434_v13  ;;  %v386_v18 = vld [vmem:[%s5943_s25] sm:$0xff]  ;;  %v436_v29 = vld [vmem:[%s5943_s25 + $0x190] sm:$0xff]  ;;  %v271_v33 = vld [vmem:[%s5893_s22 + $0x68] sm:$0xff]  ;;  %v5598_v55 = vpack.i.bf16 %v5964_v25, %v319_v26 }
  0x28   : > { %v418_v20 = vld [vmem:[%s5943_s25 + $0x100] sm:$0xff]  ;;  %v4888_v21 = vpack.c.bf16 %v387_v19, %v386_v18  ;;  %v421_v38 = vld [vmem:[%s5943_s25 + $0x118] sm:$0xff]  ;;  %v407_v43 = vld [vmem:[%s5943_s25 + $0xa8] sm:$0xff] }
  0x29   : > { %5583 = vxpose.xlu1.b32.cont [6/16] (narrow) %v5582_v34, 8  ;;  %4919 = vmatprep.subr.bf16.mxu1 %v4918_v17  ;;  %v4920_v27 = vpack.c.bf16 %v419_v22, %v418_v20  ;;  %v287_v34 = vld [vmem:[%s5893_s22 + $0xe8] sm:$0xff]  ;;  %v406_v42 = vld [vmem:[%s5943_s25 + $0xa0] sm:$0xff]  ;;  %v304_v49 = vld [vmem:[%s5893_s22 + $0x170] sm:$0xff] }
  0x2a   : > { %4889 = vmatpush3.bf16.msra.mxu0 %v4888_v21  ;;  %v438_v44 = vld [vmem:[%s5943_s25 + $0x1a0] sm:$0xff]  ;;  %v4894_v45 = vpack.c.bf16 %v407_v43, %v406_v42  ;;  %v391_v48 = vld [vmem:[%s5943_s25 + $0x28] sm:$0xff]  ;;  %v320_v50 = vld [vmem:[%s5893_s22 + $0x1f0] sm:$0xff]  ;;  %v5561_v61 = vpack.i.bf16 %v271_v33, %v287_v34 }
  0x2b   : > { %5546 = vxpose.xlu0.b32.cont [6/16] (narrow) %v5545_v35, 8  ;;  %v4922_v35 = vpack.c.bf16 %v437_v30, %v436_v29  ;;  %4921 = vmatpush3.bf16.msra.mxu1 %v4920_v27  ;;  %v408_v54 = vld [vmem:[%s5943_s25 + $0xb0] sm:$0xff]  ;;  %v441_v60 = vld [vmem:[%s5943_s25 + $0x1b8] sm:$0xff]  ;;  %v410_v6 = vld [vmem:[%s5943_s25 + $0xc0] sm:$0xff]  ;;  %v5600_v10 = vpack.i.bf16 %v304_v49, %v320_v50 }
  0x2c   : > { %4891 = vmatprep.subr.bf16.mxu0 %v4890_v28  ;;  %v272_v56 = vld [vmem:[%s5893_s22 + $0x70] sm:$0xff]  ;;  %v425_v5 = vld [vmem:[%s5943_s25 + $0x138] sm:$0xff]  ;;  %v411_v7 = vld [vmem:[%s5943_s25 + $0xc8] sm:$0xff] }
  0x2d   : > { %5585 = vxpose.xlu1.b32.cont [7/16] (narrow) %v5584_v40, 8  ;;  %v4892_v40 = vpack.c.bf16 %v389_v36, %v388_v31  ;;  %4923 = vmatprep.subr.bf16.mxu1 %v4922_v35  ;;  %v288_v62 = vld [vmem:[%s5893_s22 + $0xf0] sm:$0xff]  ;;  %v442_v8 = vld [vmem:[%s5943_s25 + $0x1c0] sm:$0xff]  ;;  %v305_v11 = vld [vmem:[%s5893_s22 + $0x178] sm:$0xff]  ;;  %v4902_v20 = vpack.c.bf16 %v411_v7, %v410_v6 }
  0x2e   : > { %v424_v4 = vld [vmem:[%s5943_s25 + $0x130] sm:$0xff]  ;;  %v321_v12 = vld [vmem:[%s5893_s22 + $0x1f8] sm:$0xff]  ;;  %v394_v18 = vld [vmem:[%s5943_s25 + $0x40] sm:$0xff] }
  0x2f   : > { %5548 = vxpose.xlu0.b32.cont [7/16] (narrow) %v5547_v41, 8  ;;  %v4924_v41 = vpack.c.bf16 %v421_v38, %v420_v37  ;;  %4893 = vmatpush3.bf16.msra.mxu0 %v4892_v40  ;;  %v273_v13 = vld [vmem:[%s5893_s22 + $0x78] sm:$0xff]  ;;  %v4932_v17 = vpack.c.bf16 %v425_v5, %v424_v4  ;;  %v395_v19 = vld [vmem:[%s5943_s25 + $0x48] sm:$0xff]  ;;  %v426_v22 = vld [vmem:[%s5943_s25 + $0x140] sm:$0xff]  ;;  %v5602_v28 = vpack.i.bf16 %v305_v11, %v321_v12 }
  0x30   : > { %4895 = vmatprep.subr.bf16.mxu0 %v4894_v45  ;;  %v289_v16 = vld [vmem:[%s5893_s22 + $0xf8] sm:$0xff]  ;;  %v427_v23 = vld [vmem:[%s5943_s25 + $0x148] sm:$0xff]  ;;  %v412_v24 = vld [vmem:[%s5943_s25 + $0xd0] sm:$0xff] }
  0x31   : > { %5587 = vxpose.xlu1.b32.cont [8/16] (narrow) %v5586_v46, 8  ;;  %v439_v46 = vld [vmem:[%s5943_s25 + $0x1a8] sm:$0xff]  ;;  %4925 = vmatpush3.bf16.msra.mxu1 %v4924_v41  ;;  %v413_v25 = vld [vmem:[%s5943_s25 + $0xd8] sm:$0xff]  ;;  %v444_v26 = vld [vmem:[%s5943_s25 + $0x1d0] sm:$0xff]  ;;  %v5565_v33 = vpack.i.bf16 %v273_v13, %v289_v16  ;;  %v4936_v35 = vpack.c.bf16 %v427_v23, %v426_v22 }
  0x32   : > { %v4926_v51 = vpack.c.bf16 %v439_v46, %v438_v44  ;;  %v445_v27 = vld [vmem:[%s5943_s25 + $0x1d8] sm:$0xff]  ;;  %v354_v29 = vld [vmem:[%s5893_s22 + $0x300] sm:$0xff]  ;;  %v396_v36 = vld [vmem:[%s5943_s25 + $0x50] sm:$0xff]  ;;  %v4906_v38 = vpack.c.bf16 %v413_v25, %v412_v24 }
  0x33   : > { %5550 = vxpose.xlu0.b32.cont [8/16] (narrow) %v5549_v47, 8  ;;  %v390_v47 = vld [vmem:[%s5943_s25 + $0x20] sm:$0xff]  ;;  %v397_v37 = vld [vmem:[%s5943_s25 + $0x58] sm:$0xff]  ;;  %v428_v40 = vld [vmem:[%s5943_s25 + $0x150] sm:$0xff] }
  0x34   : > { %v4896_v57 = vpack.c.bf16 %v391_v48, %v390_v47  ;;  %4927 = vmatprep.subr.bf16.mxu1 %v4926_v51  ;;  %v370_v30 = vld [vmem:[%s5893_s22 + $0x380] sm:$0xff]  ;;  %v429_v41 = vld [vmem:[%s5943_s25 + $0x158] sm:$0xff]  ;;  %v415_v43 = vld [vmem:[%s5943_s25 + $0xe8] sm:$0xff]  ;;  %v4908_v50 = vpack.c.bf16 %v397_v37, %v396_v36 }
  0x35   : > { %5589 = vxpose.xlu1.b32.cont [9/16] (narrow) %v5588_v52, 8  ;;  %v422_v52 = vld [vmem:[%s5943_s25 + $0x120] sm:$0xff]  ;;  %v447_v45 = vld [vmem:[%s5943_s25 + $0x1e8] sm:$0xff]  ;;  %v5646_v46 = vpack.i.bf16 %v354_v29, %v370_v30  ;;  %v340_v6 = vld [vmem:[%s5893_s22 + $0x290] sm:$0xff] }
  0x36   : > { %4897 = vmatpush3.bf16.msra.mxu0 %v4896_v57  ;;  %v322_v31 = vld [vmem:[%s5893_s22 + $0x200] sm:$0xff]  ;;  %v355_v47 = vld [vmem:[%s5893_s22 + $0x308] sm:$0xff]  ;;  %v432_v12 = vld [vmem:[%s5943_s25 + $0x170] sm:$0xff] }
  0x37   : > { %5552 = vxpose.xlu0.b32.cont [9/16] (narrow) %v5551_v53, 8  ;;  %v423_v53 = vld [vmem:[%s5943_s25 + $0x128] sm:$0xff]  ;;  %v338_v34 = vld [vmem:[%s5893_s22 + $0x280] sm:$0xff]  ;;  %v433_v13 = vld [vmem:[%s5943_s25 + $0x178] sm:$0xff] }
  0x38   : > { %v4928_v63 = vpack.c.bf16 %v423_v53, %v422_v52  ;;  %v414_v42 = vld [vmem:[%s5943_s25 + $0xe0] sm:$0xff]  ;;  %v371_v48 = vld [vmem:[%s5893_s22 + $0x388] sm:$0xff]  ;;  %v5609_v51 = vpack.i.bf16 %v322_v31, %v338_v34  ;;  %v4940_v53 = vpack.c.bf16 %v429_v41, %v428_v40  ;;  %v373_v22 = vld [vmem:[%s5893_s22 + $0x398] sm:$0xff]  ;;  %v4948_v23 = vpack.c.bf16 %v433_v13, %v432_v12 }
  0x39   : > { %5591 = vxpose.xlu1.b32.cont [10/16] (narrow) %v5590_v58, 8  ;;  %v409_v58 = vld [vmem:[%s5943_s25 + $0xb8] sm:$0xff]  ;;  %v446_v44 = vld [vmem:[%s5943_s25 + $0x1e0] sm:$0xff]  ;;  %v323_v49 = vld [vmem:[%s5893_s22 + $0x208] sm:$0xff] }
  0x3a   : > { %v4898_v2 = vpack.c.bf16 %v409_v58, %v408_v54  ;;  %4929 = vmatpush3.bf16.msra.mxu1 %v4928_v63  ;;  %v339_v52 = vld [vmem:[%s5893_s22 + $0x288] sm:$0xff]  ;;  %v398_v54 = vld [vmem:[%s5943_s25 + $0x60] sm:$0xff]  ;;  %v4942_v57 = vpack.c.bf16 %v447_v45, %v446_v44  ;;  %v449_v63 = vld [vmem:[%s5943_s25 + $0x1f8] sm:$0xff] }
  0x3b   : > { %5554 = vxpose.xlu0.b32.cont [10/16] (narrow) %v5553_v59, 8  ;;  %v440_v59 = vld [vmem:[%s5943_s25 + $0x1b0] sm:$0xff]  ;;  %v430_v58 = vld [vmem:[%s5943_s25 + $0x160] sm:$0xff]  ;;  %v5611_v5 = vpack.i.bf16 %v323_v49, %v339_v52  ;;  %v325_v24 = vld [vmem:[%s5893_s22 + $0x218] sm:$0xff] }
  0x3c   : > { %v4930_v3 = vpack.c.bf16 %v441_v60, %v440_v59  ;;  %4899 = vmatprep.subr.bf16.mxu0 %v4898_v2  ;;  %v431_v59 = vld [vmem:[%s5943_s25 + $0x168] sm:$0xff]  ;;  %v416_v60 = vld [vmem:[%s5943_s25 + $0xf0] sm:$0xff]  ;;  %v498_v16 = vld [vmem:[%s5943_s25 + $0x380] sm:$0xff] }
  0x3d   : > { %5593 = vxpose.xlu1.b32.cont [11/16] (narrow) %v5592_v0, 8  ;;  %v392_v0 = vld [vmem:[%s5943_s25 + $0x30] sm:$0xff]  ;;  %v4944_v7 = vpack.c.bf16 %v431_v59, %v430_v58  ;;  %v341_v25 = vld [vmem:[%s5893_s22 + $0x298] sm:$0xff]  ;;  %v358_v30 = vld [vmem:[%s5893_s22 + $0x320] sm:$0xff] }
  0x3e   : > { %4931 = vmatprep.subr.bf16.mxu1 %v4930_v3  ;;  %v372_v2 = vld [vmem:[%s5893_s22 + $0x390] sm:$0xff]  ;;  %v5615_v29 = vpack.i.bf16 %v325_v24, %v341_v25  ;;  %v374_v31 = vld [vmem:[%s5893_s22 + $0x3a0] sm:$0xff]  ;;  %v359_v36 = vld [vmem:[%s5893_s22 + $0x328] sm:$0xff] }
  0x3f   : > { %5556 = vxpose.xlu0.b32.cont [11/16] (narrow) %v5555_v1, 8  ;;  %v393_v1 = vld [vmem:[%s5943_s25 + $0x38] sm:$0xff]  ;;  %4933 = vmatpush3.bf16.msra.mxu1 %v4932_v17  ;;  %v324_v3 = vld [vmem:[%s5893_s22 + $0x210] sm:$0xff]  ;;  %v499_v17 = vld [vmem:[%s5943_s25 + $0x388] sm:$0xff]  ;;  %v5654_v34 = vpack.i.bf16 %v358_v30, %v374_v31 }
  0x40   : > { %v4900_v14 = vpack.c.bf16 %v393_v1, %v392_v0  ;;  %v5648_v0 = vpack.i.bf16 %v355_v47, %v371_v48  ;;  %v356_v1 = vld [vmem:[%s5893_s22 + $0x310] sm:$0xff]  ;;  %v375_v37 = vld [vmem:[%s5893_s22 + $0x3a8] sm:$0xff]  ;;  %v361_v48 = vld [vmem:[%s5893_s22 + $0x338] sm:$0xff] }
  0x41   : > { %5595 = vxpose.xlu1.b32.cont [12/16] (narrow) %v5594_v9, 8  ;;  %v443_v9 = vld [vmem:[%s5943_s25 + $0x1c8] sm:$0xff]  ;;  %v5656_v40 = vpack.i.bf16 %v359_v36, %v375_v37  ;;  %v328_v44 = vld [vmem:[%s5893_s22 + $0x230] sm:$0xff]  ;;  %v377_v49 = vld [vmem:[%s5893_s22 + $0x3b8] sm:$0xff] }
  0x42   : > { %v4934_v21 = vpack.c.bf16 %v443_v9, %v442_v8  ;;  %4901 = vmatpush3.bf16.msra.mxu0 %v4900_v14  ;;  %v400_v8 = vld [vmem:[%s5943_s25 + $0x70] sm:$0xff]  ;;  %v401_v9 = vld [vmem:[%s5943_s25 + $0x78] sm:$0xff]  ;;  %v466_v14 = vld [vmem:[%s5943_s25 + $0x280] sm:$0xff]  ;;  %v5660_v52 = vpack.i.bf16 %v361_v48, %v377_v49 }
  0x43   : > { %5558 = vxpose.xlu0.b32.cont [12/16] (narrow) %v5557_v15, 8  ;;  %v5563_v15 = vpack.i.bf16 %v272_v56, %v288_v62  ;;  %4903 = vmatprep.subr.bf16.mxu0 %v4902_v20  ;;  %v4910_v56 = vpack.c.bf16 %v415_v43, %v414_v42  ;;  %v448_v62 = vld [vmem:[%s5943_s25 + $0x1f0] sm:$0xff]  ;;  %v5613_v20 = vpack.i.bf16 %v324_v3, %v340_v6  ;;  %v469_v48 = vld [vmem:[%s5943_s25 + $0x298] sm:$0xff] }
  0x44   : > { %4935 = vmatprep.subr.bf16.mxu1 %v4934_v21  ;;  %v4946_v11 = vpack.c.bf16 %v449_v63, %v448_v62  ;;  %v357_v21 = vld [vmem:[%s5893_s22 + $0x318] sm:$0xff]  ;;  %v360_v42 = vld [vmem:[%s5893_s22 + $0x330] sm:$0xff]  ;;  %v331_v62 = vld [vmem:[%s5893_s22 + $0x248] sm:$0xff] }
  0x45   : > { %5597 = vxpose.xlu1.b32.cont [13/16] (narrow) %v5596_v32, 8  ;;  %v4904_v32 = vpack.c.bf16 %v395_v19, %v394_v18  ;;  %4937 = vmatpush3.bf16.msra.mxu1 %v4936_v35  ;;  %v5650_v18 = vpack.i.bf16 %v356_v1, %v372_v2  ;;  %v4916_v19 = vpack.c.bf16 %v401_v9, %v400_v8  ;;  %v376_v43 = vld [vmem:[%s5893_s22 + $0x3b0] sm:$0xff]  ;;  %v347_v63 = vld [vmem:[%s5893_s22 + $0x2c8] sm:$0xff]  ;;  %v365_v8 = vld [vmem:[%s5893_s22 + $0x358] sm:$0xff] }
  0x46   : > { %v344_v45 = vld [vmem:[%s5893_s22 + $0x2b0] sm:$0xff]  ;;  %v5627_v1 = vpack.i.bf16 %v331_v62, %v347_v63  ;;  %v381_v9 = vld [vmem:[%s5893_s22 + $0x3d8] sm:$0xff]  ;;  %v470_v62 = vld [vmem:[%s5943_s25 + $0x2a0] sm:$0xff] }
  0x47   : > { %5560 = vxpose.xlu0.b32.cont [13/16] (narrow) %v5559_v39, 8  ;;  %v4938_v39 = vpack.c.bf16 %v445_v27, %v444_v26  ;;  %4905 = vmatpush3.bf16.msra.mxu0 %v4904_v32  ;;  %v4982_v27 = vpack.c.bf16 %v499_v17, %v498_v16  ;;  %v326_v32 = vld [vmem:[%s5893_s22 + $0x220] sm:$0xff]  ;;  %v5621_v47 = vpack.i.bf16 %v328_v44, %v344_v45  ;;  %v364_v2 = vld [vmem:[%s5893_s22 + $0x350] sm:$0xff]  ;;  %v471_v63 = vld [vmem:[%s5943_s25 + $0x2a8] sm:$0xff] }
  0x48   : > { %4907 = vmatprep.subr.bf16.mxu0 %v4906_v38  ;;  %v327_v38 = vld [vmem:[%s5893_s22 + $0x228] sm:$0xff]  ;;  %v380_v3 = vld [vmem:[%s5893_s22 + $0x3d0] sm:$0xff]  ;;  %v5668_v12 = vpack.i.bf16 %v365_v8, %v381_v9  ;;  %v334_v16 = vld [vmem:[%s5893_s22 + $0x260] sm:$0xff] }
  0x49   : > { %5599 = vxpose.xlu1.b32.cont [14/16] (narrow) %v5598_v55, 8  ;;  %v399_v55 = vld [vmem:[%s5943_s25 + $0x68] sm:$0xff]  ;;  %4939 = vmatprep.subr.bf16.mxu1 %v4938_v39  ;;  %v5666_v6 = vpack.i.bf16 %v364_v2, %v380_v3  ;;  %v350_v17 = vld [vmem:[%s5893_s22 + $0x2e0] sm:$0xff]  ;;  %v504_v8 = vld [vmem:[%s5943_s25 + $0x3b0] sm:$0xff] }
  0x4a   : > { %v4912_v4 = vpack.c.bf16 %v399_v55, %v398_v54  ;;  %4941 = vmatpush3.bf16.msra.mxu1 %v4940_v53  ;;  %v343_v39 = vld [vmem:[%s5893_s22 + $0x2a8] sm:$0xff]  ;;  %v362_v54 = vld [vmem:[%s5893_s22 + $0x340] sm:$0xff]  ;;  %v505_v9 = vld [vmem:[%s5943_s25 + $0x3b8] sm:$0xff] }
  0x4b   : > { %5562 = vxpose.xlu0.b32.cont [14/16] (narrow) %v5561_v61, 8  ;;  %v417_v61 = vld [vmem:[%s5943_s25 + $0xf8] sm:$0xff]  ;;  %4909 = vmatpush3.bf16.msra.mxu0 %v4908_v50  ;;  %v5619_v41 = vpack.i.bf16 %v327_v38, %v343_v39  ;;  %v378_v55 = vld [vmem:[%s5893_s22 + $0x3c0] sm:$0xff]  ;;  %v451_v39 = vld [vmem:[%s5943_s25 + $0x208] sm:$0xff] }
  0x4c   : > { %4911 = vmatprep.subr.bf16.mxu0 %v4910_v56  ;;  %4943 = vmatprep.subr.bf16.mxu1 %v4942_v57  ;;  %v329_v50 = vld [vmem:[%s5893_s22 + $0x238] sm:$0xff]  ;;  %v330_v56 = vld [vmem:[%s5893_s22 + $0x240] sm:$0xff]  ;;  %v5662_v58 = vpack.i.bf16 %v362_v54, %v378_v55  ;;  %v452_v55 = vld [vmem:[%s5943_s25 + $0x210] sm:$0xff] }
  0x4d   : > { %5601 = vxpose.xlu1.b32.cont [15/16] (narrow) %v5600_v10, 8  ;;  %v4914_v10 = vpack.c.bf16 %v417_v61, %v416_v60  ;;  %v346_v57 = vld [vmem:[%s5893_s22 + $0x2c0] sm:$0xff]  ;;  %v363_v60 = vld [vmem:[%s5893_s22 + $0x348] sm:$0xff] }
  0x4e   : > { %4945 = vmatpush3.bf16.msra.mxu1 %v4944_v7  ;;  %v5625_v59 = vpack.i.bf16 %v330_v56, %v346_v57  ;;  %v379_v61 = vld [vmem:[%s5893_s22 + $0x3c8] sm:$0xff]  ;;  %v450_v38 = vld [vmem:[%s5943_s25 + $0x200] sm:$0xff]  ;;  %v484_v56 = vld [vmem:[%s5943_s25 + $0x310] sm:$0xff] }
  0x4f   : > { %5564 = vxpose.xlu0.b32.cont [15/16] (narrow) %v5563_v15, 8  ;;  %v467_v15 = vld [vmem:[%s5943_s25 + $0x288] sm:$0xff]  ;;  %4913 = vmatpush3.bf16.msra.mxu0 %v4912_v4  ;;  %v332_v4 = vld [vmem:[%s5893_s22 + $0x250] sm:$0xff]  ;;  %v4952_v45 = vpack.c.bf16 %v451_v39, %v450_v38  ;;  %v485_v57 = vld [vmem:[%s5943_s25 + $0x318] sm:$0xff] }
  0x50   : > { %4915 = vmatprep.subr.bf16.mxu0 %v4914_v10  ;;  %4947 = vmatprep.subr.bf16.mxu1 %v4946_v11  ;;  %v4950_v26 = vpack.c.bf16 %v467_v15, %v466_v14  ;;  %v333_v10 = vld [vmem:[%s5893_s22 + $0x258] sm:$0xff]  ;;  %v366_v14 = vld [vmem:[%s5893_s22 + $0x360] sm:$0xff]  ;;  %v460_v39 = vld [vmem:[%s5943_s25 + $0x250] sm:$0xff] }
  0x51   : > { %5603 = vxpose.xlu1.b32.end [16/16] (narrow) %v5602_v28, 8  ;;  %v5652_v28 = vpack.i.bf16 %v357_v21, %v373_v22  ;;  %v349_v11 = vld [vmem:[%s5893_s22 + $0x2d8] sm:$0xff]  ;;  %v382_v15 = vld [vmem:[%s5893_s22 + $0x3e0] sm:$0xff]  ;;  %v383_v21 = vld [vmem:[%s5893_s22 + $0x3e8] sm:$0xff] }
  0x52   : > { %4949 = vmatpush3.bf16.msra.mxu1 %v4948_v23  ;;  %v5631_v13 = vpack.i.bf16 %v333_v10, %v349_v11  ;;  %v335_v22 = vld [vmem:[%s5893_s22 + $0x268] sm:$0xff]  ;;  %v454_v3 = vld [vmem:[%s5943_s25 + $0x220] sm:$0xff]  ;;  %v472_v10 = vld [vmem:[%s5943_s25 + $0x2b0] sm:$0xff] }
  0x53   : > { %5566 = vxpose.xlu0.b32.end [16/16] (narrow) %v5565_v33, 8  ;;  %4917 = vmatpush3.bf16.msra.mxu0 %v4916_v19  ;;  %v342_v33 = vld [vmem:[%s5893_s22 + $0x2a0] sm:$0xff]  ;;  %v5633_v19 = vpack.i.bf16 %v334_v16, %v350_v17  ;;  %v351_v23 = vld [vmem:[%s5893_s22 + $0x2e8] sm:$0xff]  ;;  %v473_v11 = vld [vmem:[%s5943_s25 + $0x2b8] sm:$0xff] }
  0x54   : > { %4951 = vmatprep.subr.bf16.mxu0 %v4950_v26  ;;  %4983 = vmatprep.subr.bf16.mxu1 %v4982_v27  ;;  %v5617_v35 = vpack.i.bf16 %v326_v32, %v342_v33  ;;  %v5635_v25 = vpack.i.bf16 %v335_v22, %v351_v23  ;;  %v368_v26 = vld [vmem:[%s5893_s22 + $0x370] sm:$0xff]  ;;  %v369_v32 = vld [vmem:[%s5893_s22 + $0x378] sm:$0xff]  ;;  %v474_v22 = vld [vmem:[%s5943_s25 + $0x2c0] sm:$0xff] }
  0x55   : > { %5647 = vxpose.xlu1.b32.start [1/16] (narrow) %v5646_v46, 8  ;;  %v5658_v46 = vpack.i.bf16 %v360_v42, %v376_v43  ;;  %v384_v27 = vld [vmem:[%s5893_s22 + $0x3f0] sm:$0xff]  ;;  %v385_v33 = vld [vmem:[%s5893_s22 + $0x3f8] sm:$0xff]  ;;  %v475_v23 = vld [vmem:[%s5943_s25 + $0x2c8] sm:$0xff] }
  0x56   : > { %v5674_v30 = vpack.i.bf16 %v368_v26, %v384_v27  ;;  %v5676_v36 = vpack.i.bf16 %v369_v32, %v385_v33  ;;  %v500_v42 = vld [vmem:[%s5943_s25 + $0x390] sm:$0xff]  ;;  %v501_v43 = vld [vmem:[%s5943_s25 + $0x398] sm:$0xff]  ;;  %v458_v27 = vld [vmem:[%s5943_s25 + $0x240] sm:$0xff] }
  0x57   : > { %5610 = vxpose.xlu0.b32.start [1/16] (narrow) %v5609_v51, 8  ;;  %v345_v51 = vld [vmem:[%s5893_s22 + $0x2b8] sm:$0xff]  ;;  %v4986_v49 = vpack.c.bf16 %v501_v43, %v500_v42  ;;  %v488_v16 = vld [vmem:[%s5943_s25 + $0x330] sm:$0xff] }
  0x58   : > { %v5623_v53 = vpack.i.bf16 %v329_v50, %v345_v51  ;;  %v489_v17 = vld [vmem:[%s5943_s25 + $0x338] sm:$0xff]  ;;  %v508_v32 = vld [vmem:[%s5943_s25 + $0x3d0] sm:$0xff] }
  0x59   : > { %5649 = vxpose.xlu1.b32.cont [2/16] (narrow) %v5648_v0, 8  ;;  %v5664_v0 = vpack.i.bf16 %v363_v60, %v379_v61  ;;  %v502_v60 = vld [vmem:[%s5943_s25 + $0x3a0] sm:$0xff]  ;;  %v503_v61 = vld [vmem:[%s5943_s25 + $0x3a8] sm:$0xff]  ;;  %v509_v33 = vld [vmem:[%s5943_s25 + $0x3d8] sm:$0xff] }
  0x5a   : > { %v4990_v2 = vpack.c.bf16 %v503_v61, %v502_v60  ;;  %v5002_v38 = vpack.c.bf16 %v509_v33, %v508_v32  ;;  %v461_v43 = vld [vmem:[%s5943_s25 + $0x258] sm:$0xff]  ;;  %v515_v32 = vld [vmem:[%s6170_s28 + $0x8] sm:$0xff] }
  0x5b   : > { %5612 = vxpose.xlu0.b32.cont [2/16] (narrow) %v5611_v5, 8  ;;  %v348_v5 = vld [vmem:[%s5893_s22 + $0x2d0] sm:$0xff] }
  0x5c   : > { %v5629_v7 = vpack.i.bf16 %v332_v4, %v348_v5  ;;  %v486_v4 = vld [vmem:[%s5943_s25 + $0x320] sm:$0xff]  ;;  %v487_v5 = vld [vmem:[%s5943_s25 + $0x328] sm:$0xff] }
  0x5d   : > { %5651 = vxpose.xlu1.b32.cont [3/16] (narrow) %v5650_v18, 8  ;;  %v5670_v18 = vpack.i.bf16 %v366_v14, %v382_v15  ;;  %v4994_v14 = vpack.c.bf16 %v505_v9, %v504_v8  ;;  %v456_v15 = vld [vmem:[%s5943_s25 + $0x230] sm:$0xff] }
  0x5f   : > { %5614 = vxpose.xlu0.b32.cont [3/16] (narrow) %v5613_v20, 8  ;;  %v367_v20 = vld [vmem:[%s5893_s22 + $0x368] sm:$0xff] }
  0x60   : > { %v5672_v24 = vpack.i.bf16 %v367_v20, %v383_v21  ;;  %v506_v20 = vld [vmem:[%s5943_s25 + $0x3c0] sm:$0xff]  ;;  %v507_v21 = vld [vmem:[%s5943_s25 + $0x3c8] sm:$0xff] }
  0x61   : > { %5653 = vxpose.xlu1.b32.cont [4/16] (narrow) %v5652_v28, 8  ;;  %v336_v28 = vld [vmem:[%s5893_s22 + $0x270] sm:$0xff]  ;;  %v4998_v26 = vpack.c.bf16 %v507_v21, %v506_v20  ;;  %v562_v21 = vld [vmem:[%s6170_s28 + $0x180] sm:$0xff] }
  0x63   : > { %5616 = vxpose.xlu0.b32.cont [4/16] (narrow) %v5615_v29, 8  ;;  %v352_v29 = vld [vmem:[%s5893_s22 + $0x2f0] sm:$0xff] }
  0x64   : > { %v5637_v31 = vpack.i.bf16 %v336_v28, %v352_v29  ;;  %v490_v28 = vld [vmem:[%s5943_s25 + $0x340] sm:$0xff]  ;;  %v491_v29 = vld [vmem:[%s5943_s25 + $0x348] sm:$0xff] }
  0x65   : > { %5655 = vxpose.xlu1.b32.cont [5/16] (narrow) %v5654_v34, 8  ;;  %v337_v34 = vld [vmem:[%s5893_s22 + $0x278] sm:$0xff] }
  0x67   : > { %5618 = vxpose.xlu0.b32.cont [5/16] (narrow) %v5617_v35, 8  ;;  %v353_v35 = vld [vmem:[%s5893_s22 + $0x2f8] sm:$0xff] }
  0x68   : > { %v5639_v37 = vpack.i.bf16 %v337_v34, %v353_v35  ;;  %v476_v34 = vld [vmem:[%s5943_s25 + $0x2d0] sm:$0xff]  ;;  %v477_v35 = vld [vmem:[%s5943_s25 + $0x2d8] sm:$0xff] }
  0x69   : > { %5657 = vxpose.xlu1.b32.cont [6/16] (narrow) %v5656_v40, 8  ;;  %v482_v40 = vld [vmem:[%s5943_s25 + $0x300] sm:$0xff]  ;;  %v4970_v42 = vpack.c.bf16 %v477_v35, %v476_v34  ;;  %v547_v35 = vld [vmem:[%s6170_s28 + $0x108] sm:$0xff] }
  0x6a   : > { %v546_v34 = vld [vmem:[%s6170_s28 + $0x100] sm:$0xff] }
  0x6b   : > { %5620 = vxpose.xlu0.b32.cont [6/16] (narrow) %v5619_v41, 8  ;;  %v483_v41 = vld [vmem:[%s5943_s25 + $0x308] sm:$0xff] }
  0x6d   : > { %5659 = vxpose.xlu1.b32.cont [7/16] (narrow) %v5658_v46, 8  ;;  %v4984_v46 = vpack.c.bf16 %v483_v41, %v482_v40  ;;  %v492_v40 = vld [vmem:[%s5943_s25 + $0x350] sm:$0xff]  ;;  %v493_v41 = vld [vmem:[%s5943_s25 + $0x358] sm:$0xff] }
  0x6f   : > { %5622 = vxpose.xlu0.b32.cont [7/16] (narrow) %v5621_v47, 8  ;;  %v468_v47 = vld [vmem:[%s5943_s25 + $0x290] sm:$0xff] }
  0x71   : > { %5661 = vxpose.xlu1.b32.cont [8/16] (narrow) %v5660_v52, 8 }
  0x73   : > { %5624 = vxpose.xlu0.b32.cont [8/16] (narrow) %v5623_v53, 8 }
  0x75   : > { %5663 = vxpose.xlu1.b32.cont [9/16] (narrow) %v5662_v58, 8  ;;  %v4954_v58 = vpack.c.bf16 %v469_v48, %v468_v47  ;;  %v479_v47 = vld [vmem:[%s5943_s25 + $0x2e8] sm:$0xff]  ;;  %v5004_v48 = vpack.c.bf16 %v493_v41, %v492_v40  ;;  %v3828_v41 = vld [vmem:[%s5893_s22 + $0x490] sm:$0xff] }
  0x77   : > { %5626 = vxpose.xlu0.b32.cont [9/16] (narrow) %v5625_v59, 8  ;;  %v453_v59 = vld [vmem:[%s5943_s25 + $0x218] sm:$0xff] }
  0x79   : > { %5665 = vxpose.xlu1.b32.cont [10/16] (narrow) %v5664_v0, 8  ;;  %v4988_v0 = vpack.c.bf16 %v485_v57, %v484_v56  ;;  %v512_v56 = vld [vmem:[%s5943_s25 + $0x3f0] sm:$0xff]  ;;  %v513_v57 = vld [vmem:[%s5943_s25 + $0x3f8] sm:$0xff] }
  0x7b   : > { %5628 = vxpose.xlu0.b32.cont [10/16] (narrow) %v5627_v1, 8  ;;  %v4956_v1 = vpack.c.bf16 %v453_v59, %v452_v55  ;;  %v463_v55 = vld [vmem:[%s5943_s25 + $0x268] sm:$0xff]  ;;  %v481_v59 = vld [vmem:[%s5943_s25 + $0x2f8] sm:$0xff] }
  0x7d   : > { %5667 = vxpose.xlu1.b32.cont [11/16] (narrow) %v5666_v6, 8  ;;  %v4958_v6 = vpack.c.bf16 %v471_v63, %v470_v62  ;;  %v5010_v62 = vpack.c.bf16 %v513_v57, %v512_v56  ;;  %v496_v63 = vld [vmem:[%s5943_s25 + $0x370] sm:$0xff]  ;;  %v517_v56 = vld [vmem:[%s6170_s28 + $0x18] sm:$0xff] }
  0x7e   : > { %v548_v57 = vld [vmem:[%s6170_s28 + $0x110] sm:$0xff] }
  0x7f   : > { %5630 = vxpose.xlu0.b32.cont [11/16] (narrow) %v5629_v7, 8  ;;  %v455_v7 = vld [vmem:[%s5943_s25 + $0x228] sm:$0xff] }
  0x81   : > { %5669 = vxpose.xlu1.b32.cont [12/16] (narrow) %v5668_v12, 8  ;;  %v4992_v12 = vpack.c.bf16 %v487_v5, %v486_v4 }
  0x83   : > { %5632 = vxpose.xlu0.b32.cont [12/16] (narrow) %v5631_v13, 8  ;;  %v4960_v13 = vpack.c.bf16 %v455_v7, %v454_v3  ;;  %v465_v3 = vld [vmem:[%s5943_s25 + $0x278] sm:$0xff] }
  0x85   : > { %5671 = vxpose.xlu1.b32.cont [13/16] (narrow) %v5670_v18, 8  ;;  %v4962_v18 = vpack.c.bf16 %v473_v11, %v472_v10 }
  0x87   : > { %5634 = vxpose.xlu0.b32.cont [13/16] (narrow) %v5633_v19, 8  ;;  %v457_v19 = vld [vmem:[%s5943_s25 + $0x238] sm:$0xff] }
  0x89   : > { %5673 = vxpose.xlu1.b32.cont [14/16] (narrow) %v5672_v24, 8  ;;  %v4996_v24 = vpack.c.bf16 %v489_v17, %v488_v16  ;;  %v3826_v16 = vld [vmem:[%s5893_s22 + $0x480] sm:$0xff]  ;;  %v3843_v17 = vld [vmem:[%s5893_s22 + $0x508] sm:$0xff] }
  0x8b   : > { %5636 = vxpose.xlu0.b32.cont [14/16] (narrow) %v5635_v25, 8  ;;  %v4964_v25 = vpack.c.bf16 %v457_v19, %v456_v15 }
  0x8d   : > { %5675 = vxpose.xlu1.b32.cont [15/16] (narrow) %v5674_v30, 8  ;;  %v4966_v30 = vpack.c.bf16 %v475_v23, %v474_v22  ;;  %v563_v22 = vld [vmem:[%s6170_s28 + $0x188] sm:$0xff] }
  0x8e   : > { %v3811_v23 = vld [vmem:[%s5893_s22 + $0x408] sm:$0xff] }
  0x8f   : > { %5638 = vxpose.xlu0.b32.cont [15/16] (narrow) %v5637_v31, 8  ;;  %v459_v31 = vld [vmem:[%s5943_s25 + $0x248] sm:$0xff] }
  0x91   : > { %5677 = vxpose.xlu1.b32.end [16/16] (narrow) %v5676_v36, 8  ;;  %v5000_v36 = vpack.c.bf16 %v491_v29, %v490_v28 }
  0x93   : > { %5640 = vxpose.xlu0.b32.end [16/16] (narrow) %v5639_v37, 8  ;;  %v4968_v37 = vpack.c.bf16 %v459_v31, %v458_v27  ;;  %v531_v27 = vld [vmem:[%s6170_s28 + $0x88] sm:$0xff]  ;;  %v514_v31 = vld [vmem:[%s6170_s28] sm:$0xff] }
  0x94   : > { %v5017_v33 = vpack.c.bf16 %v515_v32, %v514_v31  ;;  %v569_v32 = vld [vmem:[%s6170_s28 + $0x1b8] sm:$0xff] }
  0x95   : > { %v5604_v44 = vpop.trf.xlu1 }
  0x96   : > { %v5605_v51 = vunpack.i.l.bf16 %v5604_v44  ;;  %v5608_v52 = vunpack.i.h.bf16 %v5604_v44  ;;  %v510_v44 = vld [vmem:[%s5943_s25 + $0x3e0] sm:$0xff] }
  0x97   : > { %v5567_v50 = vpop.trf.xlu0 }
  0x98   : > { %v5568_v53 = vunpack.i.l.bf16 %v5567_v50  ;;  %v5571_v54 = vunpack.i.h.bf16 %v5567_v50  ;;  %1032 = vmatprep.mubr.f32.mxu1 %v5605_v51  ;;  %v462_v51 = vld [vmem:[%s5943_s25 + $0x260] sm:$0xff] }
  0x99   : > { %1033 = vmatmul.mubr.f32.vlgmr.msra.gmra.mrb[0].mxu1 %v5608_v52  ;;  %v494_v52 = vld [vmem:[%s5943_s25 + $0x360] sm:$0xff]  ;;  %v4976_v61 = vpack.c.bf16 %v463_v55, %v462_v51 }
  0x9a   : > { %962 = vmatprep.mubr.f32.mxu0 %v5568_v53  ;;  %4985 = vmatpush3.bf16.msra.mxu1 %v4984_v46  ;;  %v478_v46 = vld [vmem:[%s5943_s25 + $0x2e0] sm:$0xff]  ;;  %v495_v53 = vld [vmem:[%s5943_s25 + $0x368] sm:$0xff] }
  0x9b   : > { %963 = vmatmul.mubr.f32.vlgmr.msra.gmra.mrb[0].mxu0 %v5571_v54  ;;  %4987 = vmatprep.subr.bf16.mxu1 %v4986_v49  ;;  %v4972_v49 = vpack.c.bf16 %v461_v43, %v460_v39  ;;  %v4974_v54 = vpack.c.bf16 %v479_v47, %v478_v46  ;;  %v5008_v60 = vpack.c.bf16 %v495_v53, %v494_v52  ;;  %v3812_v39 = vld [vmem:[%s5893_s22 + $0x410] sm:$0xff]  ;;  %v3845_v43 = vld [vmem:[%s5893_s22 + $0x518] sm:$0xff] }
  0x9c   : > { %4953 = vmatpush3.bf16.msra.mxu0 %v4952_v45  ;;  %v511_v45 = vld [vmem:[%s5943_s25 + $0x3e8] sm:$0xff]  ;;  %v565_v47 = vld [vmem:[%s6170_s28 + $0x198] sm:$0xff]  ;;  %v532_v52 = vld [vmem:[%s6170_s28 + $0x90] sm:$0xff] }
  0x9d   : > { %4955 = vmatprep.subr.bf16.mxu0 %v4954_v58  ;;  %v5006_v50 = vpack.c.bf16 %v511_v45, %v510_v44  ;;  %v480_v58 = vld [vmem:[%s5943_s25 + $0x2f0] sm:$0xff]  ;;  %v3861_v44 = vld [vmem:[%s5893_s22 + $0x598] sm:$0xff] }
  0x9e   : > { %4989 = vmatpush3.bf16.msra.mxu1 %v4988_v0  ;;  %v497_v0 = vld [vmem:[%s5943_s25 + $0x378] sm:$0xff]  ;;  %v564_v45 = vld [vmem:[%s6170_s28 + $0x190] sm:$0xff]  ;;  %v5726_v46 = vpack.i.bf16 %v3845_v43, %v3861_v44 }
  0x9f   : > { %4991 = vmatprep.subr.bf16.mxu1 %v4990_v2  ;;  %v464_v2 = vld [vmem:[%s5943_s25 + $0x270] sm:$0xff]  ;;  %v5012_v4 = vpack.c.bf16 %v497_v0, %v496_v63  ;;  %v533_v53 = vld [vmem:[%s6170_s28 + $0x98] sm:$0xff]  ;;  %v3814_v63 = vld [vmem:[%s5893_s22 + $0x420] sm:$0xff] }
  0xa0   : > { %4957 = vmatpush3.bf16.msra.mxu0 %v4956_v1  ;;  %v4978_v1 = vpack.c.bf16 %v481_v59, %v480_v58  ;;  %v4980_v5 = vpack.c.bf16 %v465_v3, %v464_v2  ;;  %v5020_v55 = vpack.c.bf16 %v533_v53, %v532_v52  ;;  %v549_v58 = vld [vmem:[%s6170_s28 + $0x118] sm:$0xff]  ;;  %v3847_v3 = vld [vmem:[%s5893_s22 + $0x528] sm:$0xff] }
  0xa1   : > { %4959 = vmatprep.subr.bf16.mxu0 %v4958_v6  ;;  %v553_v43 = vld [vmem:[%s6170_s28 + $0x138] sm:$0xff]  ;;  %v3851_v52 = vld [vmem:[%s5893_s22 + $0x548] sm:$0xff] }
  0xa2   : > { %4993 = vmatpush3.bf16.msra.mxu1 %v4992_v12  ;;  %v3842_v12 = vld [vmem:[%s5893_s22 + $0x500] sm:$0xff]  ;;  %v3867_v53 = vld [vmem:[%s5893_s22 + $0x5c8] sm:$0xff] }
  0xa3   : > { %4995 = vmatprep.subr.bf16.mxu1 %v4994_v14  ;;  %v3810_v14 = vld [vmem:[%s5893_s22 + $0x400] sm:$0xff] }
  0xa4   : > { %4961 = vmatpush3.bf16.msra.mxu0 %v4960_v13  ;;  %v3858_v13 = vld [vmem:[%s5893_s22 + $0x580] sm:$0xff]  ;;  %v5683_v19 = vpack.i.bf16 %v3810_v14, %v3826_v16  ;;  %v519_v16 = vld [vmem:[%s6170_s28 + $0x28] sm:$0xff] }
  0xa5   : > { %4963 = vmatprep.subr.bf16.mxu0 %v4962_v18  ;;  %v5720_v15 = vpack.i.bf16 %v3842_v12, %v3858_v13  ;;  %v3859_v18 = vld [vmem:[%s5893_s22 + $0x588] sm:$0xff]  ;;  %v534_v12 = vld [vmem:[%s6170_s28 + $0xa0] sm:$0xff] }
  0xa6   : > { %4997 = vmatpush3.bf16.msra.mxu1 %v4996_v24  ;;  %v5722_v20 = vpack.i.bf16 %v3843_v17, %v3859_v18  ;;  %5684 = vxpose.xlu0.b32.start [1/16] (narrow) %v5683_v19, 8  ;;  %v5062_v24 = vpack.c.bf16 %v563_v22, %v562_v21  ;;  %v535_v13 = vld [vmem:[%s6170_s28 + $0xa8] sm:$0xff]  ;;  %v518_v14 = vld [vmem:[%s6170_s28 + $0x20] sm:$0xff]  ;;  %v3848_v21 = vld [vmem:[%s5893_s22 + $0x530] sm:$0xff] }
  0xa7   : > { %4999 = vmatprep.subr.bf16.mxu1 %v4998_v26  ;;  %5721 = vxpose.xlu1.b32.start [1/16] (narrow) %v5720_v15, 8  ;;  %v530_v26 = vld [vmem:[%s6170_s28 + $0x80] sm:$0xff]  ;;  %v5026_v15 = vpack.c.bf16 %v535_v13, %v534_v12  ;;  %v551_v18 = vld [vmem:[%s6170_s28 + $0x128] sm:$0xff]  ;;  %v5029_v19 = vpack.c.bf16 %v519_v16, %v518_v14  ;;  %v3864_v22 = vld [vmem:[%s5893_s22 + $0x5b0] sm:$0xff] }
  0xa8   : > { %4965 = vmatpush3.bf16.msra.mxu0 %v4964_v25  ;;  %v3827_v25 = vld [vmem:[%s5893_s22 + $0x488] sm:$0xff]  ;;  %v550_v17 = vld [vmem:[%s6170_s28 + $0x120] sm:$0xff]  ;;  %v3853_v12 = vld [vmem:[%s5893_s22 + $0x558] sm:$0xff] }
  0xa9   : > { %4967 = vmatprep.subr.bf16.mxu0 %v4966_v30  ;;  %v5685_v29 = vpack.i.bf16 %v3811_v23, %v3827_v25  ;;  %v5014_v30 = vpack.c.bf16 %v531_v27, %v530_v26  ;;  %v3816_v23 = vld [vmem:[%s5893_s22 + $0x430] sm:$0xff]  ;;  %v3849_v27 = vld [vmem:[%s5893_s22 + $0x538] sm:$0xff] }
  0xaa   : > { %5001 = vmatpush3.bf16.msra.mxu1 %v5000_v36  ;;  %v5065_v36 = vpack.c.bf16 %v547_v35, %v546_v34  ;;  %v3832_v25 = vld [vmem:[%s5893_s22 + $0x4b0] sm:$0xff]  ;;  %v3833_v34 = vld [vmem:[%s5893_s22 + $0x4b8] sm:$0xff] }
  0xab   : > { %5003 = vmatprep.subr.bf16.mxu1 %v5002_v38  ;;  %5723 = vxpose.xlu1.b32.cont [2/16] (narrow) %v5722_v20, 8  ;;  %v3860_v38 = vld [vmem:[%s5893_s22 + $0x590] sm:$0xff]  ;;  %v5077_v20 = vpack.c.bf16 %v551_v18, %v550_v17  ;;  %v5695_v26 = vpack.i.bf16 %v3816_v23, %v3832_v25  ;;  %v3869_v13 = vld [vmem:[%s5893_s22 + $0x5d8] sm:$0xff] }
  0xac   : > { %4969 = vmatpush3.bf16.msra.mxu0 %v4968_v37  ;;  %5686 = vxpose.xlu0.b32.cont [2/16] (narrow) %v5685_v29, 8  ;;  %v3844_v37 = vld [vmem:[%s5893_s22 + $0x510] sm:$0xff]  ;;  %v3865_v29 = vld [vmem:[%s5893_s22 + $0x5b8] sm:$0xff] }
  0xad   : > { %4971 = vmatprep.subr.bf16.mxu0 %v4970_v42  ;;  %v5724_v40 = vpack.i.bf16 %v3844_v37, %v3860_v38  ;;  %v5687_v42 = vpack.i.bf16 %v3812_v39, %v3828_v41  ;;  %v5734_v31 = vpack.i.bf16 %v3849_v27, %v3865_v29  ;;  %v536_v37 = vld [vmem:[%s6170_s28 + $0xb0] sm:$0xff]  ;;  %v537_v38 = vld [vmem:[%s6170_s28 + $0xb8] sm:$0xff] }
  0xae   : > { %5005 = vmatpush3.bf16.msra.mxu1 %v5004_v48  ;;  %v3813_v48 = vld [vmem:[%s5893_s22 + $0x418] sm:$0xff]  ;;  %v520_v39 = vld [vmem:[%s6170_s28 + $0x30] sm:$0xff] }
  0xaf   : > { %5007 = vmatprep.subr.bf16.mxu1 %v5006_v50  ;;  %5725 = vxpose.xlu1.b32.cont [3/16] (narrow) %v5724_v40, 8  ;;  %v5068_v50 = vpack.c.bf16 %v565_v47, %v564_v45  ;;  %v5032_v40 = vpack.c.bf16 %v537_v38, %v536_v37  ;;  %v521_v41 = vld [vmem:[%s6170_s28 + $0x38] sm:$0xff]  ;;  %v3866_v47 = vld [vmem:[%s5893_s22 + $0x5c0] sm:$0xff]  ;;  %v572_v14 = vld [vmem:[%s6170_s28 + $0x1d0] sm:$0xff] }
  0xb0   : > { %4973 = vmatpush3.bf16.msra.mxu0 %v4972_v49  ;;  %5688 = vxpose.xlu0.b32.cont [3/16] (narrow) %v5687_v42, 8  ;;  %v3829_v49 = vld [vmem:[%s5893_s22 + $0x498] sm:$0xff]  ;;  %v552_v42 = vld [vmem:[%s6170_s28 + $0x130] sm:$0xff]  ;;  %v5035_v44 = vpack.c.bf16 %v521_v41, %v520_v39  ;;  %v3855_v37 = vld [vmem:[%s5893_s22 + $0x568] sm:$0xff] }
  0xb1   : > { %4975 = vmatprep.subr.bf16.mxu0 %v4974_v54  ;;  %v5689_v51 = vpack.i.bf16 %v3813_v48, %v3829_v49  ;;  %v516_v54 = vld [vmem:[%s6170_s28 + $0x10] sm:$0xff]  ;;  %v5083_v45 = vpack.c.bf16 %v553_v43, %v552_v42  ;;  %v3818_v48 = vld [vmem:[%s5893_s22 + $0x440] sm:$0xff]  ;;  %v573_v16 = vld [vmem:[%s6170_s28 + $0x1d8] sm:$0xff] }
  0xb2   : > { %5009 = vmatpush3.bf16.msra.mxu1 %v5008_v60  ;;  %v5023_v59 = vpack.c.bf16 %v517_v56, %v516_v54  ;;  %v5071_v60 = vpack.c.bf16 %v549_v58, %v548_v57  ;;  %v570_v54 = vld [vmem:[%s6170_s28 + $0x1c0] sm:$0xff]  ;;  %v571_v56 = vld [vmem:[%s6170_s28 + $0x1c8] sm:$0xff]  ;;  %v3821_v17 = vld [vmem:[%s5893_s22 + $0x458] sm:$0xff] }
  0xb3   : > { %5011 = vmatprep.subr.bf16.mxu1 %v5010_v62  ;;  %5727 = vxpose.xlu1.b32.cont [4/16] (narrow) %v5726_v46, 8  ;;  %v3862_v62 = vld [vmem:[%s5893_s22 + $0x5a0] sm:$0xff]  ;;  %v3819_v57 = vld [vmem:[%s5893_s22 + $0x448] sm:$0xff]  ;;  %v3837_v18 = vld [vmem:[%s5893_s22 + $0x4d8] sm:$0xff] }
  0xb4   : > { %4977 = vmatpush3.bf16.msra.mxu0 %v4976_v61  ;;  %5690 = vxpose.xlu0.b32.cont [4/16] (narrow) %v5689_v51, 8  ;;  %v3846_v61 = vld [vmem:[%s5893_s22 + $0x520] sm:$0xff]  ;;  %v3835_v58 = vld [vmem:[%s5893_s22 + $0x4c8] sm:$0xff]  ;;  %v524_v23 = vld [vmem:[%s6170_s28 + $0x50] sm:$0xff] }
  0xb5   : > { %4979 = vmatprep.subr.bf16.mxu0 %v4978_v1  ;;  %v5728_v0 = vpack.i.bf16 %v3846_v61, %v3862_v62  ;;  %v3830_v1 = vld [vmem:[%s5893_s22 + $0x4a0] sm:$0xff]  ;;  %v539_v62 = vld [vmem:[%s6170_s28 + $0xc8] sm:$0xff]  ;;  %v525_v25 = vld [vmem:[%s6170_s28 + $0x58] sm:$0xff] }
  0xb6   : > { %5013 = vmatpush3.bf16.msra.mxu1 %v5012_v4  ;;  %v5691_v2 = vpack.i.bf16 %v3814_v63, %v3830_v1  ;;  %v3863_v4 = vld [vmem:[%s5893_s22 + $0x5a8] sm:$0xff]  ;;  %v3850_v46 = vld [vmem:[%s5893_s22 + $0x540] sm:$0xff]  ;;  %v557_v27 = vld [vmem:[%s6170_s28 + $0x158] sm:$0xff]  ;;  %v5047_v29 = vpack.c.bf16 %v525_v25, %v524_v23 }
  0xb7   : > { %5064 = vmatprep.subr.msk.bf16.mxu1 %vm6180_vm1, %v5062_v24  ;;  %5729 = vxpose.xlu1.b32.cont [5/16] (narrow) %v5728_v0, 8  ;;  %v5732_v24 = vpack.i.bf16 %v3848_v21, %v3864_v22  ;;  %v5736_v49 = vpack.i.bf16 %v3850_v46, %v3866_v47  ;;  %v538_v61 = vld [vmem:[%s6170_s28 + $0xc0] sm:$0xff]  ;;  %v523_v1 = vld [vmem:[%s6170_s28 + $0x48] sm:$0xff]  ;;  %v540_v21 = vld [vmem:[%s6170_s28 + $0xd0] sm:$0xff] }
  0xb8   : > { %4981 = vmatpush3.bf16.msra.mxu0 %v4980_v5  ;;  %5692 = vxpose.xlu0.b32.cont [5/16] (narrow) %v5691_v2, 8  ;;  %v566_v5 = vld [vmem:[%s6170_s28 + $0x1a0] sm:$0xff]  ;;  %v5038_v0 = vpack.c.bf16 %v539_v62, %v538_v61  ;;  %v541_v22 = vld [vmem:[%s6170_s28 + $0xd8] sm:$0xff]  ;;  %v3871_v38 = vld [vmem:[%s5893_s22 + $0x5e8] sm:$0xff] }
  0xb9   : > { %5016 = vmatprep.subr.msk.bf16.mxu0 %vm6180_vm1, %v5014_v30  ;;  %v568_v30 = vld [vmem:[%s6170_s28 + $0x1b0] sm:$0xff]  ;;  %v522_v63 = vld [vmem:[%s6170_s28 + $0x40] sm:$0xff]  ;;  %v575_v41 = vld [vmem:[%s6170_s28 + $0x1e8] sm:$0xff] }
  0xba   : > { %v5080_v35 = vpack.c.bf16 %v569_v32, %v568_v30  ;;  %v554_v2 = vld [vmem:[%s6170_s28 + $0x140] sm:$0xff]  ;;  %v3823_v42 = vld [vmem:[%s5893_s22 + $0x468] sm:$0xff]  ;;  %v3857_v61 = vld [vmem:[%s5893_s22 + $0x578] sm:$0xff] }
  0xbb   : > { %v3870_v32 = vld [vmem:[%s5893_s22 + $0x5e0] sm:$0xff]  ;;  %v3839_v43 = vld [vmem:[%s5893_s22 + $0x4e8] sm:$0xff]  ;;  %v3873_v62 = vld [vmem:[%s5893_s22 + $0x5f8] sm:$0xff] }
  0xbc   : > { %v574_v39 = vld [vmem:[%s6170_s28 + $0x1e0] sm:$0xff]  ;;  %v543_v47 = vld [vmem:[%s6170_s28 + $0xe8] sm:$0xff] }
  0xbd   : > { %v542_v46 = vld [vmem:[%s6170_s28 + $0xe0] sm:$0xff]  ;;  %v627_v25 = vld [vmem:[%s6170_s28 + $0x388] sm:$0xff] }
  0xbe   : > { %v626_v23 = vld [vmem:[%s6170_s28 + $0x380] sm:$0xff] }
  0xd5   : > { %v5678_v6 = vpop.trf.xlu1 }
  0xd6   : > { %v5682_v7 = vunpack.i.h.bf16 %v5678_v6  ;;  %v5679_v9 = vunpack.i.l.bf16 %v5678_v6  ;;  %v5730_v6 = vpack.i.bf16 %v3847_v3, %v3863_v4  ;;  %v555_v3 = vld [vmem:[%s6170_s28 + $0x148] sm:$0xff]  ;;  %v5041_v4 = vpack.c.bf16 %v523_v1, %v522_v63  ;;  %v576_v63 = vld [vmem:[%s6170_s28 + $0x1f0] sm:$0xff]  ;;  %v577_v1 = vld [vmem:[%s6170_s28 + $0x1f8] sm:$0xff] }
  0xd7   : > { %v5641_v8 = vpop.trf.xlu0 }
  0xd8   : > { %v5645_v10 = vunpack.i.h.bf16 %v5641_v8  ;;  %v5642_v11 = vunpack.i.l.bf16 %v5641_v8  ;;  %1172 = vmatprep.mubr.f32.mxu1 %v5679_v9  ;;  %v3815_v8 = vld [vmem:[%s5893_s22 + $0x428] sm:$0xff]  ;;  %5731 = vxpose.xlu1.b32.cont [6/16] (narrow) %v5730_v6, 8  ;;  %v3852_v6 = vld [vmem:[%s5893_s22 + $0x550] sm:$0xff] }
  0xd9   : > { %1173 = vmatmul.mubr.f32.vlgmr.msra.gmra.mrb[2].mxu1 %v5682_v7  ;;  %v567_v7 = vld [vmem:[%s6170_s28 + $0x1a8] sm:$0xff] }
  0xda   : > { %1102 = vmatprep.mubr.f32.mxu0 %v5642_v11  ;;  %5067 = vmatpush3.bf16.xpose.msk.msra.mxu1 %vm6180_vm1, %v5065_v36  ;;  %v3831_v9 = vld [vmem:[%s5893_s22 + $0x4a8] sm:$0xff] }
  0xdb   : > { %1103 = vmatmul.mubr.f32.vlgmr.msra.gmra.mrb[2].mxu0 %v5645_v10  ;;  %5070 = vmatprep.subr.msk.bf16.mxu1 %vm6180_vm1, %v5068_v50  ;;  %v5074_v10 = vpack.c.bf16 %v567_v7, %v566_v5  ;;  %v5693_v11 = vpack.i.bf16 %v3815_v8, %v3831_v9  ;;  %v3834_v50 = vld [vmem:[%s5893_s22 + $0x4c0] sm:$0xff]  ;;  %v5089_v5 = vpack.c.bf16 %v555_v3, %v554_v2  ;;  %v3868_v7 = vld [vmem:[%s5893_s22 + $0x5d0] sm:$0xff]  ;;  %v3825_v2 = vld [vmem:[%s5893_s22 + $0x478] sm:$0xff] }
  0xdc   : > { %5019 = vmatpush3.bf16.xpose.msk.msra.mxu0 %vm6180_vm1, %v5017_v33  ;;  %5733 = vxpose.xlu1.b32.cont [7/16] (narrow) %v5732_v24, 8  ;;  %v3817_v33 = vld [vmem:[%s5893_s22 + $0x438] sm:$0xff]  ;;  %v5699_v51 = vpack.i.bf16 %v3818_v48, %v3834_v50  ;;  %v3820_v8 = vld [vmem:[%s5893_s22 + $0x450] sm:$0xff]  ;;  %v5740_v9 = vpack.i.bf16 %v3852_v6, %v3868_v7  ;;  %v5044_v24 = vpack.c.bf16 %v541_v22, %v540_v21  ;;  %v526_v48 = vld [vmem:[%s6170_s28 + $0x60] sm:$0xff] }
  0xdd   : > { %5022 = vmatprep.subr.msk.bf16.mxu0 %vm6180_vm1, %v5020_v55  ;;  %5694 = vxpose.xlu0.b32.cont [6/16] (narrow) %v5693_v11, 8  ;;  %v5697_v36 = vpack.i.bf16 %v3817_v33, %v3833_v34  ;;  %v5738_v55 = vpack.i.bf16 %v3851_v52, %v3867_v53  ;;  %v3822_v33 = vld [vmem:[%s5893_s22 + $0x460] sm:$0xff]  ;;  %v527_v50 = vld [vmem:[%s6170_s28 + $0x68] sm:$0xff]  ;;  %v3841_v3 = vld [vmem:[%s5893_s22 + $0x4f8] sm:$0xff] }
  0xde   : > { %v559_v52 = vld [vmem:[%s6170_s28 + $0x168] sm:$0xff]  ;;  %v5053_v53 = vpack.c.bf16 %v527_v50, %v526_v48  ;;  %v544_v6 = vld [vmem:[%s6170_s28 + $0xf0] sm:$0xff]  ;;  %v545_v7 = vld [vmem:[%s6170_s28 + $0xf8] sm:$0xff] }
  0xdf   : > { %v3907_v21 = vld [vmem:[%s5893_s22 + $0x708] sm:$0xff]  ;;  %v3893_v50 = vld [vmem:[%s5893_s22 + $0x698] sm:$0xff] }
  0xe0   : > { %5735 = vxpose.xlu1.b32.cont [8/16] (narrow) %v5734_v31, 8  ;;  %v3854_v31 = vld [vmem:[%s5893_s22 + $0x560] sm:$0xff]  ;;  %v3923_v22 = vld [vmem:[%s5893_s22 + $0x788] sm:$0xff] }
  0xe1   : > { %5696 = vxpose.xlu0.b32.cont [7/16] (narrow) %v5695_v26, 8  ;;  %v556_v26 = vld [vmem:[%s6170_s28 + $0x150] sm:$0xff]  ;;  %v5744_v34 = vpack.i.bf16 %v3854_v31, %v3870_v32  ;;  %v594_v32 = vld [vmem:[%s6170_s28 + $0x280] sm:$0xff] }
  0xe2   : > { %5073 = vmatpush3.bf16.xpose.msk.msra.mxu1 %vm6180_vm1, %v5071_v60  ;;  %v5701_v60 = vpack.i.bf16 %v3819_v57, %v3835_v58  ;;  %v5095_v30 = vpack.c.bf16 %v557_v27, %v556_v26  ;;  %v3824_v57 = vld [vmem:[%s5893_s22 + $0x470] sm:$0xff]  ;;  %v3875_v26 = vld [vmem:[%s5893_s22 + $0x608] sm:$0xff] }
  0xe3   : > { %5076 = vmatprep.subr.msk.bf16.mxu1 %vm6180_vm1, %v5074_v10  ;;  %v3836_v10 = vld [vmem:[%s5893_s22 + $0x4d0] sm:$0xff]  ;;  %v3891_v27 = vld [vmem:[%s5893_s22 + $0x688] sm:$0xff] }
  0xe4   : > { %5025 = vmatpush3.bf16.xpose.msk.msra.mxu0 %vm6180_vm1, %v5023_v59  ;;  %5737 = vxpose.xlu1.b32.cont [9/16] (narrow) %v5736_v49, 8  ;;  %v5086_v59 = vpack.c.bf16 %v571_v56, %v570_v54  ;;  %v5703_v11 = vpack.i.bf16 %v3820_v8, %v3836_v10  ;;  %v5050_v49 = vpack.c.bf16 %v543_v47, %v542_v46  ;;  %v3872_v56 = vld [vmem:[%s5893_s22 + $0x5f0] sm:$0xff]  ;;  %v529_v10 = vld [vmem:[%s6170_s28 + $0x78] sm:$0xff] }
  0xe5   : > { %5028 = vmatprep.subr.msk.bf16.mxu0 %vm6180_vm1, %v5026_v15  ;;  %5698 = vxpose.xlu0.b32.cont [8/16] (narrow) %v5697_v36, 8  ;;  %v5742_v15 = vpack.i.bf16 %v3853_v12, %v3869_v13  ;;  %v528_v8 = vld [vmem:[%s6170_s28 + $0x70] sm:$0xff]  ;;  %v561_v12 = vld [vmem:[%s6170_s28 + $0x178] sm:$0xff]  ;;  %v5759_v31 = vpack.i.bf16 %v3875_v26, %v3891_v27 }
  0xe6   : > { %v5059_v13 = vpack.c.bf16 %v529_v10, %v528_v8  ;;  %v3925_v46 = vld [vmem:[%s5893_s22 + $0x798] sm:$0xff]  ;;  %v3932_v26 = vld [vmem:[%s5893_s22 + $0x7d0] sm:$0xff] }
  0xe7   : > { %v3897_v10 = vld [vmem:[%s5893_s22 + $0x6b8] sm:$0xff]  ;;  %v3884_v27 = vld [vmem:[%s5893_s22 + $0x650] sm:$0xff] }
  0xe8   : > { %5739 = vxpose.xlu1.b32.cont [10/16] (narrow) %v5738_v55, 8  ;;  %v3856_v55 = vld [vmem:[%s5893_s22 + $0x570] sm:$0xff] }
  0xe9   : > { %5700 = vxpose.xlu0.b32.cont [9/16] (narrow) %v5699_v51, 8  ;;  %v558_v51 = vld [vmem:[%s6170_s28 + $0x160] sm:$0xff]  ;;  %v5748_v58 = vpack.i.bf16 %v3856_v55, %v3872_v56 }
  0xea   : > { %5079 = vmatpush3.bf16.xpose.msk.msra.mxu1 %vm6180_vm1, %v5077_v20  ;;  %v5705_v20 = vpack.i.bf16 %v3821_v17, %v3837_v18  ;;  %v5101_v54 = vpack.c.bf16 %v559_v52, %v558_v51  ;;  %v3874_v17 = vld [vmem:[%s5893_s22 + $0x600] sm:$0xff] }
  0xeb   : > { %5082 = vmatprep.subr.msk.bf16.mxu1 %vm6180_vm1, %v5080_v35  ;;  %v3838_v35 = vld [vmem:[%s5893_s22 + $0x4e0] sm:$0xff] }
  0xec   : > { %5031 = vmatpush3.bf16.xpose.msk.msra.mxu0 %vm6180_vm1, %v5029_v19  ;;  %5741 = vxpose.xlu1.b32.cont [11/16] (narrow) %v5740_v9, 8  ;;  %v5092_v19 = vpack.c.bf16 %v573_v16, %v572_v14  ;;  %v5707_v36 = vpack.i.bf16 %v3822_v33, %v3838_v35  ;;  %v5056_v9 = vpack.c.bf16 %v545_v7, %v544_v6  ;;  %v3922_v16 = vld [vmem:[%s5893_s22 + $0x780] sm:$0xff]  ;;  %v595_v33 = vld [vmem:[%s6170_s28 + $0x288] sm:$0xff]  ;;  %v3913_v6 = vld [vmem:[%s5893_s22 + $0x738] sm:$0xff] }
  0xed   : > { %5034 = vmatprep.subr.msk.bf16.mxu0 %vm6180_vm1, %v5032_v40  ;;  %5702 = vxpose.xlu0.b32.cont [10/16] (narrow) %v5701_v60, 8  ;;  %v5746_v40 = vpack.i.bf16 %v3855_v37, %v3871_v38  ;;  %v3878_v55 = vld [vmem:[%s5893_s22 + $0x620] sm:$0xff]  ;;  %v3929_v7 = vld [vmem:[%s5893_s22 + $0x7b8] sm:$0xff] }
  0xf0   : > { %5743 = vxpose.xlu1.b32.cont [12/16] (narrow) %v5742_v15, 8  ;;  %v3906_v15 = vld [vmem:[%s5893_s22 + $0x700] sm:$0xff] }
  0xf1   : > { %5704 = vxpose.xlu0.b32.cont [11/16] (narrow) %v5703_v11, 8  ;;  %v560_v11 = vld [vmem:[%s6170_s28 + $0x170] sm:$0xff]  ;;  %v5794_v18 = vpack.i.bf16 %v3906_v15, %v3922_v16  ;;  %v3882_v15 = vld [vmem:[%s5893_s22 + $0x640] sm:$0xff] }
  0xf2   : > { %5085 = vmatpush3.bf16.xpose.msk.msra.mxu1 %vm6180_vm1, %v5083_v45  ;;  %v5709_v45 = vpack.i.bf16 %v3823_v42, %v3839_v43  ;;  %v5107_v14 = vpack.c.bf16 %v561_v12, %v560_v11  ;;  %v3876_v42 = vld [vmem:[%s5893_s22 + $0x610] sm:$0xff]  ;;  %v5808_v11 = vpack.i.bf16 %v3913_v6, %v3929_v7  ;;  %v1178_v6 = vstv %s6438_s29 }
  0xf3   : > { %5088 = vmatprep.subr.msk.bf16.mxu1 %vm6180_vm1, %v5086_v59  ;;  %v3840_v59 = vld [vmem:[%s5893_s22 + $0x4f0] sm:$0xff] }
  0xf4   : > { %5037 = vmatpush3.bf16.xpose.msk.msra.mxu0 %vm6180_vm1, %v5035_v44  ;;  %5745 = vxpose.xlu1.b32.cont [13/16] (narrow) %v5744_v34, 8  ;;  %v5098_v44 = vpack.c.bf16 %v575_v41, %v574_v39  ;;  %v5711_v60 = vpack.i.bf16 %v3824_v57, %v3840_v59  ;;  %v3924_v41 = vld [vmem:[%s5893_s22 + $0x790] sm:$0xff]  ;;  %v3894_v57 = vld [vmem:[%s5893_s22 + $0x6a0] sm:$0xff]  ;;  %v3927_v59 = vld [vmem:[%s5893_s22 + $0x7a8] sm:$0xff] }
  0xf5   : > { %5040 = vmatprep.subr.msk.bf16.mxu0 %vm6180_vm1, %v5038_v0  ;;  %5706 = vxpose.xlu0.b32.cont [12/16] (narrow) %v5705_v20, 8  ;;  %v5750_v0 = vpack.i.bf16 %v3857_v61, %v3873_v62  ;;  %v3879_v61 = vld [vmem:[%s5893_s22 + $0x628] sm:$0xff] }
  0xf6   : > { %v3895_v62 = vld [vmem:[%s5893_s22 + $0x6a8] sm:$0xff] }
  0xf8   : > { %5747 = vxpose.xlu1.b32.cont [14/16] (narrow) %v5746_v40, 8  ;;  %v3908_v40 = vld [vmem:[%s5893_s22 + $0x710] sm:$0xff] }
  0xf9   : > { %5708 = vxpose.xlu0.b32.cont [13/16] (narrow) %v5707_v36, 8  ;;  %v5110_v36 = vpack.c.bf16 %v595_v33, %v594_v32  ;;  %v5798_v43 = vpack.i.bf16 %v3908_v40, %v3924_v41  ;;  %v3933_v32 = vld [vmem:[%s5893_s22 + $0x7d8] sm:$0xff]  ;;  %v3886_v40 = vld [vmem:[%s5893_s22 + $0x660] sm:$0xff] }
  0xfa   : > { %5091 = vmatpush3.bf16.xpose.msk.msra.mxu1 %vm6180_vm1, %v5089_v5  ;;  %v5713_v5 = vpack.i.bf16 %v3825_v2, %v3841_v3  ;;  %v3928_v2 = vld [vmem:[%s5893_s22 + $0x7b0] sm:$0xff] }
  0xfb   : > { %5094 = vmatprep.subr.msk.bf16.mxu1 %vm6180_vm1, %v5092_v19  ;;  %v3890_v19 = vld [vmem:[%s5893_s22 + $0x680] sm:$0xff]  ;;  %v3880_v3 = vld [vmem:[%s5893_s22 + $0x630] sm:$0xff] }
  0xfc   : > { %5043 = vmatpush3.bf16.xpose.msk.msra.mxu0 %vm6180_vm1, %v5041_v4  ;;  %5749 = vxpose.xlu1.b32.cont [15/16] (narrow) %v5748_v58, 8  ;;  %v5104_v4 = vpack.c.bf16 %v577_v1, %v576_v63  ;;  %v5757_v20 = vpack.i.bf16 %v3874_v17, %v3890_v19  ;;  %v3911_v58 = vld [vmem:[%s5893_s22 + $0x728] sm:$0xff]  ;;  %v3912_v1 = vld [vmem:[%s5893_s22 + $0x730] sm:$0xff]  ;;  %v3898_v17 = vld [vmem:[%s5893_s22 + $0x6c0] sm:$0xff] }
  0xfd   : > { %5046 = vmatprep.subr.msk.bf16.mxu0 %vm6180_vm1, %v5044_v24  ;;  %5710 = vxpose.xlu0.b32.cont [14/16] (narrow) %v5709_v45, 8  ;;  %v5796_v24 = vpack.i.bf16 %v3907_v21, %v3923_v22  ;;  %v3909_v45 = vld [vmem:[%s5893_s22 + $0x718] sm:$0xff]  ;;  %v5804_v63 = vpack.i.bf16 %v3911_v58, %v3927_v59  ;;  %v3931_v19 = vld [vmem:[%s5893_s22 + $0x7c8] sm:$0xff] }
  0xfe   : > { %v5800_v51 = vpack.i.bf16 %v3909_v45, %v3925_v46  ;;  %v3883_v21 = vld [vmem:[%s5893_s22 + $0x648] sm:$0xff]  ;;  %v3889_v59 = vld [vmem:[%s5893_s22 + $0x678] sm:$0xff] }
  0xff   : > { %v3899_v22 = vld [vmem:[%s5893_s22 + $0x6c8] sm:$0xff] }
 0x100   : > { %5751 = vxpose.xlu1.b32.end [16/16] (narrow) %v5750_v0, 8  ;;  %v5767_v0 = vpack.i.bf16 %v3879_v61, %v3895_v62  ;;  %v3887_v46 = vld [vmem:[%s5893_s22 + $0x668] sm:$0xff] }
 0x101   : > { %5712 = vxpose.xlu0.b32.cont [15/16] (narrow) %v5711_v60, 8  ;;  %v5765_v60 = vpack.i.bf16 %v3878_v55, %v3894_v57  ;;  %v3904_v55 = vld [vmem:[%s5893_s22 + $0x6f0] sm:$0xff]  ;;  %v3937_v57 = vld [vmem:[%s5893_s22 + $0x7f8] sm:$0xff] }
 0x102   : > { %5097 = vmatpush3.bf16.xpose.msk.msra.mxu1 %vm6180_vm1, %v5095_v30  ;;  %v5158_v30 = vpack.c.bf16 %v627_v25, %v626_v23  ;;  %v3916_v25 = vld [vmem:[%s5893_s22 + $0x750] sm:$0xff] }
 0x103   : > { %5100 = vmatprep.subr.msk.bf16.mxu1 %vm6180_vm1, %v5098_v44  ;;  %v3892_v44 = vld [vmem:[%s5893_s22 + $0x690] sm:$0xff] }
 0x104   : > { %5049 = vmatpush3.bf16.xpose.msk.msra.mxu0 %vm6180_vm1, %v5047_v29  ;;  %5795 = vxpose.xlu1.b32.start [1/16] (narrow) %v5794_v18, 8  ;;  %v5761_v48 = vpack.i.bf16 %v3876_v42, %v3892_v44  ;;  %v3915_v18 = vld [vmem:[%s5893_s22 + $0x748] sm:$0xff]  ;;  %v3902_v42 = vld [vmem:[%s5893_s22 + $0x6e0] sm:$0xff] }
 0x105   : > { %5052 = vmatprep.subr.msk.bf16.mxu0 %vm6180_vm1, %v5050_v49  ;;  %5714 = vxpose.xlu0.b32.end [16/16] (narrow) %v5713_v5, 8  ;;  %v3877_v49 = vld [vmem:[%s5893_s22 + $0x618] sm:$0xff]  ;;  %v3896_v5 = vld [vmem:[%s5893_s22 + $0x6b0] sm:$0xff]  ;;  %v5812_v23 = vpack.i.bf16 %v3915_v18, %v3931_v19  ;;  %v3935_v44 = vld [vmem:[%s5893_s22 + $0x7e8] sm:$0xff]  ;;  %v5781_v45 = vpack.i.bf16 %v3886_v40, %v3902_v42 }
 0x106   : > { %v5763_v52 = vpack.i.bf16 %v3877_v49, %v3893_v50  ;;  %v5769_v8 = vpack.i.bf16 %v3880_v3, %v3896_v5 }
 0x108   : > { %5797 = vxpose.xlu1.b32.cont [2/16] (narrow) %v5796_v24, 8  ;;  %v5775_v24 = vpack.i.bf16 %v3883_v21, %v3899_v22 }
 0x109   : > { %5758 = vxpose.xlu0.b32.start [1/16] (narrow) %v5757_v20, 8  ;;  %v5773_v20 = vpack.i.bf16 %v3882_v15, %v3898_v17 }
 0x10a   : > { %5103 = vmatpush3.bf16.xpose.msk.msra.mxu1 %vm6180_vm1, %v5101_v54  ;;  %v3926_v54 = vld [vmem:[%s5893_s22 + $0x7a0] sm:$0xff] }
 0x10b   : > { %5106 = vmatprep.subr.msk.bf16.mxu1 %vm6180_vm1, %v5104_v4  ;;  %v5806_v4 = vpack.i.bf16 %v3912_v1, %v3928_v2 }
 0x10c   : > { %5055 = vmatpush3.bf16.xpose.msk.msra.mxu0 %vm6180_vm1, %v5053_v53  ;;  %5799 = vxpose.xlu1.b32.cont [3/16] (narrow) %v5798_v43, 8  ;;  %v3910_v53 = vld [vmem:[%s5893_s22 + $0x720] sm:$0xff]  ;;  %v3919_v43 = vld [vmem:[%s5893_s22 + $0x768] sm:$0xff] }
 0x10d   : > { %5058 = vmatprep.subr.msk.bf16.mxu0 %vm6180_vm1, %v5056_v9  ;;  %5760 = vxpose.xlu0.b32.cont [2/16] (narrow) %v5759_v31, 8  ;;  %v5802_v56 = vpack.i.bf16 %v3910_v53, %v3926_v54  ;;  %v3881_v9 = vld [vmem:[%s5893_s22 + $0x638] sm:$0xff]  ;;  %v5820_v49 = vpack.i.bf16 %v3919_v43, %v3935_v44  ;;  %v3888_v53 = vld [vmem:[%s5893_s22 + $0x670] sm:$0xff] }
 0x10e   : > { %v5771_v12 = vpack.i.bf16 %v3881_v9, %v3897_v10  ;;  %v3917_v31 = vld [vmem:[%s5893_s22 + $0x758] sm:$0xff]  ;;  %v5785_v58 = vpack.i.bf16 %v3888_v53, %v3904_v55  ;;  %v580_v44 = vld [vmem:[%s6170_s28 + $0x210] sm:$0xff] }
 0x110   : > { %5801 = vxpose.xlu1.b32.cont [4/16] (narrow) %v5800_v51, 8  ;;  %v3920_v51 = vld [vmem:[%s5893_s22 + $0x770] sm:$0xff] }
 0x111   : > { %5762 = vxpose.xlu0.b32.cont [3/16] (narrow) %v5761_v48, 8  ;;  %v3903_v48 = vld [vmem:[%s5893_s22 + $0x6e8] sm:$0xff] }
 0x112   : > { %5109 = vmatpush3.bf16.xpose.msk.msra.mxu1 %vm6180_vm1, %v5107_v14  ;;  %v3930_v14 = vld [vmem:[%s5893_s22 + $0x7c0] sm:$0xff]  ;;  %v5783_v50 = vpack.i.bf16 %v3887_v46, %v3903_v48  ;;  %v612_v46 = vld [vmem:[%s6170_s28 + $0x310] sm:$0xff]  ;;  %v613_v48 = vld [vmem:[%s6170_s28 + $0x318] sm:$0xff] }
 0x113   : > { %5160 = vmatprep.subr.msk.bf16.mxu1 %vm6180_vm1, %v5158_v30  ;;  %v3900_v30 = vld [vmem:[%s5893_s22 + $0x6d0] sm:$0xff] }
 0x114   : > { %5061 = vmatpush3.bf16.xpose.msk.msra.mxu0 %vm6180_vm1, %v5059_v13  ;;  %5803 = vxpose.xlu1.b32.cont [5/16] (narrow) %v5802_v56, 8  ;;  %v3914_v13 = vld [vmem:[%s5893_s22 + $0x740] sm:$0xff]  ;;  %v5777_v33 = vpack.i.bf16 %v3884_v27, %v3900_v30  ;;  %v3921_v56 = vld [vmem:[%s5893_s22 + $0x778] sm:$0xff] }
 0x115   : > { %5112 = vmatprep.subr.msk.bf16.mxu0 %vm6180_vm1, %v5110_v36  ;;  %5764 = vxpose.xlu0.b32.cont [4/16] (narrow) %v5763_v52, 8  ;;  %v5810_v16 = vpack.i.bf16 %v3914_v13, %v3930_v14  ;;  %v5816_v36 = vpack.i.bf16 %v3917_v31, %v3933_v32  ;;  %v3936_v52 = vld [vmem:[%s5893_s22 + $0x7f0] sm:$0xff]  ;;  %v5824_v61 = vpack.i.bf16 %v3921_v56, %v3937_v57  ;;  %v578_v27 = vld [vmem:[%s6170_s28 + $0x200] sm:$0xff]  ;;  %v611_v31 = vld [vmem:[%s6170_s28 + $0x308] sm:$0xff] }
 0x116   : > { %v5822_v54 = vpack.i.bf16 %v3920_v51, %v3936_v52  ;;  %v610_v30 = vld [vmem:[%s6170_s28 + $0x300] sm:$0xff]  ;;  %v596_v32 = vld [vmem:[%s6170_s28 + $0x290] sm:$0xff]  ;;  %v631_v52 = vld [vmem:[%s6170_s28 + $0x3a8] sm:$0xff] }
 0x117   : > { %v5161_v40 = vpack.c.bf16 %v611_v31, %v610_v30  ;;  %v630_v51 = vld [vmem:[%s6170_s28 + $0x3a0] sm:$0xff] }
 0x118   : > { %5805 = vxpose.xlu1.b32.cont [6/16] (narrow) %v5804_v63, 8  ;;  %v5170_v56 = vpack.c.bf16 %v631_v52, %v630_v51  ;;  %v582_v57 = vld [vmem:[%s6170_s28 + $0x220] sm:$0xff]  ;;  %v623_v51 = vld [vmem:[%s6170_s28 + $0x368] sm:$0xff]  ;;  %v608_v52 = vld [vmem:[%s6170_s28 + $0x2f0] sm:$0xff] }
 0x119   : > { %5766 = vxpose.xlu0.b32.cont [5/16] (narrow) %v5765_v60, 8  ;;  %v3905_v60 = vld [vmem:[%s5893_s22 + $0x6f8] sm:$0xff] }
 0x11a   : > { %v5787_v62 = vpack.i.bf16 %v3889_v59, %v3905_v60  ;;  %v614_v59 = vld [vmem:[%s6170_s28 + $0x320] sm:$0xff]  ;;  %v615_v60 = vld [vmem:[%s6170_s28 + $0x328] sm:$0xff] }
 0x11c   : > { %5807 = vxpose.xlu1.b32.cont [7/16] (narrow) %v5806_v4, 8 }
 0x11d   : > { %5768 = vxpose.xlu0.b32.cont [6/16] (narrow) %v5767_v0, 8 }
 0x120   : > { %5809 = vxpose.xlu1.b32.cont [8/16] (narrow) %v5808_v11, 8 }
 0x121   : > { %5770 = vxpose.xlu0.b32.cont [7/16] (narrow) %v5769_v8, 8 }
 0x124   : > { %5811 = vxpose.xlu1.b32.cont [9/16] (narrow) %v5810_v16, 8 }
 0x125   : > { %5772 = vxpose.xlu0.b32.cont [8/16] (narrow) %v5771_v12, 8 }
 0x128   : > { %5813 = vxpose.xlu1.b32.cont [10/16] (narrow) %v5812_v23, 8 }
 0x129   : > { %5774 = vxpose.xlu0.b32.cont [9/16] (narrow) %v5773_v20, 8 }
 0x12d   : > { %5776 = vxpose.xlu0.b32.cont [10/16] (narrow) %v5775_v24, 8 }
 0x131   : > { %5778 = vxpose.xlu0.b32.cont [11/16] (narrow) %v5777_v33, 8 }
 0x149   : > { %v6447_v18 = vpop.trf.xlu0 }
 0x16c   : > { %v4401_v29 = vpop.f32.mrb[0].mxu1 }
 0x16d   : > { %v4402_v35 = vpop.f32.mrb[1].mxu1 }
 0x16e   : > { %v4366_v34 = vpop.f32.mrb[0].mxu0  ;;  %v4403_v38 = vadd.f32 %v4402_v35, %v4401_v29  ;;  %v5814_v29 = vpack.i.bf16 %v3916_v25, %v3932_v26  ;;  %v3901_v35 = vld [vmem:[%s5893_s22 + $0x6d8] sm:$0xff] }
 0x16f   : > { %v4367_v37 = vpop.f32.mrb[1].mxu0 }
 0x170   : > { %v4368_v39 = vadd.f32 %v4367_v37, %v4366_v34  ;;  %v3885_v34 = vld [vmem:[%s5893_s22 + $0x658] sm:$0xff]  ;;  %5815 = vxpose.xlu1.b32.cont [11/16] (narrow) %v5814_v29, 8  ;;  %v579_v29 = vld [vmem:[%s6170_s28 + $0x208] sm:$0xff] }
 0x171   : > { %v5779_v37 = vpack.i.bf16 %v3885_v34, %v3901_v35  ;;  %v5113_v34 = vpack.c.bf16 %v579_v29, %v578_v27  ;;  %v597_v35 = vld [vmem:[%s6170_s28 + $0x298] sm:$0xff] }
 0x172   : > { %v6386_v47 = vadd.f32 %v4403_v38, %v4368_v39  ;;  %v3918_v38 = vld [vmem:[%s5893_s22 + $0x760] sm:$0xff]  ;;  %v5116_v42 = vpack.c.bf16 %v597_v35, %v596_v32  ;;  %v588_v32 = vld [vmem:[%s6170_s28 + $0x250] sm:$0xff]  ;;  %v621_v35 = vld [vmem:[%s6170_s28 + $0x358] sm:$0xff] }
 0x173   : > { %5780 = vxpose.xlu0.b32.cont [12/16] (narrow) %v5779_v37, 8  ;;  %v3934_v39 = vld [vmem:[%s5893_s22 + $0x7e0] sm:$0xff]  ;;  %v629_v37 = vld [vmem:[%s6170_s28 + $0x398] sm:$0xff] }
 0x174   : > { %5817 = vxpose.xlu1.b32.cont [12/16] (narrow) %v5816_v36, 8  ;;  %v5818_v41 = vpack.i.bf16 %v3918_v38, %v3934_v39  ;;  %v628_v36 = vld [vmem:[%s6170_s28 + $0x390] sm:$0xff] }
 0x175   : > { %v5164_v43 = vpack.c.bf16 %v629_v37, %v628_v36  ;;  %v606_v36 = vld [vmem:[%s6170_s28 + $0x2e0] sm:$0xff]  ;;  %v607_v37 = vld [vmem:[%s6170_s28 + $0x2e8] sm:$0xff] }
 0x177   : > { %5782 = vxpose.xlu0.b32.cont [13/16] (narrow) %v5781_v45, 8  ;;  %v581_v45 = vld [vmem:[%s6170_s28 + $0x218] sm:$0xff] }
 0x178   : > { %5819 = vxpose.xlu1.b32.cont [13/16] (narrow) %v5818_v41, 8  ;;  %v5119_v53 = vpack.c.bf16 %v581_v45, %v580_v44  ;;  %v5146_v45 = vpack.c.bf16 %v607_v37, %v606_v36  ;;  %v3943_v36 = vld [vmem:[%s5943_s25 + $0x428] sm:$0xff] }
 0x17b   : > { %5784 = vxpose.xlu0.b32.cont [14/16] (narrow) %v5783_v50, 8  ;;  %v599_v50 = vld [vmem:[%s6170_s28 + $0x2a8] sm:$0xff] }
 0x17c   : > { %5821 = vxpose.xlu1.b32.cont [14/16] (narrow) %v5820_v49, 8  ;;  %v598_v49 = vld [vmem:[%s6170_s28 + $0x2a0] sm:$0xff] }
 0x17d   : > { %v5122_v55 = vpack.c.bf16 %v599_v50, %v598_v49  ;;  %v591_v49 = vld [vmem:[%s6170_s28 + $0x268] sm:$0xff]  ;;  %v622_v50 = vld [vmem:[%s6170_s28 + $0x360] sm:$0xff] }
 0x17f   : > { %5786 = vxpose.xlu0.b32.cont [15/16] (narrow) %v5785_v58, 8  ;;  %v583_v58 = vld [vmem:[%s6170_s28 + $0x228] sm:$0xff] }
 0x180   : > { %5823 = vxpose.xlu1.b32.cont [15/16] (narrow) %v5822_v54, 8  ;;  %v5167_v54 = vpack.c.bf16 %v613_v48, %v612_v46  ;;  %v590_v48 = vld [vmem:[%s6170_s28 + $0x260] sm:$0xff] }
 0x183   : > { %5788 = vxpose.xlu0.b32.end [16/16] (narrow) %v5787_v62, 8  ;;  %v601_v62 = vld [vmem:[%s6170_s28 + $0x2b8] sm:$0xff] }
 0x184   : > { %5825 = vxpose.xlu1.b32.end [16/16] (narrow) %v5824_v61, 8  ;;  %v600_v61 = vld [vmem:[%s6170_s28 + $0x2b0] sm:$0xff] }
 0x1ac   : > { %v4471_v63 = vpop.f32.mrb[2].mxu1 }
 0x1ad   : > { %v4472_v1 = vpop.f32.mrb[3].mxu1 }
 0x1ae   : > { %v4436_v0 = vpop.f32.mrb[2].mxu0  ;;  %v4473_v3 = vadd.f32 %v4472_v1, %v4471_v63  ;;  %v632_v63 = vld [vmem:[%s6170_s28 + $0x3b0] sm:$0xff]  ;;  %v5125_v1 = vpack.c.bf16 %v583_v58, %v582_v57  ;;  %v5197_v57 = vpack.c.bf16 %v623_v51, %v622_v50  ;;  %v3945_v51 = vld [vmem:[%s5943_s25 + $0x438] sm:$0xff] }
 0x1af   : > { %v4437_v2 = vpop.f32.mrb[3].mxu0  ;;  %v3944_v50 = vld [vmem:[%s5943_s25 + $0x430] sm:$0xff] }
 0x1b0   : > { %v4438_v4 = vadd.f32 %v4437_v2, %v4436_v0  ;;  %v633_v0 = vld [vmem:[%s6170_s28 + $0x3b8] sm:$0xff]  ;;  %v5173_v2 = vpack.c.bf16 %v615_v60, %v614_v59  ;;  %v592_v60 = vld [vmem:[%s6170_s28 + $0x270] sm:$0xff] }
 0x1b2   : > { %v1105_v5 = vadd.f32 %v4438_v4, %v6386_v47  ;;  %v6445_v47 = vpop.trf.xlu1  ;;  %v5176_v4 = vpack.c.bf16 %v633_v0, %v632_v63  ;;  %v625_v63 = vld [vmem:[%s6170_s28 + $0x378] sm:$0xff]  ;;  %v3954_v0 = vld [vmem:[%s5943_s25 + $0x480] sm:$0xff] }
 0x1b4   : > { %v1175_v7 = vadd.f32 %v4473_v3, %v1105_v5  ;;  %v5128_v3 = vpack.c.bf16 %v601_v62, %v600_v61  ;;  %v584_v5 = vld [vmem:[%s6170_s28 + $0x230] sm:$0xff]  ;;  %v593_v61 = vld [vmem:[%s6170_s28 + $0x278] sm:$0xff] }
 0x1b5   : > { %v624_v62 = vld [vmem:[%s6170_s28 + $0x370] sm:$0xff] }
 0x1b6   : > { %v1179_v8 = vmul.f32 %v1178_v6, %v1175_v7  ;;  %v585_v7 = vld [vmem:[%s6170_s28 + $0x238] sm:$0xff] }
 0x1b8   : > { %v1181_v9 = vsel %vm1180_vm2, %v1179_v8, -inf }
 0x1b9   : > { %v1182_v10 = vrot.slane %v1181_v9, 4 }
 0x1bb   : > { %v1183_v11 = vmax.f32 %v1181_v9, %v1182_v10  ;;  %v617_v9 = vld [vmem:[%s6170_s28 + $0x338] sm:$0xff]  ;;  %v602_v10 = vld [vmem:[%s6170_s28 + $0x2c0] sm:$0xff] }
 0x1bd   : > { %v1184_v12 = vrot.slane %v1183_v11, 2 }
 0x1bf   : > { %v1185_v13 = vmax.f32 %v1183_v11, %v1184_v12  ;;  %v603_v11 = vld [vmem:[%s6170_s28 + $0x2c8] sm:$0xff]  ;;  %v634_v12 = vld [vmem:[%s6170_s28 + $0x3c0] sm:$0xff] }
 0x1c1   : > { %v1186_v14 = vrot.slane %v1185_v13, 1 }
 0x1c3   : > { %v1187_v15 = vmax.f32 %v1185_v13, %v1186_v14  ;;  %v635_v13 = vld [vmem:[%s6170_s28 + $0x3c8] sm:$0xff]  ;;  %v5131_v14 = vpack.c.bf16 %v585_v7, %v584_v5  ;;  %v5203_v5 = vpack.c.bf16 %v625_v63, %v624_v62  ;;  %v3946_v62 = vld [vmem:[%s5943_s25 + $0x440] sm:$0xff] }
 0x1c4   : > { %v3947_v63 = vld [vmem:[%s5943_s25 + $0x448] sm:$0xff] }
 0x1c5   : > { %v1188_v16 = vsub.f32 %v1179_v8, %v1187_v15  ;;  %v616_v8 = vld [vmem:[%s6170_s28 + $0x330] sm:$0xff] }
 0x1c6   : > { %v5179_v15 = vpack.c.bf16 %v617_v9, %v616_v8  ;;  %v3938_v9 = vld [vmem:[%s5943_s25 + $0x400] sm:$0xff] }
 0x1c7   : > { %v1189_v17 = vmul.f32 1.442695, %v1188_v16  ;;  %v6462_v41 = vpop.trf.xlu0  ;;  %v5134_v16 = vpack.c.bf16 %v603_v11, %v602_v10  ;;  %v3939_v10 = vld [vmem:[%s5943_s25 + $0x408] sm:$0xff]  ;;  %v3970_v11 = vld [vmem:[%s5943_s25 + $0x500] sm:$0xff] }
 0x1c8   : > { %v6458_v38 = vpop.trf.xlu1 }
 0x1c9   : > { %5831 = vpow2.f32 %v1189_v17  ;;  %v5182_v17 = vpack.c.bf16 %v635_v13, %v634_v12  ;;  %v3971_v12 = vld [vmem:[%s5943_s25 + $0x508] sm:$0xff]  ;;  %v3956_v13 = vld [vmem:[%s5943_s25 + $0x490] sm:$0xff] }
 0x1d3   : > { %v5832_v19 = vpop.eup %5831 }
 0x1d4   : > { %v1191_v20 = vsel %vm1180_vm2, %v5832_v19, 0.0 }
 0x1d5   : > { %v1192_v21 = vrot.slane %v1191_v20, 4 }
 0x1d7   : > { %v1193_v22 = vadd.f32 %v1192_v21, %v1191_v20  ;;  %v587_v20 = vld [vmem:[%s6170_s28 + $0x248] sm:$0xff]  ;;  %v618_v21 = vld [vmem:[%s6170_s28 + $0x340] sm:$0xff] }
 0x1d9   : > { %v1194_v23 = vrot.slane %v1193_v22, 2 }
 0x1db   : > { %v1195_v24 = vadd.f32 %v1194_v23, %v1193_v22  ;;  %v619_v22 = vld [vmem:[%s6170_s28 + $0x348] sm:$0xff]  ;;  %v604_v23 = vld [vmem:[%s6170_s28 + $0x2d0] sm:$0xff] }
 0x1dc   : > { %v5185_v29 = vpack.c.bf16 %v619_v22, %v618_v21  ;;  %v3941_v21 = vld [vmem:[%s5943_s25 + $0x418] sm:$0xff] }
 0x1dd   : > { %v1196_v25 = vrot.slane %v1195_v24, 1 }
 0x1df   : > { %v1197_v26 = vadd.f32 %v1196_v25, %v1195_v24  ;;  %v605_v24 = vld [vmem:[%s6170_s28 + $0x2d8] sm:$0xff]  ;;  %v636_v25 = vld [vmem:[%s6170_s28 + $0x3d0] sm:$0xff] }
 0x1e0   : > { %v5140_v30 = vpack.c.bf16 %v605_v24, %v604_v23  ;;  %v3972_v24 = vld [vmem:[%s5943_s25 + $0x510] sm:$0xff] }
 0x1e1   : > { %5833 = vrcp.f32 %v1197_v26  ;;  %v637_v26 = vld [vmem:[%s6170_s28 + $0x3d8] sm:$0xff] }
 0x1e2   : > { %v5188_v31 = vpack.c.bf16 %v637_v26, %v636_v25  ;;  %v3973_v25 = vld [vmem:[%s5943_s25 + $0x518] sm:$0xff]  ;;  %v3958_v26 = vld [vmem:[%s5943_s25 + $0x4a0] sm:$0xff] }
 0x1eb   : > { %v5834_v33 = vpop.eup %5833 }
 0x1ec   : > { %v6460_v39 = vmul.f32 %v5834_v33, %v5832_v19  ;;  %v586_v19 = vld [vmem:[%s6170_s28 + $0x240] sm:$0xff]  ;;  %v589_v33 = vld [vmem:[%s6170_s28 + $0x258] sm:$0xff] }
 0x1ed   : > { %v5137_v27 = vpack.c.bf16 %v587_v20, %v586_v19  ;;  %v5240_v19 = vpack.c.bf16 %v3971_v12, %v3970_v11  ;;  %v3940_v20 = vld [vmem:[%s5943_s25 + $0x410] sm:$0xff]  ;;  %v3949_v12 = vld [vmem:[%s5943_s25 + $0x458] sm:$0xff] }
 0x1ee   : > { %4506 = vmatprep.mubr.msk.f32.mxu0 %vm1200_vm0, %v6460_v39  ;;  %4540 = vmatprep.mubr.msk.f32.mxu1 %vm1200_vm0, %v6460_v39  ;;  %v3948_v11 = vld [vmem:[%s5943_s25 + $0x450] sm:$0xff] }
 0x1ef   : > { %4507 = vmatmul.mubr.msk.f32.vlgmr.msra.gmra.mrb[4].mxu0 %vm1200_vm0, %v6460_v39  ;;  %4541 = vmatmul.mubr.msk.f32.vlgmr.msra.gmra.mrb[4].mxu1 %vm1200_vm0, %v6460_v39 }
 0x1f0   : > { %5115 = vmatpush3.bf16.xpose.msk.msra.mxu0 %vm6180_vm1, %v5113_v34  ;;  %5163 = vmatpush3.bf16.xpose.msk.msra.mxu1 %vm6180_vm1, %v5161_v40  ;;  %v620_v34 = vld [vmem:[%s6170_s28 + $0x350] sm:$0xff]  ;;  %v638_v40 = vld [vmem:[%s6170_s28 + $0x3e0] sm:$0xff] }
 0x1f1   : > { %4574 = vmatprep.mubr.msk.f32.mxu0 %vm1200_vm0, %v6460_v39  ;;  %4608 = vmatprep.mubr.msk.f32.mxu1 %vm1200_vm0, %v6460_v39  ;;  %v5191_v44 = vpack.c.bf16 %v621_v35, %v620_v34  ;;  %v5244_v34 = vpack.c.bf16 %v3973_v25, %v3972_v24  ;;  %v3942_v35 = vld [vmem:[%s5943_s25 + $0x420] sm:$0xff]  ;;  %v3951_v25 = vld [vmem:[%s5943_s25 + $0x468] sm:$0xff] }
 0x1f2   : > { %5118 = vmatprep.subr.msk.bf16.mxu0 %vm6180_vm1, %v5116_v42  ;;  %5166 = vmatprep.subr.msk.bf16.mxu1 %vm6180_vm1, %v5164_v43  ;;  %v639_v42 = vld [vmem:[%s6170_s28 + $0x3e8] sm:$0xff]  ;;  %v5143_v43 = vpack.c.bf16 %v589_v33, %v588_v32  ;;  %v5753_v32 = vunpack.i.l.bf16 %v6445_v47  ;;  %v5212_v33 = vpack.c.bf16 %v3941_v21, %v3940_v20  ;;  %v3998_v20 = vld [vmem:[%s5943_s25 + $0x5e0] sm:$0xff] }
 0x1f3   : > { %v5194_v46 = vpack.c.bf16 %v639_v42, %v638_v40  ;;  %v3974_v42 = vld [vmem:[%s5943_s25 + $0x520] sm:$0xff]  ;;  %v3999_v21 = vld [vmem:[%s5943_s25 + $0x5e8] sm:$0xff] }
 0x1f4   : > { %v3950_v24 = vld [vmem:[%s5943_s25 + $0x460] sm:$0xff] }
 0x1f8   : > { %5121 = vmatpush3.bf16.xpose.msk.msra.mxu0 %vm6180_vm1, %v5119_v53  ;;  %5169 = vmatpush3.bf16.xpose.msk.msra.mxu1 %vm6180_vm1, %v5167_v54  ;;  %v609_v53 = vld [vmem:[%s6170_s28 + $0x2f8] sm:$0xff]  ;;  %v640_v54 = vld [vmem:[%s6170_s28 + $0x3f0] sm:$0xff] }
 0x1f9   : > { %5124 = vmatprep.subr.msk.bf16.mxu0 %vm6180_vm1, %v5122_v55  ;;  %5172 = vmatprep.subr.msk.bf16.mxu1 %vm6180_vm1, %v5170_v56  ;;  %v641_v55 = vld [vmem:[%s6170_s28 + $0x3f8] sm:$0xff]  ;;  %v5149_v56 = vpack.c.bf16 %v591_v49, %v590_v48  ;;  %v5152_v58 = vpack.c.bf16 %v609_v53, %v608_v52  ;;  %v5216_v48 = vpack.c.bf16 %v3943_v36, %v3942_v35 }
 0x1fa   : > { %v5200_v59 = vpack.c.bf16 %v641_v55, %v640_v54  ;;  %v3976_v54 = vld [vmem:[%s5943_s25 + $0x530] sm:$0xff]  ;;  %v3977_v55 = vld [vmem:[%s5943_s25 + $0x538] sm:$0xff]  ;;  %v5232_v35 = vpack.c.bf16 %v3951_v25, %v3950_v24 }
 0x1fb   : > { %v4056_v24 = vld [vmem:[%s5943_s25 + $0x7b0] sm:$0xff]  ;;  %v4057_v25 = vld [vmem:[%s5943_s25 + $0x7b8] sm:$0xff] }
 0x200   : > { %5127 = vmatpush3.bf16.xpose.msk.msra.mxu0 %vm6180_vm1, %v5125_v1  ;;  %5175 = vmatpush3.bf16.xpose.msk.msra.mxu1 %vm6180_vm1, %v5173_v2  ;;  %v3955_v1 = vld [vmem:[%s5943_s25 + $0x488] sm:$0xff]  ;;  %v3986_v2 = vld [vmem:[%s5943_s25 + $0x580] sm:$0xff] }
 0x201   : > { %5130 = vmatprep.subr.msk.bf16.mxu0 %vm6180_vm1, %v5128_v3  ;;  %5178 = vmatprep.subr.msk.bf16.mxu1 %vm6180_vm1, %v5176_v4  ;;  %v3987_v3 = vld [vmem:[%s5943_s25 + $0x588] sm:$0xff]  ;;  %v5155_v4 = vpack.c.bf16 %v593_v61, %v592_v60  ;;  %v5206_v7 = vpack.c.bf16 %v3955_v1, %v3954_v0  ;;  %v5220_v60 = vpack.c.bf16 %v3945_v51, %v3944_v50 }
 0x202   : > { %v5238_v8 = vpack.c.bf16 %v3987_v3, %v3986_v2  ;;  %v5252_v61 = vpack.c.bf16 %v3977_v55, %v3976_v54  ;;  %v3978_v2 = vld [vmem:[%s5943_s25 + $0x540] sm:$0xff]  ;;  %v3979_v3 = vld [vmem:[%s5943_s25 + $0x548] sm:$0xff] }
 0x208   : > { %5133 = vmatpush3.bf16.xpose.msk.msra.mxu0 %vm6180_vm1, %v5131_v14  ;;  %5181 = vmatpush3.bf16.xpose.msk.msra.mxu1 %vm6180_vm1, %v5179_v15  ;;  %v3957_v14 = vld [vmem:[%s5943_s25 + $0x498] sm:$0xff]  ;;  %v3988_v15 = vld [vmem:[%s5943_s25 + $0x590] sm:$0xff] }
 0x209   : > { %5136 = vmatprep.subr.msk.bf16.mxu0 %vm6180_vm1, %v5134_v16  ;;  %5184 = vmatprep.subr.msk.bf16.mxu1 %vm6180_vm1, %v5182_v17  ;;  %v3989_v16 = vld [vmem:[%s5943_s25 + $0x598] sm:$0xff]  ;;  %v5208_v17 = vpack.c.bf16 %v3939_v10, %v3938_v9  ;;  %v5210_v22 = vpack.c.bf16 %v3957_v14, %v3956_v13  ;;  %v5224_v9 = vpack.c.bf16 %v3947_v63, %v3946_v62  ;;  %v5756_v62 = vunpack.i.h.bf16 %v6445_v47  ;;  %v4023_v47 = vld [vmem:[%s5943_s25 + $0x6a8] sm:$0xff] }
 0x20a   : > { %v5242_v23 = vpack.c.bf16 %v3989_v16, %v3988_v15  ;;  %v5256_v10 = vpack.c.bf16 %v3979_v3, %v3978_v2  ;;  %v3980_v15 = vld [vmem:[%s5943_s25 + $0x550] sm:$0xff]  ;;  %v3981_v16 = vld [vmem:[%s5943_s25 + $0x558] sm:$0xff]  ;;  %v5719_v63 = vunpack.i.h.bf16 %v6447_v18 }
 0x20b   : > { %v4004_v2 = vld [vmem:[%s5943_s25 + $0x610] sm:$0xff]  ;;  %v4005_v3 = vld [vmem:[%s5943_s25 + $0x618] sm:$0xff] }
 0x210   : > { %5139 = vmatpush3.bf16.xpose.msk.msra.mxu0 %vm6180_vm1, %v5137_v27  ;;  %5187 = vmatpush3.bf16.xpose.msk.msra.mxu1 %vm6180_vm1, %v5185_v29  ;;  %v3959_v27 = vld [vmem:[%s5943_s25 + $0x4a8] sm:$0xff]  ;;  %v3990_v29 = vld [vmem:[%s5943_s25 + $0x5a0] sm:$0xff] }
 0x211   : > { %5142 = vmatprep.subr.msk.bf16.mxu0 %vm6180_vm1, %v5140_v30  ;;  %5190 = vmatprep.subr.msk.bf16.mxu1 %vm6180_vm1, %v5188_v31  ;;  %v3991_v30 = vld [vmem:[%s5943_s25 + $0x5a8] sm:$0xff]  ;;  %v5716_v31 = vunpack.i.l.bf16 %v6447_v18  ;;  %v5214_v37 = vpack.c.bf16 %v3959_v27, %v3958_v26  ;;  %v5262_v27 = vpack.c.bf16 %v3999_v21, %v3998_v20  ;;  %v4038_v20 = vld [vmem:[%s5943_s25 + $0x720] sm:$0xff] }
 0x212   : > { %v5246_v40 = vpack.c.bf16 %v3991_v30, %v3990_v29  ;;  %v3982_v29 = vld [vmem:[%s5943_s25 + $0x560] sm:$0xff]  ;;  %v3983_v30 = vld [vmem:[%s5943_s25 + $0x568] sm:$0xff] }
 0x213   : > { %v5264_v36 = vpack.c.bf16 %v3983_v30, %v3982_v29  ;;  %v4055_v18 = vld [vmem:[%s5943_s25 + $0x7a8] sm:$0xff]  ;;  %v4008_v29 = vld [vmem:[%s5943_s25 + $0x630] sm:$0xff]  ;;  %v4009_v30 = vld [vmem:[%s5943_s25 + $0x638] sm:$0xff] }
 0x214   : > { %v4039_v21 = vld [vmem:[%s5943_s25 + $0x728] sm:$0xff] }
 0x218   : > { %5145 = vmatpush3.bf16.xpose.msk.msra.mxu0 %vm6180_vm1, %v5143_v43  ;;  %5193 = vmatpush3.bf16.xpose.msk.msra.mxu1 %vm6180_vm1, %v5191_v44  ;;  %v3975_v43 = vld [vmem:[%s5943_s25 + $0x528] sm:$0xff]  ;;  %v3960_v44 = vld [vmem:[%s5943_s25 + $0x4b0] sm:$0xff] }
 0x219   : > { %5148 = vmatprep.subr.msk.bf16.mxu0 %vm6180_vm1, %v5146_v45  ;;  %5196 = vmatprep.subr.msk.bf16.mxu1 %vm6180_vm1, %v5194_v46  ;;  %v3961_v45 = vld [vmem:[%s5943_s25 + $0x4b8] sm:$0xff]  ;;  %v5248_v49 = vpack.c.bf16 %v3975_v43, %v3974_v42 }
 0x21a   : > { %v3993_v46 = vld [vmem:[%s5943_s25 + $0x5b8] sm:$0xff]  ;;  %v5218_v52 = vpack.c.bf16 %v3961_v45, %v3960_v44  ;;  %v3984_v44 = vld [vmem:[%s5943_s25 + $0x570] sm:$0xff] }
 0x21b   : > { %v3985_v45 = vld [vmem:[%s5943_s25 + $0x578] sm:$0xff] }
 0x21c   : > { %v5268_v51 = vpack.c.bf16 %v3985_v45, %v3984_v44  ;;  %v4010_v44 = vld [vmem:[%s5943_s25 + $0x640] sm:$0xff]  ;;  %v4011_v45 = vld [vmem:[%s5943_s25 + $0x648] sm:$0xff] }
 0x220   : > { %5151 = vmatpush3.bf16.xpose.msk.msra.mxu0 %vm6180_vm1, %v5149_v56  ;;  %5199 = vmatpush3.bf16.xpose.msk.msra.mxu1 %vm6180_vm1, %v5197_v57  ;;  %v3962_v56 = vld [vmem:[%s5943_s25 + $0x4c0] sm:$0xff]  ;;  %v3963_v57 = vld [vmem:[%s5943_s25 + $0x4c8] sm:$0xff] }
 0x221   : > { %5154 = vmatprep.subr.msk.bf16.mxu0 %vm6180_vm1, %v5152_v58  ;;  %5202 = vmatprep.subr.msk.bf16.mxu1 %vm6180_vm1, %v5200_v59  ;;  %v3994_v58 = vld [vmem:[%s5943_s25 + $0x5c0] sm:$0xff]  ;;  %v3995_v59 = vld [vmem:[%s5943_s25 + $0x5c8] sm:$0xff]  ;;  %v5222_v0 = vpack.c.bf16 %v3963_v57, %v3962_v56 }
 0x222   : > { %v5254_v1 = vpack.c.bf16 %v3995_v59, %v3994_v58  ;;  %v4034_v56 = vld [vmem:[%s5943_s25 + $0x700] sm:$0xff]  ;;  %v4035_v57 = vld [vmem:[%s5943_s25 + $0x708] sm:$0xff]  ;;  %v4020_v58 = vld [vmem:[%s5943_s25 + $0x690] sm:$0xff] }
 0x223   : > { %v4021_v59 = vld [vmem:[%s5943_s25 + $0x698] sm:$0xff] }
 0x228   : > { %5157 = vmatpush3.bf16.xpose.msk.msra.mxu0 %vm6180_vm1, %v5155_v4  ;;  %5205 = vmatpush3.bf16.xpose.msk.msra.mxu1 %vm6180_vm1, %v5203_v5  ;;  %v3964_v4 = vld [vmem:[%s5943_s25 + $0x4d0] sm:$0xff]  ;;  %v3965_v5 = vld [vmem:[%s5943_s25 + $0x4d8] sm:$0xff] }
 0x229   : > { %5207 = vmatprep.subr.bf16.mxu0 %v5206_v7  ;;  %5239 = vmatprep.subr.bf16.mxu1 %v5238_v8  ;;  %v3996_v7 = vld [vmem:[%s5943_s25 + $0x5d0] sm:$0xff]  ;;  %v3997_v8 = vld [vmem:[%s5943_s25 + $0x5d8] sm:$0xff]  ;;  %v5226_v13 = vpack.c.bf16 %v3965_v5, %v3964_v4  ;;  %v5274_v4 = vpack.c.bf16 %v4021_v59, %v4020_v58 }
 0x22a   : > { %v5258_v14 = vpack.c.bf16 %v3997_v8, %v3996_v7  ;;  %v4036_v7 = vld [vmem:[%s5943_s25 + $0x710] sm:$0xff]  ;;  %v4037_v8 = vld [vmem:[%s5943_s25 + $0x718] sm:$0xff] }
 0x22f   : > { %4575 = vmatmul.mubr.msk.f32.vlgmr.msra.gmra.mrb[6].mxu0 %vm1200_vm0, %v6460_v39  ;;  %4609 = vmatmul.mubr.msk.f32.vlgmr.msra.gmra.mrb[6].mxu1 %vm1200_vm0, %v6460_v39  ;;  %v3992_v39 = vld [vmem:[%s5943_s25 + $0x5b0] sm:$0xff] }
 0x230   : > { %5209 = vmatpush3.bf16.msra.mxu0 %v5208_v17  ;;  %5241 = vmatpush3.bf16.msra.mxu1 %v5240_v19  ;;  %v5250_v53 = vpack.c.bf16 %v3993_v46, %v3992_v39  ;;  %v3966_v17 = vld [vmem:[%s5943_s25 + $0x4e0] sm:$0xff]  ;;  %v3967_v19 = vld [vmem:[%s5943_s25 + $0x4e8] sm:$0xff] }
 0x231   : > { %5211 = vmatprep.subr.bf16.mxu0 %v5210_v22  ;;  %5243 = vmatprep.subr.bf16.mxu1 %v5242_v23  ;;  %v5228_v22 = vpack.c.bf16 %v3949_v12, %v3948_v11  ;;  %v5260_v23 = vpack.c.bf16 %v3981_v16, %v3980_v15  ;;  %v5230_v26 = vpack.c.bf16 %v3967_v19, %v3966_v17  ;;  %v4018_v39 = vld [vmem:[%s5943_s25 + $0x680] sm:$0xff]  ;;  %v4019_v46 = vld [vmem:[%s5943_s25 + $0x688] sm:$0xff]  ;;  %v5827_v11 = vunpack.i.l.bf16 %v6458_v38 }
 0x232   : > { %2625 = vmatprep.mubr.f32.mxu0 %v5716_v31  ;;  %2695 = vmatprep.mubr.f32.mxu1 %v5753_v32  ;;  %v3968_v31 = vld [vmem:[%s5943_s25 + $0x4f0] sm:$0xff]  ;;  %v3969_v32 = vld [vmem:[%s5943_s25 + $0x4f8] sm:$0xff]  ;;  %v5270_v54 = vpack.c.bf16 %v4019_v46, %v4018_v39  ;;  %v5790_v12 = vunpack.i.l.bf16 %v6462_v41  ;;  %v4006_v15 = vld [vmem:[%s5943_s25 + $0x620] sm:$0xff] }
 0x233   : > { %v5234_v42 = vpack.c.bf16 %v3969_v32, %v3968_v31  ;;  %v4007_v16 = vld [vmem:[%s5943_s25 + $0x628] sm:$0xff]  ;;  %v5314_v32 = vpack.c.bf16 %v4057_v25, %v4056_v24  ;;  %v5830_v24 = vunpack.i.h.bf16 %v6458_v38  ;;  %v5793_v25 = vunpack.i.h.bf16 %v6462_v41 }
 0x234   : > { %5213 = vmatpush3.bf16.msra.mxu0 %v5212_v33  ;;  %5245 = vmatpush3.bf16.msra.mxu1 %v5244_v34  ;;  %v4000_v33 = vld [vmem:[%s5943_s25 + $0x5f0] sm:$0xff]  ;;  %v4001_v34 = vld [vmem:[%s5943_s25 + $0x5f8] sm:$0xff]  ;;  %v4115_v38 = vld [vmem:[%s6170_s28 + $0x588] sm:$0xff] }
 0x235   : > { %5215 = vmatprep.subr.bf16.mxu0 %v5214_v37  ;;  %5247 = vmatprep.subr.bf16.mxu1 %v5246_v40  ;;  %v3952_v37 = vld [vmem:[%s5943_s25 + $0x470] sm:$0xff]  ;;  %v3953_v40 = vld [vmem:[%s5943_s25 + $0x478] sm:$0xff]  ;;  %v5266_v43 = vpack.c.bf16 %v4001_v34, %v4000_v33  ;;  %v4067_v41 = vld [vmem:[%s6170_s28 + $0x408] sm:$0xff] }
 0x236   : > { %v5236_v50 = vpack.c.bf16 %v3953_v40, %v3952_v37  ;;  %v4040_v33 = vld [vmem:[%s5943_s25 + $0x730] sm:$0xff]  ;;  %v4041_v34 = vld [vmem:[%s5943_s25 + $0x738] sm:$0xff]  ;;  %v4058_v37 = vld [vmem:[%s5943_s25 + $0x7c0] sm:$0xff] }
 0x237   : > { %v4059_v40 = vld [vmem:[%s5943_s25 + $0x7c8] sm:$0xff] }
 0x238   : > { %5217 = vmatpush3.bf16.msra.mxu0 %v5216_v48  ;;  %5249 = vmatpush3.bf16.msra.mxu1 %v5248_v49  ;;  %v4050_v48 = vld [vmem:[%s5943_s25 + $0x780] sm:$0xff]  ;;  %v4051_v49 = vld [vmem:[%s5943_s25 + $0x788] sm:$0xff]  ;;  %v5318_v46 = vpack.c.bf16 %v4059_v40, %v4058_v37 }
 0x239   : > { %5219 = vmatprep.subr.bf16.mxu0 %v5218_v52  ;;  %5251 = vmatprep.subr.bf16.mxu1 %v5250_v53  ;;  %v4002_v52 = vld [vmem:[%s5943_s25 + $0x600] sm:$0xff]  ;;  %v4003_v53 = vld [vmem:[%s5943_s25 + $0x608] sm:$0xff]  ;;  %v5302_v55 = vpack.c.bf16 %v4051_v49, %v4050_v48 }
 0x23a   : > { %v4042_v48 = vld [vmem:[%s5943_s25 + $0x740] sm:$0xff]  ;;  %v4043_v49 = vld [vmem:[%s5943_s25 + $0x748] sm:$0xff] }
 0x23c   : > { %5221 = vmatpush3.bf16.msra.mxu0 %v5220_v60  ;;  %5253 = vmatpush3.bf16.msra.mxu1 %v5252_v61  ;;  %v4052_v60 = vld [vmem:[%s5943_s25 + $0x790] sm:$0xff]  ;;  %v4053_v61 = vld [vmem:[%s5943_s25 + $0x798] sm:$0xff] }
 0x23d   : > { %5223 = vmatprep.subr.bf16.mxu0 %v5222_v0  ;;  %5255 = vmatprep.subr.bf16.mxu1 %v5254_v1  ;;  %v5272_v0 = vpack.c.bf16 %v4003_v53, %v4002_v52  ;;  %v5304_v1 = vpack.c.bf16 %v4035_v57, %v4034_v56  ;;  %v5306_v5 = vpack.c.bf16 %v4053_v61, %v4052_v60  ;;  %v4060_v52 = vld [vmem:[%s5943_s25 + $0x7d0] sm:$0xff]  ;;  %v4061_v53 = vld [vmem:[%s5943_s25 + $0x7d8] sm:$0xff] }
 0x23e   : > { %v4012_v56 = vld [vmem:[%s5943_s25 + $0x650] sm:$0xff]  ;;  %v4013_v57 = vld [vmem:[%s5943_s25 + $0x658] sm:$0xff]  ;;  %v5322_v59 = vpack.c.bf16 %v4061_v53, %v4060_v52 }
 0x23f   : > { %v4044_v60 = vld [vmem:[%s5943_s25 + $0x750] sm:$0xff]  ;;  %v4045_v61 = vld [vmem:[%s5943_s25 + $0x758] sm:$0xff] }
 0x240   : > { %5225 = vmatpush3.bf16.msra.mxu0 %v5224_v9  ;;  %5257 = vmatpush3.bf16.msra.mxu1 %v5256_v10  ;;  %v4022_v9 = vld [vmem:[%s5943_s25 + $0x6a0] sm:$0xff] }
 0x241   : > { %5227 = vmatprep.subr.bf16.mxu0 %v5226_v13  ;;  %5259 = vmatprep.subr.bf16.mxu1 %v5258_v14  ;;  %v4054_v10 = vld [vmem:[%s5943_s25 + $0x7a0] sm:$0xff]  ;;  %v5276_v13 = vpack.c.bf16 %v4005_v3, %v4004_v2  ;;  %v5308_v14 = vpack.c.bf16 %v4037_v8, %v4036_v7  ;;  %v5278_v17 = vpack.c.bf16 %v4023_v47, %v4022_v9  ;;  %v4047_v47 = vld [vmem:[%s5943_s25 + $0x768] sm:$0xff] }
 0x242   : > { %v5310_v19 = vpack.c.bf16 %v4055_v18, %v4054_v10  ;;  %v5292_v2 = vpack.c.bf16 %v4013_v57, %v4012_v56  ;;  %v5324_v3 = vpack.c.bf16 %v4045_v61, %v4044_v60  ;;  %v4046_v9 = vld [vmem:[%s5943_s25 + $0x760] sm:$0xff]  ;;  %v4032_v10 = vld [vmem:[%s5943_s25 + $0x6f0] sm:$0xff]  ;;  %v4033_v18 = vld [vmem:[%s5943_s25 + $0x6f8] sm:$0xff] }
 0x243   : > { %v4116_v56 = vld [vmem:[%s6170_s28 + $0x590] sm:$0xff]  ;;  %v4069_v61 = vld [vmem:[%s6170_s28 + $0x418] sm:$0xff] }
 0x244   : > { %5229 = vmatpush3.bf16.msra.mxu0 %v5228_v22  ;;  %5261 = vmatpush3.bf16.msra.mxu1 %v5260_v23  ;;  %v4024_v22 = vld [vmem:[%s5943_s25 + $0x6b0] sm:$0xff]  ;;  %v4025_v23 = vld [vmem:[%s5943_s25 + $0x6b8] sm:$0xff] }
 0x245   : > { %5231 = vmatprep.subr.bf16.mxu0 %v5230_v26  ;;  %5263 = vmatprep.subr.bf16.mxu1 %v5262_v27  ;;  %v5280_v26 = vpack.c.bf16 %v4007_v16, %v4006_v15  ;;  %v5312_v27 = vpack.c.bf16 %v4039_v21, %v4038_v20  ;;  %v5282_v31 = vpack.c.bf16 %v4025_v23, %v4024_v22  ;;  %v4016_v15 = vld [vmem:[%s5943_s25 + $0x670] sm:$0xff]  ;;  %v4049_v21 = vld [vmem:[%s5943_s25 + $0x778] sm:$0xff] }
 0x246   : > { %v5298_v16 = vpack.c.bf16 %v4033_v18, %v4032_v10  ;;  %v4048_v20 = vld [vmem:[%s5943_s25 + $0x770] sm:$0xff] }
 0x247   : > { %v5332_v23 = vpack.c.bf16 %v4049_v21, %v4048_v20  ;;  %v4068_v60 = vld [vmem:[%s6170_s28 + $0x410] sm:$0xff]  ;;  %v4073_v21 = vld [vmem:[%s6170_s28 + $0x438] sm:$0xff] }
 0x248   : > { %5233 = vmatpush3.bf16.msra.mxu0 %v5232_v35  ;;  %5265 = vmatpush3.bf16.msra.mxu1 %v5264_v36  ;;  %v4026_v35 = vld [vmem:[%s5943_s25 + $0x6c0] sm:$0xff]  ;;  %v4027_v36 = vld [vmem:[%s5943_s25 + $0x6c8] sm:$0xff]  ;;  %v4072_v20 = vld [vmem:[%s6170_s28 + $0x430] sm:$0xff] }
 0x249   : > { %5235 = vmatprep.subr.bf16.mxu0 %v5234_v42  ;;  %5267 = vmatprep.subr.bf16.mxu1 %v5266_v43  ;;  %v5284_v42 = vpack.c.bf16 %v4009_v30, %v4008_v29  ;;  %v5316_v43 = vpack.c.bf16 %v4041_v34, %v4040_v33  ;;  %v5286_v39 = vpack.c.bf16 %v4027_v36, %v4026_v35  ;;  %v1885_v29 = vlaneseq  ;;  %v4083_v33 = vld [vmem:[%s6170_s28 + $0x488] sm:$0xff]  ;;  %v4114_v34 = vld [vmem:[%s6170_s28 + $0x580] sm:$0xff] }
 0x24a   : > { %v4066_v36 = vld [vmem:[%s6170_s28 + $0x400] sm:$0xff]  ;;  %v5382_v37 = vpack.c.bf16 %v4115_v38, %v4114_v34  ;;  %v4075_v34 = vld [vmem:[%s6170_s28 + $0x448] sm:$0xff] }
 0x24b   : > { %v5337_v40 = vpack.c.bf16 %v4067_v41, %v4066_v36  ;;  %v4106_v36 = vld [vmem:[%s6170_s28 + $0x540] sm:$0xff]  ;;  %v4107_v41 = vld [vmem:[%s6170_s28 + $0x548] sm:$0xff] }
 0x24c   : > { %5237 = vmatpush3.bf16.msra.mxu0 %v5236_v50  ;;  %5269 = vmatpush3.bf16.msra.mxu1 %v5268_v51  ;;  %v4028_v50 = vld [vmem:[%s5943_s25 + $0x6d0] sm:$0xff]  ;;  %v4029_v51 = vld [vmem:[%s5943_s25 + $0x6d8] sm:$0xff] }
 0x24d   : > { %5271 = vmatprep.subr.bf16.mxu0 %v5270_v54  ;;  %5303 = vmatprep.subr.bf16.mxu1 %v5302_v55  ;;  %v5288_v54 = vpack.c.bf16 %v4011_v45, %v4010_v44  ;;  %v5320_v55 = vpack.c.bf16 %v4043_v49, %v4042_v48  ;;  %v5290_v58 = vpack.c.bf16 %v4029_v51, %v4028_v50 }
 0x24f   : > { %2626 = vmatmul.mubr.f32.vlgmr.msra.gmra.mrb[8].mxu0 %v5719_v63  ;;  %2696 = vmatmul.mubr.f32.vlgmr.msra.gmra.mrb[8].mxu1 %v5756_v62  ;;  %v4030_v62 = vld [vmem:[%s5943_s25 + $0x6e0] sm:$0xff]  ;;  %v4031_v63 = vld [vmem:[%s5943_s25 + $0x6e8] sm:$0xff] }
 0x250   : > { %5273 = vmatpush3.bf16.msra.mxu0 %v5272_v0  ;;  %5305 = vmatpush3.bf16.msra.mxu1 %v5304_v1  ;;  %v4062_v0 = vld [vmem:[%s5943_s25 + $0x7e0] sm:$0xff]  ;;  %v4063_v1 = vld [vmem:[%s5943_s25 + $0x7e8] sm:$0xff]  ;;  %v5294_v7 = vpack.c.bf16 %v4031_v63, %v4030_v62  ;;  %v5343_v63 = vpack.c.bf16 %v4069_v61, %v4068_v60 }
 0x251   : > { %5275 = vmatprep.subr.bf16.mxu0 %v5274_v4  ;;  %5307 = vmatprep.subr.bf16.mxu1 %v5306_v5  ;;  %v4014_v4 = vld [vmem:[%s5943_s25 + $0x660] sm:$0xff]  ;;  %v4015_v5 = vld [vmem:[%s5943_s25 + $0x668] sm:$0xff]  ;;  %v5326_v8 = vpack.c.bf16 %v4063_v1, %v4062_v0  ;;  %v4100_v0 = vld [vmem:[%s6170_s28 + $0x510] sm:$0xff] }
 0x252   : > { %2765 = vmatprep.mubr.f32.mxu0 %v5790_v12  ;;  %2835 = vmatprep.mubr.f32.mxu1 %v5827_v11  ;;  %v4064_v11 = vld [vmem:[%s5943_s25 + $0x7f0] sm:$0xff]  ;;  %v4065_v12 = vld [vmem:[%s5943_s25 + $0x7f8] sm:$0xff]  ;;  %v4079_v60 = vld [vmem:[%s6170_s28 + $0x468] sm:$0xff] }
 0x253   : > { %v4101_v1 = vld [vmem:[%s6170_s28 + $0x518] sm:$0xff] }
 0x254   : > { %5277 = vmatpush3.bf16.msra.mxu0 %v5276_v13  ;;  %5309 = vmatpush3.bf16.msra.mxu1 %v5308_v14  ;;  %v5296_v13 = vpack.c.bf16 %v4015_v5, %v4014_v4  ;;  %v5328_v14 = vpack.c.bf16 %v4047_v47, %v4046_v9  ;;  %v4087_v4 = vld [vmem:[%s6170_s28 + $0x4a8] sm:$0xff]  ;;  %v4118_v5 = vld [vmem:[%s6170_s28 + $0x5a0] sm:$0xff] }
 0x255   : > { %5279 = vmatprep.subr.bf16.mxu0 %v5278_v17  ;;  %5311 = vmatprep.subr.bf16.mxu1 %v5310_v19  ;;  %v5330_v17 = vpack.c.bf16 %v4065_v12, %v4064_v11  ;;  %v4017_v19 = vld [vmem:[%s5943_s25 + $0x678] sm:$0xff]  ;;  %v4070_v9 = vld [vmem:[%s6170_s28 + $0x420] sm:$0xff]  ;;  %v4071_v47 = vld [vmem:[%s6170_s28 + $0x428] sm:$0xff] }
 0x256   : > { %v5300_v22 = vpack.c.bf16 %v4017_v19, %v4016_v15  ;;  %v5349_v18 = vpack.c.bf16 %v4071_v47, %v4070_v9  ;;  %v4102_v11 = vld [vmem:[%s6170_s28 + $0x520] sm:$0xff]  ;;  %v4103_v12 = vld [vmem:[%s6170_s28 + $0x528] sm:$0xff]  ;;  %v4089_v15 = vld [vmem:[%s6170_s28 + $0x4b8] sm:$0xff] }
 0x257   : > { %v4121_v19 = vld [vmem:[%s6170_s28 + $0x5b8] sm:$0xff] }
 0x258   : > { %5281 = vmatpush3.bf16.msra.mxu0 %v5280_v26  ;;  %5313 = vmatpush3.bf16.msra.mxu1 %v5312_v27  ;;  %v5847_v26 = vmov 1983009808   ;;  %v4081_v9 = vld [vmem:[%s6170_s28 + $0x478] sm:$0xff] }
 0x259   : > { %5283 = vmatprep.subr.bf16.mxu0 %v5282_v31  ;;  %5315 = vmatprep.subr.bf16.mxu1 %v5314_v32  ;;  %v1883_v27 = vunpack.c.l.s4 %v5847_v26  ;;  %v1886_v31 = vshrl.u32 %v1885_v29, 7  ;;  %v4082_v32 = vld [vmem:[%s6170_s28 + $0x480] sm:$0xff]  ;;  %v4091_v29 = vld [vmem:[%s6170_s28 + $0x4c8] sm:$0xff] }
 0x25a   : > { %v5334_v35 = vpack.c.bf16 %v4083_v33, %v4082_v32  ;;  %v4123_v32 = vld [vmem:[%s6170_s28 + $0x5c8] sm:$0xff]  ;;  %v4074_v33 = vld [vmem:[%s6170_s28 + $0x440] sm:$0xff] }
 0x25b   : > { %v1884_v30 = vunpack.c.0.s8 %v1883_v27  ;;  %v4090_v27 = vld [vmem:[%s6170_s28 + $0x4c0] sm:$0xff]  ;;  %v5361_v38 = vpack.c.bf16 %v4075_v34, %v4074_v33 }
 0x25c   : > { %5285 = vmatpush3.bf16.msra.mxu0 %v5284_v42  ;;  %5317 = vmatpush3.bf16.msra.mxu1 %v5316_v43  ;;  %v4098_v42 = vld [vmem:[%s6170_s28 + $0x500] sm:$0xff]  ;;  %v4099_v43 = vld [vmem:[%s6170_s28 + $0x508] sm:$0xff] }
 0x25d   : > { %5287 = vmatprep.subr.bf16.mxu0 %v5286_v39  ;;  %5319 = vmatprep.subr.bf16.mxu1 %v5318_v46  ;;  %v6736_v39 = vsub.s32 %v1884_v30, %v1886_v31  ;;  %v5385_v46 = vpack.c.bf16 %v4099_v43, %v4098_v42  ;;  %v4122_v30 = vld [vmem:[%s6170_s28 + $0x5c0] sm:$0xff]  ;;  %v5358_v31 = vpack.c.bf16 %v4091_v29, %v4090_v27  ;;  %v4093_v42 = vld [vmem:[%s6170_s28 + $0x4d8] sm:$0xff]  ;;  %v4124_v43 = vld [vmem:[%s6170_s28 + $0x5d0] sm:$0xff] }
 0x260   : > { %5289 = vmatpush3.bf16.msra.mxu0 %v5288_v54  ;;  %5321 = vmatpush3.bf16.msra.mxu1 %v5320_v55  ;;  %v4084_v54 = vld [vmem:[%s6170_s28 + $0x490] sm:$0xff]  ;;  %v4085_v55 = vld [vmem:[%s6170_s28 + $0x498] sm:$0xff] }
 0x261   : > { %5291 = vmatprep.subr.bf16.mxu0 %v5290_v58  ;;  %5323 = vmatprep.subr.bf16.mxu1 %v5322_v59  ;;  %v5340_v58 = vpack.c.bf16 %v4085_v55, %v4084_v54  ;;  %v4117_v59 = vld [vmem:[%s6170_s28 + $0x598] sm:$0xff]  ;;  %v4094_v54 = vld [vmem:[%s6170_s28 + $0x4e0] sm:$0xff]  ;;  %v4095_v55 = vld [vmem:[%s6170_s28 + $0x4e8] sm:$0xff] }
 0x262   : > { %v5388_v62 = vpack.c.bf16 %v4117_v59, %v4116_v56  ;;  %v4126_v56 = vld [vmem:[%s6170_s28 + $0x5e0] sm:$0xff] }
 0x263   : > { %v4078_v59 = vld [vmem:[%s6170_s28 + $0x460] sm:$0xff] }
 0x264   : > { %5293 = vmatpush3.bf16.msra.mxu0 %v5292_v2  ;;  %5325 = vmatpush3.bf16.msra.mxu1 %v5324_v3  ;;  %v5391_v2 = vpack.c.bf16 %v4101_v1, %v4100_v0  ;;  %v4086_v3 = vld [vmem:[%s6170_s28 + $0x4a0] sm:$0xff]  ;;  %v4111_v0 = vld [vmem:[%s6170_s28 + $0x568] sm:$0xff] }
 0x265   : > { %5295 = vmatprep.subr.bf16.mxu0 %v5294_v7  ;;  %5327 = vmatprep.subr.bf16.mxu1 %v5326_v8  ;;  %v5346_v7 = vpack.c.bf16 %v4087_v4, %v4086_v3  ;;  %v4119_v8 = vld [vmem:[%s6170_s28 + $0x5a8] sm:$0xff]  ;;  %v4097_v3 = vld [vmem:[%s6170_s28 + $0x4f8] sm:$0xff]  ;;  %v4128_v4 = vld [vmem:[%s6170_s28 + $0x5f0] sm:$0xff] }
 0x266   : > { %v5394_v10 = vpack.c.bf16 %v4119_v8, %v4118_v5  ;;  %v4080_v8 = vld [vmem:[%s6170_s28 + $0x470] sm:$0xff] }
 0x268   : > { %5297 = vmatpush3.bf16.msra.mxu0 %v5296_v13  ;;  %5329 = vmatpush3.bf16.msra.mxu1 %v5328_v14  ;;  %v5397_v13 = vpack.c.bf16 %v4103_v12, %v4102_v11  ;;  %v4088_v14 = vld [vmem:[%s6170_s28 + $0x4b0] sm:$0xff]  ;;  %v4113_v11 = vld [vmem:[%s6170_s28 + $0x578] sm:$0xff] }
 0x269   : > { %5299 = vmatprep.subr.bf16.mxu0 %v5298_v16  ;;  %5331 = vmatprep.subr.bf16.mxu1 %v5330_v17  ;;  %v4120_v16 = vld [vmem:[%s6170_s28 + $0x5b0] sm:$0xff]  ;;  %v5352_v17 = vpack.c.bf16 %v4089_v15, %v4088_v14  ;;  %v4147_v14 = vld [vmem:[%s6170_s28 + $0x688] sm:$0xff]  ;;  %v4178_v15 = vld [vmem:[%s6170_s28 + $0x780] sm:$0xff] }
 0x26c   : > { %5301 = vmatpush3.bf16.msra.mxu0 %v5300_v22  ;;  %5333 = vmatpush3.bf16.msra.mxu1 %v5332_v23  ;;  %v5400_v22 = vpack.c.bf16 %v4121_v19, %v4120_v16  ;;  %v5355_v23 = vpack.c.bf16 %v4073_v21, %v4072_v20 }
 0x26d   : > { %5336 = vmatprep.subr.msk.bf16.mxu0 %vm6180_vm1, %v5334_v35  ;;  %5384 = vmatprep.subr.msk.bf16.mxu1 %vm6180_vm1, %v5382_v37  ;;  %v5406_v35 = vpack.c.bf16 %v4123_v32, %v4122_v30  ;;  %v5409_v37 = vpack.c.bf16 %v4107_v41, %v4106_v36 }
 0x26f   : > { %2766 = vmatmul.mubr.f32.vlgmr.msra.gmra.mrb[10].mxu0 %v5793_v25  ;;  %2836 = vmatmul.mubr.f32.vlgmr.msra.gmra.mrb[10].mxu1 %v5830_v24  ;;  %v4104_v24 = vld [vmem:[%s6170_s28 + $0x530] sm:$0xff]  ;;  %v4105_v25 = vld [vmem:[%s6170_s28 + $0x538] sm:$0xff] }
 0x270   : > { %v5403_v26 = vpack.c.bf16 %v4105_v25, %v4104_v24 }
 0x275   : > { %5339 = vmatpush3.bf16.xpose.msk.msra.mxu0 %vm6180_vm1, %v5337_v40  ;;  %5387 = vmatpush3.bf16.xpose.msk.msra.mxu1 %vm6180_vm1, %v5385_v46  ;;  %v4092_v40 = vld [vmem:[%s6170_s28 + $0x4d0] sm:$0xff] }
 0x276   : > { %5342 = vmatprep.subr.msk.bf16.mxu0 %vm6180_vm1, %v5340_v58  ;;  %5390 = vmatprep.subr.msk.bf16.mxu1 %vm6180_vm1, %v5388_v62  ;;  %v4076_v46 = vld [vmem:[%s6170_s28 + $0x450] sm:$0xff]  ;;  %v4127_v58 = vld [vmem:[%s6170_s28 + $0x5e8] sm:$0xff]  ;;  %v5373_v62 = vpack.c.bf16 %v4079_v60, %v4078_v59 }
 0x277   : > { %v5418_v61 = vpack.c.bf16 %v4127_v58, %v4126_v56 }
 0x27d   : > { %5345 = vmatpush3.bf16.xpose.msk.msra.mxu0 %vm6180_vm1, %v5343_v63  ;;  %5393 = vmatpush3.bf16.xpose.msk.msra.mxu1 %vm6180_vm1, %v5391_v2  ;;  %v4110_v63 = vld [vmem:[%s6170_s28 + $0x560] sm:$0xff]  ;;  %v4096_v2 = vld [vmem:[%s6170_s28 + $0x4f0] sm:$0xff] }
 0x27e   : > { %5348 = vmatprep.subr.msk.bf16.mxu0 %vm6180_vm1, %v5346_v7  ;;  %5396 = vmatprep.subr.msk.bf16.mxu1 %vm6180_vm1, %v5394_v10  ;;  %v5421_v1 = vpack.c.bf16 %v4111_v0, %v4110_v63  ;;  %v5376_v5 = vpack.c.bf16 %v4097_v3, %v4096_v2  ;;  %v4129_v7 = vld [vmem:[%s6170_s28 + $0x5f8] sm:$0xff]  ;;  %v5379_v10 = vpack.c.bf16 %v4081_v9, %v4080_v8  ;;  %v4130_v0 = vld [vmem:[%s6170_s28 + $0x600] sm:$0xff]  ;;  %v4163_v3 = vld [vmem:[%s6170_s28 + $0x708] sm:$0xff] }
 0x27f   : > { %v5424_v47 = vpack.c.bf16 %v4129_v7, %v4128_v4  ;;  %v4162_v2 = vld [vmem:[%s6170_s28 + $0x700] sm:$0xff]  ;;  %v4148_v4 = vld [vmem:[%s6170_s28 + $0x690] sm:$0xff]  ;;  %v4149_v7 = vld [vmem:[%s6170_s28 + $0x698] sm:$0xff] }
 0x280   : > { %v4180_v8 = vld [vmem:[%s6170_s28 + $0x790] sm:$0xff]  ;;  %v4181_v9 = vld [vmem:[%s6170_s28 + $0x798] sm:$0xff] }
 0x285   : > { %5351 = vmatpush3.bf16.xpose.msk.msra.mxu0 %vm6180_vm1, %v5349_v18  ;;  %5399 = vmatpush3.bf16.xpose.msk.msra.mxu1 %vm6180_vm1, %v5397_v13  ;;  %v4112_v18 = vld [vmem:[%s6170_s28 + $0x570] sm:$0xff]  ;;  %v4146_v13 = vld [vmem:[%s6170_s28 + $0x680] sm:$0xff] }
 0x286   : > { %5354 = vmatprep.subr.msk.bf16.mxu0 %vm6180_vm1, %v5352_v17  ;;  %5402 = vmatprep.subr.msk.bf16.mxu1 %vm6180_vm1, %v5400_v22  ;;  %v5427_v12 = vpack.c.bf16 %v4113_v11, %v4112_v18  ;;  %v5430_v16 = vpack.c.bf16 %v4147_v14, %v4146_v13  ;;  %v4179_v17 = vld [vmem:[%s6170_s28 + $0x788] sm:$0xff]  ;;  %v5481_v18 = vpack.c.bf16 %v4163_v3, %v4162_v2  ;;  %v4132_v13 = vld [vmem:[%s6170_s28 + $0x610] sm:$0xff]  ;;  %v4133_v14 = vld [vmem:[%s6170_s28 + $0x618] sm:$0xff] }
 0x287   : > { %v5478_v19 = vpack.c.bf16 %v4179_v17, %v4178_v15  ;;  %v5436_v11 = vpack.c.bf16 %v4149_v7, %v4148_v4  ;;  %v4164_v15 = vld [vmem:[%s6170_s28 + $0x710] sm:$0xff]  ;;  %v4150_v17 = vld [vmem:[%s6170_s28 + $0x6a0] sm:$0xff]  ;;  %v4173_v3 = vld [vmem:[%s6170_s28 + $0x758] sm:$0xff] }
 0x288   : > { %v4172_v2 = vld [vmem:[%s6170_s28 + $0x750] sm:$0xff]  ;;  %v4158_v4 = vld [vmem:[%s6170_s28 + $0x6e0] sm:$0xff] }
 0x289   : > { %v4190_v7 = vld [vmem:[%s6170_s28 + $0x7e0] sm:$0xff] }
 0x28d   : > { %5357 = vmatpush3.bf16.xpose.msk.msra.mxu0 %vm6180_vm1, %v5355_v23  ;;  %5405 = vmatpush3.bf16.xpose.msk.msra.mxu1 %vm6180_vm1, %v5403_v26 }
 0x28e   : > { %5360 = vmatprep.subr.msk.bf16.mxu0 %vm6180_vm1, %v5358_v31  ;;  %5408 = vmatprep.subr.msk.bf16.mxu1 %vm6180_vm1, %v5406_v35 }
 0x295   : > { %5363 = vmatpush3.bf16.xpose.msk.msra.mxu0 %vm6180_vm1, %v5361_v38  ;;  %5411 = vmatpush3.bf16.xpose.msk.msra.mxu1 %vm6180_vm1, %v5409_v37 }
 0x2c2   : > { %v1654_v44 = vpop.f32.mrb[4].mxu0  ;;  %v1725_v45 = vpop.f32.mrb[4].mxu1 }
 0x2c3   : > { %v1656_v48 = vpop.f32.mrb[5].mxu0  ;;  %v1727_v49 = vpop.f32.mrb[5].mxu1 }
 0x2c4   : > { %v1880_v50 = vcombine.low %v1654_v44, %v1656_v48  ;;  %v1881_v51 = vcombine.low %v1725_v45, %v1727_v49  ;;  %v5364_v44 = vpack.c.bf16 %v4093_v42, %v4092_v40  ;;  %v4125_v45 = vld [vmem:[%s6170_s28 + $0x5d8] sm:$0xff] }
 0x2c5   : > { %v4077_v48 = vld [vmem:[%s6170_s28 + $0x458] sm:$0xff]  ;;  %v5412_v49 = vpack.c.bf16 %v4125_v45, %v4124_v43 }
 0x2c6   : > { %v1888_v52 = vrot.slane %v1880_v50, %v6736_v39  ;;  %v1895_v53 = vrot.slane %v1881_v51, %v6736_v39  ;;  %v5367_v50 = vpack.c.bf16 %v4077_v48, %v4076_v46  ;;  %v4108_v51 = vld [vmem:[%s6170_s28 + $0x550] sm:$0xff]  ;;  %5366 = vmatprep.subr.msk.bf16.mxu0 %vm6180_vm1, %v5364_v44 }
 0x2c7   : > { %5414 = vmatprep.subr.msk.bf16.mxu1 %vm6180_vm1, %v5412_v49 }
 0x2c8   : > { %v1896_v57 = vcombine.low %v1888_v52, %v1895_v53  ;;  %v4109_v52 = vld [vmem:[%s6170_s28 + $0x558] sm:$0xff]  ;;  %5369 = vmatpush3.bf16.xpose.msk.msra.mxu0 %vm6180_vm1, %v5367_v50 }
 0x2c9   : > { %v5415_v53 = vpack.c.bf16 %v4109_v52, %v4108_v51 }
 0x2ca   : > { %1916 = vst [vmem:[%s6752_s7] sm:$0xff] %v1896_v57  ;;  %v5370_v57 = vpack.c.bf16 %v4095_v55, %v4094_v54 }
 0x2cb   : > { %5417 = vmatpush3.bf16.xpose.msk.msra.mxu1 %vm6180_vm1, %v5415_v53 }
 0x2cc   : > { %5372 = vmatprep.subr.msk.bf16.mxu0 %vm6180_vm1, %v5370_v57  ;;  %5420 = vmatprep.subr.msk.bf16.mxu1 %vm6180_vm1, %v5418_v61 }
 0x2d0   : > { %5375 = vmatpush3.bf16.xpose.msk.msra.mxu0 %vm6180_vm1, %v5373_v62 }
 0x2d1   : > { %5378 = vmatprep.subr.msk.bf16.mxu0 %vm6180_vm1, %v5376_v5 }
 0x2d3   : > { %5423 = vmatpush3.bf16.xpose.msk.msra.mxu1 %vm6180_vm1, %v5421_v1  ;;  %v4131_v1 = vld [vmem:[%s6170_s28 + $0x608] sm:$0xff] }
 0x2d4   : > { %5426 = vmatprep.subr.msk.bf16.mxu1 %vm6180_vm1, %v5424_v47 }
 0x2d8   : > { %5381 = vmatpush3.bf16.xpose.msk.msra.mxu0 %vm6180_vm1, %v5379_v10  ;;  %v5433_v10 = vpack.c.bf16 %v4131_v1, %v4130_v0  ;;  %v4140_v0 = vld [vmem:[%s6170_s28 + $0x650] sm:$0xff]  ;;  %v4141_v1 = vld [vmem:[%s6170_s28 + $0x658] sm:$0xff] }
 0x2d9   : > { %5432 = vmatprep.subr.msk.bf16.mxu0 %vm6180_vm1, %v5430_v16  ;;  %v4165_v16 = vld [vmem:[%s6170_s28 + $0x718] sm:$0xff] }
 0x2db   : > { %5429 = vmatpush3.bf16.xpose.msk.msra.mxu1 %vm6180_vm1, %v5427_v12  ;;  %v5484_v12 = vpack.c.bf16 %v4181_v9, %v4180_v8  ;;  %v4191_v8 = vld [vmem:[%s6170_s28 + $0x7e8] sm:$0xff]  ;;  %v5463_v9 = vpack.c.bf16 %v4141_v1, %v4140_v0 }
 0x2dc   : > { %5480 = vmatprep.subr.msk.bf16.mxu1 %vm6180_vm1, %v5478_v19  ;;  %v4151_v19 = vld [vmem:[%s6170_s28 + $0x6a8] sm:$0xff] }
 0x302   : > { %v1796_v20 = vpop.f32.mrb[6].mxu0  ;;  %v1867_v21 = vpop.f32.mrb[6].mxu1 }
 0x303   : > { %v1798_v22 = vpop.f32.mrb[7].mxu0  ;;  %v1869_v23 = vpop.f32.mrb[7].mxu1 }
 0x304   : > { %v1897_v24 = vcombine.low %v1796_v20, %v1798_v22  ;;  %v1898_v25 = vcombine.low %v1867_v21, %v1869_v23  ;;  %v4182_v20 = vld [vmem:[%s6170_s28 + $0x7a0] sm:$0xff]  ;;  %v4183_v21 = vld [vmem:[%s6170_s28 + $0x7a8] sm:$0xff]  ;;  %v5439_v22 = vpack.c.bf16 %v4133_v14, %v4132_v13  ;;  %v5487_v23 = vpack.c.bf16 %v4165_v16, %v4164_v15  ;;  %v4160_v16 = vld [vmem:[%s6170_s28 + $0x6f0] sm:$0xff] }
 0x305   : > { %v4143_v13 = vld [vmem:[%s6170_s28 + $0x668] sm:$0xff]  ;;  %v4174_v14 = vld [vmem:[%s6170_s28 + $0x760] sm:$0xff] }
 0x306   : > { %v1905_v26 = vrot.slane %v1897_v24, %v6736_v39  ;;  %v1912_v27 = vrot.slane %v1898_v25, %v6736_v39  ;;  %v5442_v24 = vpack.c.bf16 %v4151_v19, %v4150_v17  ;;  %v5490_v25 = vpack.c.bf16 %v4183_v21, %v4182_v20  ;;  %v4175_v15 = vld [vmem:[%s6170_s28 + $0x768] sm:$0xff]  ;;  %v4161_v17 = vld [vmem:[%s6170_s28 + $0x6f8] sm:$0xff]  ;;  %v4192_v19 = vld [vmem:[%s6170_s28 + $0x7f0] sm:$0xff] }
 0x307   : > { %v4193_v20 = vld [vmem:[%s6170_s28 + $0x7f8] sm:$0xff] }
 0x308   : > { %v1913_v29 = vcombine.low %v1905_v26, %v1912_v27  ;;  %v4134_v26 = vld [vmem:[%s6170_s28 + $0x620] sm:$0xff]  ;;  %v4135_v27 = vld [vmem:[%s6170_s28 + $0x628] sm:$0xff] }
 0x30a   : > { %1917 = vst [vmem:[%s6752_s7 + $0x8] sm:$0xff] %v1913_v29  ;;  %v4166_v29 = vld [vmem:[%s6170_s28 + $0x720] sm:$0xff] }
 0x322   : > { %v4642_v30 = vpop.f32.mrb[8].mxu0  ;;  %v4677_v31 = vpop.f32.mrb[8].mxu1 }
 0x323   : > { %v4643_v32 = vpop.f32.mrb[9].mxu0  ;;  %v4678_v33 = vpop.f32.mrb[9].mxu1 }
 0x324   : > { %v4644_v34 = vadd.f32 %v4643_v32, %v4642_v30  ;;  %v4679_v35 = vadd.f32 %v4678_v33, %v4677_v31  ;;  %v4167_v30 = vld [vmem:[%s6170_s28 + $0x728] sm:$0xff]  ;;  %v4152_v31 = vld [vmem:[%s6170_s28 + $0x6b0] sm:$0xff]  ;;  %v4153_v32 = vld [vmem:[%s6170_s28 + $0x6b8] sm:$0xff] }
 0x325   : > { %v4184_v33 = vld [vmem:[%s6170_s28 + $0x7b0] sm:$0xff] }
 0x326   : > { %v2698_v38 = vadd.f32 %v4679_v35, %v4644_v34  ;;  %v4185_v34 = vld [vmem:[%s6170_s28 + $0x7b8] sm:$0xff]  ;;  %v5445_v35 = vpack.c.bf16 %v4135_v27, %v4134_v26  ;;  %v4176_v27 = vld [vmem:[%s6170_s28 + $0x770] sm:$0xff] }
 0x327   : > { %v4145_v26 = vld [vmem:[%s6170_s28 + $0x678] sm:$0xff] }
 0x342   : > { %v4712_v36 = vpop.f32.mrb[10].mxu0  ;;  %v4747_v41 = vpop.f32.mrb[10].mxu1 }
 0x343   : > { %v4713_v37 = vpop.f32.mrb[11].mxu0  ;;  %v4748_v40 = vpop.f32.mrb[11].mxu1 }
 0x344   : > { %v4714_v42 = vadd.f32 %v4713_v37, %v4712_v36  ;;  %v4749_v43 = vadd.f32 %v4748_v40, %v4747_v41  ;;  %v5448_v36 = vpack.c.bf16 %v4153_v32, %v4152_v31  ;;  %v5496_v41 = vpack.c.bf16 %v4185_v34, %v4184_v33  ;;  %v4136_v37 = vld [vmem:[%s6170_s28 + $0x630] sm:$0xff]  ;;  %v4137_v40 = vld [vmem:[%s6170_s28 + $0x638] sm:$0xff] }
 0x346   : > { %v2768_v44 = vadd.f32 %v4714_v42, %v2698_v38  ;;  %v5493_v38 = vpack.c.bf16 %v4167_v30, %v4166_v29  ;;  %v4168_v42 = vld [vmem:[%s6170_s28 + $0x730] sm:$0xff]  ;;  %v4177_v29 = vld [vmem:[%s6170_s28 + $0x778] sm:$0xff] }
 0x347   : > { %v5523_v31 = vpack.c.bf16 %v4177_v29, %v4176_v27 }
 0x348   : > { %v2838_v45 = vadd.f32 %v4749_v43, %v2768_v44  ;;  %v4169_v43 = vld [vmem:[%s6170_s28 + $0x738] sm:$0xff]  ;;  %v4154_v44 = vld [vmem:[%s6170_s28 + $0x6c0] sm:$0xff] }
 0x34a   : > { %v2841_v46 = vmul.f32 %v2838_v45, %v1178_v6  ;;  %v4155_v45 = vld [vmem:[%s6170_s28 + $0x6c8] sm:$0xff] }
 0x34c   : > { %v2842_v48 = vsel %vm1180_vm2, %v2841_v46, -inf }
 0x34d   : > { %v2843_v49 = vrot.slane %v2842_v48, 4 }
 0x34f   : > { %v2844_v50 = vmax.f32 %v2842_v48, %v2843_v49  ;;  %v4187_v48 = vld [vmem:[%s6170_s28 + $0x7c8] sm:$0xff]  ;;  %v5451_v49 = vpack.c.bf16 %v4137_v40, %v4136_v37 }
 0x351   : > { %v2845_v51 = vrot.slane %v2844_v50, 2 }
 0x353   : > { %v2846_v52 = vmax.f32 %v2844_v50, %v2845_v51  ;;  %v5499_v50 = vpack.c.bf16 %v4169_v43, %v4168_v42  ;;  %v5454_v51 = vpack.c.bf16 %v4155_v45, %v4154_v44 }
 0x355   : > { %v2847_v53 = vrot.slane %v2846_v52, 1 }
 0x357   : > { %v2848_v54 = vmax.f32 %v2846_v52, %v2847_v53  ;;  %v4138_v53 = vld [vmem:[%s6170_s28 + $0x640] sm:$0xff] }
 0x359   : > { %v2849_v55 = vsub.f32 %v2841_v46, %v2848_v54  ;;  %v4186_v46 = vld [vmem:[%s6170_s28 + $0x7c0] sm:$0xff]  ;;  %v4139_v54 = vld [vmem:[%s6170_s28 + $0x648] sm:$0xff] }
 0x35a   : > { %v5502_v52 = vpack.c.bf16 %v4187_v48, %v4186_v46 }
 0x35b   : > { %v2850_v56 = vmul.f32 1.442695, %v2849_v55  ;;  %v4170_v55 = vld [vmem:[%s6170_s28 + $0x740] sm:$0xff] }
 0x35d   : > { %5835 = vpow2.f32 %v2850_v56  ;;  %v4171_v56 = vld [vmem:[%s6170_s28 + $0x748] sm:$0xff] }
 0x367   : > { %v5836_v57 = vpop.eup %5835 }
 0x368   : > { %v2852_v6 = vsel %vm1180_vm2, %v5836_v57, 0.0 }
 0x369   : > { %v2853_v58 = vrot.slane %v2852_v6, 4 }
 0x36b   : > { %v2854_v59 = vadd.f32 %v2853_v58, %v2852_v6  ;;  %v4157_v6 = vld [vmem:[%s6170_s28 + $0x6d8] sm:$0xff]  ;;  %v4188_v58 = vld [vmem:[%s6170_s28 + $0x7d0] sm:$0xff] }
 0x36d   : > { %v2855_v60 = vrot.slane %v2854_v59, 2 }
 0x36f   : > { %v2856_v61 = vadd.f32 %v2855_v60, %v2854_v59  ;;  %v4189_v59 = vld [vmem:[%s6170_s28 + $0x7d8] sm:$0xff]  ;;  %v5457_v60 = vpack.c.bf16 %v4139_v54, %v4138_v53 }
 0x371   : > { %v2857_v62 = vrot.slane %v2856_v61, 1 }
 0x373   : > { %v2858_v63 = vadd.f32 %v2857_v62, %v2856_v61  ;;  %v5505_v61 = vpack.c.bf16 %v4171_v56, %v4170_v55 }
 0x375   : > { %5837 = vrcp.f32 %v2858_v63  ;;  %v5508_v63 = vpack.c.bf16 %v4189_v59, %v4188_v58 }
 0x37f   : > { %v5838_v5 = vpop.eup %5837 }
 0x380   : > { %v6890_v47 = vmul.f32 %v5838_v5, %v5836_v57  ;;  %v4156_v57 = vld [vmem:[%s6170_s28 + $0x6d0] sm:$0xff]  ;;  %v4159_v5 = vld [vmem:[%s6170_s28 + $0x6e8] sm:$0xff] }
 0x381   : > { %v5460_v62 = vpack.c.bf16 %v4157_v6, %v4156_v57 }
 0x382   : > { %4782 = vmatprep.mubr.msk.f32.mxu0 %vm1200_vm0, %v6890_v47  ;;  %4816 = vmatprep.mubr.msk.f32.mxu1 %vm1200_vm0, %v6890_v47 }
 0x383   : > { %4783 = vmatmul.mubr.msk.f32.vlgmr.msra.gmra.mrb[12].mxu0 %vm1200_vm0, %v6890_v47  ;;  %4817 = vmatmul.mubr.msk.f32.vlgmr.msra.gmra.mrb[12].mxu1 %vm1200_vm0, %v6890_v47 }
 0x384   : > { %5435 = vmatpush3.bf16.xpose.msk.msra.mxu0 %vm6180_vm1, %v5433_v10  ;;  %5483 = vmatpush3.bf16.xpose.msk.msra.mxu1 %vm6180_vm1, %v5481_v18  ;;  %v5511_v10 = vpack.c.bf16 %v4173_v3, %v4172_v2  ;;  %v5466_v18 = vpack.c.bf16 %v4159_v5, %v4158_v4 }
 0x385   : > { %4850 = vmatprep.mubr.msk.f32.mxu0 %vm1200_vm0, %v6890_v47  ;;  %4884 = vmatprep.mubr.msk.f32.mxu1 %vm1200_vm0, %v6890_v47 }
 0x386   : > { %5438 = vmatprep.subr.msk.bf16.mxu0 %vm6180_vm1, %v5436_v11  ;;  %5486 = vmatprep.subr.msk.bf16.mxu1 %vm6180_vm1, %v5484_v12  ;;  %v5514_v11 = vpack.c.bf16 %v4191_v8, %v4190_v7  ;;  %v4142_v12 = vld [vmem:[%s6170_s28 + $0x660] sm:$0xff] }
 0x387   : > { %v5469_v21 = vpack.c.bf16 %v4143_v13, %v4142_v12 }
 0x38c   : > { %5441 = vmatpush3.bf16.xpose.msk.msra.mxu0 %vm6180_vm1, %v5439_v22  ;;  %5489 = vmatpush3.bf16.xpose.msk.msra.mxu1 %vm6180_vm1, %v5487_v23  ;;  %v5517_v22 = vpack.c.bf16 %v4175_v15, %v4174_v14  ;;  %v5472_v23 = vpack.c.bf16 %v4161_v17, %v4160_v16 }
 0x38d   : > { %5444 = vmatprep.subr.msk.bf16.mxu0 %vm6180_vm1, %v5442_v24  ;;  %5492 = vmatprep.subr.msk.bf16.mxu1 %vm6180_vm1, %v5490_v25  ;;  %v5520_v24 = vpack.c.bf16 %v4193_v20, %v4192_v19  ;;  %v4144_v25 = vld [vmem:[%s6170_s28 + $0x670] sm:$0xff] }
 0x38e   : > { %v5475_v30 = vpack.c.bf16 %v4145_v26, %v4144_v25 }
 0x394   : > { %5447 = vmatpush3.bf16.xpose.msk.msra.mxu0 %vm6180_vm1, %v5445_v35  ;;  %5495 = vmatpush3.bf16.xpose.msk.msra.mxu1 %vm6180_vm1, %v5493_v38 }
 0x395   : > { %5450 = vmatprep.subr.msk.bf16.mxu0 %vm6180_vm1, %v5448_v36  ;;  %5498 = vmatprep.subr.msk.bf16.mxu1 %vm6180_vm1, %v5496_v41 }
 0x39c   : > { %5453 = vmatpush3.bf16.xpose.msk.msra.mxu0 %vm6180_vm1, %v5451_v49  ;;  %5501 = vmatpush3.bf16.xpose.msk.msra.mxu1 %vm6180_vm1, %v5499_v50 }
 0x39d   : > { %5456 = vmatprep.subr.msk.bf16.mxu0 %vm6180_vm1, %v5454_v51  ;;  %5504 = vmatprep.subr.msk.bf16.mxu1 %vm6180_vm1, %v5502_v52 }
 0x3a4   : > { %5459 = vmatpush3.bf16.xpose.msk.msra.mxu0 %vm6180_vm1, %v5457_v60  ;;  %5507 = vmatpush3.bf16.xpose.msk.msra.mxu1 %vm6180_vm1, %v5505_v61 }
 0x3a5   : > { %5462 = vmatprep.subr.msk.bf16.mxu0 %vm6180_vm1, %v5460_v62  ;;  %5510 = vmatprep.subr.msk.bf16.mxu1 %vm6180_vm1, %v5508_v63 }
 0x3ac   : > { %5465 = vmatpush3.bf16.xpose.msk.msra.mxu0 %vm6180_vm1, %v5463_v9  ;;  %5513 = vmatpush3.bf16.xpose.msk.msra.mxu1 %vm6180_vm1, %v5511_v10 }
 0x3ad   : > { %5468 = vmatprep.subr.msk.bf16.mxu0 %vm6180_vm1, %v5466_v18  ;;  %5516 = vmatprep.subr.msk.bf16.mxu1 %vm6180_vm1, %v5514_v11 }
 0x3b4   : > { %5471 = vmatpush3.bf16.xpose.msk.msra.mxu0 %vm6180_vm1, %v5469_v21  ;;  %5519 = vmatpush3.bf16.xpose.msk.msra.mxu1 %vm6180_vm1, %v5517_v22 }
 0x3b5   : > { %5474 = vmatprep.subr.msk.bf16.mxu0 %vm6180_vm1, %v5472_v23  ;;  %5522 = vmatprep.subr.msk.bf16.mxu1 %vm6180_vm1, %v5520_v24 }
 0x3bc   : > { %5477 = vmatpush3.bf16.xpose.msk.msra.mxu0 %vm6180_vm1, %v5475_v30  ;;  %5525 = vmatpush3.bf16.xpose.msk.msra.mxu1 %vm6180_vm1, %v5523_v31 }
 0x3c3   : > { %4851 = vmatmul.mubr.msk.f32.vlgmr.msra.gmra.mrb[14].mxu0 %vm1200_vm0, %v6890_v47  ;;  %4885 = vmatmul.mubr.msk.f32.vlgmr.msra.gmra.mrb[14].mxu1 %vm1200_vm0, %v6890_v47 }
 0x456   : > { %v3314_v32 = vpop.f32.mrb[12].mxu0  ;;  %v3385_v33 = vpop.f32.mrb[12].mxu1 }
 0x457   : > { %v3316_v34 = vpop.f32.mrb[13].mxu0  ;;  %v3387_v35 = vpop.f32.mrb[13].mxu1 }
 0x458   : > { %v3540_v38 = vcombine.low %v3314_v32, %v3316_v34  ;;  %v3541_v36 = vcombine.low %v3385_v33, %v3387_v35 }
 0x45a   : > { %v3548_v41 = vrot.slane %v3540_v38, %v6736_v39  ;;  %v3555_v37 = vrot.slane %v3541_v36, %v6736_v39 }
 0x45c   : > { %v3556_v40 = vcombine.low %v3548_v41, %v3555_v37 }
 0x45e   : > { %4326 = vst [vmem:[%s6752_s7 + $0x10] sm:$0xff] %v3556_v40 }
 0x496   : > { %v3456_v28 = vpop.f32.mrb[14].mxu0  ;;  %v3527_v42 = vpop.f32.mrb[14].mxu1 }
 0x497   : > { %v3458_v43 = vpop.f32.mrb[15].mxu0  ;;  %v3529_v44 = vpop.f32.mrb[15].mxu1 }
 0x498   : > { %v3557_v45 = vcombine.low %v3456_v28, %v3458_v43  ;;  %v3558_v46 = vcombine.low %v3527_v42, %v3529_v44 }
 0x49a   : > { %v3565_v47 = vrot.slane %v3557_v45, %v6736_v39  ;;  %v3572_v48 = vrot.slane %v3558_v46, %v6736_v39 }
 0x49c   : > { %v3573_v49 = vcombine.low %v3565_v47, %v3572_v48 }
 0x49e   : > { %4327 = vst [vmem:[%s6752_s7 + $0x18] sm:$0xff] %v3573_v49 }
 0x49f PF: > { %s15_s17 = sadd.s32 1, %s5845_s17  }
 0x4a0   : > { %p12_p4 = scmp.ge.s32.totalorder %s15_s17, 4  }
 0x4a2   :  { %14 = sbr.rel (!%p12_p4) target bundleno = 2 (0x2), region = 76 }

// kernel: _lambda_.9
= control target key start
LH: loop header
LB: loop body
LE: loop exit
PB: predicated region body
PF: predicated region fallthrough
CT: control target
= control target key end

     0   :  { %s1318_s12 = smov 0   ;;  %s1672_s0 = inlined_call_operand.vmem [shape: f32[2048,4], index: 0, kind: input, shape index: {}]   ;;  %s1673_s1 = inlined_call_operand.vmem [shape: f32[4,4], index: 1, kind: input, shape index: {}]   ;;  %s1674_s2 = inlined_call_operand.vmem [shape: f32[2048,4], index: 2, kind: input, shape index: {}]   ;;  %s1675_s3 = inlined_call_operand.vmem [shape: f32[2048,4], index: 3, kind: output, shape index: {}]  }
   0x1 LB: > { %s1039_s13 = sadd.s32 4294967295, %s1296_s12   ;;  %p1043_p0 = scmp.ge.s32.totalorder %s1296_s12, 1  ;;  %s1296_s12 = sphi %s1318_s12, %s13_s12  }
   0x2   : > { %p149_p1 = scmp.lt.s32.totalorder %s1296_s12, 5 }
   0x4   : > { %p150_p2 = pnand %p1043_p0, %p149_p1 }
   0x5   : > { %v260_v0 = vld [vmem:[%s1673_s1] sm:$0xf] (!%p150_p2)  ;;  %vm518_vm0 = vcmask (!%p150_p2), 1043456   ;;  %s1044_s16 = sshll.u32 (!%p150_p2), %s1039_s13, 6  ;;  %vm325_vm1 = vcmask (!%p150_p2), 31744  }
   0x6   : > { %153 = sbr.rel (%p150_p2) target bundleno = 295 (0x127), region = 32  ;;  %1182 = vmatprep.subr.msk.mxu0 (!%p150_p2), %vm518_vm0, %v260_v0  ;;  %1280 = vmatprep.subr.msk.mxu1 (!%p150_p2), %vm518_vm0, %v260_v0  ;;  %p179_p3 = scmp.lt.s32.totalorder (!%p150_p2), %s1044_s16, 255 }
   0x7   : > { %1183 = vmatpush3.msk.msra.mxu0 (!%p150_p2), %vm518_vm0, %v260_v0  ;;  %1281 = vmatpush3.msk.msra.mxu1 (!%p150_p2), %vm518_vm0, %v260_v0 }
   0xd   : > { %s1677_s16 = smov (!%p179_p3, %s1044_s16), 255 }
   0xe   : > { %s1329_s17 = sshll.u32 %s1677_s16, 3 }
   0xf   : > { %s1335_s20 = scalar_lea.vmem %s1672_s0, %s1329_s17  ;;  %s1469_s23 = scalar_lea.vmem %s1674_s2, %s1329_s17 }
  0x10   : > { %v196_v1 = vld [vmem:[%s1335_s20] sm:$0xff]  ;;  %v197_v3 = vld [vmem:[%s1335_s20 + $0x8] sm:$0xff]  ;;  %v198_v5 = vld [vmem:[%s1335_s20 + $0x10] sm:$0xff]  ;;  %s1479_s26 = scalar_lea.vmem %s1675_s3, %s1329_s17 }
  0x11   : > { %v228_v2 = vld [vmem:[%s1335_s20 + $0x100] sm:$0xff]  ;;  %1184 = vmatprep.mubr.msk.f32.mxu0 %vm325_vm1, %v196_v1  ;;  %v229_v4 = vld [vmem:[%s1335_s20 + $0x108] sm:$0xff]  ;;  %v230_v6 = vld [vmem:[%s1335_s20 + $0x110] sm:$0xff] }
  0x12   : > { %1232 = vmatprep.mubr.msk.f32.mxu1 %vm325_vm1, %v228_v2  ;;  %1185 = vmatmul.mubr.msk.f32.vlgmr.msra.gmra.mrb[0].mxu0 %vm325_vm1, %v197_v3  ;;  %v199_v7 = vld [vmem:[%s1335_s20 + $0x18] sm:$0xff]  ;;  %v200_v9 = vld [vmem:[%s1335_s20 + $0x20] sm:$0xff]  ;;  %v201_v11 = vld [vmem:[%s1335_s20 + $0x28] sm:$0xff] }
  0x13   : > { %1233 = vmatmul.mubr.msk.f32.vlgmr.msra.gmra.mrb[0].mxu1 %vm325_vm1, %v229_v4  ;;  %1187 = vmatprep.mubr.msk.f32.mxu0 %vm325_vm1, %v198_v5  ;;  %v231_v8 = vld [vmem:[%s1335_s20 + $0x118] sm:$0xff]  ;;  %v232_v10 = vld [vmem:[%s1335_s20 + $0x120] sm:$0xff]  ;;  %v233_v12 = vld [vmem:[%s1335_s20 + $0x128] sm:$0xff] }
  0x14   : > { %1235 = vmatprep.mubr.msk.f32.mxu1 %vm325_vm1, %v230_v6  ;;  %v202_v13 = vld [vmem:[%s1335_s20 + $0x30] sm:$0xff]  ;;  %v203_v15 = vld [vmem:[%s1335_s20 + $0x38] sm:$0xff]  ;;  %v204_v17 = vld [vmem:[%s1335_s20 + $0x40] sm:$0xff] }
  0x15   : > { %v234_v14 = vld [vmem:[%s1335_s20 + $0x130] sm:$0xff]  ;;  %v235_v16 = vld [vmem:[%s1335_s20 + $0x138] sm:$0xff]  ;;  %v236_v18 = vld [vmem:[%s1335_s20 + $0x140] sm:$0xff] }
  0x16   : > { %1188 = vmatmul.mubr.msk.f32.gmra.mrb[2].mxu0 %vm325_vm1, %v199_v7  ;;  %v205_v19 = vld [vmem:[%s1335_s20 + $0x48] sm:$0xff]  ;;  %v206_v21 = vld [vmem:[%s1335_s20 + $0x50] sm:$0xff]  ;;  %v207_v23 = vld [vmem:[%s1335_s20 + $0x58] sm:$0xff] }
  0x17   : > { %1236 = vmatmul.mubr.msk.f32.gmra.mrb[2].mxu1 %vm325_vm1, %v231_v8  ;;  %1190 = vmatprep.mubr.msk.f32.mxu0 %vm325_vm1, %v200_v9  ;;  %v237_v20 = vld [vmem:[%s1335_s20 + $0x148] sm:$0xff]  ;;  %v238_v22 = vld [vmem:[%s1335_s20 + $0x150] sm:$0xff]  ;;  %v239_v24 = vld [vmem:[%s1335_s20 + $0x158] sm:$0xff] }
  0x18   : > { %1238 = vmatprep.mubr.msk.f32.mxu1 %vm325_vm1, %v232_v10  ;;  %v208_v25 = vld [vmem:[%s1335_s20 + $0x60] sm:$0xff]  ;;  %v209_v27 = vld [vmem:[%s1335_s20 + $0x68] sm:$0xff]  ;;  %v210_v29 = vld [vmem:[%s1335_s20 + $0x70] sm:$0xff] }
  0x19   : > { %v240_v26 = vld [vmem:[%s1335_s20 + $0x160] sm:$0xff]  ;;  %v241_v28 = vld [vmem:[%s1335_s20 + $0x168] sm:$0xff]  ;;  %v242_v30 = vld [vmem:[%s1335_s20 + $0x170] sm:$0xff] }
  0x1a   : > { %1191 = vmatmul.mubr.msk.f32.gmra.mrb[4].mxu0 %vm325_vm1, %v201_v11  ;;  %v211_v31 = vld [vmem:[%s1335_s20 + $0x78] sm:$0xff]  ;;  %v212_v33 = vld [vmem:[%s1335_s20 + $0x80] sm:$0xff]  ;;  %v213_v35 = vld [vmem:[%s1335_s20 + $0x88] sm:$0xff] }
  0x1b   : > { %1239 = vmatmul.mubr.msk.f32.gmra.mrb[4].mxu1 %vm325_vm1, %v233_v12  ;;  %1193 = vmatprep.mubr.msk.f32.mxu0 %vm325_vm1, %v202_v13  ;;  %v243_v32 = vld [vmem:[%s1335_s20 + $0x178] sm:$0xff]  ;;  %v244_v34 = vld [vmem:[%s1335_s20 + $0x180] sm:$0xff]  ;;  %v245_v36 = vld [vmem:[%s1335_s20 + $0x188] sm:$0xff] }
  0x1c   : > { %1241 = vmatprep.mubr.msk.f32.mxu1 %vm325_vm1, %v234_v14  ;;  %v214_v37 = vld [vmem:[%s1335_s20 + $0x90] sm:$0xff]  ;;  %v215_v39 = vld [vmem:[%s1335_s20 + $0x98] sm:$0xff]  ;;  %v216_v41 = vld [vmem:[%s1335_s20 + $0xa0] sm:$0xff] }
  0x1d   : > { %v246_v38 = vld [vmem:[%s1335_s20 + $0x190] sm:$0xff]  ;;  %v247_v40 = vld [vmem:[%s1335_s20 + $0x198] sm:$0xff]  ;;  %v248_v42 = vld [vmem:[%s1335_s20 + $0x1a0] sm:$0xff] }
  0x1e   : > { %1194 = vmatmul.mubr.msk.f32.gmra.mrb[6].mxu0 %vm325_vm1, %v203_v15  ;;  %v217_v43 = vld [vmem:[%s1335_s20 + $0xa8] sm:$0xff]  ;;  %v218_v45 = vld [vmem:[%s1335_s20 + $0xb0] sm:$0xff]  ;;  %v219_v47 = vld [vmem:[%s1335_s20 + $0xb8] sm:$0xff] }
  0x1f   : > { %1242 = vmatmul.mubr.msk.f32.gmra.mrb[6].mxu1 %vm325_vm1, %v235_v16  ;;  %1196 = vmatprep.mubr.msk.f32.mxu0 %vm325_vm1, %v204_v17  ;;  %v249_v44 = vld [vmem:[%s1335_s20 + $0x1a8] sm:$0xff]  ;;  %v250_v46 = vld [vmem:[%s1335_s20 + $0x1b0] sm:$0xff]  ;;  %v251_v48 = vld [vmem:[%s1335_s20 + $0x1b8] sm:$0xff] }
  0x20   : > { %1244 = vmatprep.mubr.msk.f32.mxu1 %vm325_vm1, %v236_v18  ;;  %v220_v49 = vld [vmem:[%s1335_s20 + $0xc0] sm:$0xff]  ;;  %v221_v51 = vld [vmem:[%s1335_s20 + $0xc8] sm:$0xff]  ;;  %v222_v53 = vld [vmem:[%s1335_s20 + $0xd0] sm:$0xff] }
  0x21   : > { %v252_v50 = vld [vmem:[%s1335_s20 + $0x1c0] sm:$0xff]  ;;  %v253_v52 = vld [vmem:[%s1335_s20 + $0x1c8] sm:$0xff]  ;;  %v254_v54 = vld [vmem:[%s1335_s20 + $0x1d0] sm:$0xff] }
  0x22   : > { %1197 = vmatmul.mubr.msk.f32.gmra.mrb[8].mxu0 %vm325_vm1, %v205_v19  ;;  %v223_v55 = vld [vmem:[%s1335_s20 + $0xd8] sm:$0xff]  ;;  %v224_v57 = vld [vmem:[%s1335_s20 + $0xe0] sm:$0xff]  ;;  %v225_v59 = vld [vmem:[%s1335_s20 + $0xe8] sm:$0xff] }
  0x23   : > { %1245 = vmatmul.mubr.msk.f32.gmra.mrb[8].mxu1 %vm325_vm1, %v237_v20  ;;  %1199 = vmatprep.mubr.msk.f32.mxu0 %vm325_vm1, %v206_v21  ;;  %v255_v56 = vld [vmem:[%s1335_s20 + $0x1d8] sm:$0xff]  ;;  %v256_v58 = vld [vmem:[%s1335_s20 + $0x1e0] sm:$0xff]  ;;  %v257_v60 = vld [vmem:[%s1335_s20 + $0x1e8] sm:$0xff] }
  0x24   : > { %1247 = vmatprep.mubr.msk.f32.mxu1 %vm325_vm1, %v238_v22  ;;  %v226_v61 = vld [vmem:[%s1335_s20 + $0xf0] sm:$0xff]  ;;  %v227_v63 = vld [vmem:[%s1335_s20 + $0xf8] sm:$0xff]  ;;  %v262_v1 = vld [vmem:[%s1469_s23 + $0x8] sm:$0xff] }
  0x25   : > { %v258_v62 = vld [vmem:[%s1335_s20 + $0x1f0] sm:$0xff]  ;;  %v259_v0 = vld [vmem:[%s1335_s20 + $0x1f8] sm:$0xff]  ;;  %v294_v2 = vld [vmem:[%s1469_s23 + $0x108] sm:$0xff] }
  0x26   : > { %1200 = vmatmul.mubr.msk.f32.gmra.mrb[10].mxu0 %vm325_vm1, %v207_v23  ;;  %v261_v3 = vld [vmem:[%s1469_s23] sm:$0xff]  ;;  %v264_v13 = vld [vmem:[%s1469_s23 + $0x18] sm:$0xff]  ;;  %v263_v15 = vld [vmem:[%s1469_s23 + $0x10] sm:$0xff] }
  0x27   : > { %1248 = vmatmul.mubr.msk.f32.gmra.mrb[10].mxu1 %vm325_vm1, %v239_v24  ;;  %1202 = vmatprep.mubr.msk.f32.mxu0 %vm325_vm1, %v208_v25  ;;  %v293_v4 = vld [vmem:[%s1469_s23 + $0x100] sm:$0xff]  ;;  %v296_v14 = vld [vmem:[%s1469_s23 + $0x118] sm:$0xff]  ;;  %v295_v16 = vld [vmem:[%s1469_s23 + $0x110] sm:$0xff] }
  0x28   : > { %1250 = vmatprep.mubr.msk.f32.mxu1 %vm325_vm1, %v240_v26  ;;  %v266_v25 = vld [vmem:[%s1469_s23 + $0x28] sm:$0xff] }
  0x29   : > { %v298_v26 = vld [vmem:[%s1469_s23 + $0x128] sm:$0xff] }
  0x2a   : > { %1203 = vmatmul.mubr.msk.f32.gmra.mrb[12].mxu0 %vm325_vm1, %v209_v27  ;;  %v265_v27 = vld [vmem:[%s1469_s23 + $0x20] sm:$0xff] }
  0x2b   : > { %1251 = vmatmul.mubr.msk.f32.gmra.mrb[12].mxu1 %vm325_vm1, %v241_v28  ;;  %1205 = vmatprep.mubr.msk.f32.mxu0 %vm325_vm1, %v210_v29  ;;  %v297_v28 = vld [vmem:[%s1469_s23 + $0x120] sm:$0xff] }
  0x2c   : > { %1253 = vmatprep.mubr.msk.f32.mxu1 %vm325_vm1, %v242_v30 }
  0x2e   : > { %1206 = vmatmul.mubr.msk.f32.gmra.mrb[14].mxu0 %vm325_vm1, %v211_v31 }
  0x2f   : > { %1254 = vmatmul.mubr.msk.f32.gmra.mrb[14].mxu1 %vm325_vm1, %v243_v32  ;;  %1208 = vmatprep.mubr.msk.f32.mxu0 %vm325_vm1, %v212_v33 }
  0x30   : > { %1256 = vmatprep.mubr.msk.f32.mxu1 %vm325_vm1, %v244_v34 }
  0x32   : > { %1209 = vmatmul.mubr.msk.f32.gmra.mrb[16].mxu0 %vm325_vm1, %v213_v35 }
  0x33   : > { %1257 = vmatmul.mubr.msk.f32.gmra.mrb[16].mxu1 %vm325_vm1, %v245_v36  ;;  %1211 = vmatprep.mubr.msk.f32.mxu0 %vm325_vm1, %v214_v37  ;;  %v268_v37 = vld [vmem:[%s1469_s23 + $0x38] sm:$0xff] }
  0x34   : > { %1259 = vmatprep.mubr.msk.f32.mxu1 %vm325_vm1, %v246_v38  ;;  %v300_v38 = vld [vmem:[%s1469_s23 + $0x138] sm:$0xff] }
  0x36   : > { %1212 = vmatmul.mubr.msk.f32.gmra.mrb[18].mxu0 %vm325_vm1, %v215_v39  ;;  %v267_v39 = vld [vmem:[%s1469_s23 + $0x30] sm:$0xff] }
  0x37   : > { %1260 = vmatmul.mubr.msk.f32.gmra.mrb[18].mxu1 %vm325_vm1, %v247_v40  ;;  %1214 = vmatprep.mubr.msk.f32.mxu0 %vm325_vm1, %v216_v41  ;;  %v299_v40 = vld [vmem:[%s1469_s23 + $0x130] sm:$0xff] }
  0x38   : > { %1262 = vmatprep.mubr.msk.f32.mxu1 %vm325_vm1, %v248_v42 }
  0x3a   : > { %1215 = vmatmul.mubr.msk.f32.gmra.mrb[20].mxu0 %vm325_vm1, %v217_v43 }
  0x3b   : > { %1263 = vmatmul.mubr.msk.f32.gmra.mrb[20].mxu1 %vm325_vm1, %v249_v44  ;;  %1217 = vmatprep.mubr.msk.f32.mxu0 %vm325_vm1, %v218_v45 }
  0x3c   : > { %1265 = vmatprep.mubr.msk.f32.mxu1 %vm325_vm1, %v250_v46 }
  0x3e   : > { %1218 = vmatmul.mubr.msk.f32.gmra.mrb[22].mxu0 %vm325_vm1, %v219_v47 }
  0x3f   : > { %1266 = vmatmul.mubr.msk.f32.gmra.mrb[22].mxu1 %vm325_vm1, %v251_v48  ;;  %1220 = vmatprep.mubr.msk.f32.mxu0 %vm325_vm1, %v220_v49  ;;  %v270_v49 = vld [vmem:[%s1469_s23 + $0x48] sm:$0xff] }
  0x40   : > { %1268 = vmatprep.mubr.msk.f32.mxu1 %vm325_vm1, %v252_v50  ;;  %v302_v50 = vld [vmem:[%s1469_s23 + $0x148] sm:$0xff] }
  0x42   : > { %1221 = vmatmul.mubr.msk.f32.gmra.mrb[24].mxu0 %vm325_vm1, %v221_v51  ;;  %v269_v51 = vld [vmem:[%s1469_s23 + $0x40] sm:$0xff] }
  0x43   : > { %1269 = vmatmul.mubr.msk.f32.gmra.mrb[24].mxu1 %vm325_vm1, %v253_v52  ;;  %1223 = vmatprep.mubr.msk.f32.mxu0 %vm325_vm1, %v222_v53  ;;  %v301_v52 = vld [vmem:[%s1469_s23 + $0x140] sm:$0xff] }
  0x44   : > { %1271 = vmatprep.mubr.msk.f32.mxu1 %vm325_vm1, %v254_v54 }
  0x46   : > { %1224 = vmatmul.mubr.msk.f32.gmra.mrb[26].mxu0 %vm325_vm1, %v223_v55 }
  0x47   : > { %1272 = vmatmul.mubr.msk.f32.gmra.mrb[26].mxu1 %vm325_vm1, %v255_v56  ;;  %1226 = vmatprep.mubr.msk.f32.mxu0 %vm325_vm1, %v224_v57 }
  0x48   : > { %1274 = vmatprep.mubr.msk.f32.mxu1 %vm325_vm1, %v256_v58 }
  0x4a   : > { %1227 = vmatmul.mubr.msk.f32.gmra.mrb[28].mxu0 %vm325_vm1, %v225_v59 }
  0x4b   : > { %1275 = vmatmul.mubr.msk.f32.gmra.mrb[28].mxu1 %vm325_vm1, %v257_v60  ;;  %1229 = vmatprep.mubr.msk.f32.mxu0 %vm325_vm1, %v226_v61  ;;  %v272_v61 = vld [vmem:[%s1469_s23 + $0x58] sm:$0xff] }
  0x4c   : > { %1277 = vmatprep.mubr.msk.f32.mxu1 %vm325_vm1, %v258_v62  ;;  %v304_v62 = vld [vmem:[%s1469_s23 + $0x158] sm:$0xff] }
  0x4e   : > { %1230 = vmatmul.mubr.msk.f32.gmra.mrb[30].mxu0 %vm325_vm1, %v227_v63  ;;  %v271_v63 = vld [vmem:[%s1469_s23 + $0x50] sm:$0xff] }
  0x4f   : > { %1278 = vmatmul.mubr.msk.f32.gmra.mrb[30].mxu1 %vm325_vm1, %v259_v0  ;;  %v303_v0 = vld [vmem:[%s1469_s23 + $0x150] sm:$0xff] }
  0xe5   : > { %v1186_v5 = vpop.f32.mrb[0].mxu0 }
  0xe6   : > { %v1234_v6 = vpop.f32.mrb[0].mxu1  ;;  %v594_v7 = vadd.f32 %v1186_v5, %v262_v1  ;;  %v588_v9 = vpop.f32.mrb[1].mxu0 }
  0xe7   : > { %v754_v8 = vadd.f32 %v1234_v6, %v294_v2  ;;  %v748_v10 = vpop.f32.mrb[1].mxu1  ;;  %v589_v11 = vadd.f32 %v588_v9, %v261_v3  ;;  %v274_v9 = vld [vmem:[%s1469_s23 + $0x68] sm:$0xff] }
  0xe8   : > { %v749_v12 = vadd.f32 %v748_v10, %v293_v4  ;;  %908 = vst.msk [vmem:[%s1479_s26 + $0x8] sm:$0xff] %vm325_vm1, %v594_v7  ;;  %v306_v10 = vld [vmem:[%s1469_s23 + $0x168] sm:$0xff] }
  0xe9   : > { %940 = vst.msk [vmem:[%s1479_s26 + $0x108] sm:$0xff] %vm325_vm1, %v754_v8  ;;  %907 = vst.msk [vmem:[%s1479_s26] sm:$0xff] %vm325_vm1, %v589_v11  ;;  %v1189_v17 = vpop.f32.mrb[2].mxu0  ;;  %v273_v11 = vld [vmem:[%s1469_s23 + $0x60] sm:$0xff] }
  0xea   : > { %939 = vst.msk [vmem:[%s1479_s26 + $0x100] sm:$0xff] %vm325_vm1, %v749_v12  ;;  %v1237_v18 = vpop.f32.mrb[2].mxu1  ;;  %v604_v19 = vadd.f32 %v1189_v17, %v264_v13  ;;  %v598_v21 = vpop.f32.mrb[3].mxu0  ;;  %v305_v12 = vld [vmem:[%s1469_s23 + $0x160] sm:$0xff] }
  0xeb   : > { %v764_v20 = vadd.f32 %v1237_v18, %v296_v14  ;;  %v758_v22 = vpop.f32.mrb[3].mxu1  ;;  %v599_v23 = vadd.f32 %v598_v21, %v263_v15  ;;  %v276_v21 = vld [vmem:[%s1469_s23 + $0x78] sm:$0xff] }
  0xec   : > { %v759_v24 = vadd.f32 %v758_v22, %v295_v16  ;;  %910 = vst.msk [vmem:[%s1479_s26 + $0x18] sm:$0xff] %vm325_vm1, %v604_v19  ;;  %v308_v22 = vld [vmem:[%s1469_s23 + $0x178] sm:$0xff] }
  0xed   : > { %942 = vst.msk [vmem:[%s1479_s26 + $0x118] sm:$0xff] %vm325_vm1, %v764_v20  ;;  %909 = vst.msk [vmem:[%s1479_s26 + $0x10] sm:$0xff] %vm325_vm1, %v599_v23  ;;  %v1192_v29 = vpop.f32.mrb[4].mxu0  ;;  %v275_v23 = vld [vmem:[%s1469_s23 + $0x70] sm:$0xff] }
  0xee   : > { %941 = vst.msk [vmem:[%s1479_s26 + $0x110] sm:$0xff] %vm325_vm1, %v759_v24  ;;  %v1240_v30 = vpop.f32.mrb[4].mxu1  ;;  %v614_v31 = vadd.f32 %v1192_v29, %v266_v25  ;;  %v608_v33 = vpop.f32.mrb[5].mxu0  ;;  %v307_v24 = vld [vmem:[%s1469_s23 + $0x170] sm:$0xff] }
  0xef   : > { %v774_v32 = vadd.f32 %v1240_v30, %v298_v26  ;;  %v768_v34 = vpop.f32.mrb[5].mxu1  ;;  %v609_v35 = vadd.f32 %v608_v33, %v265_v27  ;;  %v278_v33 = vld [vmem:[%s1469_s23 + $0x88] sm:$0xff] }
  0xf0   : > { %v769_v36 = vadd.f32 %v768_v34, %v297_v28  ;;  %912 = vst.msk [vmem:[%s1479_s26 + $0x28] sm:$0xff] %vm325_vm1, %v614_v31  ;;  %v310_v34 = vld [vmem:[%s1469_s23 + $0x188] sm:$0xff] }
  0xf1   : > { %944 = vst.msk [vmem:[%s1479_s26 + $0x128] sm:$0xff] %vm325_vm1, %v774_v32  ;;  %911 = vst.msk [vmem:[%s1479_s26 + $0x20] sm:$0xff] %vm325_vm1, %v609_v35  ;;  %v1195_v41 = vpop.f32.mrb[6].mxu0  ;;  %v277_v35 = vld [vmem:[%s1469_s23 + $0x80] sm:$0xff] }
  0xf2   : > { %943 = vst.msk [vmem:[%s1479_s26 + $0x120] sm:$0xff] %vm325_vm1, %v769_v36  ;;  %v1243_v42 = vpop.f32.mrb[6].mxu1  ;;  %v624_v43 = vadd.f32 %v1195_v41, %v268_v37  ;;  %v618_v45 = vpop.f32.mrb[7].mxu0  ;;  %v309_v36 = vld [vmem:[%s1469_s23 + $0x180] sm:$0xff] }
  0xf3   : > { %v784_v44 = vadd.f32 %v1243_v42, %v300_v38  ;;  %v778_v46 = vpop.f32.mrb[7].mxu1  ;;  %v619_v47 = vadd.f32 %v618_v45, %v267_v39  ;;  %v280_v45 = vld [vmem:[%s1469_s23 + $0x98] sm:$0xff] }
  0xf4   : > { %v779_v48 = vadd.f32 %v778_v46, %v299_v40  ;;  %914 = vst.msk [vmem:[%s1479_s26 + $0x38] sm:$0xff] %vm325_vm1, %v624_v43  ;;  %v312_v46 = vld [vmem:[%s1469_s23 + $0x198] sm:$0xff] }
  0xf5   : > { %946 = vst.msk [vmem:[%s1479_s26 + $0x138] sm:$0xff] %vm325_vm1, %v784_v44  ;;  %913 = vst.msk [vmem:[%s1479_s26 + $0x30] sm:$0xff] %vm325_vm1, %v619_v47  ;;  %v1198_v53 = vpop.f32.mrb[8].mxu0  ;;  %v279_v47 = vld [vmem:[%s1469_s23 + $0x90] sm:$0xff] }
  0xf6   : > { %945 = vst.msk [vmem:[%s1479_s26 + $0x130] sm:$0xff] %vm325_vm1, %v779_v48  ;;  %v1246_v54 = vpop.f32.mrb[8].mxu1  ;;  %v634_v55 = vadd.f32 %v1198_v53, %v270_v49  ;;  %v628_v57 = vpop.f32.mrb[9].mxu0  ;;  %v311_v48 = vld [vmem:[%s1469_s23 + $0x190] sm:$0xff] }
  0xf7   : > { %v794_v56 = vadd.f32 %v1246_v54, %v302_v50  ;;  %v788_v58 = vpop.f32.mrb[9].mxu1  ;;  %v629_v59 = vadd.f32 %v628_v57, %v269_v51  ;;  %v282_v57 = vld [vmem:[%s1469_s23 + $0xa8] sm:$0xff] }
  0xf8   : > { %v789_v60 = vadd.f32 %v788_v58, %v301_v52  ;;  %916 = vst.msk [vmem:[%s1479_s26 + $0x48] sm:$0xff] %vm325_vm1, %v634_v55  ;;  %v314_v58 = vld [vmem:[%s1469_s23 + $0x1a8] sm:$0xff] }
  0xf9   : > { %948 = vst.msk [vmem:[%s1479_s26 + $0x148] sm:$0xff] %vm325_vm1, %v794_v56  ;;  %915 = vst.msk [vmem:[%s1479_s26 + $0x40] sm:$0xff] %vm325_vm1, %v629_v59  ;;  %v1201_v1 = vpop.f32.mrb[10].mxu0  ;;  %v281_v59 = vld [vmem:[%s1469_s23 + $0xa0] sm:$0xff] }
  0xfa   : > { %947 = vst.msk [vmem:[%s1479_s26 + $0x140] sm:$0xff] %vm325_vm1, %v789_v60  ;;  %v1249_v2 = vpop.f32.mrb[10].mxu1  ;;  %v644_v3 = vadd.f32 %v1201_v1, %v272_v61  ;;  %v638_v5 = vpop.f32.mrb[11].mxu0  ;;  %v313_v60 = vld [vmem:[%s1469_s23 + $0x1a0] sm:$0xff] }
  0xfb   : > { %v804_v4 = vadd.f32 %v1249_v2, %v304_v62  ;;  %v798_v6 = vpop.f32.mrb[11].mxu1  ;;  %v639_v7 = vadd.f32 %v638_v5, %v271_v63  ;;  %v284_v5 = vld [vmem:[%s1469_s23 + $0xb8] sm:$0xff] }
  0xfc   : > { %v799_v8 = vadd.f32 %v798_v6, %v303_v0  ;;  %918 = vst.msk [vmem:[%s1479_s26 + $0x58] sm:$0xff] %vm325_vm1, %v644_v3  ;;  %v316_v6 = vld [vmem:[%s1469_s23 + $0x1b8] sm:$0xff] }
  0xfd   : > { %950 = vst.msk [vmem:[%s1479_s26 + $0x158] sm:$0xff] %vm325_vm1, %v804_v4  ;;  %917 = vst.msk [vmem:[%s1479_s26 + $0x50] sm:$0xff] %vm325_vm1, %v639_v7  ;;  %v1204_v13 = vpop.f32.mrb[12].mxu0  ;;  %v283_v7 = vld [vmem:[%s1469_s23 + $0xb0] sm:$0xff] }
  0xfe   : > { %949 = vst.msk [vmem:[%s1479_s26 + $0x150] sm:$0xff] %vm325_vm1, %v799_v8  ;;  %v1252_v14 = vpop.f32.mrb[12].mxu1  ;;  %v654_v15 = vadd.f32 %v1204_v13, %v274_v9  ;;  %v648_v17 = vpop.f32.mrb[13].mxu0  ;;  %v315_v8 = vld [vmem:[%s1469_s23 + $0x1b0] sm:$0xff] }
  0xff   : > { %v814_v16 = vadd.f32 %v1252_v14, %v306_v10  ;;  %v808_v18 = vpop.f32.mrb[13].mxu1  ;;  %v649_v19 = vadd.f32 %v648_v17, %v273_v11  ;;  %v286_v17 = vld [vmem:[%s1469_s23 + $0xc8] sm:$0xff] }
 0x100   : > { %v809_v20 = vadd.f32 %v808_v18, %v305_v12  ;;  %920 = vst.msk [vmem:[%s1479_s26 + $0x68] sm:$0xff] %vm325_vm1, %v654_v15  ;;  %v318_v18 = vld [vmem:[%s1469_s23 + $0x1c8] sm:$0xff] }
 0x101   : > { %952 = vst.msk [vmem:[%s1479_s26 + $0x168] sm:$0xff] %vm325_vm1, %v814_v16  ;;  %919 = vst.msk [vmem:[%s1479_s26 + $0x60] sm:$0xff] %vm325_vm1, %v649_v19  ;;  %v1207_v25 = vpop.f32.mrb[14].mxu0  ;;  %v285_v19 = vld [vmem:[%s1469_s23 + $0xc0] sm:$0xff] }
 0x102   : > { %951 = vst.msk [vmem:[%s1479_s26 + $0x160] sm:$0xff] %vm325_vm1, %v809_v20  ;;  %v1255_v26 = vpop.f32.mrb[14].mxu1  ;;  %v664_v27 = vadd.f32 %v1207_v25, %v276_v21  ;;  %v658_v29 = vpop.f32.mrb[15].mxu0  ;;  %v317_v20 = vld [vmem:[%s1469_s23 + $0x1c0] sm:$0xff] }
 0x103   : > { %v824_v28 = vadd.f32 %v1255_v26, %v308_v22  ;;  %v818_v30 = vpop.f32.mrb[15].mxu1  ;;  %v659_v31 = vadd.f32 %v658_v29, %v275_v23  ;;  %v288_v29 = vld [vmem:[%s1469_s23 + $0xd8] sm:$0xff] }
 0x104   : > { %v819_v32 = vadd.f32 %v818_v30, %v307_v24  ;;  %922 = vst.msk [vmem:[%s1479_s26 + $0x78] sm:$0xff] %vm325_vm1, %v664_v27  ;;  %v320_v30 = vld [vmem:[%s1469_s23 + $0x1d8] sm:$0xff] }
 0x105   : > { %954 = vst.msk [vmem:[%s1479_s26 + $0x178] sm:$0xff] %vm325_vm1, %v824_v28  ;;  %921 = vst.msk [vmem:[%s1479_s26 + $0x70] sm:$0xff] %vm325_vm1, %v659_v31  ;;  %v1210_v37 = vpop.f32.mrb[16].mxu0  ;;  %v287_v31 = vld [vmem:[%s1469_s23 + $0xd0] sm:$0xff] }
 0x106   : > { %953 = vst.msk [vmem:[%s1479_s26 + $0x170] sm:$0xff] %vm325_vm1, %v819_v32  ;;  %v1258_v38 = vpop.f32.mrb[16].mxu1  ;;  %v674_v39 = vadd.f32 %v1210_v37, %v278_v33  ;;  %v668_v41 = vpop.f32.mrb[17].mxu0  ;;  %v319_v32 = vld [vmem:[%s1469_s23 + $0x1d0] sm:$0xff] }
 0x107   : > { %v834_v40 = vadd.f32 %v1258_v38, %v310_v34  ;;  %v828_v42 = vpop.f32.mrb[17].mxu1  ;;  %v669_v43 = vadd.f32 %v668_v41, %v277_v35  ;;  %v290_v41 = vld [vmem:[%s1469_s23 + $0xe8] sm:$0xff] }
 0x108   : > { %v829_v44 = vadd.f32 %v828_v42, %v309_v36  ;;  %924 = vst.msk [vmem:[%s1479_s26 + $0x88] sm:$0xff] %vm325_vm1, %v674_v39  ;;  %v322_v42 = vld [vmem:[%s1469_s23 + $0x1e8] sm:$0xff] }
 0x109   : > { %956 = vst.msk [vmem:[%s1479_s26 + $0x188] sm:$0xff] %vm325_vm1, %v834_v40  ;;  %923 = vst.msk [vmem:[%s1479_s26 + $0x80] sm:$0xff] %vm325_vm1, %v669_v43  ;;  %v1213_v49 = vpop.f32.mrb[18].mxu0  ;;  %v289_v43 = vld [vmem:[%s1469_s23 + $0xe0] sm:$0xff] }
 0x10a   : > { %955 = vst.msk [vmem:[%s1479_s26 + $0x180] sm:$0xff] %vm325_vm1, %v829_v44  ;;  %v1261_v50 = vpop.f32.mrb[18].mxu1  ;;  %v684_v51 = vadd.f32 %v1213_v49, %v280_v45  ;;  %v678_v53 = vpop.f32.mrb[19].mxu0  ;;  %v321_v44 = vld [vmem:[%s1469_s23 + $0x1e0] sm:$0xff] }
 0x10b   : > { %v844_v52 = vadd.f32 %v1261_v50, %v312_v46  ;;  %v838_v54 = vpop.f32.mrb[19].mxu1  ;;  %v679_v55 = vadd.f32 %v678_v53, %v279_v47  ;;  %v292_v53 = vld [vmem:[%s1469_s23 + $0xf8] sm:$0xff] }
 0x10c   : > { %v839_v56 = vadd.f32 %v838_v54, %v311_v48  ;;  %926 = vst.msk [vmem:[%s1479_s26 + $0x98] sm:$0xff] %vm325_vm1, %v684_v51  ;;  %v324_v54 = vld [vmem:[%s1469_s23 + $0x1f8] sm:$0xff] }
 0x10d   : > { %958 = vst.msk [vmem:[%s1479_s26 + $0x198] sm:$0xff] %vm325_vm1, %v844_v52  ;;  %925 = vst.msk [vmem:[%s1479_s26 + $0x90] sm:$0xff] %vm325_vm1, %v679_v55  ;;  %v1216_v61 = vpop.f32.mrb[20].mxu0  ;;  %v291_v55 = vld [vmem:[%s1469_s23 + $0xf0] sm:$0xff] }
 0x10e   : > { %957 = vst.msk [vmem:[%s1479_s26 + $0x190] sm:$0xff] %vm325_vm1, %v839_v56  ;;  %v1264_v62 = vpop.f32.mrb[20].mxu1  ;;  %v694_v63 = vadd.f32 %v1216_v61, %v282_v57  ;;  %v688_v1 = vpop.f32.mrb[21].mxu0  ;;  %v323_v56 = vld [vmem:[%s1469_s23 + $0x1f0] sm:$0xff] }
 0x10f   : > { %v854_v0 = vadd.f32 %v1264_v62, %v314_v58  ;;  %v848_v2 = vpop.f32.mrb[21].mxu1  ;;  %v689_v3 = vadd.f32 %v688_v1, %v281_v59 }
 0x110   : > { %v849_v4 = vadd.f32 %v848_v2, %v313_v60  ;;  %928 = vst.msk [vmem:[%s1479_s26 + $0xa8] sm:$0xff] %vm325_vm1, %v694_v63 }
 0x111   : > { %960 = vst.msk [vmem:[%s1479_s26 + $0x1a8] sm:$0xff] %vm325_vm1, %v854_v0  ;;  %927 = vst.msk [vmem:[%s1479_s26 + $0xa0] sm:$0xff] %vm325_vm1, %v689_v3  ;;  %v1219_v9 = vpop.f32.mrb[22].mxu0 }
 0x112   : > { %959 = vst.msk [vmem:[%s1479_s26 + $0x1a0] sm:$0xff] %vm325_vm1, %v849_v4  ;;  %v1267_v10 = vpop.f32.mrb[22].mxu1  ;;  %v704_v11 = vadd.f32 %v1219_v9, %v284_v5  ;;  %v698_v13 = vpop.f32.mrb[23].mxu0 }
 0x113   : > { %v864_v12 = vadd.f32 %v1267_v10, %v316_v6  ;;  %v858_v14 = vpop.f32.mrb[23].mxu1  ;;  %v699_v15 = vadd.f32 %v698_v13, %v283_v7 }
 0x114   : > { %v859_v16 = vadd.f32 %v858_v14, %v315_v8  ;;  %930 = vst.msk [vmem:[%s1479_s26 + $0xb8] sm:$0xff] %vm325_vm1, %v704_v11 }
 0x115   : > { %962 = vst.msk [vmem:[%s1479_s26 + $0x1b8] sm:$0xff] %vm325_vm1, %v864_v12  ;;  %929 = vst.msk [vmem:[%s1479_s26 + $0xb0] sm:$0xff] %vm325_vm1, %v699_v15  ;;  %v1222_v21 = vpop.f32.mrb[24].mxu0 }
 0x116   : > { %961 = vst.msk [vmem:[%s1479_s26 + $0x1b0] sm:$0xff] %vm325_vm1, %v859_v16  ;;  %v1270_v22 = vpop.f32.mrb[24].mxu1  ;;  %v714_v23 = vadd.f32 %v1222_v21, %v286_v17  ;;  %v708_v25 = vpop.f32.mrb[25].mxu0 }
 0x117   : > { %v874_v24 = vadd.f32 %v1270_v22, %v318_v18  ;;  %v868_v26 = vpop.f32.mrb[25].mxu1  ;;  %v709_v27 = vadd.f32 %v708_v25, %v285_v19 }
 0x118   : > { %v869_v28 = vadd.f32 %v868_v26, %v317_v20  ;;  %932 = vst.msk [vmem:[%s1479_s26 + $0xc8] sm:$0xff] %vm325_vm1, %v714_v23 }
 0x119   : > { %964 = vst.msk [vmem:[%s1479_s26 + $0x1c8] sm:$0xff] %vm325_vm1, %v874_v24  ;;  %931 = vst.msk [vmem:[%s1479_s26 + $0xc0] sm:$0xff] %vm325_vm1, %v709_v27  ;;  %v1225_v33 = vpop.f32.mrb[26].mxu0 }
 0x11a   : > { %963 = vst.msk [vmem:[%s1479_s26 + $0x1c0] sm:$0xff] %vm325_vm1, %v869_v28  ;;  %v1273_v34 = vpop.f32.mrb[26].mxu1  ;;  %v724_v35 = vadd.f32 %v1225_v33, %v288_v29  ;;  %v718_v37 = vpop.f32.mrb[27].mxu0 }
 0x11b   : > { %v884_v36 = vadd.f32 %v1273_v34, %v320_v30  ;;  %v878_v38 = vpop.f32.mrb[27].mxu1  ;;  %v719_v39 = vadd.f32 %v718_v37, %v287_v31 }
 0x11c   : > { %v879_v40 = vadd.f32 %v878_v38, %v319_v32  ;;  %934 = vst.msk [vmem:[%s1479_s26 + $0xd8] sm:$0xff] %vm325_vm1, %v724_v35 }
 0x11d   : > { %966 = vst.msk [vmem:[%s1479_s26 + $0x1d8] sm:$0xff] %vm325_vm1, %v884_v36  ;;  %933 = vst.msk [vmem:[%s1479_s26 + $0xd0] sm:$0xff] %vm325_vm1, %v719_v39  ;;  %v1228_v45 = vpop.f32.mrb[28].mxu0 }
 0x11e   : > { %965 = vst.msk [vmem:[%s1479_s26 + $0x1d0] sm:$0xff] %vm325_vm1, %v879_v40  ;;  %v1276_v46 = vpop.f32.mrb[28].mxu1  ;;  %v734_v47 = vadd.f32 %v1228_v45, %v290_v41  ;;  %v728_v49 = vpop.f32.mrb[29].mxu0 }
 0x11f   : > { %v894_v48 = vadd.f32 %v1276_v46, %v322_v42  ;;  %v888_v50 = vpop.f32.mrb[29].mxu1  ;;  %v729_v51 = vadd.f32 %v728_v49, %v289_v43 }
 0x120   : > { %v889_v52 = vadd.f32 %v888_v50, %v321_v44  ;;  %936 = vst.msk [vmem:[%s1479_s26 + $0xe8] sm:$0xff] %vm325_vm1, %v734_v47 }
 0x121   : > { %968 = vst.msk [vmem:[%s1479_s26 + $0x1e8] sm:$0xff] %vm325_vm1, %v894_v48  ;;  %935 = vst.msk [vmem:[%s1479_s26 + $0xe0] sm:$0xff] %vm325_vm1, %v729_v51  ;;  %v1231_v57 = vpop.f32.mrb[30].mxu0 }
 0x122   : > { %967 = vst.msk [vmem:[%s1479_s26 + $0x1e0] sm:$0xff] %vm325_vm1, %v889_v52  ;;  %v1279_v58 = vpop.f32.mrb[30].mxu1  ;;  %v744_v59 = vadd.f32 %v1231_v57, %v292_v53  ;;  %v738_v61 = vpop.f32.mrb[31].mxu0 }
 0x123   : > { %v904_v60 = vadd.f32 %v1279_v58, %v324_v54  ;;  %v898_v62 = vpop.f32.mrb[31].mxu1  ;;  %v739_v63 = vadd.f32 %v738_v61, %v291_v55 }
 0x124   : > { %v899_v0 = vadd.f32 %v898_v62, %v323_v56  ;;  %938 = vst.msk [vmem:[%s1479_s26 + $0xf8] sm:$0xff] %vm325_vm1, %v744_v59 }
 0x125   : > { %970 = vst.msk [vmem:[%s1479_s26 + $0x1f8] sm:$0xff] %vm325_vm1, %v904_v60  ;;  %937 = vst.msk [vmem:[%s1479_s26 + $0xf0] sm:$0xff] %vm325_vm1, %v739_v63 }
 0x126   : > { %969 = vst.msk [vmem:[%s1479_s26 + $0x1f0] sm:$0xff] %vm325_vm1, %v899_v0 }
 0x127 PF: > { %s13_s12 = sadd.s32 1, %s1296_s12  }
 0x128   : > { %p10_p4 = scmp.ge.s32.totalorder %s13_s12, 6  }
 0x12a   :  { %12 = sbr.rel (!%p10_p4) target bundleno = 1 (0x1), region = 65 }

// kernel: _lambda_.11
= control target key start
LH: loop header
LB: loop body
LE: loop exit
PB: predicated region body
PF: predicated region fallthrough
CT: control target
= control target key end

     0   :  { %s4908_s18 = smov 0   ;;  %s7187_s0 = inlined_call_operand.vmem [shape: f32[2048,36], index: 0, kind: input, shape index: {}]   ;;  %s7188_s1 = inlined_call_operand.vmem [shape: f32[36,8], index: 1, kind: input, shape index: {}]   ;;  %s7189_s2 = inlined_call_operand.vmem [shape: f32[36,8], index: 2, kind: input, shape index: {}]   ;;  %s7190_s3 = inlined_call_operand.vmem [shape: f32[8,4], index: 3, kind: input, shape index: {}]   ;;  %s7191_s4 = inlined_call_operand.vmem [shape: f32[2048,4], index: 4, kind: input, shape index: {}]   ;;  %s7192_s5 = inlined_call_operand.vmem [shape: f32[2048,4], index: 5, kind: output, shape index: {}]  }
   0x1 LB: > { %s3862_s19 = sadd.s32 4294967295, %s4875_s18   ;;  %p3866_p0 = scmp.ge.s32.totalorder %s4875_s18, 1  ;;  %s4875_s18 = sphi %s4908_s18, %s15_s18  }
   0x2   : > { %p199_p1 = scmp.lt.s32.totalorder %s4875_s18, 5 }
   0x4   : > { %p200_p2 = pnand %p3866_p0, %p199_p1 }
   0x6   : > { %203 = sbr.rel (%p200_p2) target bundleno = 911 (0x38f), region = 40 }
   0xd   : > { %v314_v0 = vld [vmem:[%s7188_s1] sm:$0xff]  ;;  %v315_v1 = vld [vmem:[%s7188_s1 + $0x8] sm:$0xff]  ;;  %v316_v2 = vld [vmem:[%s7188_s1 + $0x10] sm:$0xff]  ;;  %s3867_s26 = sshll.u32 %s3862_s19, 6  ;;  %vm512_vm0 = vcmask 1043456   ;;  %vm319_vm1 = vcmask 293888  }
   0xe   : > { %v4582_v3 = vpack.c.bf16 %v315_v1, %v314_v0  ;;  %v317_v4 = vld [vmem:[%s7188_s1 + $0x18] sm:$0xff]  ;;  %p233_p3 = scmp.lt.s32.totalorder %s3867_s26, 255  ;;  %v318_v6 = vld [vmem:[%s7188_s1 + $0x20] sm:$0xf]  ;;  %v902_v10 = vld [vmem:[%s7189_s2 + $0x8] sm:$0xff] }
   0xf   : > { %v4586_v5 = vpack.c.bf16 %v317_v4, %v316_v2  ;;  %v901_v7 = vld [vmem:[%s7189_s2] sm:$0xff]  ;;  %v903_v11 = vld [vmem:[%s7189_s2 + $0x10] sm:$0xff]  ;;  %v904_v12 = vld [vmem:[%s7189_s2 + $0x18] sm:$0xff] }
  0x10   : > { %4583 = vmatprep.subr.bf16.mxu0 %v4582_v3  ;;  %4598 = vmatprep.subr.bf16.mxu1 %v4582_v3  ;;  %s7772_s26 = smov (!%p233_p3, %s3867_s26), 255  ;;  %v4590_v15 = vpack.c.bf16 %v902_v10, %v901_v7  ;;  %v4594_v18 = vpack.c.bf16 %v904_v12, %v903_v11  ;;  %v905_v23 = vld [vmem:[%s7189_s2 + $0x20] sm:$0xf] }
  0x11   : > { %4585 = vmatpush3.bf16.msra.mxu0 %v4582_v3  ;;  %4601 = vmatpush3.bf16.msra.mxu1 %v4582_v3  ;;  %s4928_s29 = sshll.u32 %s7772_s26, 3 }
  0x12   : > { %4587 = vmatprep.subr.bf16.mxu0 %v4586_v5  ;;  %4599 = vmatprep.subr.bf16.mxu1 %v4586_v5  ;;  %s4937_s9 = scalar_lea.vmem %s7187_s0, %s4928_s29  ;;  %s6962_s25 = scalar_lea.vmem %s7191_s4, %s4928_s29 }
  0x13   : > { %v4943_v8 = vld [vmem:[%s4937_s9] sm:$0xff]  ;;  %v4964_v13 = vld [vmem:[%s4937_s9 + $0x8] sm:$0xff]  ;;  %v4970_v16 = vld [vmem:[%s4937_s9 + $0x10] sm:$0xff]  ;;  %s6984_s28 = scalar_lea.vmem %s7192_s5, %s4928_s29 }
  0x14   : > { %v4946_v9 = vld [vmem:[%s4937_s9 + $0x100] sm:$0xff]  ;;  %4282 = vmatprep.mubr.msk.f32.mxu0 %vm319_vm1, %v4943_v8  ;;  %v4967_v14 = vld [vmem:[%s4937_s9 + $0x108] sm:$0xff]  ;;  %v4975_v17 = vld [vmem:[%s4937_s9 + $0x110] sm:$0xff] }
  0x15   : > { %4589 = vmatpush3.bf16.msra.mxu0 %v4586_v5  ;;  %4602 = vmatpush3.bf16.msra.mxu1 %v4586_v5  ;;  %v4984_v19 = vld [vmem:[%s4937_s9 + $0x18] sm:$0xff]  ;;  %v4992_v21 = vld [vmem:[%s4937_s9 + $0x20] sm:$0xff]  ;;  %v5009_v24 = vld [vmem:[%s4937_s9 + $0x28] sm:$0xff] }
  0x16   : > { %4280 = vmatprep.subr.msk.mxu0 %vm512_vm0, %v318_v6  ;;  %4600 = vmatprep.subr.msk.mxu1 %vm512_vm0, %v318_v6  ;;  %v4987_v20 = vld [vmem:[%s4937_s9 + $0x118] sm:$0xff]  ;;  %v4995_v22 = vld [vmem:[%s4937_s9 + $0x120] sm:$0xff]  ;;  %v5012_v25 = vld [vmem:[%s4937_s9 + $0x128] sm:$0xff] }
  0x17   : > { %4330 = vmatprep.mubr.msk.f32.mxu1 %vm319_vm1, %v4946_v9  ;;  %v5015_v26 = vld [vmem:[%s4937_s9 + $0x30] sm:$0xff]  ;;  %v5030_v28 = vld [vmem:[%s4937_s9 + $0x38] sm:$0xff]  ;;  %v5036_v30 = vld [vmem:[%s4937_s9 + $0x40] sm:$0xff] }
  0x18   : > { %v5018_v27 = vld [vmem:[%s4937_s9 + $0x130] sm:$0xff]  ;;  %v5033_v29 = vld [vmem:[%s4937_s9 + $0x138] sm:$0xff]  ;;  %v5039_v31 = vld [vmem:[%s4937_s9 + $0x140] sm:$0xff] }
  0x19   : > { %4281 = vmatpush3.msk.msra.mxu0 %vm512_vm0, %v318_v6  ;;  %4603 = vmatpush3.msk.msra.mxu1 %vm512_vm0, %v318_v6  ;;  %v5051_v32 = vld [vmem:[%s4937_s9 + $0x48] sm:$0xff]  ;;  %v5057_v34 = vld [vmem:[%s4937_s9 + $0x50] sm:$0xff]  ;;  %v5071_v36 = vld [vmem:[%s4937_s9 + $0x58] sm:$0xff] }
  0x1a   : > { %4283 = vmatmul.mubr.msk.f32.vlgmr.msra.gmra.mrb[0].mxu0 %vm319_vm1, %v4964_v13  ;;  %4331 = vmatmul.mubr.msk.f32.vlgmr.msra.gmra.mrb[0].mxu1 %vm319_vm1, %v4967_v14  ;;  %v5054_v33 = vld [vmem:[%s4937_s9 + $0x148] sm:$0xff]  ;;  %v5060_v35 = vld [vmem:[%s4937_s9 + $0x150] sm:$0xff]  ;;  %v5074_v37 = vld [vmem:[%s4937_s9 + $0x158] sm:$0xff] }
  0x1b   : > { %4591 = vmatprep.subr.bf16.mxu1 %v4590_v15  ;;  %4285 = vmatprep.mubr.msk.f32.mxu0 %vm319_vm1, %v4970_v16  ;;  %v5077_v38 = vld [vmem:[%s4937_s9 + $0x60] sm:$0xff]  ;;  %v5091_v40 = vld [vmem:[%s4937_s9 + $0x68] sm:$0xff]  ;;  %v5097_v42 = vld [vmem:[%s4937_s9 + $0x70] sm:$0xff] }
  0x1c   : > { %4593 = vmatpush3.bf16.msra.mxu1 %v4590_v15  ;;  %4333 = vmatprep.mubr.msk.f32.mxu1 %vm319_vm1, %v4975_v17  ;;  %v5080_v39 = vld [vmem:[%s4937_s9 + $0x160] sm:$0xff]  ;;  %v5094_v41 = vld [vmem:[%s4937_s9 + $0x168] sm:$0xff]  ;;  %v5100_v43 = vld [vmem:[%s4937_s9 + $0x170] sm:$0xff] }
  0x1d   : > { %4595 = vmatprep.subr.bf16.mxu1 %v4594_v18  ;;  %v5111_v44 = vld [vmem:[%s4937_s9 + $0x78] sm:$0xff]  ;;  %v5117_v46 = vld [vmem:[%s4937_s9 + $0x80] sm:$0xff]  ;;  %v5131_v48 = vld [vmem:[%s4937_s9 + $0x88] sm:$0xff] }
  0x1e   : > { %4286 = vmatmul.mubr.msk.f32.gmra.mrb[2].mxu0 %vm319_vm1, %v4984_v19  ;;  %4334 = vmatmul.mubr.msk.f32.gmra.mrb[2].mxu1 %vm319_vm1, %v4987_v20  ;;  %v5114_v45 = vld [vmem:[%s4937_s9 + $0x178] sm:$0xff]  ;;  %v5120_v47 = vld [vmem:[%s4937_s9 + $0x180] sm:$0xff]  ;;  %v5134_v49 = vld [vmem:[%s4937_s9 + $0x188] sm:$0xff] }
  0x1f   : > { %4288 = vmatprep.mubr.msk.f32.mxu0 %vm319_vm1, %v4992_v21  ;;  %4336 = vmatprep.mubr.msk.f32.mxu1 %vm319_vm1, %v4995_v22  ;;  %v5137_v50 = vld [vmem:[%s4937_s9 + $0x90] sm:$0xff]  ;;  %v5151_v52 = vld [vmem:[%s4937_s9 + $0x98] sm:$0xff]  ;;  %v5157_v54 = vld [vmem:[%s4937_s9 + $0xa0] sm:$0xff] }
  0x20   : > { %4597 = vmatpush3.bf16.msra.mxu1 %v4594_v18  ;;  %v5140_v51 = vld [vmem:[%s4937_s9 + $0x190] sm:$0xff]  ;;  %v5154_v53 = vld [vmem:[%s4937_s9 + $0x198] sm:$0xff]  ;;  %v5160_v55 = vld [vmem:[%s4937_s9 + $0x1a0] sm:$0xff] }
  0x21   : > { %4386 = vmatprep.subr.msk.mxu1 %vm512_vm0, %v905_v23  ;;  %v5171_v56 = vld [vmem:[%s4937_s9 + $0xa8] sm:$0xff]  ;;  %v5177_v58 = vld [vmem:[%s4937_s9 + $0xb0] sm:$0xff]  ;;  %v273_v60 = vld [vmem:[%s4937_s9 + $0xb8] sm:$0xff] }
  0x22   : > { %4289 = vmatmul.mubr.msk.f32.gmra.mrb[4].mxu0 %vm319_vm1, %v5009_v24  ;;  %4337 = vmatmul.mubr.msk.f32.gmra.mrb[4].mxu1 %vm319_vm1, %v5012_v25  ;;  %v5174_v57 = vld [vmem:[%s4937_s9 + $0x1a8] sm:$0xff]  ;;  %v5180_v59 = vld [vmem:[%s4937_s9 + $0x1b0] sm:$0xff]  ;;  %v5192_v61 = vld [vmem:[%s4937_s9 + $0x1b8] sm:$0xff] }
  0x23   : > { %4291 = vmatprep.mubr.msk.f32.mxu0 %vm319_vm1, %v5015_v26  ;;  %4339 = vmatprep.mubr.msk.f32.mxu1 %vm319_vm1, %v5018_v27  ;;  %v274_v62 = vld [vmem:[%s4937_s9 + $0xc0] sm:$0xff]  ;;  %v275_v0 = vld [vmem:[%s4937_s9 + $0xc8] sm:$0xff]  ;;  %v276_v2 = vld [vmem:[%s4937_s9 + $0xd0] sm:$0xff] }
  0x24   : > { %4387 = vmatpush3.msk.msra.mxu1 %vm512_vm0, %v905_v23  ;;  %v5196_v63 = vld [vmem:[%s4937_s9 + $0x1c0] sm:$0xff]  ;;  %v5206_v1 = vld [vmem:[%s4937_s9 + $0x1c8] sm:$0xff]  ;;  %v5210_v3 = vld [vmem:[%s4937_s9 + $0x1d0] sm:$0xff] }
  0x25   : > { %v277_v4 = vld [vmem:[%s4937_s9 + $0xd8] sm:$0xff]  ;;  %v278_v6 = vld [vmem:[%s4937_s9 + $0xe0] sm:$0xff]  ;;  %v279_v10 = vld [vmem:[%s4937_s9 + $0xe8] sm:$0xff] }
  0x26   : > { %4292 = vmatmul.mubr.msk.f32.gmra.mrb[6].mxu0 %vm319_vm1, %v5030_v28  ;;  %4340 = vmatmul.mubr.msk.f32.gmra.mrb[6].mxu1 %vm319_vm1, %v5033_v29  ;;  %v5220_v5 = vld [vmem:[%s4937_s9 + $0x1d8] sm:$0xff]  ;;  %v5224_v7 = vld [vmem:[%s4937_s9 + $0x1e0] sm:$0xff]  ;;  %v5234_v11 = vld [vmem:[%s4937_s9 + $0x1e8] sm:$0xff] }
  0x27   : > { %4294 = vmatprep.mubr.msk.f32.mxu0 %vm319_vm1, %v5036_v30  ;;  %4342 = vmatprep.mubr.msk.f32.mxu1 %vm319_vm1, %v5039_v31  ;;  %v280_v12 = vld [vmem:[%s4937_s9 + $0xf0] sm:$0xff]  ;;  %v281_v18 = vld [vmem:[%s4937_s9 + $0xf8] sm:$0xff] }
  0x28   : > { %v5238_v15 = vld [vmem:[%s4937_s9 + $0x1f0] sm:$0xff]  ;;  %v5248_v23 = vld [vmem:[%s4937_s9 + $0x1f8] sm:$0xff] }
  0x2a   : > { %4295 = vmatmul.mubr.msk.f32.gmra.mrb[8].mxu0 %vm319_vm1, %v5051_v32  ;;  %4343 = vmatmul.mubr.msk.f32.gmra.mrb[8].mxu1 %vm319_vm1, %v5054_v33 }
  0x2b   : > { %4297 = vmatprep.mubr.msk.f32.mxu0 %vm319_vm1, %v5057_v34  ;;  %4345 = vmatprep.mubr.msk.f32.mxu1 %vm319_vm1, %v5060_v35 }
  0x2e   : > { %4298 = vmatmul.mubr.msk.f32.gmra.mrb[10].mxu0 %vm319_vm1, %v5071_v36  ;;  %4346 = vmatmul.mubr.msk.f32.gmra.mrb[10].mxu1 %vm319_vm1, %v5074_v37 }
  0x2f   : > { %4300 = vmatprep.mubr.msk.f32.mxu0 %vm319_vm1, %v5077_v38  ;;  %4348 = vmatprep.mubr.msk.f32.mxu1 %vm319_vm1, %v5080_v39 }
  0x32   : > { %4301 = vmatmul.mubr.msk.f32.gmra.mrb[12].mxu0 %vm319_vm1, %v5091_v40  ;;  %4349 = vmatmul.mubr.msk.f32.gmra.mrb[12].mxu1 %vm319_vm1, %v5094_v41 }
  0x33   : > { %4303 = vmatprep.mubr.msk.f32.mxu0 %vm319_vm1, %v5097_v42  ;;  %4351 = vmatprep.mubr.msk.f32.mxu1 %vm319_vm1, %v5100_v43 }
  0x36   : > { %4304 = vmatmul.mubr.msk.f32.gmra.mrb[14].mxu0 %vm319_vm1, %v5111_v44  ;;  %4352 = vmatmul.mubr.msk.f32.gmra.mrb[14].mxu1 %vm319_vm1, %v5114_v45 }
  0x37   : > { %4306 = vmatprep.mubr.msk.f32.mxu0 %vm319_vm1, %v5117_v46  ;;  %4354 = vmatprep.mubr.msk.f32.mxu1 %vm319_vm1, %v5120_v47 }
  0x3a   : > { %4307 = vmatmul.mubr.msk.f32.gmra.mrb[16].mxu0 %vm319_vm1, %v5131_v48  ;;  %4355 = vmatmul.mubr.msk.f32.gmra.mrb[16].mxu1 %vm319_vm1, %v5134_v49 }
  0x3b   : > { %4309 = vmatprep.mubr.msk.f32.mxu0 %vm319_vm1, %v5137_v50  ;;  %4357 = vmatprep.mubr.msk.f32.mxu1 %vm319_vm1, %v5140_v51 }
  0x3e   : > { %4310 = vmatmul.mubr.msk.f32.gmra.mrb[18].mxu0 %vm319_vm1, %v5151_v52  ;;  %4358 = vmatmul.mubr.msk.f32.gmra.mrb[18].mxu1 %vm319_vm1, %v5154_v53 }
  0x3f   : > { %4312 = vmatprep.mubr.msk.f32.mxu0 %vm319_vm1, %v5157_v54  ;;  %4360 = vmatprep.mubr.msk.f32.mxu1 %vm319_vm1, %v5160_v55 }
  0x42   : > { %4313 = vmatmul.mubr.msk.f32.gmra.mrb[20].mxu0 %vm319_vm1, %v5171_v56  ;;  %4361 = vmatmul.mubr.msk.f32.gmra.mrb[20].mxu1 %vm319_vm1, %v5174_v57 }
  0x43   : > { %4315 = vmatprep.mubr.msk.f32.mxu0 %vm319_vm1, %v5177_v58  ;;  %4363 = vmatprep.mubr.msk.f32.mxu1 %vm319_vm1, %v5180_v59 }
  0x46   : > { %4316 = vmatmul.mubr.msk.f32.gmra.mrb[22].mxu0 %vm319_vm1, %v273_v60  ;;  %4364 = vmatmul.mubr.msk.f32.gmra.mrb[22].mxu1 %vm319_vm1, %v5192_v61 }
  0x47   : > { %4318 = vmatprep.mubr.msk.f32.mxu0 %vm319_vm1, %v274_v62  ;;  %4366 = vmatprep.mubr.msk.f32.mxu1 %vm319_vm1, %v5196_v63 }
  0x4a   : > { %4319 = vmatmul.mubr.msk.f32.gmra.mrb[24].mxu0 %vm319_vm1, %v275_v0  ;;  %4367 = vmatmul.mubr.msk.f32.gmra.mrb[24].mxu1 %vm319_vm1, %v5206_v1 }
  0x4b   : > { %4321 = vmatprep.mubr.msk.f32.mxu0 %vm319_vm1, %v276_v2  ;;  %4369 = vmatprep.mubr.msk.f32.mxu1 %vm319_vm1, %v5210_v3 }
  0x4e   : > { %4322 = vmatmul.mubr.msk.f32.gmra.mrb[26].mxu0 %vm319_vm1, %v277_v4  ;;  %4370 = vmatmul.mubr.msk.f32.gmra.mrb[26].mxu1 %vm319_vm1, %v5220_v5 }
  0x4f   : > { %4324 = vmatprep.mubr.msk.f32.mxu0 %vm319_vm1, %v278_v6  ;;  %4372 = vmatprep.mubr.msk.f32.mxu1 %vm319_vm1, %v5224_v7 }
  0x52   : > { %4325 = vmatmul.mubr.msk.f32.gmra.mrb[28].mxu0 %vm319_vm1, %v279_v10  ;;  %4373 = vmatmul.mubr.msk.f32.gmra.mrb[28].mxu1 %vm319_vm1, %v5234_v11 }
  0x53   : > { %4327 = vmatprep.mubr.msk.f32.mxu0 %vm319_vm1, %v280_v12  ;;  %4375 = vmatprep.mubr.msk.f32.mxu1 %vm319_vm1, %v5238_v15 }
  0x56   : > { %4328 = vmatmul.mubr.msk.f32.gmra.mrb[30].mxu0 %vm319_vm1, %v281_v18  ;;  %4376 = vmatmul.mubr.msk.f32.gmra.mrb[30].mxu1 %vm319_vm1, %v5248_v23 }
  0x57   : > { %4388 = vmatprep.mubr.msk.f32.mxu1 %vm319_vm1, %v4943_v8  ;;  %v3086_v8 = vld [vmem:[%s7190_s3] sm:$0xff] }
  0x58   : > { %4484 = vmatprep.subr.mxu0 %v3086_v8 }
  0x59   : > { %4485 = vmatpush3.msra.mxu0 %v3086_v8 }
  0x5a   : > { %4389 = vmatmul.mubr.msk.f32.vlgmr.msra.gmra.mrb[32].mxu1 %vm319_vm1, %v4964_v13 }
  0x5b   : > { %4391 = vmatprep.mubr.msk.f32.mxu1 %vm319_vm1, %v4970_v16 }
  0x5e   : > { %4392 = vmatmul.mubr.msk.f32.gmra.mrb[34].mxu1 %vm319_vm1, %v4984_v19 }
  0x5f   : > { %4394 = vmatprep.mubr.msk.f32.mxu1 %vm319_vm1, %v4992_v21 }
  0x62   : > { %4395 = vmatmul.mubr.msk.f32.gmra.mrb[36].mxu1 %vm319_vm1, %v5009_v24 }
  0x63   : > { %4397 = vmatprep.mubr.msk.f32.mxu1 %vm319_vm1, %v5015_v26 }
  0x66   : > { %4398 = vmatmul.mubr.msk.f32.gmra.mrb[38].mxu1 %vm319_vm1, %v5030_v28 }
  0x67   : > { %4400 = vmatprep.mubr.msk.f32.mxu1 %vm319_vm1, %v5036_v30 }
  0x6a   : > { %4401 = vmatmul.mubr.msk.f32.gmra.mrb[40].mxu1 %vm319_vm1, %v5051_v32 }
  0x6b   : > { %4403 = vmatprep.mubr.msk.f32.mxu1 %vm319_vm1, %v5057_v34 }
  0x6e   : > { %4404 = vmatmul.mubr.msk.f32.gmra.mrb[42].mxu1 %vm319_vm1, %v5071_v36 }
  0x6f   : > { %4406 = vmatprep.mubr.msk.f32.mxu1 %vm319_vm1, %v5077_v38 }
  0x72   : > { %4407 = vmatmul.mubr.msk.f32.gmra.mrb[44].mxu1 %vm319_vm1, %v5091_v40 }
  0x73   : > { %4409 = vmatprep.mubr.msk.f32.mxu1 %vm319_vm1, %v5097_v42 }
  0x76   : > { %4410 = vmatmul.mubr.msk.f32.gmra.mrb[46].mxu1 %vm319_vm1, %v5111_v44 }
  0x77   : > { %4412 = vmatprep.mubr.msk.f32.mxu1 %vm319_vm1, %v5117_v46 }
  0x7a   : > { %4413 = vmatmul.mubr.msk.f32.gmra.mrb[48].mxu1 %vm319_vm1, %v5131_v48 }
  0x7b   : > { %4415 = vmatprep.mubr.msk.f32.mxu1 %vm319_vm1, %v5137_v50 }
  0x7e   : > { %4416 = vmatmul.mubr.msk.f32.gmra.mrb[50].mxu1 %vm319_vm1, %v5151_v52 }
  0x7f   : > { %4418 = vmatprep.mubr.msk.f32.mxu1 %vm319_vm1, %v5157_v54 }
  0x82   : > { %4419 = vmatmul.mubr.msk.f32.gmra.mrb[52].mxu1 %vm319_vm1, %v5171_v56 }
  0x83   : > { %4421 = vmatprep.mubr.msk.f32.mxu1 %vm319_vm1, %v5177_v58 }
  0x86   : > { %4422 = vmatmul.mubr.msk.f32.gmra.mrb[54].mxu1 %vm319_vm1, %v273_v60 }
  0x87   : > { %4424 = vmatprep.mubr.msk.f32.mxu1 %vm319_vm1, %v274_v62 }
  0x8a   : > { %4425 = vmatmul.mubr.msk.f32.gmra.mrb[56].mxu1 %vm319_vm1, %v275_v0 }
  0x8b   : > { %4427 = vmatprep.mubr.msk.f32.mxu1 %vm319_vm1, %v276_v2 }
  0x8e   : > { %4428 = vmatmul.mubr.msk.f32.gmra.mrb[58].mxu1 %vm319_vm1, %v277_v4 }
  0x8f   : > { %4430 = vmatprep.mubr.msk.f32.mxu1 %vm319_vm1, %v278_v6 }
  0x92   : > { %4431 = vmatmul.mubr.msk.f32.gmra.mrb[60].mxu1 %vm319_vm1, %v279_v10 }
  0x93   : > { %4433 = vmatprep.mubr.msk.f32.mxu1 %vm319_vm1, %v280_v12 }
  0x96   : > { %4434 = vmatmul.mubr.msk.f32.gmra.mrb[62].mxu1 %vm319_vm1, %v281_v18 }
  0x97   : > { %4436 = vmatprep.mubr.msk.f32.mxu1 %vm319_vm1, %v4946_v9 }
  0x9a   : > { %4437 = vmatmul.mubr.msk.f32.gmra.mrb[64].mxu1 %vm319_vm1, %v4967_v14 }
  0x9b   : > { %4439 = vmatprep.mubr.msk.f32.mxu1 %vm319_vm1, %v4975_v17 }
  0x9e   : > { %4440 = vmatmul.mubr.msk.f32.gmra.mrb[66].mxu1 %vm319_vm1, %v4987_v20 }
  0x9f   : > { %4442 = vmatprep.mubr.msk.f32.mxu1 %vm319_vm1, %v4995_v22 }
  0xa2   : > { %4443 = vmatmul.mubr.msk.f32.gmra.mrb[68].mxu1 %vm319_vm1, %v5012_v25 }
  0xa3   : > { %4445 = vmatprep.mubr.msk.f32.mxu1 %vm319_vm1, %v5018_v27 }
  0xa6   : > { %4446 = vmatmul.mubr.msk.f32.gmra.mrb[70].mxu1 %vm319_vm1, %v5033_v29 }
  0xa7   : > { %4448 = vmatprep.mubr.msk.f32.mxu1 %vm319_vm1, %v5039_v31 }
  0xaa   : > { %4449 = vmatmul.mubr.msk.f32.gmra.mrb[72].mxu1 %vm319_vm1, %v5054_v33  ;;  %v7193_v33 = vmov 1.0  }
  0xab   : > { %4451 = vmatprep.mubr.msk.f32.mxu1 %vm319_vm1, %v5060_v35 }
  0xae   : > { %4452 = vmatmul.mubr.msk.f32.gmra.mrb[74].mxu1 %vm319_vm1, %v5074_v37 }
  0xaf   : > { %4454 = vmatprep.mubr.msk.f32.mxu1 %vm319_vm1, %v5080_v39 }
  0xb2   : > { %4455 = vmatmul.mubr.msk.f32.gmra.mrb[76].mxu1 %vm319_vm1, %v5094_v41 }
  0xb3   : > { %4457 = vmatprep.mubr.msk.f32.mxu1 %vm319_vm1, %v5100_v43 }
  0xb6   : > { %4458 = vmatmul.mubr.msk.f32.gmra.mrb[78].mxu1 %vm319_vm1, %v5114_v45 }
  0xb7   : > { %4460 = vmatprep.mubr.msk.f32.mxu1 %vm319_vm1, %v5120_v47 }
  0xba   : > { %4461 = vmatmul.mubr.msk.f32.gmra.mrb[80].mxu1 %vm319_vm1, %v5134_v49 }
  0xbb   : > { %4463 = vmatprep.mubr.msk.f32.mxu1 %vm319_vm1, %v5140_v51 }
  0xbe   : > { %4464 = vmatmul.mubr.msk.f32.gmra.mrb[82].mxu1 %vm319_vm1, %v5154_v53 }
  0xbf   : > { %4466 = vmatprep.mubr.msk.f32.mxu1 %vm319_vm1, %v5160_v55 }
  0xc2   : > { %4467 = vmatmul.mubr.msk.f32.gmra.mrb[84].mxu1 %vm319_vm1, %v5174_v57 }
  0xc3   : > { %4469 = vmatprep.mubr.msk.f32.mxu1 %vm319_vm1, %v5180_v59 }
  0xc6   : > { %4470 = vmatmul.mubr.msk.f32.gmra.mrb[86].mxu1 %vm319_vm1, %v5192_v61 }
  0xc7   : > { %4472 = vmatprep.mubr.msk.f32.mxu1 %vm319_vm1, %v5196_v63 }
  0xca   : > { %4473 = vmatmul.mubr.msk.f32.gmra.mrb[88].mxu1 %vm319_vm1, %v5206_v1 }
  0xcb   : > { %4475 = vmatprep.mubr.msk.f32.mxu1 %vm319_vm1, %v5210_v3 }
  0xce   : > { %4476 = vmatmul.mubr.msk.f32.gmra.mrb[90].mxu1 %vm319_vm1, %v5220_v5 }
  0xcf   : > { %4478 = vmatprep.mubr.msk.f32.mxu1 %vm319_vm1, %v5224_v7 }
  0xd2   : > { %4479 = vmatmul.mubr.msk.f32.gmra.mrb[92].mxu1 %vm319_vm1, %v5234_v11 }
  0xd3   : > { %4481 = vmatprep.mubr.msk.f32.mxu1 %vm319_vm1, %v5238_v15 }
  0xd6   : > { %4482 = vmatmul.mubr.msk.f32.gmra.mrb[94].mxu1 %vm319_vm1, %v5248_v23 }
  0xed   : > { %v4284_v9 = vpop.f32.mrb[0].mxu0  ;;  %v4332_v13 = vpop.f32.mrb[0].mxu1 }
  0xee   : > { %v1359_v14 = vmul.f32 0.70710677, %v4284_v9  ;;  %v1391_v16 = vmul.f32 0.70710677, %v4332_v13  ;;  %v582_v17 = vpop.f32.mrb[1].mxu0  ;;  %v742_v19 = vpop.f32.mrb[1].mxu1 }
  0xef   : > { %v1358_v22 = vmul.f32 0.70710677, %v582_v17  ;;  %v5375_v29 = vmul.f32 0.5, %v4284_v9  ;;  %v5377_v30 = vmul.f32 0.5, %v4332_v13  ;;  %v1390_v32 = vmul.f32 0.70710677, %v742_v19 }
  0xf0   : > { %v1551_v20 = vand.u32 2147483647, %v1359_v14  ;;  %v1583_v21 = vand.u32 2147483647, %v1391_v16  ;;  %vm1423_vm2 = vcmp.lt.f32.partialorder %v1359_v14, 0.0  ;;  %vm1455_vm3 = vcmp.lt.f32.partialorder %v1391_v16, 0.0 }
  0xf1   : > { %v4287_v24 = vpop.f32.mrb[2].mxu0  ;;  %7252 = vst [vmem:[#allocation2_spill] sm:$0xff] %v5375_v29  ;;  %7253 = vst [vmem:[#allocation3_spill] sm:$0xff] %v5377_v30  ;;  %v1550_v31 = vand.u32 2147483647, %v1358_v22  ;;  %v5380_v34 = vsel %vm1423_vm2, -1.0, %v7193_v33 }
  0xf2   : > { %v1615_v25 = vmul.f32 0.3275911, %v1551_v20  ;;  %v2447_v26 = vsub.f32 0.0, %v1551_v20  ;;  %v1647_v27 = vmul.f32 0.3275911, %v1583_v21  ;;  %v2479_v28 = vsub.f32 0.0, %v1583_v21 }
  0xf3   : > { %7254 = vst [vmem:[#allocation4_spill] sm:$0xff] %v5380_v34  ;;  %v5383_v36 = vsel %vm1455_vm3, -1.0, %v7193_v33  ;;  %v4335_v38 = vpop.f32.mrb[2].mxu1  ;;  %v5385_v39 = vpop.f32.mrb[3].mxu0  ;;  %v5387_v41 = vmul.f32 0.5, %v582_v17  ;;  %vm1422_vm4 = vcmp.lt.f32.partialorder %v1358_v22, 0.0 }
  0xf4   : > { %v2511_v35 = vmul.f32 %v2447_v26, %v1551_v20  ;;  %7255 = vst [vmem:[#allocation5_spill] sm:$0xff] %v5383_v36  ;;  %v2543_v37 = vmul.f32 %v2479_v28, %v1583_v21  ;;  %v1679_v40 = vadd.f32 1.0, %v1615_v25  ;;  %v2446_v42 = vsub.f32 0.0, %v1550_v31  ;;  %v752_v43 = vpop.f32.mrb[3].mxu1 }
  0xf5   : > { %7256 = vst [vmem:[#allocation6_spill] sm:$0xff] %v5387_v41  ;;  %v1711_v44 = vadd.f32 1.0, %v1647_v27  ;;  %v1614_v45 = vmul.f32 0.3275911, %v1550_v31  ;;  %v5389_v46 = vmul.f32 0.5, %v742_v19  ;;  %vm1454_vm5 = vcmp.lt.f32.partialorder %v1390_v32, 0.0 }
  0xf6   : > { %v5391_v47 = vpop.f32.mrb[4].mxu0  ;;  %v2576_v48 = vmul.f32 1.442695, %v2511_v35  ;;  %v2510_v49 = vmul.f32 %v2446_v42, %v1550_v31  ;;  %v1582_v50 = vand.u32 2147483647, %v1390_v32  ;;  %v5393_v51 = vpop.f32.mrb[4].mxu1  ;;  %4613 = vrcp.f32 %v1679_v40 }
  0xf7   : > { %7257 = vst [vmem:[#allocation7_spill] sm:$0xff] %v5389_v46  ;;  %v5395_v52 = vpop.f32.mrb[5].mxu0  ;;  %v2640_v53 = vmul.f32 1.442695, %v2543_v37  ;;  %v5398_v54 = vsel %vm1422_vm4, -1.0, %v7193_v33  ;;  %v5400_v56 = vpop.f32.mrb[5].mxu1  ;;  %4615 = vrcp.f32 %v1711_v44 }
  0xf8   : > { %7258 = vst [vmem:[#allocation8_spill] sm:$0xff] %v5398_v54  ;;  %v1361_v55 = vmul.f32 0.70710677, %v4287_v24  ;;  %v5403_v57 = vsel %vm1454_vm5, -1.0, %v7193_v33  ;;  %v1646_v58 = vmul.f32 0.3275911, %v1582_v50  ;;  %4617 = vpow2.f32 %v2576_v48 }
  0xf9   : > { %7259 = vst [vmem:[#allocation9_spill] sm:$0xff] %v5403_v57  ;;  %v2478_v59 = vsub.f32 0.0, %v1582_v50  ;;  %v5405_v60 = vpop.f32.mrb[6].mxu0  ;;  %v1678_v61 = vadd.f32 1.0, %v1614_v45  ;;  %v1393_v63 = vmul.f32 0.70710677, %v4335_v38  ;;  %4619 = vpow2.f32 %v2640_v53 }
  0xfa   : > { %v1553_v62 = vand.u32 2147483647, %v1361_v55  ;;  %v5407_v0 = vpop.f32.mrb[6].mxu1  ;;  %v2574_v1 = vmul.f32 1.442695, %v2510_v49  ;;  %v5409_v3 = vmul.f32 0.5, %v4287_v24 }
  0xfb   : > { %v2542_v2 = vmul.f32 %v2478_v59, %v1582_v50  ;;  %v5411_v4 = vpop.f32.mrb[7].mxu0  ;;  %v5413_v5 = vpop.f32.mrb[7].mxu1  ;;  %v1710_v6 = vadd.f32 1.0, %v1646_v58  ;;  %v1585_v11 = vand.u32 2147483647, %v1393_v63  ;;  %vm1425_vm6 = vcmp.lt.f32.partialorder %v1361_v55, 0.0 }
  0xfc   : > { %7260 = vst [vmem:[#allocation10_spill] sm:$0xff] %v5409_v3  ;;  %v1617_v7 = vmul.f32 0.3275911, %v1553_v62  ;;  %v2449_v10 = vsub.f32 0.0, %v1553_v62  ;;  %v5415_v12 = vmul.f32 0.5, %v4335_v38  ;;  %vm1457_vm7 = vcmp.lt.f32.partialorder %v1393_v63, 0.0 }
  0xfd   : > { %v5417_v15 = vpop.f32.mrb[8].mxu0  ;;  %v5419_v18 = vpop.f32.mrb[8].mxu1  ;;  %4621 = vrcp.f32 %v1678_v61  ;;  %v1649_v8 = vmul.f32 0.3275911, %v1585_v11  ;;  %v2481_v9 = vsub.f32 0.0, %v1585_v11  ;;  %v5428_v20 = vsel %vm1425_vm6, -1.0, %v7193_v33 }
  0xfe   : > { %7261 = vst [vmem:[#allocation11_spill] sm:$0xff] %v5415_v12  ;;  %v2513_v23 = vmul.f32 %v2449_v10, %v1553_v62  ;;  %v5421_v13 = vpop.f32.mrb[9].mxu0  ;;  %v5423_v14 = vpop.f32.mrb[9].mxu1  ;;  %4623 = vpow2.f32 %v2574_v1  ;;  %v2638_v16 = vmul.f32 1.442695, %v2542_v2  ;;  %7262 = vst [vmem:[#allocation12_spill] sm:$0xff] %v5428_v20 }
  0xff   : > { %v1360_v17 = vmul.f32 0.70710677, %v5385_v39  ;;  %v1392_v19 = vmul.f32 0.70710677, %v752_v43  ;;  %4625 = vrcp.f32 %v1710_v6  ;;  %v1681_v21 = vadd.f32 1.0, %v1617_v7 }
 0x100   : > { %v5432_v22 = vsel %vm1457_vm7, -1.0, %v7193_v33  ;;  %v2580_v24 = vmul.f32 1.442695, %v2513_v23  ;;  %v2545_v25 = vmul.f32 %v2481_v9, %v1585_v11  ;;  %v1713_v28 = vadd.f32 1.0, %v1649_v8  ;;  %v5443_v38 = vpop.eup %4613 }
 0x101   : > { %7263 = vst [vmem:[#allocation13_spill] sm:$0xff] %v5432_v22  ;;  %v1552_v26 = vand.u32 2147483647, %v1360_v17  ;;  %v1584_v27 = vand.u32 2147483647, %v1392_v19  ;;  %v5435_v31 = vmul.f32 0.5, %v5385_v39  ;;  %4627 = vpow2.f32 %v2638_v16  ;;  %v5447_v48 = vpop.eup %4615 }
 0x102   : > { %vm1424_vm8 = vcmp.lt.f32.partialorder %v1360_v17, 0.0  ;;  %v5437_v32 = vmul.f32 0.5, %v752_v43  ;;  %v5439_v35 = vpop.f32.mrb[10].mxu0  ;;  %v5441_v37 = vpop.f32.mrb[10].mxu1  ;;  %7266 = vst [vmem:[#allocation16_spill] sm:$0xff] %v5443_v38  ;;  %7267 = vst [vmem:[#allocation17_spill] sm:$0xff] %v5447_v48  ;;  %4629 = vrcp.f32 %v1681_v21 }
 0x103   : > { %7264 = vst [vmem:[#allocation14_spill] sm:$0xff] %v5435_v31  ;;  %v1616_v40 = vmul.f32 0.3275911, %v1552_v26  ;;  %v2448_v42 = vsub.f32 0.0, %v1552_v26  ;;  %v1648_v44 = vmul.f32 0.3275911, %v1584_v27  ;;  %v5452_v50 = vpop.eup %4617  ;;  %4631 = vpow2.f32 %v2580_v24 }
 0x104   : > { %7265 = vst [vmem:[#allocation15_spill] sm:$0xff] %v5437_v32  ;;  %v5445_v45 = vpop.f32.mrb[11].mxu0  ;;  %vm1456_vm9 = vcmp.lt.f32.partialorder %v1392_v19, 0.0  ;;  %v2480_v39 = vsub.f32 0.0, %v1584_v27  ;;  %v1363_v43 = vmul.f32 0.70710677, %v5391_v47  ;;  %v5465_v7 = vpop.eup %4619  ;;  %4633 = vrcp.f32 %v1713_v28 }
 0x105   : > { %v5450_v49 = vpop.f32.mrb[11].mxu1  ;;  %7268 = vst [vmem:[#allocation18_spill] sm:$0xff] %v5452_v50  ;;  %v2644_v53 = vmul.f32 1.442695, %v2545_v25  ;;  %v5456_v55 = vsel %vm1424_vm8, -1.0, %v7193_v33  ;;  %v2512_v58 = vmul.f32 %v2448_v42, %v1552_v26  ;;  %v5458_v59 = vpop.f32.mrb[12].mxu0 }
 0x106   : > { %7269 = vst [vmem:[#allocation19_spill] sm:$0xff] %v5456_v55  ;;  %v5460_v61 = vpop.f32.mrb[12].mxu1  ;;  %v1680_v62 = vadd.f32 1.0, %v1616_v40  ;;  %v2544_v63 = vmul.f32 %v2480_v39, %v1584_v27  ;;  %v1555_v1 = vand.u32 2147483647, %v1363_v43  ;;  %v5463_v6 = vpop.f32.mrb[13].mxu0 }
 0x107   : > { %v1395_v2 = vmul.f32 0.70710677, %v5393_v51  ;;  %7270 = vst [vmem:[#allocation20_spill] sm:$0xff] %v5465_v7  ;;  %v5469_v10 = vsel %vm1456_vm9, -1.0, %v7193_v33  ;;  %v1712_v11 = vadd.f32 1.0, %v1648_v44  ;;  %vm1427_vm10 = vcmp.lt.f32.partialorder %v1363_v43, 0.0  ;;  %v5473_v8 = vpop.eup %4621 }
 0x108   : > { %7271 = vst [vmem:[#allocation21_spill] sm:$0xff] %v5469_v10  ;;  %v5471_v23 = vpop.f32.mrb[13].mxu1  ;;  %7272 = vst [vmem:[#allocation22_spill] sm:$0xff] %v5473_v8  ;;  %v2578_v9 = vmul.f32 1.442695, %v2512_v58  ;;  %v5476_v16 = vmul.f32 0.5, %v5391_v47  ;;  %v5478_v24 = vpop.eup %4623  ;;  %4635 = vpow2.f32 %v2644_v53 }
 0x109   : > { %v1619_v17 = vmul.f32 0.3275911, %v1555_v1  ;;  %v2451_v21 = vsub.f32 0.0, %v1555_v1  ;;  %7274 = vst [vmem:[#allocation24_spill] sm:$0xff] %v5478_v24  ;;  %v5481_v25 = vmul.f32 0.5, %v5393_v51  ;;  %v5484_v27 = vpop.f32.mrb[14].mxu0  ;;  %v5486_v28 = vpop.eup %4625  ;;  %4637 = vrcp.f32 %v1680_v62 }
 0x10a   : > { %7273 = vst [vmem:[#allocation23_spill] sm:$0xff] %v5476_v16  ;;  %v1587_v19 = vand.u32 2147483647, %v1395_v2  ;;  %v1362_v26 = vmul.f32 0.70710677, %v5395_v52  ;;  %7276 = vst [vmem:[#allocation26_spill] sm:$0xff] %v5486_v28  ;;  %4639 = vrcp.f32 %v1712_v11 }
 0x10b   : > { %7275 = vst [vmem:[#allocation25_spill] sm:$0xff] %v5481_v25  ;;  %v2642_v40 = vmul.f32 1.442695, %v2544_v63  ;;  %v5490_v47 = vsel %vm1427_vm10, -1.0, %v7193_v33  ;;  %v2515_v42 = vmul.f32 %v2451_v21, %v1555_v1  ;;  %v5492_v44 = vpop.f32.mrb[14].mxu1  ;;  %v5494_v39 = vpop.f32.mrb[15].mxu0  ;;  %4641 = vpow2.f32 %v2578_v9 }
 0x10c   : > { %7277 = vst [vmem:[#allocation27_spill] sm:$0xff] %v5490_v47  ;;  %v1651_v51 = vmul.f32 0.3275911, %v1587_v19  ;;  %v2483_v53 = vsub.f32 0.0, %v1587_v19  ;;  %v1554_v58 = vand.u32 2147483647, %v1362_v26  ;;  %v5498_v62 = vpop.eup %4627 }
 0x10d   : > { %v1683_v25 = vadd.f32 1.0, %v1619_v17  ;;  %v2584_v32 = vmul.f32 1.442695, %v2515_v42  ;;  %vm1459_vm11 = vcmp.lt.f32.partialorder %v1395_v2, 0.0  ;;  %vm1426_vm12 = vcmp.lt.f32.partialorder %v1362_v26, 0.0  ;;  %v5496_v12 = vpop.f32.mrb[15].mxu1  ;;  %v5504_v11 = vpop.eup %4629 }
 0x10e   : > { %7278 = vst [vmem:[#allocation28_spill] sm:$0xff] %v5498_v62  ;;  %v2547_v43 = vmul.f32 %v2483_v53, %v1587_v19  ;;  %v1618_v63 = vmul.f32 0.3275911, %v1554_v58  ;;  %v2450_v1 = vsub.f32 0.0, %v1554_v58  ;;  %v5500_v21 = vpop.f32.mrb[16].mxu0  ;;  %v5502_v33 = vpop.f32.mrb[16].mxu1  ;;  %4643 = vpow2.f32 %v2642_v40 }
 0x10f   : > { %7279 = vst [vmem:[#allocation29_spill] sm:$0xff] %v5504_v11  ;;  %v5507_v17 = vmul.f32 0.5, %v5395_v52  ;;  %v1394_v42 = vmul.f32 0.70710677, %v5400_v56  ;;  %v1365_v10 = vmul.f32 0.70710677, %v5405_v60  ;;  %v5513_v9 = vpop.eup %4631  ;;  %4645 = vrcp.f32 %v1683_v25 }
 0x110   : > { %v5511_v46 = vpop.f32.mrb[17].mxu0  ;;  %7281 = vst [vmem:[#allocation31_spill] sm:$0xff] %v5513_v9  ;;  %v7282_v19 = vmov 1.0   ;;  %v1715_v22 = vadd.f32 1.0, %v1651_v51  ;;  %v2514_v40 = vmul.f32 %v2450_v1, %v1554_v58  ;;  %v5523_v52 = vpop.f32.mrb[17].mxu1  ;;  %v1682_v28 = vadd.f32 1.0, %v1618_v63 }
 0x111   : > { %7280 = vst [vmem:[#allocation30_spill] sm:$0xff] %v5507_v17  ;;  %v5517_v53 = vsel %vm1459_vm11, -1.0, %v7282_v19  ;;  %v5521_v30 = vsel %vm1426_vm12, -1.0, %v7282_v19  ;;  %v2648_v57 = vmul.f32 1.442695, %v2547_v43  ;;  %v5525_v7 = vpop.eup %4633  ;;  %v5528_v48 = vmul.f32 0.5, %v5400_v56 }
 0x112   : > { %7283 = vst [vmem:[#allocation32_spill] sm:$0xff] %v5517_v53  ;;  %7284 = vst [vmem:[#allocation33_spill] sm:$0xff] %v5521_v30  ;;  %v1586_v36 = vand.u32 2147483647, %v1394_v42  ;;  %v1557_v62 = vand.u32 2147483647, %v1365_v10  ;;  %4647 = vpow2.f32 %v2584_v32  ;;  %v5536_v43 = vpop.eup %4635 }
 0x113   : > { %7285 = vst [vmem:[#allocation34_spill] sm:$0xff] %v5525_v7  ;;  %7286 = vst [vmem:[#allocation35_spill] sm:$0xff] %v5528_v48  ;;  %vm1458_vm13 = vcmp.lt.f32.partialorder %v1394_v42, 0.0  ;;  %vm1429_vm14 = vcmp.lt.f32.partialorder %v1365_v10, 0.0  ;;  %v5530_v2 = vpop.f32.mrb[18].mxu0  ;;  %v5532_v26 = vpop.f32.mrb[18].mxu1  ;;  %4649 = vrcp.f32 %v1715_v22 }
 0x114   : > { %v1650_v51 = vmul.f32 0.3275911, %v1586_v36  ;;  %v2482_v58 = vsub.f32 0.0, %v1586_v36  ;;  %v1621_v1 = vmul.f32 0.3275911, %v1557_v62  ;;  %v5534_v25 = vpop.f32.mrb[19].mxu0  ;;  %v5541_v7 = vpop.eup %4637  ;;  %4651 = vpow2.f32 %v2648_v57 }
 0x115   : > { %7287 = vst [vmem:[#allocation36_spill] sm:$0xff] %v5536_v43  ;;  %v2582_v53 = vmul.f32 1.442695, %v2514_v40  ;;  %v2453_v63 = vsub.f32 0.0, %v1557_v62  ;;  %v1397_v56 = vmul.f32 0.70710677, %v5407_v0  ;;  %v5550_v31 = vpop.eup %4639  ;;  %4653 = vrcp.f32 %v1682_v28 }
 0x116   : > { %v5539_v48 = vpop.f32.mrb[19].mxu1  ;;  %7288 = vst [vmem:[#allocation37_spill] sm:$0xff] %v5541_v7  ;;  %v5545_v32 = vsel %vm1458_vm13, -1.0, %v7282_v19  ;;  %v2546_v17 = vmul.f32 %v2482_v58, %v1586_v36  ;;  %v5548_v16 = vmul.f32 0.5, %v5405_v60  ;;  %7291 = vst [vmem:[#allocation40_spill] sm:$0xff] %v5550_v31  ;;  %v1714_v22 = vadd.f32 1.0, %v1650_v51  ;;  %v5563_v58 = vpop.eup %4641 }
 0x117   : > { %7289 = vst [vmem:[#allocation38_spill] sm:$0xff] %v5545_v32  ;;  %v2517_v40 = vmul.f32 %v2453_v63, %v1557_v62  ;;  %v1589_v43 = vand.u32 2147483647, %v1397_v56  ;;  %v1364_v3 = vmul.f32 0.70710677, %v5411_v4  ;;  %v5553_v30 = vpop.f32.mrb[20].mxu0  ;;  %4655 = vpow2.f32 %v2582_v53 }
 0x118   : > { %7290 = vst [vmem:[#allocation39_spill] sm:$0xff] %v5548_v16  ;;  %v5557_v57 = vsel %vm1429_vm14, -1.0, %v7282_v19  ;;  %v1685_v42 = vadd.f32 1.0, %v1621_v1  ;;  %vm1461_vm15 = vcmp.lt.f32.partialorder %v1397_v56, 0.0  ;;  %v5559_v36 = vpop.f32.mrb[20].mxu1  ;;  %v5561_v60 = vpop.f32.mrb[21].mxu0  ;;  %4657 = vrcp.f32 %v1714_v22 }
 0x119   : > { %7292 = vst [vmem:[#allocation41_spill] sm:$0xff] %v5557_v57  ;;  %7293 = vst [vmem:[#allocation42_spill] sm:$0xff] %v5563_v58  ;;  %v2646_v62 = vmul.f32 1.442695, %v2546_v17  ;;  %v1653_v51 = vmul.f32 0.3275911, %v1589_v43  ;;  %v5567_v31 = vpop.eup %4643 }
 0x11a   : > { %v2485_v63 = vsub.f32 0.0, %v1589_v43  ;;  %v5565_v32 = vpop.f32.mrb[21].mxu1  ;;  %7294 = vst [vmem:[#allocation43_spill] sm:$0xff] %v5567_v31  ;;  %v5570_v10 = vmul.f32 0.5, %v5407_v0  ;;  %v5573_v28 = vmul.f32 0.5, %v5411_v4  ;;  %v5578_v17 = vsel %vm1461_vm15, -1.0, %v7282_v19  ;;  %v5584_v31 = vpop.eup %4645 }
 0x11b   : > { %v1556_v1 = vand.u32 2147483647, %v1364_v3  ;;  %v1396_v16 = vmul.f32 0.70710677, %v5413_v5  ;;  %v2588_v57 = vmul.f32 1.442695, %v2517_v40  ;;  %4659 = vrcp.f32 %v1685_v42 }
 0x11c   : > { %7295 = vst [vmem:[#allocation44_spill] sm:$0xff] %v5570_v10  ;;  %7296 = vst [vmem:[#allocation45_spill] sm:$0xff] %v5573_v28  ;;  %v2549_v53 = vmul.f32 %v2485_v63, %v1589_v43  ;;  %v5580_v47 = vpop.f32.mrb[22].mxu0  ;;  %v5582_v55 = vpop.f32.mrb[22].mxu1  ;;  %4661 = vpow2.f32 %v2646_v62  ;;  %v1717_v28 = vadd.f32 1.0, %v1653_v51  ;;  %vm1428_vm0 = vcmp.lt.f32.partialorder %v1364_v3, 0.0 }
 0x11d   : > { %7297 = vst [vmem:[#allocation46_spill] sm:$0xff] %v5578_v17  ;;  %7298 = vst [vmem:[#allocation47_spill] sm:$0xff] %v5584_v31  ;;  %v1620_v0 = vmul.f32 0.3275911, %v1556_v1  ;;  %v2452_v4 = vsub.f32 0.0, %v1556_v1  ;;  %vm1460_vm1 = vcmp.lt.f32.partialorder %v1396_v16, 0.0  ;;  %v5590_v40 = vpop.eup %4647  ;;  %4663 = vpow2.f32 %v2588_v57 }
 0x11e   : > { %v1588_v10 = vand.u32 2147483647, %v1396_v16  ;;  %v5586_v22 = vpop.f32.mrb[23].mxu0  ;;  %v5588_v56 = vpop.f32.mrb[23].mxu1  ;;  %7299 = vst [vmem:[#allocation48_spill] sm:$0xff] %v5590_v40  ;;  %v5595_v42 = vmul.f32 0.5, %v5413_v5  ;;  %4665 = vrcp.f32 %v1717_v28 }
 0x11f   : > { %v2652_v43 = vmul.f32 1.442695, %v2549_v53  ;;  %v2516_v63 = vmul.f32 %v2452_v4, %v1556_v1  ;;  %v5592_v20 = vpop.eup %4649  ;;  %v1367_v62 = vmul.f32 0.70710677, %v5417_v15  ;;  %v1399_v51 = vmul.f32 0.70710677, %v5419_v18 }
 0x120   : > { %v1652_v17 = vmul.f32 0.3275911, %v1588_v10  ;;  %v2484_v41 = vsub.f32 0.0, %v1588_v10  ;;  %7300 = vst [vmem:[#allocation49_spill] sm:$0xff] %v5592_v20  ;;  %7301 = vst [vmem:[#allocation50_spill] sm:$0xff] %v5595_v42  ;;  %v5599_v29 = vpop.f32.mrb[24].mxu0  ;;  %v5601_v58 = vpop.eup %4651 }
 0x121   : > { %7302 = vst [vmem:[#allocation51_spill] sm:$0xff] %v5601_v58  ;;  %v5605_v53 = vsel %vm1428_vm0, -1.0, %v7282_v19  ;;  %v1684_v1 = vadd.f32 1.0, %v1620_v0  ;;  %v5609_v4 = vsel %vm1460_vm1, -1.0, %v7282_v19  ;;  %v5611_v5 = vpop.f32.mrb[24].mxu1  ;;  %v5613_v42 = vpop.f32.mrb[25].mxu0  ;;  %4667 = vpow2.f32 %v2652_v43 }
 0x122   : > { %7303 = vst [vmem:[#allocation52_spill] sm:$0xff] %v5605_v53  ;;  %7304 = vst [vmem:[#allocation53_spill] sm:$0xff] %v5609_v4  ;;  %v2548_v57 = vmul.f32 %v2484_v41, %v1588_v10  ;;  %v2586_v20 = vmul.f32 1.442695, %v2516_v63  ;;  %v1559_v40 = vand.u32 2147483647, %v1367_v62  ;;  %v5615_v9 = vpop.eup %4653 }
 0x123   : > { %v1591_v54 = vand.u32 2147483647, %v1399_v51  ;;  %7305 = vst [vmem:[#allocation54_spill] sm:$0xff] %v5615_v9  ;;  %v1716_v58 = vadd.f32 1.0, %v1652_v17  ;;  %v5618_v53 = vmul.f32 0.5, %v5417_v15  ;;  %vm1431_vm2 = vcmp.lt.f32.partialorder %v1367_v62, 0.0  ;;  %v5622_v0 = vpop.eup %4655 }
 0x124   : > { %v2650_v3 = vmul.f32 1.442695, %v2548_v57  ;;  %v5620_v16 = vpop.f32.mrb[25].mxu1  ;;  %7307 = vst [vmem:[#allocation56_spill] sm:$0xff] %v5622_v0  ;;  %v1623_v41 = vmul.f32 0.3275911, %v1559_v40  ;;  %4669 = vrcp.f32 %v1684_v1 }
 0x125   : > { %7306 = vst [vmem:[#allocation55_spill] sm:$0xff] %v5618_v53  ;;  %v2455_v10 = vsub.f32 0.0, %v1559_v40  ;;  %v1655_v4 = vmul.f32 0.3275911, %v1591_v54  ;;  %v5624_v28 = vpop.f32.mrb[26].mxu0  ;;  %vm1463_vm3 = vcmp.lt.f32.partialorder %v1399_v51, 0.0  ;;  %v5631_v53 = vpop.eup %4657  ;;  %4671 = vpow2.f32 %v2586_v20 }
 0x126   : > { %v2487_v63 = vsub.f32 0.0, %v1591_v54  ;;  %v1366_v17 = vmul.f32 0.70710677, %v5421_v13  ;;  %v5627_v57 = vpop.f32.mrb[26].mxu1  ;;  %v5629_v15 = vpop.f32.mrb[27].mxu0  ;;  %7308 = vst [vmem:[#allocation57_spill] sm:$0xff] %v5631_v53  ;;  %4673 = vrcp.f32 %v1716_v58 }
 0x127   : > { %v1687_v34 = vadd.f32 1.0, %v1623_v41  ;;  %v2519_v0 = vmul.f32 %v2455_v10, %v1559_v40  ;;  %v5634_v43 = vmul.f32 0.5, %v5419_v18  ;;  %v5636_v24 = vpop.f32.mrb[27].mxu1  ;;  %v5638_v50 = vpop.eup %4659  ;;  %v1719_v1 = vadd.f32 1.0, %v1655_v4 }
 0x128   : > { %7310 = vst [vmem:[#allocation59_spill] sm:$0xff] %v5638_v50  ;;  %v2551_v9 = vmul.f32 %v2487_v63, %v1591_v54  ;;  %v1558_v31 = vand.u32 2147483647, %v1366_v17  ;;  %v1398_v7 = vmul.f32 0.70710677, %v5423_v14  ;;  %v5641_v11 = vpop.eup %4661  ;;  %v5645_v20 = vsel %vm1431_vm2, -1.0, %v7282_v19 }
 0x129   : > { %7309 = vst [vmem:[#allocation58_spill] sm:$0xff] %v5634_v43  ;;  %7311 = vst [vmem:[#allocation60_spill] sm:$0xff] %v5641_v11  ;;  %v5649_v18 = vsel %vm1463_vm3, -1.0, %v7282_v19  ;;  %v5652_v40 = vmul.f32 0.5, %v5421_v13  ;;  %v5654_v41 = vpop.f32.mrb[28].mxu0  ;;  %v5656_v54 = vpop.f32.mrb[28].mxu1  ;;  %4675 = vpow2.f32 %v2650_v3 }
 0x12a   : > { %7312 = vst [vmem:[#allocation61_spill] sm:$0xff] %v5645_v20  ;;  %7313 = vst [vmem:[#allocation62_spill] sm:$0xff] %v5649_v18  ;;  %v2592_v4 = vmul.f32 1.442695, %v2519_v0  ;;  %v1622_v10 = vmul.f32 0.3275911, %v1558_v31  ;;  %v5660_v62 = vpop.eup %4663  ;;  %4677 = vrcp.f32 %v1687_v34 }
 0x12b   : > { %7314 = vst [vmem:[#allocation63_spill] sm:$0xff] %v5652_v40  ;;  %v2454_v63 = vsub.f32 0.0, %v1558_v31  ;;  %v5658_v58 = vpop.f32.mrb[29].mxu0  ;;  %7315 = vst [vmem:[#allocation64_spill] sm:$0xff] %v5660_v62  ;;  %vm1430_vm4 = vcmp.lt.f32.partialorder %v1366_v17, 0.0  ;;  %v5663_v18 = vpop.f32.mrb[29].mxu1  ;;  %4679 = vrcp.f32 %v1719_v1 }
 0x12c   : > { %v1590_v51 = vand.u32 2147483647, %v1398_v7  ;;  %v1369_v43 = vmul.f32 0.70710677, %v5439_v35  ;;  %v2656_v13 = vmul.f32 1.442695, %v2551_v9  ;;  %v5668_v3 = vpop.eup %4665  ;;  %4681 = vpow2.f32 %v2592_v4 }
 0x12d   : > { %v2518_v11 = vmul.f32 %v2454_v63, %v1558_v31  ;;  %v5666_v53 = vmul.f32 0.5, %v5423_v14  ;;  %7317 = vst [vmem:[#allocation66_spill] sm:$0xff] %v5668_v3  ;;  %v1686_v0 = vadd.f32 1.0, %v1622_v10  ;;  %v5671_v34 = vsel %vm1430_vm4, -1.0, %v7282_v19  ;;  %v5673_v62 = vpop.f32.mrb[30].mxu0  ;;  %v5675_v1 = vpop.f32.mrb[30].mxu1 }
 0x12e   : > { %v1654_v40 = vmul.f32 0.3275911, %v1590_v51  ;;  %v2486_v20 = vsub.f32 0.0, %v1590_v51  ;;  %v1561_v50 = vand.u32 2147483647, %v1369_v43  ;;  %7318 = vst [vmem:[#allocation67_spill] sm:$0xff] %v5671_v34  ;;  %v5677_v31 = vpop.eup %4667  ;;  %4683 = vpow2.f32 %v2656_v13 }
 0x12f   : > { %7316 = vst [vmem:[#allocation65_spill] sm:$0xff] %v5666_v53  ;;  %v2590_v17 = vmul.f32 1.442695, %v2518_v11  ;;  %vm1462_vm5 = vcmp.lt.f32.partialorder %v1398_v7, 0.0  ;;  %7319 = vst [vmem:[#allocation68_spill] sm:$0xff] %v5675_v1  ;;  %v5679_v10 = vpop.f32.mrb[31].mxu0  ;;  %v5683_v4 = vpop.eup %4669  ;;  %4685 = vrcp.f32 %v1686_v0 }
 0x130   : > { %7320 = vst [vmem:[#allocation69_spill] sm:$0xff] %v5677_v31  ;;  %v1718_v14 = vadd.f32 1.0, %v1654_v40  ;;  %v2550_v9 = vmul.f32 %v2486_v20, %v1590_v51  ;;  %v1625_v63 = vmul.f32 0.3275911, %v1561_v50  ;;  %v2457_v53 = vsub.f32 0.0, %v1561_v50  ;;  %7321 = vst [vmem:[#allocation70_spill] sm:$0xff] %v5679_v10  ;;  %v5687_v8 = vpop.eup %4671 }
 0x131   : > { %v5681_v3 = vpop.f32.mrb[31].mxu1  ;;  %7323 = vst [vmem:[#allocation72_spill] sm:$0xff] %v5683_v4  ;;  %vm1433_vm6 = vcmp.lt.f32.partialorder %v1369_v43, 0.0  ;;  %v1401_v11 = vmul.f32 0.70710677, %v5441_v37  ;;  %7324 = vst [vmem:[#allocation73_spill] sm:$0xff] %v5687_v8  ;;  %4687 = vpow2.f32 %v2590_v17  ;;  %v5694_v13 = vpop.eup %4673 }
 0x132   : > { %7322 = vst [vmem:[#allocation71_spill] sm:$0xff] %v5681_v3  ;;  %v1368_v34 = vmul.f32 0.70710677, %v5445_v45  ;;  %v2654_v31 = vmul.f32 1.442695, %v2550_v9  ;;  %v5690_v20 = vmul.f32 0.5, %v5439_v35  ;;  %v2521_v40 = vmul.f32 %v2457_v53, %v1561_v50 }
 0x133   : > { %v5692_v51 = vpop.f32.mrb[32].mxu1  ;;  %v1689_v38 = vadd.f32 1.0, %v1625_v63  ;;  %v1593_v3 = vand.u32 2147483647, %v1401_v11  ;;  %7327 = vst [vmem:[#allocation76_spill] sm:$0xff] %v5694_v13  ;;  %v5698_v10 = vsel %vm1462_vm5, -1.0, %v7282_v19  ;;  %4689 = vrcp.f32 %v1718_v14  ;;  %v5704_v9 = vpop.eup %4675 }
 0x134   : > { %7325 = vst [vmem:[#allocation74_spill] sm:$0xff] %v5690_v20  ;;  %7326 = vst [vmem:[#allocation75_spill] sm:$0xff] %v5692_v51  ;;  %v1560_v4 = vand.u32 2147483647, %v1368_v34  ;;  %v5702_v0 = vsel %vm1433_vm6, -1.0, %v7282_v19  ;;  %vm1465_vm7 = vcmp.lt.f32.partialorder %v1401_v11, 0.0  ;;  %v5706_v63 = vpop.eup %4677  ;;  %4691 = vpow2.f32 %v2654_v31 }
 0x135   : > { %7328 = vst [vmem:[#allocation77_spill] sm:$0xff] %v5698_v10  ;;  %7329 = vst [vmem:[#allocation78_spill] sm:$0xff] %v5702_v0  ;;  %v2596_v35 = vmul.f32 1.442695, %v2521_v40  ;;  %v1657_v50 = vmul.f32 0.3275911, %v1593_v3  ;;  %v5709_v10 = vpop.eup %4679  ;;  %4693 = vrcp.f32 %v1689_v38 }
 0x136   : > { %7330 = vst [vmem:[#allocation79_spill] sm:$0xff] %v5704_v9  ;;  %v2489_v53 = vsub.f32 0.0, %v1593_v3  ;;  %v1624_v17 = vmul.f32 0.3275911, %v1560_v4  ;;  %vm1432_vm8 = vcmp.lt.f32.partialorder %v1368_v34, 0.0  ;;  %v2456_v13 = vsub.f32 0.0, %v1560_v4  ;;  %v5715_v51 = vpop.eup %4681 }
 0x137   : > { %v1400_v7 = vmul.f32 0.70710677, %v5450_v49  ;;  %7331 = vst [vmem:[#allocation80_spill] sm:$0xff] %v5709_v10  ;;  %v5712_v43 = vmul.f32 0.5, %v5441_v37  ;;  %v1721_v14 = vadd.f32 1.0, %v1657_v50  ;;  %7333 = vst [vmem:[#allocation82_spill] sm:$0xff] %v5715_v51  ;;  %4695 = vpow2.f32 %v2596_v35 }
 0x138   : > { %v2553_v40 = vmul.f32 %v2489_v53, %v1593_v3  ;;  %v1688_v9 = vadd.f32 1.0, %v1624_v17  ;;  %v2520_v20 = vmul.f32 %v2456_v13, %v1560_v4  ;;  %v1371_v8 = vmul.f32 0.70710677, %v5458_v59  ;;  %v5731_v50 = vpop.eup %4683 }
 0x139   : > { %7332 = vst [vmem:[#allocation81_spill] sm:$0xff] %v5712_v43  ;;  %v1592_v0 = vand.u32 2147483647, %v1400_v7  ;;  %v5719_v31 = vsel %vm1465_vm7, -1.0, %v7282_v19  ;;  %v5722_v10 = vmul.f32 0.5, %v5445_v45  ;;  %v5726_v37 = vsel %vm1432_vm8, -1.0, %v7282_v19  ;;  %v5734_v53 = vpop.eup %4685 }
 0x13a   : > { %7334 = vst [vmem:[#allocation83_spill] sm:$0xff] %v5719_v31  ;;  %7336 = vst [vmem:[#allocation85_spill] sm:$0xff] %v5726_v37  ;;  %v2660_v38 = vmul.f32 1.442695, %v2553_v40  ;;  %v5729_v3 = vmul.f32 0.5, %v5450_v49  ;;  %4697 = vrcp.f32 %v1721_v14  ;;  %vm1464_vm9 = vcmp.lt.f32.partialorder %v1400_v7, 0.0 }
 0x13b   : > { %7335 = vst [vmem:[#allocation84_spill] sm:$0xff] %v5722_v10  ;;  %v1656_v4 = vmul.f32 0.3275911, %v1592_v0  ;;  %v2488_v13 = vsub.f32 0.0, %v1592_v0  ;;  %7338 = vst [vmem:[#allocation87_spill] sm:$0xff] %v5731_v50  ;;  %4699 = vrcp.f32 %v1688_v9  ;;  %v5737_v17 = vmul.f32 0.5, %v5458_v59  ;;  %v5739_v40 = vpop.eup %4687 }
 0x13c   : > { %7337 = vst [vmem:[#allocation86_spill] sm:$0xff] %v5729_v3  ;;  %v1563_v11 = vand.u32 2147483647, %v1371_v8  ;;  %v1403_v35 = vmul.f32 0.70710677, %v5460_v61  ;;  %7340 = vst [vmem:[#allocation89_spill] sm:$0xff] %v5739_v40  ;;  %4701 = vpow2.f32 %v2660_v38 }
 0x13d   : > { %v2594_v45 = vmul.f32 1.442695, %v2520_v20  ;;  %v2552_v34 = vmul.f32 %v2488_v13, %v1592_v0  ;;  %7339 = vst [vmem:[#allocation88_spill] sm:$0xff] %v5737_v17  ;;  %v1720_v49 = vadd.f32 1.0, %v1656_v4  ;;  %v5741_v50 = vpop.eup %4689  ;;  %v5744_v7 = vsel %vm1464_vm9, -1.0, %v7282_v19 }
 0x13e   : > { %v1627_v3 = vmul.f32 0.3275911, %v1563_v11  ;;  %v2459_v43 = vsub.f32 0.0, %v1563_v11  ;;  %v1595_v31 = vand.u32 2147483647, %v1403_v35  ;;  %7341 = vst [vmem:[#allocation90_spill] sm:$0xff] %v5741_v50  ;;  %v5746_v59 = vpop.eup %4691 }
 0x13f   : > { %7342 = vst [vmem:[#allocation91_spill] sm:$0xff] %v5744_v7  ;;  %v2658_v14 = vmul.f32 1.442695, %v2552_v34  ;;  %vm1435_vm10 = vcmp.lt.f32.partialorder %v1371_v8, 0.0  ;;  %vm1467_vm11 = vcmp.lt.f32.partialorder %v1403_v35, 0.0  ;;  %7343 = vst [vmem:[#allocation92_spill] sm:$0xff] %v5746_v59  ;;  %4703 = vpow2.f32 %v2594_v45  ;;  %v5750_v10 = vpop.eup %4693 }
 0x140   : > { %v1691_v9 = vadd.f32 1.0, %v1627_v3  ;;  %v2523_v20 = vmul.f32 %v2459_v43, %v1563_v11  ;;  %v2491_v0 = vsub.f32 0.0, %v1595_v31  ;;  %v1659_v13 = vmul.f32 0.3275911, %v1595_v31 }
 0x141   : > { %v1370_v4 = vmul.f32 0.70710677, %v5463_v6  ;;  %v1402_v17 = vmul.f32 0.70710677, %v5471_v23  ;;  %4705 = vrcp.f32 %v1720_v49  ;;  %v5753_v38 = vsel %vm1435_vm10, -1.0, %v7282_v19  ;;  %v5758_v45 = vpop.eup %4695 }
 0x142   : > { %7344 = vst [vmem:[#allocation93_spill] sm:$0xff] %v5753_v38  ;;  %v5756_v8 = vmul.f32 0.5, %v5460_v61  ;;  %v2555_v43 = vmul.f32 %v2491_v0, %v1595_v31  ;;  %4707 = vpow2.f32 %v2658_v14  ;;  %v2600_v3 = vmul.f32 1.442695, %v2523_v20  ;;  %7346 = vst [vmem:[#allocation95_spill] sm:$0xff] %v5758_v45 }
 0x143   : > { %v1562_v11 = vand.u32 2147483647, %v1370_v4  ;;  %v1594_v34 = vand.u32 2147483647, %v1402_v17  ;;  %4709 = vrcp.f32 %v1691_v9  ;;  %v5762_v7 = vsel %vm1467_vm11, -1.0, %v7282_v19 }
 0x144   : > { %7345 = vst [vmem:[#allocation94_spill] sm:$0xff] %v5756_v8  ;;  %7347 = vst [vmem:[#allocation96_spill] sm:$0xff] %v5762_v7  ;;  %v5765_v49 = vmul.f32 0.5, %v5463_v6  ;;  %vm1434_vm12 = vcmp.lt.f32.partialorder %v1370_v4, 0.0  ;;  %v1723_v59 = vadd.f32 1.0, %v1659_v13  ;;  %v5767_v31 = vpop.eup %4697  ;;  %vm1466_vm13 = vcmp.lt.f32.partialorder %v1402_v17, 0.0 }
 0x145   : > { %v1626_v50 = vmul.f32 0.3275911, %v1562_v11  ;;  %v2458_v61 = vsub.f32 0.0, %v1562_v11  ;;  %v1658_v8 = vmul.f32 0.3275911, %v1594_v34  ;;  %7349 = vst [vmem:[#allocation98_spill] sm:$0xff] %v5767_v31  ;;  %v5770_v9 = vpop.eup %4699  ;;  %4711 = vpow2.f32 %v2600_v3 }
 0x146   : > { %7348 = vst [vmem:[#allocation97_spill] sm:$0xff] %v5765_v49  ;;  %v2664_v14 = vmul.f32 1.442695, %v2555_v43  ;;  %v2490_v20 = vsub.f32 0.0, %v1594_v34  ;;  %v1373_v0 = vmul.f32 0.70710677, %v5484_v27  ;;  %v5779_v43 = vpop.eup %4701  ;;  %4713 = vrcp.f32 %v1723_v59 }
 0x147   : > { %v5773_v35 = vsel %vm1434_vm12, -1.0, %v7282_v19  ;;  %v2522_v6 = vmul.f32 %v2458_v61, %v1562_v11  ;;  %v5776_v4 = vmul.f32 0.5, %v5471_v23  ;;  %v1690_v13 = vadd.f32 1.0, %v1626_v50  ;;  %7352 = vst [vmem:[#allocation101_spill] sm:$0xff] %v5779_v43 }
 0x148   : > { %7350 = vst [vmem:[#allocation99_spill] sm:$0xff] %v5773_v35  ;;  %v2554_v7 = vmul.f32 %v2490_v20, %v1594_v34  ;;  %v1565_v49 = vand.u32 2147483647, %v1373_v0  ;;  %v1405_v31 = vmul.f32 0.70710677, %v5492_v44  ;;  %v5782_v17 = vsel %vm1466_vm13, -1.0, %v7282_v19 }
 0x149   : > { %7351 = vst [vmem:[#allocation100_spill] sm:$0xff] %v5776_v4  ;;  %7353 = vst [vmem:[#allocation102_spill] sm:$0xff] %v5782_v17  ;;  %v1722_v38 = vadd.f32 1.0, %v1658_v8  ;;  %vm1437_vm14 = vcmp.lt.f32.partialorder %v1373_v0, 0.0  ;;  %4715 = vpow2.f32 %v2664_v14  ;;  %v2598_v3 = vmul.f32 1.442695, %v2522_v6  ;;  %v5784_v61 = vpop.eup %4703 }
 0x14a   : > { %v1629_v35 = vmul.f32 0.3275911, %v1565_v49  ;;  %v2461_v11 = vsub.f32 0.0, %v1565_v49  ;;  %7354 = vst [vmem:[#allocation103_spill] sm:$0xff] %v5784_v61  ;;  %v5787_v23 = vmul.f32 0.5, %v5484_v27  ;;  %v5790_v50 = vmul.f32 0.5, %v5492_v44 }
 0x14b   : > { %v1597_v34 = vand.u32 2147483647, %v1405_v31  ;;  %v1372_v59 = vmul.f32 0.70710677, %v5494_v39  ;;  %v5793_v20 = vpop.eup %4705  ;;  %4717 = vrcp.f32 %v1690_v13  ;;  %v2662_v8 = vmul.f32 1.442695, %v2554_v7 }
 0x14c   : > { %7355 = vst [vmem:[#allocation104_spill] sm:$0xff] %v5787_v23  ;;  %7356 = vst [vmem:[#allocation105_spill] sm:$0xff] %v5790_v50  ;;  %v5796_v14 = vsel %vm1437_vm14, -1.0, %v7282_v19  ;;  %v2525_v0 = vmul.f32 %v2461_v11, %v1565_v49  ;;  %v5798_v6 = vpop.f32.mrb[33].mxu1  ;;  %v5800_v4 = vpop.eup %4707  ;;  %4719 = vrcp.f32 %v1722_v38  ;;  %v1693_v43 = vadd.f32 1.0, %v1629_v35 }
 0x14d   : > { %7357 = vst [vmem:[#allocation106_spill] sm:$0xff] %v5793_v20  ;;  %7358 = vst [vmem:[#allocation107_spill] sm:$0xff] %v5796_v14  ;;  %v1661_v27 = vmul.f32 0.3275911, %v1597_v34  ;;  %v2493_v17 = vsub.f32 0.0, %v1597_v34  ;;  %v5802_v50 = vpop.eup %4709  ;;  %4721 = vpow2.f32 %v2598_v3  ;;  %vm1469_vm15 = vcmp.lt.f32.partialorder %v1405_v31, 0.0 }
 0x14e   : > { %7359 = vst [vmem:[#allocation108_spill] sm:$0xff] %v5800_v4  ;;  %v1564_v44 = vand.u32 2147483647, %v1372_v59  ;;  %7360 = vst [vmem:[#allocation109_spill] sm:$0xff] %v5802_v50  ;;  %vm1436_vm0 = vcmp.lt.f32.partialorder %v1372_v59, 0.0  ;;  %v5804_v13 = vpop.f32.mrb[34].mxu1  ;;  %4723 = vpow2.f32 %v2662_v8 }
 0x14f   : > { %v2604_v7 = vmul.f32 1.442695, %v2525_v0  ;;  %v2557_v20 = vmul.f32 %v2493_v17, %v1597_v34  ;;  %v5807_v11 = vmul.f32 0.5, %v5494_v39  ;;  %v1404_v38 = vmul.f32 0.70710677, %v5496_v12  ;;  %v5811_v14 = vpop.f32.mrb[35].mxu1  ;;  %v5813_v3 = vpop.eup %4711 }
 0x150   : > { %v1628_v23 = vmul.f32 0.3275911, %v1564_v44  ;;  %v2460_v49 = vsub.f32 0.0, %v1564_v44  ;;  %v1375_v4 = vmul.f32 0.70710677, %v5500_v21  ;;  %7362 = vst [vmem:[#allocation111_spill] sm:$0xff] %v5813_v3  ;;  %4725 = vrcp.f32 %v1693_v43  ;;  %v5821_v0 = vpop.eup %4713 }
 0x151   : > { %7361 = vst [vmem:[#allocation110_spill] sm:$0xff] %v5807_v11  ;;  %v5816_v31 = vsel %vm1469_vm15, -1.0, %v7282_v19  ;;  %v1725_v35 = vadd.f32 1.0, %v1661_v27  ;;  %v5819_v17 = vsel %vm1436_vm0, -1.0, %v7282_v19  ;;  %v2668_v59 = vmul.f32 1.442695, %v2557_v20 }
 0x152   : > { %7363 = vst [vmem:[#allocation112_spill] sm:$0xff] %v5816_v31  ;;  %7364 = vst [vmem:[#allocation113_spill] sm:$0xff] %v5819_v17  ;;  %v2524_v34 = vmul.f32 %v2460_v49, %v1564_v44  ;;  %v1596_v39 = vand.u32 2147483647, %v1404_v38  ;;  %v1567_v8 = vand.u32 2147483647, %v1375_v4  ;;  %4727 = vpow2.f32 %v2604_v7 }
 0x153   : > { %7365 = vst [vmem:[#allocation114_spill] sm:$0xff] %v5821_v0  ;;  %v1692_v11 = vadd.f32 1.0, %v1628_v23  ;;  %v5824_v37 = vmul.f32 0.5, %v5496_v12  ;;  %vm1468_vm1 = vcmp.lt.f32.partialorder %v1404_v38, 0.0  ;;  %vm1439_vm2 = vcmp.lt.f32.partialorder %v1375_v4, 0.0  ;;  %v5826_v3 = vpop.f32.mrb[36].mxu1  ;;  %v5828_v31 = vpop.eup %4715 }
 0x154   : > { %7367 = vst [vmem:[#allocation116_spill] sm:$0xff] %v5828_v31  ;;  %v1660_v27 = vmul.f32 0.3275911, %v1596_v39  ;;  %v2492_v17 = vsub.f32 0.0, %v1596_v39  ;;  %v1631_v44 = vmul.f32 0.3275911, %v1567_v8  ;;  %4729 = vrcp.f32 %v1725_v35 }
 0x155   : > { %7366 = vst [vmem:[#allocation115_spill] sm:$0xff] %v5824_v37  ;;  %v5830_v43 = vpop.f32.mrb[37].mxu1  ;;  %v2602_v20 = vmul.f32 1.442695, %v2524_v34  ;;  %v2463_v49 = vsub.f32 0.0, %v1567_v8  ;;  %v5835_v12 = vpop.eup %4717  ;;  %4731 = vpow2.f32 %v2668_v59  ;;  %v5838_v31 = vmul.f32 0.5, %v5500_v21 }
 0x156   : > { %v1407_v23 = vmul.f32 0.70710677, %v5502_v33  ;;  %v5833_v0 = vpop.f32.mrb[38].mxu1  ;;  %v1724_v37 = vadd.f32 1.0, %v1660_v27  ;;  %v2556_v61 = vmul.f32 %v2492_v17, %v1596_v39  ;;  %v5842_v45 = vpop.eup %4719  ;;  %v1695_v40 = vadd.f32 1.0, %v1631_v44 }
 0x157   : > { %7368 = vst [vmem:[#allocation117_spill] sm:$0xff] %v5838_v31  ;;  %v5840_v7 = vpop.f32.mrb[39].mxu1  ;;  %7369 = vst [vmem:[#allocation118_spill] sm:$0xff] %v5842_v45  ;;  %v2527_v35 = vmul.f32 %v2463_v49, %v1567_v8  ;;  %v1374_v51 = vmul.f32 0.70710677, %v5511_v46  ;;  %v5845_v50 = vpop.eup %4721  ;;  %4733 = vrcp.f32 %v1692_v11  ;;  %v5849_v59 = vsel %vm1468_vm1, -1.0, %v7282_v19 }
 0x158   : > { %v1599_v34 = vand.u32 2147483647, %v1407_v23  ;;  %7370 = vst [vmem:[#allocation119_spill] sm:$0xff] %v5849_v59  ;;  %v5853_v21 = vsel %vm1439_vm2, -1.0, %v7282_v19  ;;  %v5856_v17 = vmul.f32 0.5, %v5502_v33  ;;  %4735 = vpow2.f32 %v2602_v20  ;;  %v5858_v44 = vpop.f32.mrb[40].mxu1  ;;  %v5860_v49 = vpop.eup %4723 }
 0x159   : > { %7371 = vst [vmem:[#allocation120_spill] sm:$0xff] %v5853_v21  ;;  %v2666_v39 = vmul.f32 1.442695, %v2556_v61  ;;  %7373 = vst [vmem:[#allocation122_spill] sm:$0xff] %v5860_v49  ;;  %4737 = vrcp.f32 %v1724_v37  ;;  %vm1471_vm3 = vcmp.lt.f32.partialorder %v1407_v23, 0.0  ;;  %v5864_v45 = vmul.f32 0.5, %v5511_v46 }
 0x15a   : > { %7372 = vst [vmem:[#allocation121_spill] sm:$0xff] %v5856_v17  ;;  %v1663_v8 = vmul.f32 0.3275911, %v1599_v34  ;;  %v2495_v27 = vsub.f32 0.0, %v1599_v34  ;;  %v1566_v11 = vand.u32 2147483647, %v1374_v51  ;;  %4739 = vrcp.f32 %v1695_v40  ;;  %v5866_v33 = vpop.eup %4725 }
 0x15b   : > { %v1406_v38 = vmul.f32 0.70710677, %v5523_v52  ;;  %v2608_v4 = vmul.f32 1.442695, %v2527_v35  ;;  %7374 = vst [vmem:[#allocation123_spill] sm:$0xff] %v5864_v45  ;;  %4741 = vpow2.f32 %v2666_v39  ;;  %v5869_v49 = vsel %vm1471_vm3, -1.0, %v7282_v19 }
 0x15c   : > { %v2559_v59 = vmul.f32 %v2495_v27, %v1599_v34  ;;  %v1727_v61 = vadd.f32 1.0, %v1663_v8  ;;  %v1630_v20 = vmul.f32 0.3275911, %v1566_v11  ;;  %v2462_v17 = vsub.f32 0.0, %v1566_v11  ;;  %7375 = vst [vmem:[#allocation124_spill] sm:$0xff] %v5869_v49  ;;  %v5871_v23 = vpop.eup %4727 }
 0x15d   : > { %v1598_v31 = vand.u32 2147483647, %v1406_v38  ;;  %vm1438_vm4 = vcmp.lt.f32.partialorder %v1374_v51, 0.0  ;;  %vm1470_vm5 = vcmp.lt.f32.partialorder %v1406_v38, 0.0  ;;  %4743 = vpow2.f32 %v2608_v4 }
 0x15e   : > { %v2672_v37 = vmul.f32 1.442695, %v2559_v59  ;;  %v1694_v40 = vadd.f32 1.0, %v1630_v20  ;;  %v2526_v35 = vmul.f32 %v2462_v17, %v1566_v11  ;;  %v5873_v46 = vpop.eup %4729  ;;  %v1377_v8 = vmul.f32 0.70710677, %v5530_v2 }
 0x15f   : > { %v2494_v34 = vsub.f32 0.0, %v1598_v31  ;;  %7376 = vst [vmem:[#allocation125_spill] sm:$0xff] %v5873_v46  ;;  %v1662_v27 = vmul.f32 0.3275911, %v1598_v31  ;;  %v1409_v45 = vmul.f32 0.70710677, %v5532_v26  ;;  %v5877_v39 = vpop.eup %4731  ;;  %4745 = vrcp.f32 %v1727_v61 }
 0x160   : > { %7377 = vst [vmem:[#allocation126_spill] sm:$0xff] %v5877_v39  ;;  %v5880_v59 = vsel %vm1438_vm4, -1.0, %v7282_v19  ;;  %v5883_v51 = vmul.f32 0.5, %v5523_v52  ;;  %4747 = vpow2.f32 %v2672_v37  ;;  %v2606_v11 = vmul.f32 1.442695, %v2526_v35 }
 0x161   : > { %7378 = vst [vmem:[#allocation127_spill] sm:$0xff] %v5880_v59  ;;  %v2558_v17 = vmul.f32 %v2494_v34, %v1598_v31  ;;  %v1569_v20 = vand.u32 2147483647, %v1377_v8  ;;  %v1601_v49 = vand.u32 2147483647, %v1409_v45  ;;  %v5885_v4 = vpop.eup %4733  ;;  %4749 = vrcp.f32 %v1694_v40 }
 0x162   : > { %7379 = vst [vmem:[#allocation128_spill] sm:$0xff] %v5883_v51  ;;  %v5889_v46 = vsel %vm1470_vm5, -1.0, %v7282_v19  ;;  %v5892_v61 = vmul.f32 0.5, %v5530_v2  ;;  %vm1441_vm6 = vcmp.lt.f32.partialorder %v1377_v8, 0.0  ;;  %v5894_v39 = vpop.eup %4735  ;;  %v1726_v52 = vadd.f32 1.0, %v1662_v27 }
 0x163   : > { %7380 = vst [vmem:[#allocation129_spill] sm:$0xff] %v5889_v46  ;;  %v1633_v51 = vmul.f32 0.3275911, %v1569_v20  ;;  %v2465_v31 = vsub.f32 0.0, %v1569_v20  ;;  %v1665_v37 = vmul.f32 0.3275911, %v1601_v49  ;;  %v5896_v35 = vpop.eup %4737  ;;  %4751 = vpow2.f32 %v2606_v11 }
 0x164   : > { %7381 = vst [vmem:[#allocation130_spill] sm:$0xff] %v5892_v61  ;;  %7382 = vst [vmem:[#allocation131_spill] sm:$0xff] %v5896_v35  ;;  %v2670_v34 = vmul.f32 1.442695, %v2558_v17  ;;  %vm1473_vm7 = vcmp.lt.f32.partialorder %v1409_v45, 0.0  ;;  %v2497_v59 = vsub.f32 0.0, %v1601_v49  ;;  %v5899_v38 = vpop.eup %4739  ;;  %4753 = vrcp.f32 %v1726_v52 }
 0x165   : > { %v1376_v40 = vmul.f32 0.70710677, %v5534_v25  ;;  %7383 = vst [vmem:[#allocation132_spill] sm:$0xff] %v5899_v38  ;;  %v5902_v2 = vsel %vm1441_vm6, -1.0, %v7282_v19  ;;  %v2529_v8 = vmul.f32 %v2465_v31, %v1569_v20  ;;  %v5905_v46 = vmul.f32 0.5, %v5532_v26  ;;  %v5908_v17 = vpop.eup %4741 }
 0x166   : > { %7384 = vst [vmem:[#allocation133_spill] sm:$0xff] %v5902_v2  ;;  %v1697_v27 = vadd.f32 1.0, %v1633_v51  ;;  %v2561_v61 = vmul.f32 %v2497_v59, %v1601_v49  ;;  %v1408_v35 = vmul.f32 0.70710677, %v5539_v48  ;;  %7386 = vst [vmem:[#allocation135_spill] sm:$0xff] %v5908_v17  ;;  %v5911_v45 = vsel %vm1473_vm7, -1.0, %v7282_v19 }
 0x167   : > { %7385 = vst [vmem:[#allocation134_spill] sm:$0xff] %v5905_v46  ;;  %v1568_v21 = vand.u32 2147483647, %v1376_v40  ;;  %7387 = vst [vmem:[#allocation136_spill] sm:$0xff] %v5911_v45  ;;  %v1729_v38 = vadd.f32 1.0, %v1665_v37  ;;  %vm1440_vm8 = vcmp.lt.f32.partialorder %v1376_v40, 0.0  ;;  %4755 = vpow2.f32 %v2670_v34  ;;  %v5913_v31 = vpop.eup %4743 }
 0x168   : > { %v2612_v11 = vmul.f32 1.442695, %v2529_v8  ;;  %7388 = vst [vmem:[#allocation137_spill] sm:$0xff] %v5913_v31  ;;  %v5916_v26 = vmul.f32 0.5, %v5534_v25  ;;  %v5919_v49 = vmul.f32 0.5, %v5539_v48  ;;  %4757 = vrcp.f32 %v1697_v27  ;;  %v5927_v8 = vpop.f32.mrb[41].mxu1 }
 0x169   : > { %v1632_v2 = vmul.f32 0.3275911, %v1568_v21  ;;  %v2464_v20 = vsub.f32 0.0, %v1568_v21  ;;  %v1600_v59 = vand.u32 2147483647, %v1408_v35  ;;  %v5922_v52 = vpop.eup %4745  ;;  %v5925_v34 = vsel %vm1440_vm8, -1.0, %v7282_v19 }
 0x16a   : > { %7389 = vst [vmem:[#allocation138_spill] sm:$0xff] %v5916_v26  ;;  %7390 = vst [vmem:[#allocation139_spill] sm:$0xff] %v5919_v49  ;;  %v1379_v51 = vmul.f32 0.70710677, %v5553_v30  ;;  %v2676_v37 = vmul.f32 1.442695, %v2561_v61  ;;  %v5929_v46 = vpop.eup %4747  ;;  %4759 = vrcp.f32 %v1729_v38 }
 0x16b   : > { %7391 = vst [vmem:[#allocation140_spill] sm:$0xff] %v5922_v52  ;;  %7392 = vst [vmem:[#allocation141_spill] sm:$0xff] %v5925_v34  ;;  %v2528_v40 = vmul.f32 %v2464_v20, %v1568_v21  ;;  %v1664_v25 = vmul.f32 0.3275911, %v1600_v59  ;;  %v2496_v45 = vsub.f32 0.0, %v1600_v59  ;;  %v5931_v49 = vpop.eup %4749  ;;  %4761 = vpow2.f32 %v2612_v11  ;;  %v5933_v27 = vpop.f32.mrb[42].mxu1 }
 0x16c   : > { %7393 = vst [vmem:[#allocation142_spill] sm:$0xff] %v5929_v46  ;;  %v1571_v48 = vand.u32 2147483647, %v1379_v51  ;;  %7394 = vst [vmem:[#allocation143_spill] sm:$0xff] %v5931_v49  ;;  %v1696_v17 = vadd.f32 1.0, %v1632_v2  ;;  %vm1472_vm9 = vcmp.lt.f32.partialorder %v1408_v35, 0.0  ;;  %4763 = vpow2.f32 %v2676_v37 }
 0x16d   : > { %vm1443_vm10 = vcmp.lt.f32.partialorder %v1379_v51, 0.0  ;;  %7395 = vst [vmem:[#allocation144_spill] sm:$0xff] %v5933_v27  ;;  %v2610_v61 = vmul.f32 1.442695, %v2528_v40  ;;  %v2560_v52 = vmul.f32 %v2496_v45, %v1600_v59  ;;  %v5936_v20 = vmul.f32 0.5, %v5553_v30  ;;  %v5940_v34 = vpop.f32.mrb[43].mxu1  ;;  %v5942_v11 = vpop.eup %4751 }
 0x16e   : > { %v1635_v26 = vmul.f32 0.3275911, %v1571_v48  ;;  %v2467_v21 = vsub.f32 0.0, %v1571_v48  ;;  %v1411_v38 = vmul.f32 0.70710677, %v5559_v36  ;;  %7397 = vst [vmem:[#allocation146_spill] sm:$0xff] %v5940_v34  ;;  %4765 = vrcp.f32 %v1696_v17  ;;  %v5950_v40 = vpop.eup %4753 }
 0x16f   : > { %7396 = vst [vmem:[#allocation145_spill] sm:$0xff] %v5936_v20  ;;  %v1378_v46 = vmul.f32 0.70710677, %v5561_v60  ;;  %7398 = vst [vmem:[#allocation147_spill] sm:$0xff] %v5942_v11  ;;  %v5945_v35 = vsel %vm1472_vm9, -1.0, %v7282_v19  ;;  %v1728_v2 = vadd.f32 1.0, %v1664_v25  ;;  %4767 = vpow2.f32 %v2610_v61 }
 0x170   : > { %7399 = vst [vmem:[#allocation148_spill] sm:$0xff] %v5945_v35  ;;  %v5948_v45 = vsel %vm1443_vm10, -1.0, %v7282_v19  ;;  %v2531_v59 = vmul.f32 %v2467_v21, %v1571_v48  ;;  %v2674_v51 = vmul.f32 1.442695, %v2560_v52  ;;  %v1603_v30 = vand.u32 2147483647, %v1411_v38 }
 0x171   : > { %7400 = vst [vmem:[#allocation149_spill] sm:$0xff] %v5948_v45  ;;  %v1570_v37 = vand.u32 2147483647, %v1378_v46  ;;  %7401 = vst [vmem:[#allocation150_spill] sm:$0xff] %v5950_v40  ;;  %v1699_v20 = vadd.f32 1.0, %v1635_v26  ;;  %v5953_v31 = vmul.f32 0.5, %v5559_v36  ;;  %v5957_v35 = vpop.eup %4755  ;;  %4769 = vrcp.f32 %v1728_v2 }
 0x172   : > { %vm1475_vm11 = vcmp.lt.f32.partialorder %v1411_v38, 0.0  ;;  %vm1442_vm12 = vcmp.lt.f32.partialorder %v1378_v46, 0.0  ;;  %v5955_v11 = vpop.f32.mrb[44].mxu1  ;;  %7404 = vst [vmem:[#allocation153_spill] sm:$0xff] %v5957_v35  ;;  %v1667_v25 = vmul.f32 0.3275911, %v1603_v30  ;;  %v5964_v36 = vpop.eup %4757  ;;  %4771 = vpow2.f32 %v2674_v51 }
 0x173   : > { %7402 = vst [vmem:[#allocation151_spill] sm:$0xff] %v5953_v31  ;;  %7403 = vst [vmem:[#allocation152_spill] sm:$0xff] %v5955_v11  ;;  %v2499_v45 = vsub.f32 0.0, %v1603_v30  ;;  %v1634_v48 = vmul.f32 0.3275911, %v1570_v37  ;;  %v5959_v17 = vpop.f32.mrb[45].mxu1  ;;  %4773 = vrcp.f32 %v1699_v20 }
 0x174   : > { %7405 = vst [vmem:[#allocation154_spill] sm:$0xff] %v5959_v17  ;;  %v2616_v52 = vmul.f32 1.442695, %v2531_v59  ;;  %v2466_v21 = vsub.f32 0.0, %v1570_v37  ;;  %v1410_v26 = vmul.f32 0.70710677, %v5565_v32  ;;  %v5971_v34 = vpop.eup %4759 }
 0x175   : > { %v5962_v40 = vpop.f32.mrb[46].mxu1  ;;  %v1731_v31 = vadd.f32 1.0, %v1667_v25  ;;  %v2563_v11 = vmul.f32 %v2499_v45, %v1603_v30  ;;  %v5967_v35 = vmul.f32 0.5, %v5561_v60  ;;  %7407 = vst [vmem:[#allocation156_spill] sm:$0xff] %v5971_v34  ;;  %v1698_v17 = vadd.f32 1.0, %v1634_v48  ;;  %v5974_v27 = vpop.eup %4761 }
 0x176   : > { %v5969_v61 = vpop.f32.mrb[47].mxu1  ;;  %v2530_v2 = vmul.f32 %v2466_v21, %v1570_v37  ;;  %v1602_v59 = vand.u32 2147483647, %v1410_v26  ;;  %v1381_v49 = vmul.f32 0.70710677, %v5580_v47  ;;  %v5978_v51 = vsel %vm1475_vm11, -1.0, %v7282_v19  ;;  %v5989_v21 = vpop.eup %4763 }
 0x177   : > { %7406 = vst [vmem:[#allocation155_spill] sm:$0xff] %v5967_v35  ;;  %7408 = vst [vmem:[#allocation157_spill] sm:$0xff] %v5978_v51  ;;  %v5982_v60 = vsel %vm1442_vm12, -1.0, %v7282_v19  ;;  %v5985_v45 = vmul.f32 0.5, %v5565_v32  ;;  %4775 = vpow2.f32 %v2616_v52  ;;  %v2680_v30 = vmul.f32 1.442695, %v2563_v11 }
 0x178   : > { %7409 = vst [vmem:[#allocation158_spill] sm:$0xff] %v5982_v60  ;;  %v1666_v37 = vmul.f32 0.3275911, %v1602_v59  ;;  %v2498_v25 = vsub.f32 0.0, %v1602_v59  ;;  %v5987_v48 = vpop.f32.mrb[48].mxu1  ;;  %7412 = vst [vmem:[#allocation161_spill] sm:$0xff] %v5989_v21  ;;  %4777 = vrcp.f32 %v1731_v31  ;;  %v5995_v32 = vpop.eup %4765 }
 0x179   : > { %7410 = vst [vmem:[#allocation159_spill] sm:$0xff] %v5985_v45  ;;  %7411 = vst [vmem:[#allocation160_spill] sm:$0xff] %v5987_v48  ;;  %vm1474_vm13 = vcmp.lt.f32.partialorder %v1410_v26, 0.0  ;;  %v1573_v20 = vand.u32 2147483647, %v1381_v49  ;;  %4779 = vrcp.f32 %v1698_v17  ;;  %v5993_v34 = vmul.f32 0.5, %v5580_v47  ;;  %v6000_v26 = vpop.eup %4767 }
 0x17a   : > { %v1413_v38 = vmul.f32 0.70710677, %v5582_v55  ;;  %v2614_v46 = vmul.f32 1.442695, %v2530_v2  ;;  %v2562_v51 = vmul.f32 %v2498_v25, %v1602_v59  ;;  %v1730_v11 = vadd.f32 1.0, %v1666_v37 }
 0x17b   : > { %7413 = vst [vmem:[#allocation162_spill] sm:$0xff] %v5993_v34  ;;  %v1637_v52 = vmul.f32 0.3275911, %v1573_v20  ;;  %v2469_v45 = vsub.f32 0.0, %v1573_v20  ;;  %4781 = vpow2.f32 %v2680_v30  ;;  %v5998_v21 = vsel %vm1474_vm13, -1.0, %v7282_v19  ;;  %v6002_v47 = vpop.eup %4769 }
 0x17c   : > { %v1605_v35 = vand.u32 2147483647, %v1413_v38  ;;  %7414 = vst [vmem:[#allocation163_spill] sm:$0xff] %v5998_v21  ;;  %v2678_v31 = vmul.f32 1.442695, %v2562_v51  ;;  %vm1445_vm14 = vcmp.lt.f32.partialorder %v1381_v49, 0.0  ;;  %4783 = vpow2.f32 %v2614_v46  ;;  %v6006_v30 = vpop.eup %4771 }
 0x17d   : > { %v1701_v17 = vadd.f32 1.0, %v1637_v52  ;;  %v2533_v2 = vmul.f32 %v2469_v45, %v1573_v20  ;;  %vm1477_vm15 = vcmp.lt.f32.partialorder %v1413_v38, 0.0  ;;  %7415 = vst [vmem:[#allocation164_spill] sm:$0xff] %v6002_v47  ;;  %v1380_v37 = vmul.f32 0.70710677, %v5586_v22  ;;  %7416 = vst [vmem:[#allocation165_spill] sm:$0xff] %v6006_v30  ;;  %v6014_v46 = vpop.eup %4773 }
 0x17e   : > { %v2501_v59 = vsub.f32 0.0, %v1605_v35  ;;  %v1669_v25 = vmul.f32 0.3275911, %v1605_v35  ;;  %v1412_v34 = vmul.f32 0.70710677, %v5588_v56  ;;  %4785 = vrcp.f32 %v1730_v11 }
 0x17f   : > { %v6009_v51 = vsel %vm1445_vm14, -1.0, %v7282_v19  ;;  %v6012_v49 = vmul.f32 0.5, %v5582_v55  ;;  %4787 = vpow2.f32 %v2678_v31  ;;  %v2620_v20 = vmul.f32 1.442695, %v2533_v2 }
 0x180   : > { %7417 = vst [vmem:[#allocation166_spill] sm:$0xff] %v6009_v51  ;;  %v2565_v45 = vmul.f32 %v2501_v59, %v1605_v35  ;;  %v1572_v52 = vand.u32 2147483647, %v1380_v37  ;;  %v1604_v21 = vand.u32 2147483647, %v1412_v34  ;;  %4789 = vrcp.f32 %v1701_v17 }
 0x181   : > { %7418 = vst [vmem:[#allocation167_spill] sm:$0xff] %v6012_v49  ;;  %v6018_v47 = vsel %vm1477_vm15, -1.0, %v7282_v19  ;;  %v6021_v11 = vmul.f32 0.5, %v5586_v22  ;;  %vm1444_vm0 = vcmp.lt.f32.partialorder %v1380_v37, 0.0  ;;  %v6023_v30 = vpop.eup %4775  ;;  %v1733_v55 = vadd.f32 1.0, %v1669_v25 }
 0x182   : > { %7419 = vst [vmem:[#allocation168_spill] sm:$0xff] %v6018_v47  ;;  %v1636_v49 = vmul.f32 0.3275911, %v1572_v52  ;;  %v2468_v35 = vsub.f32 0.0, %v1572_v52  ;;  %v1668_v31 = vmul.f32 0.3275911, %v1604_v21  ;;  %v6025_v2 = vpop.eup %4777  ;;  %4791 = vpow2.f32 %v2620_v20 }
 0x183   : > { %7420 = vst [vmem:[#allocation169_spill] sm:$0xff] %v6021_v11  ;;  %7421 = vst [vmem:[#allocation170_spill] sm:$0xff] %v6025_v2  ;;  %v2684_v59 = vmul.f32 1.442695, %v2565_v45  ;;  %vm1476_vm1 = vcmp.lt.f32.partialorder %v1412_v34, 0.0  ;;  %v2500_v51 = vsub.f32 0.0, %v1604_v21  ;;  %v6028_v38 = vpop.eup %4779  ;;  %4793 = vrcp.f32 %v1733_v55 }
 0x184   : > { %v1383_v17 = vmul.f32 0.70710677, %v5599_v29  ;;  %v6031_v22 = vsel %vm1444_vm0, -1.0, %v7282_v19  ;;  %v2532_v37 = vmul.f32 %v2468_v35, %v1572_v52  ;;  %v6034_v47 = vmul.f32 0.5, %v5588_v56 }
 0x185   : > { %7422 = vst [vmem:[#allocation171_spill] sm:$0xff] %v6031_v22  ;;  %v1700_v25 = vadd.f32 1.0, %v1636_v49  ;;  %v2564_v11 = vmul.f32 %v2500_v51, %v1604_v21  ;;  %v1415_v2 = vmul.f32 0.70710677, %v5611_v5  ;;  %v6037_v45 = vpop.eup %4781  ;;  %v6040_v34 = vsel %vm1476_vm1, -1.0, %v7282_v19 }
 0x186   : > { %7423 = vst [vmem:[#allocation172_spill] sm:$0xff] %v6034_v47  ;;  %v1575_v60 = vand.u32 2147483647, %v1383_v17  ;;  %7424 = vst [vmem:[#allocation173_spill] sm:$0xff] %v6037_v45  ;;  %v1732_v48 = vadd.f32 1.0, %v1668_v31  ;;  %vm1447_vm2 = vcmp.lt.f32.partialorder %v1383_v17, 0.0  ;;  %4795 = vpow2.f32 %v2684_v59  ;;  %v6042_v35 = vpop.eup %4783 }
 0x187   : > { %7425 = vst [vmem:[#allocation174_spill] sm:$0xff] %v6040_v34  ;;  %v2618_v20 = vmul.f32 1.442695, %v2532_v37  ;;  %7426 = vst [vmem:[#allocation175_spill] sm:$0xff] %v6042_v35  ;;  %v6045_v56 = vmul.f32 0.5, %v5599_v29  ;;  %v6048_v21 = vmul.f32 0.5, %v5611_v5  ;;  %4797 = vrcp.f32 %v1700_v25 }
 0x188   : > { %v1639_v22 = vmul.f32 0.3275911, %v1575_v60  ;;  %v2471_v52 = vsub.f32 0.0, %v1575_v60  ;;  %v1607_v51 = vand.u32 2147483647, %v1415_v2  ;;  %v6051_v55 = vpop.eup %4785  ;;  %v6054_v59 = vsel %vm1447_vm2, -1.0, %v7282_v19 }
 0x189   : > { %7427 = vst [vmem:[#allocation176_spill] sm:$0xff] %v6045_v56  ;;  %7428 = vst [vmem:[#allocation177_spill] sm:$0xff] %v6048_v21  ;;  %v1382_v49 = vmul.f32 0.70710677, %v5613_v42  ;;  %v2682_v31 = vmul.f32 1.442695, %v2564_v11  ;;  %v6058_v47 = vpop.eup %4787  ;;  %4799 = vrcp.f32 %v1732_v48 }
 0x18a   : > { %7429 = vst [vmem:[#allocation178_spill] sm:$0xff] %v6051_v55  ;;  %7430 = vst [vmem:[#allocation179_spill] sm:$0xff] %v6054_v59  ;;  %v2535_v17 = vmul.f32 %v2471_v52, %v1575_v60  ;;  %v6056_v37 = vpop.f32.mrb[49].mxu1  ;;  %v1671_v29 = vmul.f32 0.3275911, %v1607_v51  ;;  %v2503_v34 = vsub.f32 0.0, %v1607_v51  ;;  %v6060_v21 = vpop.eup %4789  ;;  %4801 = vpow2.f32 %v2618_v20 }
 0x18b   : > { %7431 = vst [vmem:[#allocation180_spill] sm:$0xff] %v6056_v37  ;;  %7432 = vst [vmem:[#allocation181_spill] sm:$0xff] %v6058_v47  ;;  %v1574_v5 = vand.u32 2147483647, %v1382_v49  ;;  %v1703_v45 = vadd.f32 1.0, %v1639_v22  ;;  %vm1479_vm3 = vcmp.lt.f32.partialorder %v1415_v2, 0.0  ;;  %4803 = vpow2.f32 %v2682_v31 }
 0x18c   : > { %vm1446_vm4 = vcmp.lt.f32.partialorder %v1382_v49, 0.0  ;;  %v6062_v25 = vpop.f32.mrb[50].mxu1  ;;  %v2624_v11 = vmul.f32 1.442695, %v2535_v17  ;;  %v2567_v55 = vmul.f32 %v2503_v34, %v1607_v51  ;;  %v6065_v52 = vmul.f32 0.5, %v5613_v42  ;;  %v6071_v20 = vpop.eup %4791 }
 0x18d   : > { %7433 = vst [vmem:[#allocation182_spill] sm:$0xff] %v6062_v25  ;;  %v1638_v56 = vmul.f32 0.3275911, %v1574_v5  ;;  %v2470_v60 = vsub.f32 0.0, %v1574_v5  ;;  %v1414_v48 = vmul.f32 0.70710677, %v5620_v16  ;;  %4805 = vrcp.f32 %v1703_v45  ;;  %v6079_v17 = vpop.eup %4793 }
 0x18e   : > { %7434 = vst [vmem:[#allocation183_spill] sm:$0xff] %v6065_v52  ;;  %v1385_v47 = vmul.f32 0.70710677, %v5624_v28  ;;  %v6069_v59 = vpop.f32.mrb[51].mxu1  ;;  %7436 = vst [vmem:[#allocation185_spill] sm:$0xff] %v6071_v20  ;;  %v6074_v2 = vsel %vm1479_vm3, -1.0, %v7282_v19  ;;  %4807 = vpow2.f32 %v2624_v11 }
 0x18f   : > { %7435 = vst [vmem:[#allocation184_spill] sm:$0xff] %v6069_v59  ;;  %7437 = vst [vmem:[#allocation186_spill] sm:$0xff] %v6074_v2  ;;  %v1735_v22 = vadd.f32 1.0, %v1671_v29  ;;  %v6077_v34 = vsel %vm1446_vm4, -1.0, %v7282_v19  ;;  %v2534_v51 = vmul.f32 %v2470_v60, %v1574_v5  ;;  %v2688_v49 = vmul.f32 1.442695, %v2567_v55 }
 0x190   : > { %7438 = vst [vmem:[#allocation187_spill] sm:$0xff] %v6077_v34  ;;  %v1606_v42 = vand.u32 2147483647, %v1414_v48  ;;  %v1577_v31 = vand.u32 2147483647, %v1385_v47  ;;  %7439 = vst [vmem:[#allocation188_spill] sm:$0xff] %v6079_v17  ;;  %v6086_v2 = vpop.eup %4795 }
 0x191   : > { %v1702_v52 = vadd.f32 1.0, %v1638_v56  ;;  %v6082_v25 = vmul.f32 0.5, %v5620_v16  ;;  %vm1478_vm5 = vcmp.lt.f32.partialorder %v1414_v48, 0.0  ;;  %vm1449_vm6 = vcmp.lt.f32.partialorder %v1385_v47, 0.0  ;;  %v6084_v59 = vpop.f32.mrb[52].mxu1  ;;  %7442 = vst [vmem:[#allocation191_spill] sm:$0xff] %v6086_v2  ;;  %v6093_v16 = vpop.eup %4797 }
 0x192   : > { %7441 = vst [vmem:[#allocation190_spill] sm:$0xff] %v6084_v59  ;;  %v1670_v29 = vmul.f32 0.3275911, %v1606_v42  ;;  %v2502_v34 = vsub.f32 0.0, %v1606_v42  ;;  %v1641_v5 = vmul.f32 0.3275911, %v1577_v31  ;;  %4809 = vrcp.f32 %v1735_v22 }
 0x193   : > { %7440 = vst [vmem:[#allocation189_spill] sm:$0xff] %v6082_v25  ;;  %v6088_v45 = vpop.f32.mrb[53].mxu1  ;;  %v2622_v55 = vmul.f32 1.442695, %v2534_v51  ;;  %v2473_v60 = vsub.f32 0.0, %v1577_v31  ;;  %4811 = vpow2.f32 %v2688_v49  ;;  %v6096_v2 = vmul.f32 0.5, %v5624_v28  ;;  %v6100_v37 = vpop.eup %4799 }
 0x194   : > { %7443 = vst [vmem:[#allocation192_spill] sm:$0xff] %v6088_v45  ;;  %v1417_v56 = vmul.f32 0.70710677, %v5627_v57  ;;  %v6091_v17 = vpop.f32.mrb[54].mxu1  ;;  %v1734_v25 = vadd.f32 1.0, %v1670_v29  ;;  %v2566_v59 = vmul.f32 %v2502_v34, %v1606_v42  ;;  %7447 = vst [vmem:[#allocation196_spill] sm:$0xff] %v6100_v37  ;;  %v6103_v35 = vpop.eup %4801  ;;  %4813 = vrcp.f32 %v1702_v52 }
 0x195   : > { %7444 = vst [vmem:[#allocation193_spill] sm:$0xff] %v6091_v17  ;;  %7445 = vst [vmem:[#allocation194_spill] sm:$0xff] %v6096_v2  ;;  %v6098_v11 = vpop.f32.mrb[55].mxu1  ;;  %v1705_v45 = vadd.f32 1.0, %v1641_v5  ;;  %v2537_v22 = vmul.f32 %v2473_v60, %v1577_v31  ;;  %v1384_v20 = vmul.f32 0.70710677, %v5629_v15  ;;  %4815 = vpow2.f32 %v2622_v55  ;;  %v6118_v60 = vpop.eup %4803 }
 0x196   : > { %7446 = vst [vmem:[#allocation195_spill] sm:$0xff] %v6098_v11  ;;  %v1609_v51 = vand.u32 2147483647, %v1417_v56  ;;  %v6107_v49 = vsel %vm1478_vm5, -1.0, %v7282_v19  ;;  %v6111_v28 = vsel %vm1449_vm6, -1.0, %v7282_v19  ;;  %v6114_v34 = vmul.f32 0.5, %v5627_v57 }
 0x197   : > { %7448 = vst [vmem:[#allocation197_spill] sm:$0xff] %v6107_v49  ;;  %7449 = vst [vmem:[#allocation198_spill] sm:$0xff] %v6111_v28  ;;  %v2686_v42 = vmul.f32 1.442695, %v2566_v59  ;;  %v6116_v5 = vpop.f32.mrb[56].mxu1  ;;  %4817 = vrcp.f32 %v1734_v25  ;;  %vm1481_vm7 = vcmp.lt.f32.partialorder %v1417_v56, 0.0  ;;  %v6124_v57 = vpop.eup %4805 }
 0x198   : > { %7450 = vst [vmem:[#allocation199_spill] sm:$0xff] %v6114_v34  ;;  %v1673_v31 = vmul.f32 0.3275911, %v1609_v51  ;;  %v2505_v29 = vsub.f32 0.0, %v1609_v51  ;;  %7451 = vst [vmem:[#allocation200_spill] sm:$0xff] %v6116_v5  ;;  %4819 = vrcp.f32 %v1705_v45  ;;  %v6122_v37 = vmul.f32 0.5, %v5629_v15  ;;  %v6129_v56 = vpop.eup %4807 }
 0x199   : > { %7452 = vst [vmem:[#allocation201_spill] sm:$0xff] %v6118_v60  ;;  %v1576_v52 = vand.u32 2147483647, %v1384_v20  ;;  %v1416_v48 = vmul.f32 0.70710677, %v5636_v24  ;;  %4821 = vpow2.f32 %v2686_v42  ;;  %v6127_v60 = vsel %vm1481_vm7, -1.0, %v7282_v19 }
 0x19a   : > { %v2628_v47 = vmul.f32 1.442695, %v2537_v22  ;;  %v2569_v49 = vmul.f32 %v2505_v29, %v1609_v51  ;;  %7453 = vst [vmem:[#allocation202_spill] sm:$0xff] %v6122_v37  ;;  %v1737_v59 = vadd.f32 1.0, %v1673_v31  ;;  %7454 = vst [vmem:[#allocation203_spill] sm:$0xff] %v6127_v60  ;;  %vm1448_vm8 = vcmp.lt.f32.partialorder %v1384_v20, 0.0 }
 0x19b   : > { %v1640_v55 = vmul.f32 0.3275911, %v1576_v52  ;;  %v2472_v34 = vsub.f32 0.0, %v1576_v52  ;;  %v1608_v2 = vand.u32 2147483647, %v1416_v48  ;;  %7455 = vst [vmem:[#allocation204_spill] sm:$0xff] %v6129_v56 }
 0x19c   : > { %v2692_v25 = vmul.f32 1.442695, %v2569_v49  ;;  %v6131_v15 = vpop.eup %4809  ;;  %4823 = vpow2.f32 %v2628_v47  ;;  %vm1480_vm9 = vcmp.lt.f32.partialorder %v1416_v48, 0.0  ;;  %v1387_v31 = vmul.f32 0.70710677, %v5654_v41 }
 0x19d   : > { %v1704_v45 = vadd.f32 1.0, %v1640_v55  ;;  %v2536_v22 = vmul.f32 %v2472_v34, %v1576_v52  ;;  %v1672_v51 = vmul.f32 0.3275911, %v1608_v2  ;;  %v2504_v29 = vsub.f32 0.0, %v1608_v2  ;;  %7456 = vst [vmem:[#allocation205_spill] sm:$0xff] %v6131_v15  ;;  %v6135_v42 = vpop.eup %4811 }
 0x19e   : > { %v1419_v37 = vmul.f32 0.70710677, %v5656_v54  ;;  %7457 = vst [vmem:[#allocation206_spill] sm:$0xff] %v6135_v42  ;;  %4825 = vrcp.f32 %v1737_v59  ;;  %v6138_v49 = vmul.f32 0.5, %v5636_v24  ;;  %v1579_v52 = vand.u32 2147483647, %v1387_v31  ;;  %v6140_v28 = vpop.eup %4813 }
 0x19f   : > { %v2626_v60 = vmul.f32 1.442695, %v2536_v22  ;;  %v2568_v5 = vmul.f32 %v2504_v29, %v1608_v2  ;;  %4827 = vpow2.f32 %v2692_v25  ;;  %v1736_v34 = vadd.f32 1.0, %v1672_v51  ;;  %v6149_v22 = vpop.eup %4815 }
 0x1a0   : > { %7458 = vst [vmem:[#allocation207_spill] sm:$0xff] %v6138_v49  ;;  %v1611_v55 = vand.u32 2147483647, %v1419_v37  ;;  %v6144_v48 = vsel %vm1448_vm8, -1.0, %v7282_v19  ;;  %4829 = vrcp.f32 %v1704_v45  ;;  %v6147_v47 = vsel %vm1480_vm9, -1.0, %v7282_v19  ;;  %7461 = vst [vmem:[#allocation210_spill] sm:$0xff] %v6149_v22 }
 0x1a1   : > { %7459 = vst [vmem:[#allocation208_spill] sm:$0xff] %v6144_v48  ;;  %7460 = vst [vmem:[#allocation209_spill] sm:$0xff] %v6147_v47  ;;  %v2690_v59 = vmul.f32 1.442695, %v2568_v5  ;;  %vm1451_vm10 = vcmp.lt.f32.partialorder %v1387_v31, 0.0  ;;  %v2475_v2 = vsub.f32 0.0, %v1579_v52  ;;  %v6151_v51 = vpop.eup %4817  ;;  %4831 = vpow2.f32 %v2626_v60 }
 0x1a2   : > { %v1643_v24 = vmul.f32 0.3275911, %v1579_v52  ;;  %v1675_v25 = vmul.f32 0.3275911, %v1611_v55  ;;  %7462 = vst [vmem:[#allocation211_spill] sm:$0xff] %v6151_v51  ;;  %vm1483_vm11 = vcmp.lt.f32.partialorder %v1419_v37, 0.0  ;;  %v6154_v49 = vpop.eup %4819  ;;  %4833 = vrcp.f32 %v1736_v34 }
 0x1a3   : > { %v2507_v29 = vsub.f32 0.0, %v1611_v55  ;;  %v1386_v20 = vmul.f32 0.70710677, %v5658_v58  ;;  %7463 = vst [vmem:[#allocation212_spill] sm:$0xff] %v6154_v49  ;;  %v6157_v45 = vmul.f32 0.5, %v5654_v41  ;;  %v2539_v47 = vmul.f32 %v2475_v2, %v1579_v52  ;;  %v6160_v56 = vpop.eup %4821 }
 0x1a4   : > { %v1707_v5 = vadd.f32 1.0, %v1643_v24  ;;  %v1739_v42 = vadd.f32 1.0, %v1675_v25  ;;  %v1418_v22 = vmul.f32 0.70710677, %v5663_v18  ;;  %7465 = vst [vmem:[#allocation214_spill] sm:$0xff] %v6160_v56  ;;  %4835 = vpow2.f32 %v2690_v59 }
 0x1a5   : > { %7464 = vst [vmem:[#allocation213_spill] sm:$0xff] %v6157_v45  ;;  %v2571_v15 = vmul.f32 %v2507_v29, %v1611_v55  ;;  %v1578_v48 = vand.u32 2147483647, %v1386_v20  ;;  %v6164_v60 = vsel %vm1451_vm10, -1.0, %v7282_v19  ;;  %v6167_v51 = vmul.f32 0.5, %v5656_v54 }
 0x1a6   : > { %7466 = vst [vmem:[#allocation215_spill] sm:$0xff] %v6164_v60  ;;  %v6171_v41 = vsel %vm1483_vm11, -1.0, %v7282_v19  ;;  %v2632_v34 = vmul.f32 1.442695, %v2539_v47  ;;  %v6174_v52 = vmul.f32 0.5, %v5658_v58  ;;  %v6176_v2 = vpop.eup %4823  ;;  %4837 = vrcp.f32 %v1707_v5  ;;  %v6184_v47 = vpop.f32.mrb[57].mxu1 }
 0x1a7   : > { %7467 = vst [vmem:[#allocation216_spill] sm:$0xff] %v6167_v51  ;;  %7468 = vst [vmem:[#allocation217_spill] sm:$0xff] %v6171_v41  ;;  %v1642_v55 = vmul.f32 0.3275911, %v1578_v48  ;;  %v2474_v24 = vsub.f32 0.0, %v1578_v48  ;;  %vm1450_vm12 = vcmp.lt.f32.partialorder %v1386_v20, 0.0  ;;  %4839 = vrcp.f32 %v1739_v42 }
 0x1a8   : > { %7469 = vst [vmem:[#allocation218_spill] sm:$0xff] %v6174_v52  ;;  %7470 = vst [vmem:[#allocation219_spill] sm:$0xff] %v6176_v2  ;;  %v1610_v31 = vand.u32 2147483647, %v1418_v22  ;;  %v1389_v59 = vmul.f32 0.70710677, %v5673_v62  ;;  %v6179_v25 = vpop.eup %4825  ;;  %4841 = vpow2.f32 %v2632_v34 }
 0x1a9   : > { %7471 = vst [vmem:[#allocation220_spill] sm:$0xff] %v6179_v25  ;;  %v2696_v54 = vmul.f32 1.442695, %v2571_v15  ;;  %v2538_v37 = vmul.f32 %v2474_v24, %v1578_v48  ;;  %v6182_v29 = vmul.f32 0.5, %v5663_v18  ;;  %7473 = vst [vmem:[#allocation222_spill] sm:$0xff] %v6184_v47  ;;  %v6186_v58 = vpop.eup %4827  ;;  %v1706_v51 = vadd.f32 1.0, %v1642_v55 }
 0x1aa   : > { %7474 = vst [vmem:[#allocation223_spill] sm:$0xff] %v6186_v58  ;;  %v1674_v41 = vmul.f32 0.3275911, %v1610_v31  ;;  %v2506_v56 = vsub.f32 0.0, %v1610_v31  ;;  %v1581_v5 = vand.u32 2147483647, %v1389_v59  ;;  %v6188_v52 = vpop.eup %4829 }
 0x1ab   : > { %7472 = vst [vmem:[#allocation221_spill] sm:$0xff] %v6182_v29  ;;  %7475 = vst [vmem:[#allocation224_spill] sm:$0xff] %v6188_v52  ;;  %v6192_v25 = vsel %vm1450_vm12, -1.0, %v7282_v19  ;;  %v2630_v15 = vmul.f32 1.442695, %v2538_v37  ;;  %vm1482_vm13 = vcmp.lt.f32.partialorder %v1418_v22, 0.0  ;;  %v6196_v58 = vpop.eup %4831  ;;  %4843 = vpow2.f32 %v2696_v54 }
 0x1ac   : > { %7476 = vst [vmem:[#allocation225_spill] sm:$0xff] %v6192_v25  ;;  %v6194_v42 = vpop.f32.mrb[58].mxu1  ;;  %v1738_v18 = vadd.f32 1.0, %v1674_v41  ;;  %v2570_v48 = vmul.f32 %v2506_v56, %v1610_v31  ;;  %v1645_v24 = vmul.f32 0.3275911, %v1581_v5  ;;  %v2477_v29 = vsub.f32 0.0, %v1581_v5  ;;  %v6204_v47 = vpop.eup %4833 }
 0x1ad   : > { %7477 = vst [vmem:[#allocation226_spill] sm:$0xff] %v6194_v42  ;;  %7478 = vst [vmem:[#allocation227_spill] sm:$0xff] %v6196_v58  ;;  %vm1453_vm14 = vcmp.lt.f32.partialorder %v1389_v59, 0.0  ;;  %v6199_v55 = vmul.f32 0.70710677, %v5675_v1  ;;  %v7480_v34 = vld [vmem:[#allocation70_spill] sm:$0xff]  ;;  %4845 = vrcp.f32 %v1706_v51 }
 0x1ae   : > { %v1388_v45 = vmul.f32 0.70710677, %v7480_v34  ;;  %v6202_v20 = vpop.f32.mrb[59].mxu1  ;;  %7482 = vst [vmem:[#allocation229_spill] sm:$0xff] %v6204_v47  ;;  %v2694_v37 = vmul.f32 1.442695, %v2570_v48  ;;  %v2541_v41 = vmul.f32 %v2477_v29, %v1581_v5  ;;  %4847 = vpow2.f32 %v2630_v15  ;;  %v6210_v25 = vpop.eup %4835 }
 0x1af   : > { %7479 = vst [vmem:[#allocation228_spill] sm:$0xff] %v6199_v55  ;;  %7481 = vst [vmem:[#allocation70_spill] sm:$0xff] %v6202_v20  ;;  %v1709_v42 = vadd.f32 1.0, %v1645_v24  ;;  %v6207_v56 = vmul.f32 0.5, %v5673_v62  ;;  %v1613_v31 = vand.u32 2147483647, %v6199_v55  ;;  %4849 = vrcp.f32 %v1738_v18 }
 0x1b0   : > { %v1580_v54 = vand.u32 2147483647, %v1388_v45  ;;  %7484 = vst [vmem:[#allocation231_spill] sm:$0xff] %v6210_v25  ;;  %v6214_v1 = vsel %vm1482_vm13, -1.0, %v7282_v19  ;;  %v6218_v51 = vsel %vm1453_vm14, -1.0, %v7282_v19  ;;  %v6220_v29 = vpop.f32.mrb[60].mxu1  ;;  %4851 = vpow2.f32 %v2694_v37  ;;  %v6224_v55 = vpop.eup %4837 }
 0x1b1   : > { %7483 = vst [vmem:[#allocation230_spill] sm:$0xff] %v6207_v56  ;;  %7485 = vst [vmem:[#allocation232_spill] sm:$0xff] %v6214_v1  ;;  %v2636_v48 = vmul.f32 1.442695, %v2541_v41  ;;  %v1677_v62 = vmul.f32 0.3275911, %v1613_v31  ;;  %4853 = vrcp.f32 %v1709_v42  ;;  %v6234_v41 = vpop.eup %4839 }
 0x1b2   : > { %7486 = vst [vmem:[#allocation233_spill] sm:$0xff] %v6218_v51  ;;  %7487 = vst [vmem:[#allocation234_spill] sm:$0xff] %v6220_v29  ;;  %v2509_v5 = vsub.f32 0.0, %v1613_v31  ;;  %v1644_v15 = vmul.f32 0.3275911, %v1580_v54  ;;  %v6222_v24 = vpop.f32.mrb[61].mxu1  ;;  %v6241_v60 = vpop.eup %4841 }
 0x1b3   : > { %7488 = vst [vmem:[#allocation235_spill] sm:$0xff] %v6222_v24  ;;  %7489 = vst [vmem:[#allocation236_spill] sm:$0xff] %v6224_v55  ;;  %v6227_v22 = vmul.f32 0.5, %v7480_v34  ;;  %v2476_v18 = vsub.f32 0.0, %v1580_v54  ;;  %v7491_v1 = vld [vmem:[#allocation71_spill] sm:$0xff]  ;;  %v6232_v25 = vpop.f32.mrb[62].mxu1  ;;  %4855 = vpow2.f32 %v2636_v48 }
 0x1b4   : > { %v6230_v59 = vmul.f32 0.70710677, %v7491_v1  ;;  %7493 = vst [vmem:[#allocation239_spill] sm:$0xff] %v6232_v25  ;;  %7494 = vst [vmem:[#allocation240_spill] sm:$0xff] %v6234_v41  ;;  %v1741_v37 = vadd.f32 1.0, %v1677_v62  ;;  %v2573_v47 = vmul.f32 %v2509_v5, %v1613_v31  ;;  %v1708_v56 = vadd.f32 1.0, %v1644_v15 }
 0x1b5   : > { %7490 = vst [vmem:[#allocation237_spill] sm:$0xff] %v6227_v22  ;;  %v7495_v29 = vld [vmem:[#allocation16_spill] sm:$0xff]  ;;  %v6237_v24 = vpop.f32.mrb[63].mxu1  ;;  %v2540_v42 = vmul.f32 %v2476_v18, %v1580_v54  ;;  %v7497_v22 = vld [vmem:[#allocation22_spill] sm:$0xff]  ;;  %vm1452_vm15 = vcmp.lt.f32.partialorder %v1388_v45, 0.0  ;;  %v6245_v41 = vpop.eup %4843  ;;  %v7501_v18 = vld [vmem:[#allocation29_spill] sm:$0xff] }
 0x1b6   : > { %7492 = vst [vmem:[#allocation238_spill] sm:$0xff] %v6230_v59  ;;  %v1871_v20 = vmul.f32 1.0614054, %v7495_v29  ;;  %7496 = vst [vmem:[#allocation16_spill] sm:$0xff] %v6237_v24  ;;  %v1612_v34 = vand.u32 2147483647, %v6230_v59  ;;  %4857 = vrcp.f32 %v1741_v37 }
 0x1b7   : > { %v1870_v51 = vmul.f32 1.0614054, %v7497_v22  ;;  %7498 = vst [vmem:[#allocation22_spill] sm:$0xff] %v6241_v60  ;;  %v2700_v1 = vmul.f32 1.442695, %v2573_v47  ;;  %4859 = vrcp.f32 %v1708_v56  ;;  %v6243_v15 = vpop.f32.mrb[64].mxu1  ;;  %v6249_v24 = vpop.eup %4845 }
 0x1b8   : > { %v1935_v25 = vadd.f32 -1.4531521, %v1871_v20  ;;  %v2634_v62 = vmul.f32 1.442695, %v2540_v42  ;;  %v1676_v31 = vmul.f32 0.3275911, %v1612_v34  ;;  %v6254_v56 = vpop.eup %4847 }
 0x1b9   : > { %v2508_v5 = vsub.f32 0.0, %v1612_v34  ;;  %7499 = vst [vmem:[#allocation241_spill] sm:$0xff] %v6243_v15  ;;  %7500 = vst [vmem:[#allocation242_spill] sm:$0xff] %v6245_v41  ;;  %4861 = vpow2.f32 %v2700_v1  ;;  %v1934_v48 = vadd.f32 -1.4531521, %v1870_v51  ;;  %v6252_v47 = vsel %vm1452_vm15, -1.0, %v7282_v19 }
 0x1ba   : > { %v1999_v54 = vmul.f32 %v7495_v29, %v1935_v25  ;;  %v1873_v59 = vmul.f32 1.0614054, %v7501_v18  ;;  %7502 = vst [vmem:[#allocation29_spill] sm:$0xff] %v6249_v24  ;;  %7503 = vst [vmem:[#allocation243_spill] sm:$0xff] %v6252_v47  ;;  %4863 = vpow2.f32 %v2634_v62  ;;  %v1740_v45 = vadd.f32 1.0, %v1676_v31  ;;  %v7505_v1 = vld [vmem:[#allocation37_spill] sm:$0xff]  ;;  %v6258_v25 = vpop.eup %4849 }
 0x1bb   : > { %v2572_v20 = vmul.f32 %v2508_v5, %v1612_v34  ;;  %7504 = vst [vmem:[#allocation244_spill] sm:$0xff] %v6254_v56  ;;  %v1998_v42 = vmul.f32 %v7497_v22, %v1934_v48  ;;  %v1872_v15 = vmul.f32 1.0614054, %v7505_v1  ;;  %7506 = vst [vmem:[#allocation37_spill] sm:$0xff] %v6258_v25  ;;  %v7507_v60 = vld [vmem:[#allocation47_spill] sm:$0xff]  ;;  %v7508_v2 = vld [vmem:[#allocation54_spill] sm:$0xff]  ;;  %v6262_v47 = vpop.eup %4851 }
 0x1bc   : > { %v2063_v37 = vadd.f32 1.4214138, %v1999_v54  ;;  %v1937_v41 = vadd.f32 -1.4531521, %v1873_v59  ;;  %4865 = vrcp.f32 %v1740_v45  ;;  %v1875_v58 = vmul.f32 1.0614054, %v7507_v60  ;;  %v6266_v54 = vpop.eup %4853 }
 0x1bd   : > { %v2698_v51 = vmul.f32 1.442695, %v2572_v20  ;;  %v1874_v19 = vmul.f32 1.0614054, %v7508_v2  ;;  %7509 = vst [vmem:[#allocation47_spill] sm:$0xff] %v6262_v47  ;;  %7510 = vst [vmem:[#allocation54_spill] sm:$0xff] %v6266_v54  ;;  %v6271_v47 = vpop.eup %4855 }
 0x1be   : > { %v2127_v34 = vmul.f32 %v7495_v29, %v2063_v37  ;;  %v2062_v62 = vadd.f32 1.4214138, %v1998_v42  ;;  %v2001_v31 = vmul.f32 %v7501_v18, %v1937_v41  ;;  %v1936_v5 = vadd.f32 -1.4531521, %v1872_v15  ;;  %v7511_v25 = vld [vmem:[#allocation59_spill] sm:$0xff]  ;;  %v7513_v42 = vld [vmem:[#allocation72_spill] sm:$0xff] }
 0x1bf   : > { %4867 = vpow2.f32 %v2698_v51  ;;  %v1939_v59 = vadd.f32 -1.4531521, %v1875_v58  ;;  %v1938_v48 = vadd.f32 -1.4531521, %v1874_v19  ;;  %v1877_v45 = vmul.f32 1.0614054, %v7511_v25 }
 0x1c0   : > { %v2191_v20 = vadd.f32 -0.28449672, %v2127_v34  ;;  %v2126_v56 = vmul.f32 %v7497_v22, %v2062_v62  ;;  %v2065_v11 = vadd.f32 1.4214138, %v2001_v31  ;;  %v2000_v24 = vmul.f32 %v7505_v1, %v1936_v5  ;;  %7512 = vst [vmem:[#allocation59_spill] sm:$0xff] %v6271_v47  ;;  %v6276_v51 = vpop.eup %4857 }
 0x1c1   : > { %v2003_v37 = vmul.f32 %v7507_v60, %v1939_v59  ;;  %v2002_v41 = vmul.f32 %v7508_v2, %v1938_v48  ;;  %v1941_v15 = vadd.f32 -1.4531521, %v1877_v45  ;;  %v1876_v54 = vmul.f32 1.0614054, %v7513_v42  ;;  %7514 = vst [vmem:[#allocation72_spill] sm:$0xff] %v6276_v51  ;;  %v6280_v31 = vpop.eup %4859 }
 0x1c2   : > { %v2255_v19 = vmul.f32 %v7495_v29, %v2191_v20  ;;  %v2190_v58 = vadd.f32 -0.28449672, %v2126_v56  ;;  %v2129_v34 = vmul.f32 %v7501_v18, %v2065_v11  ;;  %v2064_v62 = vadd.f32 1.4214138, %v2000_v24  ;;  %7515 = vst [vmem:[#allocation245_spill] sm:$0xff] %v6280_v31  ;;  %v7519_v31 = vld [vmem:[#allocation18_spill] sm:$0xff] }
 0x1c3   : > { %v2067_v5 = vadd.f32 1.4214138, %v2003_v37  ;;  %v2066_v55 = vadd.f32 1.4214138, %v2002_v41  ;;  %v2005_v47 = vmul.f32 %v7511_v25, %v1941_v15  ;;  %v1940_v59 = vadd.f32 -1.4531521, %v1876_v54  ;;  %v6283_v17 = vpop.eup %4861 }
 0x1c4   : > { %7516 = vst [vmem:[#allocation246_spill] sm:$0xff] %v6283_v17  ;;  %v2319_v48 = vadd.f32 0.2548296, %v2255_v19  ;;  %v2254_v45 = vmul.f32 %v7497_v22, %v2190_v58  ;;  %v2193_v52 = vadd.f32 -0.28449672, %v2129_v34  ;;  %v2128_v51 = vmul.f32 %v7505_v1, %v2064_v62  ;;  %v6287_v20 = vpop.eup %4863 }
 0x1c5   : > { %7517 = vst [vmem:[#allocation247_spill] sm:$0xff] %v6287_v20  ;;  %v2131_v11 = vmul.f32 %v7507_v60, %v2067_v5  ;;  %v2130_v24 = vmul.f32 %v7508_v2, %v2066_v55  ;;  %v2069_v56 = vadd.f32 1.4214138, %v2005_v47  ;;  %v2004_v37 = vmul.f32 %v7513_v42, %v1940_v59 }
 0x1c6   : > { %v2383_v41 = vmul.f32 %v7495_v29, %v2319_v48  ;;  %v2318_v54 = vadd.f32 0.2548296, %v2254_v45  ;;  %v2257_v15 = vmul.f32 %v7501_v18, %v2193_v52  ;;  %v2192_v19 = vadd.f32 -0.28449672, %v2128_v51  ;;  %v6294_v17 = vpop.eup %4865 }
 0x1c7   : > { %7518 = vst [vmem:[#allocation248_spill] sm:$0xff] %v6294_v17  ;;  %v2195_v58 = vadd.f32 -0.28449672, %v2131_v11  ;;  %v2194_v34 = vadd.f32 -0.28449672, %v2130_v24  ;;  %v2133_v62 = vmul.f32 %v7511_v25, %v2069_v56  ;;  %v7521_v11 = vld [vmem:[#allocation24_spill] sm:$0xff] }
 0x1c8   : > { %v2068_v20 = vadd.f32 1.4214138, %v2004_v37  ;;  %v2703_v5 = vmul.f32 %v7519_v31, %v2383_v41  ;;  %v2382_v55 = vmul.f32 %v7497_v22, %v2318_v54  ;;  %v2321_v47 = vadd.f32 0.2548296, %v2257_v15  ;;  %v6307_v37 = vpop.f32.mrb[65].mxu1 }
 0x1c9   : > { %v2256_v59 = vmul.f32 %v7505_v1, %v2192_v19  ;;  %v6300_v49 = vpop.eup %4867  ;;  %v2259_v29 = vmul.f32 %v7507_v60, %v2195_v58  ;;  %v2258_v52 = vmul.f32 %v7508_v2, %v2194_v34  ;;  %v2197_v51 = vadd.f32 -0.28449672, %v2133_v62  ;;  %v7522_v19 = vld [vmem:[#allocation4_spill] sm:$0xff]  ;;  %v7523_v62 = vld [vmem:[#allocation31_spill] sm:$0xff] }
 0x1ca   : > { %7520 = vst [vmem:[#allocation18_spill] sm:$0xff] %v6300_v49  ;;  %v2132_v48 = vmul.f32 %v7513_v42, %v2068_v20  ;;  %v2767_v45 = vsub.f32 1.0, %v2703_v5  ;;  %v2702_v24 = vmul.f32 %v7521_v11, %v2382_v55  ;;  %v2385_v56 = vmul.f32 %v7501_v18, %v2321_v47  ;;  %v6313_v5 = vpop.f32.mrb[66].mxu1  ;;  %v7525_v11 = vld [vmem:[#allocation42_spill] sm:$0xff] }
 0x1cb   : > { %v2320_v31 = vadd.f32 0.2548296, %v2256_v59  ;;  %vm3151_vm0 = vcmask 64512   ;;  %v2323_v22 = vadd.f32 0.2548296, %v2259_v29  ;;  %v2261_v54 = vmul.f32 %v7511_v25, %v2197_v51 }
 0x1cc   : > { %v2322_v41 = vadd.f32 0.2548296, %v2258_v52  ;;  %v2196_v15 = vadd.f32 -0.28449672, %v2132_v48  ;;  %v2831_v58 = vmul.f32 %v2767_v45, %v7522_v19  ;;  %v2766_v34 = vsub.f32 1.0, %v2702_v24  ;;  %v7524_v52 = vld [vmem:[#allocation8_spill] sm:$0xff] }
 0x1cd   : > { %v2705_v49 = vmul.f32 %v7523_v62, %v2385_v56  ;;  %v2384_v20 = vmul.f32 %v7505_v1, %v2320_v31  ;;  %v2387_v18 = vmul.f32 %v7507_v60, %v2323_v22  ;;  %v2325_v47 = vadd.f32 0.2548296, %v2261_v54  ;;  %v6320_v24 = vpop.f32.mrb[67].mxu1  ;;  %v7526_v56 = vld [vmem:[#allocation48_spill] sm:$0xff]  ;;  %v7528_v22 = vld [vmem:[#allocation2_spill] sm:$0xff] }
 0x1ce   : > { %v2386_v55 = vmul.f32 %v7508_v2, %v2322_v41  ;;  %v2260_v59 = vmul.f32 %v7513_v42, %v2196_v15  ;;  %v2895_v29 = vadd.f32 1.0, %v2831_v58  ;;  %v2830_v51 = vmul.f32 %v2766_v34, %v7524_v52  ;;  %v7527_v1 = vld [vmem:[#allocation56_spill] sm:$0xff]  ;;  %v6327_v17 = vpop.f32.mrb[68].mxu1 }
 0x1cf   : > { %v2769_v48 = vsub.f32 1.0, %v2705_v49  ;;  %v2704_v45 = vmul.f32 %v7525_v11, %v2384_v20  ;;  %v2707_v19 = vmul.f32 %v7526_v56, %v2387_v18  ;;  %v2389_v62 = vmul.f32 %v7511_v25, %v2325_v47  ;;  %v7529_v54 = vld [vmem:[#allocation12_spill] sm:$0xff]  ;;  %7530 = vst [vmem:[#allocation24_spill] sm:$0xff] %v6327_v17  ;;  %v7532_v18 = vld [vmem:[#allocation75_spill] sm:$0xff] }
 0x1d0   : > { %v2706_v31 = vmul.f32 %v7527_v1, %v2386_v55  ;;  %v2324_v60 = vadd.f32 0.2548296, %v2260_v59  ;;  %v2959_v2 = vmul.f32 %v2895_v29, %v7528_v22  ;;  %v2894_v41 = vadd.f32 1.0, %v2830_v51  ;;  %v7531_v20 = vld [vmem:[#allocation64_spill] sm:$0xff]  ;;  %v7533_v55 = vld [vmem:[#allocation6_spill] sm:$0xff]  ;;  %v7534_v47 = vld [vmem:[#allocation19_spill] sm:$0xff] }
 0x1d1   : > { %v2833_v15 = vmul.f32 %v2769_v48, %v7529_v54  ;;  %v2768_v58 = vsub.f32 1.0, %v2704_v45  ;;  %v2771_v49 = vsub.f32 1.0, %v2707_v19  ;;  %v2709_v52 = vmul.f32 %v7531_v20, %v2389_v62  ;;  %v6334_v29 = vpop.f32.mrb[69].mxu1  ;;  %v7535_v51 = vld [vmem:[#allocation27_spill] sm:$0xff]  ;;  %v7536_v45 = vld [vmem:[#allocation33_spill] sm:$0xff]  ;;  %v7538_v62 = vld [vmem:[#allocation10_spill] sm:$0xff] }
 0x1d2   : > { %v2770_v34 = vsub.f32 1.0, %v2706_v31  ;;  %v2388_v11 = vmul.f32 %v7513_v42, %v2324_v60  ;;  %v3023_v56 = vmul.f32 %v7532_v18, %v2959_v2  ;;  %v2958_v1 = vmul.f32 %v2894_v41, %v7533_v55  ;;  %v7537_v19 = vld [vmem:[#allocation73_spill] sm:$0xff]  ;;  %v6339_v17 = vpop.f32.mrb[70].mxu1 }
 0x1d3   : > { %v2897_v25 = vadd.f32 1.0, %v2833_v15  ;;  %v2832_v59 = vmul.f32 %v2768_v58, %v7534_v47  ;;  %v2835_v48 = vmul.f32 %v2771_v49, %v7535_v51  ;;  %v2773_v54 = vsub.f32 1.0, %v2709_v52  ;;  %v6344_v15 = vpop.f32.mrb[71].mxu1  ;;  %v7539_v18 = vld [vmem:[#allocation41_spill] sm:$0xff]  ;;  %v7540_v52 = vld [vmem:[#allocation14_spill] sm:$0xff] }
 0x1d4   : > { %v2834_v22 = vmul.f32 %v2770_v34, %v7536_v45  ;;  %v2708_v31 = vmul.f32 %v7537_v19, %v2388_v11  ;;  %v3022_v42 = vmul.f32 %v2958_v1, %v5798_v6  ;;  %v1879_v41 = vmul.f32 1.0614054, %v5706_v63  ;;  %v7541_v1 = vld [vmem:[#allocation23_spill] sm:$0xff]  ;;  %v7543_v45 = vld [vmem:[#allocation52_spill] sm:$0xff] }
 0x1d5   : > { %v2961_v60 = vmul.f32 %v2897_v25, %v7538_v62  ;;  %v2896_v2 = vadd.f32 1.0, %v2832_v59  ;;  %v2899_v58 = vadd.f32 1.0, %v2835_v48  ;;  %v2837_v49 = vmul.f32 %v2773_v54, %v7539_v18  ;;  %v7542_v59 = vld [vmem:[#allocation30_spill] sm:$0xff]  ;;  %v6355_v54 = vpop.f32.mrb[72].mxu1 }
 0x1d6   : > { %v2898_v20 = vadd.f32 1.0, %v2834_v22  ;;  %v2772_v55 = vsub.f32 1.0, %v2708_v31  ;;  %4486 = vmatprep.mubr.msk.f32.mxu0 %vm3151_vm0, %v3022_v42  ;;  %v1943_v47 = vadd.f32 -1.4531521, %v1879_v41  ;;  %v1878_v6 = vmul.f32 1.0614054, %v5734_v53 }
 0x1d7   : > { %v3025_v34 = vmul.f32 %v5804_v13, %v2961_v60  ;;  %v2960_v11 = vmul.f32 %v2896_v2, %v7540_v52  ;;  %4487 = vmatmul.mubr.msk.f32.vlgmr.msra.gmra.mrb[32].mxu0 %vm3151_vm0, %v3023_v56  ;;  %v2963_v25 = vmul.f32 %v2899_v58, %v7541_v1  ;;  %v2901_v48 = vadd.f32 1.0, %v2837_v49  ;;  %v7544_v60 = vld [vmem:[#allocation39_spill] sm:$0xff] }
 0x1d8   : > { %v2962_v51 = vmul.f32 %v2898_v20, %v7542_v59  ;;  %v2836_v22 = vmul.f32 %v2772_v55, %v7543_v45  ;;  %v2007_v19 = vmul.f32 %v5706_v63, %v1943_v47  ;;  %v1942_v31 = vadd.f32 -1.4531521, %v1878_v6  ;;  %v7545_v55 = vld [vmem:[#allocation45_spill] sm:$0xff] }
 0x1d9   : > { %v3024_v13 = vmul.f32 %v2960_v11, %v5811_v14  ;;  %v1881_v42 = vmul.f32 1.0614054, %v5750_v10  ;;  %v3027_v62 = vmul.f32 %v5826_v3, %v2963_v25  ;;  %v2965_v2 = vmul.f32 %v2901_v48, %v7544_v60  ;;  %v7546_v3 = vld [vmem:[#allocation109_spill] sm:$0xff] }
 0x1da   : > { %v3026_v56 = vmul.f32 %v2962_v51, %v5830_v43  ;;  %v2900_v41 = vadd.f32 1.0, %v2836_v22  ;;  %v2071_v58 = vadd.f32 1.4214138, %v2007_v19  ;;  %v2006_v20 = vmul.f32 %v5734_v53, %v1942_v31 }
 0x1db   : > { %4489 = vmatprep.mubr.msk.f32.mxu0 %vm3151_vm0, %v3024_v13  ;;  %v1945_v18 = vadd.f32 -1.4531521, %v1881_v42  ;;  %v1880_v14 = vmul.f32 1.0614054, %v5770_v9  ;;  %v3029_v49 = vmul.f32 %v5833_v0, %v2965_v2  ;;  %v1883_v11 = vmul.f32 1.0614054, %v7546_v3 }
 0x1dc   : > { %4490 = vmatmul.mubr.msk.f32.gmra.mrb[34].mxu0 %vm3151_vm0, %v3025_v34  ;;  %v2964_v52 = vmul.f32 %v2900_v41, %v7545_v55  ;;  %v1882_v43 = vmul.f32 1.0614054, %v5835_v12  ;;  %v2135_v47 = vmul.f32 %v5706_v63, %v2071_v58  ;;  %v2070_v6 = vadd.f32 1.4214138, %v2006_v20 }
 0x1dd   : > { %4492 = vmatprep.mubr.msk.f32.mxu0 %vm3151_vm0, %v3026_v56  ;;  %v2009_v1 = vmul.f32 %v5750_v10, %v1945_v18  ;;  %v1944_v25 = vadd.f32 -1.4531521, %v1880_v14  ;;  %v1947_v51 = vadd.f32 -1.4531521, %v1883_v11  ;;  %v1885_v0 = vmul.f32 1.0614054, %v5866_v33 }
 0x1de   : > { %v3028_v59 = vmul.f32 %v2964_v52, %v5840_v7  ;;  %v1946_v34 = vadd.f32 -1.4531521, %v1882_v43  ;;  %v2199_v48 = vadd.f32 -0.28449672, %v2135_v47  ;;  %v2134_v45 = vmul.f32 %v5734_v53, %v2070_v6 }
 0x1df   : > { %v2073_v22 = vadd.f32 1.4214138, %v2009_v1  ;;  %v2008_v13 = vmul.f32 %v5770_v9, %v1944_v25  ;;  %v2011_v19 = vmul.f32 %v7546_v3, %v1947_v51  ;;  %v1949_v42 = vadd.f32 -1.4531521, %v1885_v0 }
 0x1e0   : > { %4493 = vmatmul.mubr.msk.f32.gmra.mrb[36].mxu0 %vm3151_vm0, %v3027_v62  ;;  %v2010_v31 = vmul.f32 %v5835_v12, %v1946_v34  ;;  %v1884_v56 = vmul.f32 1.0614054, %v5885_v4  ;;  %v2263_v7 = vmul.f32 %v5706_v63, %v2199_v48  ;;  %v2198_v60 = vadd.f32 -0.28449672, %v2134_v45 }
 0x1e1   : > { %4495 = vmatprep.mubr.msk.f32.mxu0 %vm3151_vm0, %v3028_v59  ;;  %v2137_v2 = vmul.f32 %v5750_v10, %v2073_v22  ;;  %v2072_v41 = vadd.f32 1.4214138, %v2008_v13  ;;  %v2075_v58 = vadd.f32 1.4214138, %v2011_v19  ;;  %v2013_v18 = vmul.f32 %v5866_v33, %v1949_v42  ;;  %v7547_v13 = vld [vmem:[#allocation82_spill] sm:$0xff] }
 0x1e2   : > { %v2074_v20 = vadd.f32 1.4214138, %v2010_v31  ;;  %v1948_v62 = vadd.f32 -1.4531521, %v1884_v56  ;;  %v2327_v14 = vadd.f32 0.2548296, %v2263_v7  ;;  %v2262_v55 = vmul.f32 %v5734_v53, %v2198_v60 }
 0x1e3   : > { %v2201_v52 = vadd.f32 -0.28449672, %v2137_v2  ;;  %v2136_v11 = vmul.f32 %v5770_v9, %v2072_v41  ;;  %v2139_v43 = vmul.f32 %v7546_v3, %v2075_v58  ;;  %v2077_v6 = vadd.f32 1.4214138, %v2013_v18  ;;  %v7548_v41 = vld [vmem:[#allocation89_spill] sm:$0xff] }
 0x1e4   : > { %4496 = vmatmul.mubr.msk.f32.gmra.mrb[38].mxu0 %vm3151_vm0, %v3029_v49  ;;  %v2138_v47 = vmul.f32 %v5835_v12, %v2074_v20  ;;  %v2012_v1 = vmul.f32 %v5885_v4, %v1948_v62  ;;  %v2391_v25 = vmul.f32 %v5706_v63, %v2327_v14  ;;  %v2326_v59 = vadd.f32 0.2548296, %v2262_v55  ;;  %v6403_v62 = vpop.f32.mrb[73].mxu1 }
 0x1e5   : > { %v2265_v51 = vmul.f32 %v5750_v10, %v2201_v52  ;;  %v2200_v34 = vadd.f32 -0.28449672, %v2136_v11  ;;  %v2203_v0 = vadd.f32 -0.28449672, %v2139_v43  ;;  %v2141_v45 = vmul.f32 %v5866_v33, %v2077_v6  ;;  %v7549_v11 = vld [vmem:[#allocation61_spill] sm:$0xff]  ;;  %v7550_v6 = vld [vmem:[#allocation95_spill] sm:$0xff] }
 0x1e6   : > { %v2202_v48 = vadd.f32 -0.28449672, %v2138_v47  ;;  %v2076_v22 = vadd.f32 1.4214138, %v2012_v1  ;;  %v2711_v49 = vmul.f32 %v7547_v13, %v2391_v25  ;;  %v2390_v19 = vmul.f32 %v5734_v53, %v2326_v59  ;;  %v6409_v59 = vpop.f32.mrb[74].mxu1 }
 0x1e7   : > { %v2329_v31 = vadd.f32 0.2548296, %v2265_v51  ;;  %v2264_v42 = vmul.f32 %v5770_v9, %v2200_v34  ;;  %v2267_v56 = vmul.f32 %v7546_v3, %v2203_v0  ;;  %v2205_v7 = vadd.f32 -0.28449672, %v2141_v45  ;;  %v7551_v45 = vld [vmem:[#allocation67_spill] sm:$0xff] }
 0x1e8   : > { %v2266_v63 = vmul.f32 %v5835_v12, %v2202_v48  ;;  %v2140_v60 = vmul.f32 %v5885_v4, %v2076_v22  ;;  %v2775_v2 = vsub.f32 1.0, %v2711_v49  ;;  %v2710_v58 = vmul.f32 %v7548_v41, %v2390_v19  ;;  %v7552_v49 = vld [vmem:[#allocation103_spill] sm:$0xff] }
 0x1e9   : > { %v2393_v20 = vmul.f32 %v5750_v10, %v2329_v31  ;;  %v2328_v18 = vadd.f32 0.2548296, %v2264_v42  ;;  %v2331_v14 = vadd.f32 0.2548296, %v2267_v56  ;;  %v2269_v55 = vmul.f32 %v5866_v33, %v2205_v7  ;;  %v6416_v31 = vpop.f32.mrb[75].mxu1  ;;  %v7553_v42 = vld [vmem:[#allocation111_spill] sm:$0xff] }
 0x1ea   : > { %v2330_v53 = vadd.f32 0.2548296, %v2266_v63  ;;  %v2204_v52 = vadd.f32 -0.28449672, %v2140_v60  ;;  %v2839_v43 = vmul.f32 %v2775_v2, %v7549_v11  ;;  %v2774_v47 = vsub.f32 1.0, %v2710_v58  ;;  %v7554_v7 = vld [vmem:[#allocation55_spill] sm:$0xff] }
 0x1eb   : > { %v2713_v1 = vmul.f32 %v7550_v6, %v2393_v20  ;;  %v2392_v25 = vmul.f32 %v5770_v9, %v2328_v18  ;;  %v2395_v51 = vmul.f32 %v7546_v3, %v2331_v14  ;;  %v2333_v34 = vadd.f32 0.2548296, %v2269_v55  ;;  %v7555_v2 = vld [vmem:[#allocation78_spill] sm:$0xff]  ;;  %v6423_v20 = vpop.f32.mrb[76].mxu1 }
 0x1ec   : > { %v2394_v10 = vmul.f32 %v5835_v12, %v2330_v53  ;;  %v2268_v0 = vmul.f32 %v5885_v4, %v2204_v52  ;;  %v2903_v48 = vadd.f32 1.0, %v2839_v43  ;;  %v2838_v22 = vmul.f32 %v2774_v47, %v7551_v45  ;;  %v7557_v43 = vld [vmem:[#allocation85_spill] sm:$0xff]  ;;  %v6430_v6 = vpop.f32.mrb[77].mxu1 }
 0x1ed   : > { %v2777_v13 = vsub.f32 1.0, %v2713_v1  ;;  %v2712_v19 = vmul.f32 %v7552_v49, %v2392_v25  ;;  %v2715_v56 = vmul.f32 %v7553_v42, %v2395_v51  ;;  %v2397_v63 = vmul.f32 %v5866_v33, %v2333_v34  ;;  %v7558_v1 = vld [vmem:[#allocation93_spill] sm:$0xff]  ;;  %v7559_v51 = vld [vmem:[#allocation99_spill] sm:$0xff] }
 0x1ee   : > { %v2714_v9 = vmul.f32 %v5845_v50, %v2394_v10  ;;  %v2332_v3 = vadd.f32 0.2548296, %v2268_v0  ;;  %v2967_v12 = vmul.f32 %v2903_v48, %v7554_v7  ;;  %v2902_v60 = vadd.f32 1.0, %v2838_v22  ;;  %v7556_v50 = vld [vmem:[#allocation63_spill] sm:$0xff]  ;;  %v6435_v48 = vpop.f32.mrb[78].mxu1  ;;  %v7561_v22 = vld [vmem:[#allocation132_spill] sm:$0xff] }
 0x1ef   : > { %v2841_v41 = vmul.f32 %v2777_v13, %v7555_v2  ;;  %v2776_v58 = vsub.f32 1.0, %v2712_v19  ;;  %v2779_v18 = vsub.f32 1.0, %v2715_v56  ;;  %v2717_v53 = vmul.f32 %v5871_v23, %v2397_v63  ;;  %v6440_v49 = vpop.f32.mrb[79].mxu1  ;;  %v7562_v56 = vld [vmem:[#allocation107_spill] sm:$0xff] }
 0x1f0   : > { %v2778_v14 = vsub.f32 1.0, %v2714_v9  ;;  %v2396_v55 = vmul.f32 %v5885_v4, %v2332_v3  ;;  %v3031_v52 = vmul.f32 %v5858_v44, %v2967_v12  ;;  %v2966_v11 = vmul.f32 %v2902_v60, %v7556_v50  ;;  %v7560_v4 = vld [vmem:[#allocation74_spill] sm:$0xff]  ;;  %v7563_v3 = vld [vmem:[#allocation144_spill] sm:$0xff] }
 0x1f1   : > { %v2905_v33 = vadd.f32 1.0, %v2841_v41  ;;  %v2840_v47 = vmul.f32 %v2776_v58, %v7557_v43  ;;  %v2843_v25 = vmul.f32 %v2779_v18, %v7558_v1  ;;  %v2781_v34 = vsub.f32 1.0, %v2717_v53  ;;  %v7566_v41 = vld [vmem:[#allocation88_spill] sm:$0xff]  ;;  %v7567_v18 = vld [vmem:[#allocation97_spill] sm:$0xff] }
 0x1f2   : > { %v2842_v10 = vmul.f32 %v2778_v14, %v7559_v51  ;;  %v2716_v0 = vmul.f32 %v5894_v39, %v2396_v55  ;;  %v3030_v23 = vmul.f32 %v2966_v11, %v5927_v8  ;;  %v1887_v13 = vmul.f32 1.0614054, %v7561_v22  ;;  %v7564_v39 = vld [vmem:[#allocation84_spill] sm:$0xff]  ;;  %v7565_v8 = vld [vmem:[#allocation143_spill] sm:$0xff]  ;;  %v7568_v55 = vld [vmem:[#allocation113_spill] sm:$0xff]  ;;  %v6451_v11 = vpop.f32.mrb[80].mxu1 }
 0x1f3   : > { %v2969_v44 = vmul.f32 %v2905_v33, %v7560_v4  ;;  %v2904_v45 = vadd.f32 1.0, %v2840_v47  ;;  %v2907_v19 = vadd.f32 1.0, %v2843_v25  ;;  %v2845_v9 = vmul.f32 %v2781_v34, %v7562_v56  ;;  %v7569_v33 = vld [vmem:[#allocation146_spill] sm:$0xff]  ;;  %v7570_v51 = vld [vmem:[#allocation152_spill] sm:$0xff] }
 0x1f4   : > { %v2906_v42 = vadd.f32 1.0, %v2842_v10  ;;  %v2780_v63 = vsub.f32 1.0, %v2716_v0  ;;  %4498 = vmatprep.mubr.msk.f32.mxu0 %vm3151_vm0, %v3030_v23  ;;  %v1951_v60 = vadd.f32 -1.4531521, %v1887_v13  ;;  %v1886_v2 = vmul.f32 1.0614054, %v7565_v8 }
 0x1f5   : > { %v3033_v7 = vmul.f32 %v7563_v3, %v2969_v44  ;;  %v2968_v12 = vmul.f32 %v2904_v45, %v7564_v39  ;;  %4499 = vmatmul.mubr.msk.f32.gmra.mrb[40].mxu0 %vm3151_vm0, %v3031_v52  ;;  %v2971_v58 = vmul.f32 %v2907_v19, %v7566_v41  ;;  %v2909_v53 = vadd.f32 1.0, %v2845_v9  ;;  %v7571_v34 = vld [vmem:[#allocation154_spill] sm:$0xff]  ;;  %v7572_v0 = vld [vmem:[#allocation104_spill] sm:$0xff] }
 0x1f6   : > { %v2970_v14 = vmul.f32 %v2906_v42, %v7567_v18  ;;  %v2844_v50 = vmul.f32 %v2780_v63, %v7568_v55  ;;  %v2015_v47 = vmul.f32 %v7561_v22, %v1951_v60  ;;  %v1950_v1 = vadd.f32 -1.4531521, %v1886_v2  ;;  %v7573_v56 = vld [vmem:[#allocation110_spill] sm:$0xff] }
 0x1f7   : > { %v3032_v43 = vmul.f32 %v2968_v12, %v7569_v33  ;;  %v1889_v25 = vmul.f32 1.0614054, %v5964_v36  ;;  %v3035_v10 = vmul.f32 %v7570_v51, %v2971_v58  ;;  %v2973_v23 = vmul.f32 %v2909_v53, %v7572_v0 }
 0x1f8   : > { %v3034_v52 = vmul.f32 %v2970_v14, %v7571_v34  ;;  %v2908_v4 = vadd.f32 1.0, %v2844_v50  ;;  %v2079_v44 = vadd.f32 1.4214138, %v2015_v47  ;;  %v2014_v45 = vmul.f32 %v7565_v8, %v1950_v1 }
 0x1f9   : > { %4501 = vmatprep.mubr.msk.f32.mxu0 %vm3151_vm0, %v3032_v43  ;;  %v1953_v13 = vadd.f32 -1.4531521, %v1889_v25  ;;  %v1888_v19 = vmul.f32 1.0614054, %v5995_v32  ;;  %v3037_v42 = vmul.f32 %v5962_v40, %v2973_v23  ;;  %v1891_v63 = vmul.f32 1.0614054, %v6014_v46 }
 0x1fa   : > { %4502 = vmatmul.mubr.msk.f32.gmra.mrb[42].mxu0 %vm3151_vm0, %v3033_v7  ;;  %v2972_v9 = vmul.f32 %v2908_v4, %v7573_v56  ;;  %v1890_v3 = vmul.f32 1.0614054, %v6028_v38  ;;  %v2143_v39 = vmul.f32 %v7561_v22, %v2079_v44  ;;  %v2078_v12 = vadd.f32 1.4214138, %v2014_v45 }
 0x1fb   : > { %4504 = vmatprep.mubr.msk.f32.mxu0 %vm3151_vm0, %v3034_v52  ;;  %v2017_v60 = vmul.f32 %v5964_v36, %v1953_v13  ;;  %v1952_v2 = vadd.f32 -1.4531521, %v1888_v19  ;;  %v1955_v58 = vadd.f32 -1.4531521, %v1891_v63  ;;  %v1893_v40 = vmul.f32 1.0614054, %v6060_v21 }
 0x1fc   : > { %v3036_v41 = vmul.f32 %v2972_v9, %v5969_v61  ;;  %v1954_v7 = vadd.f32 -1.4531521, %v1890_v3  ;;  %v2207_v18 = vadd.f32 -0.28449672, %v2143_v39  ;;  %v2142_v14 = vmul.f32 %v7565_v8, %v2078_v12 }
 0x1fd   : > { %v2081_v53 = vadd.f32 1.4214138, %v2017_v60  ;;  %v2016_v55 = vmul.f32 %v5995_v32, %v1952_v2  ;;  %v2019_v50 = vmul.f32 %v6014_v46, %v1955_v58  ;;  %v1957_v43 = vadd.f32 -1.4531521, %v1893_v40 }
 0x1fe   : > { %4505 = vmatmul.mubr.msk.f32.gmra.mrb[44].mxu0 %vm3151_vm0, %v3035_v10  ;;  %v2018_v33 = vmul.f32 %v6028_v38, %v1954_v7  ;;  %v1892_v47 = vmul.f32 1.0614054, %v6093_v16  ;;  %v2271_v61 = vmul.f32 %v7561_v22, %v2207_v18  ;;  %v2206_v1 = vadd.f32 -0.28449672, %v2142_v14  ;;  %v7574_v7 = vld [vmem:[#allocation137_spill] sm:$0xff] }
 0x1ff   : > { %4507 = vmatprep.mubr.msk.f32.mxu0 %vm3151_vm0, %v3036_v41  ;;  %v2145_v25 = vmul.f32 %v5964_v36, %v2081_v53  ;;  %v2080_v51 = vadd.f32 1.4214138, %v2016_v55  ;;  %v2083_v34 = vadd.f32 1.4214138, %v2019_v50  ;;  %v2021_v0 = vmul.f32 %v6060_v21, %v1957_v43  ;;  %v7575_v43 = vld [vmem:[#allocation147_spill] sm:$0xff] }
 0x200   : > { %v2082_v52 = vadd.f32 1.4214138, %v2018_v33  ;;  %v1956_v10 = vadd.f32 -1.4531521, %v1892_v47  ;;  %v2335_v23 = vadd.f32 0.2548296, %v2271_v61  ;;  %v2270_v4 = vmul.f32 %v7565_v8, %v2206_v1 }
 0x201   : > { %v2209_v44 = vadd.f32 -0.28449672, %v2145_v25  ;;  %v2144_v45 = vmul.f32 %v5995_v32, %v2080_v51  ;;  %v2147_v13 = vmul.f32 %v6014_v46, %v2083_v34  ;;  %v2085_v56 = vadd.f32 1.4214138, %v2021_v0  ;;  %v6499_v25 = vpop.f32.mrb[81].mxu1  ;;  %v7576_v0 = vld [vmem:[#allocation120_spill] sm:$0xff] }
 0x202   : > { %4508 = vmatmul.mubr.msk.f32.gmra.mrb[46].mxu0 %vm3151_vm0, %v3037_v42  ;;  %v2146_v19 = vmul.f32 %v6028_v38, %v2082_v52  ;;  %v2020_v9 = vmul.f32 %v6093_v16, %v1956_v10  ;;  %v2399_v63 = vmul.f32 %v7561_v22, %v2335_v23  ;;  %v2334_v3 = vadd.f32 0.2548296, %v2270_v4 }
 0x203   : > { %v2273_v39 = vmul.f32 %v5964_v36, %v2209_v44  ;;  %v2208_v12 = vadd.f32 -0.28449672, %v2144_v45  ;;  %v2211_v60 = vadd.f32 -0.28449672, %v2147_v13  ;;  %v2149_v41 = vmul.f32 %v6060_v21, %v2085_v56  ;;  %v6505_v45 = vpop.f32.mrb[82].mxu1 }
 0x204   : > { %v2210_v2 = vadd.f32 -0.28449672, %v2146_v19  ;;  %v2084_v58 = vadd.f32 1.4214138, %v2020_v9  ;;  %v2719_v42 = vmul.f32 %v7574_v7, %v2399_v63  ;;  %v2398_v40 = vmul.f32 %v7565_v8, %v2334_v3  ;;  %v7577_v63 = vld [vmem:[#allocation127_spill] sm:$0xff] }
 0x205   : > { %v2337_v18 = vadd.f32 0.2548296, %v2273_v39  ;;  %v2272_v14 = vmul.f32 %v5995_v32, %v2208_v12  ;;  %v2275_v53 = vmul.f32 %v6014_v46, %v2211_v60  ;;  %v2213_v55 = vadd.f32 -0.28449672, %v2149_v41  ;;  %v6512_v60 = vpop.f32.mrb[83].mxu1 }
 0x206   : > { %v2274_v22 = vmul.f32 %v6028_v38, %v2210_v2  ;;  %v2148_v50 = vmul.f32 %v6093_v16, %v2084_v58  ;;  %v2783_v33 = vsub.f32 1.0, %v2719_v42  ;;  %v2718_v47 = vmul.f32 %v7575_v43, %v2398_v40  ;;  %v7579_v58 = vld [vmem:[#allocation117_spill] sm:$0xff]  ;;  %v7583_v43 = vld [vmem:[#allocation123_spill] sm:$0xff] }
 0x207   : > { %v2401_v61 = vmul.f32 %v5964_v36, %v2337_v18  ;;  %v2336_v1 = vadd.f32 0.2548296, %v2272_v14  ;;  %v2339_v51 = vadd.f32 0.2548296, %v2275_v53  ;;  %v2277_v34 = vmul.f32 %v6060_v21, %v2213_v55  ;;  %v7580_v42 = vld [vmem:[#allocation133_spill] sm:$0xff]  ;;  %v6519_v14 = vpop.f32.mrb[84].mxu1 }
 0x208   : > { %v2338_v8 = vadd.f32 0.2548296, %v2274_v22  ;;  %v2212_v52 = vadd.f32 -0.28449672, %v2148_v50  ;;  %v2847_v10 = vmul.f32 %v2783_v33, %v7576_v0  ;;  %v2782_v23 = vsub.f32 1.0, %v2718_v47 }
 0x209   : > { %v2721_v4 = vmul.f32 %v5974_v27, %v2401_v61  ;;  %v2400_v44 = vmul.f32 %v5995_v32, %v2336_v1  ;;  %v2403_v13 = vmul.f32 %v6014_v46, %v2339_v51  ;;  %v2341_v19 = vadd.f32 0.2548296, %v2277_v34  ;;  %v7578_v32 = vld [vmem:[#allocation175_spill] sm:$0xff]  ;;  %v7584_v61 = vld [vmem:[#allocation141_spill] sm:$0xff]  ;;  %v6526_v51 = vpop.f32.mrb[85].mxu1 }
 0x20a   : > { %v2402_v36 = vmul.f32 %v6028_v38, %v2338_v8  ;;  %v2276_v56 = vmul.f32 %v6093_v16, %v2212_v52  ;;  %v2911_v9 = vadd.f32 1.0, %v2847_v10  ;;  %v2846_v3 = vmul.f32 %v2782_v23, %v7577_v63  ;;  %v7585_v8 = vld [vmem:[#allocation149_spill] sm:$0xff]  ;;  %v7586_v52 = vld [vmem:[#allocation158_spill] sm:$0xff] }
 0x20b   : > { %v2785_v39 = vsub.f32 1.0, %v2721_v4  ;;  %v2720_v12 = vmul.f32 %v6000_v26, %v2400_v44  ;;  %v2723_v27 = vmul.f32 %v6023_v30, %v2403_v13  ;;  %v2405_v41 = vmul.f32 %v6060_v21, %v2341_v19  ;;  %v7581_v26 = vld [vmem:[#allocation185_spill] sm:$0xff]  ;;  %v7582_v30 = vld [vmem:[#allocation160_spill] sm:$0xff]  ;;  %v6531_v4 = vpop.f32.mrb[86].mxu1  ;;  %v7588_v13 = vld [vmem:[#allocation130_spill] sm:$0xff] }
 0x20c   : > { %v2722_v2 = vmul.f32 %v7578_v32, %v2402_v36  ;;  %v2340_v46 = vadd.f32 0.2548296, %v2276_v56  ;;  %v2975_v38 = vmul.f32 %v2911_v9, %v7579_v58  ;;  %v2910_v7 = vadd.f32 1.0, %v2846_v3  ;;  %v7587_v44 = vld [vmem:[#allocation180_spill] sm:$0xff]  ;;  %v6536_v9 = vpop.f32.mrb[87].mxu1  ;;  %v7590_v32 = vld [vmem:[#allocation182_spill] sm:$0xff] }
 0x20d   : > { %v2849_v40 = vmul.f32 %v2785_v39, %v7580_v42  ;;  %v2784_v18 = vsub.f32 1.0, %v2720_v12  ;;  %v2787_v53 = vsub.f32 1.0, %v2723_v27  ;;  %v2725_v55 = vmul.f32 %v7581_v26, %v2405_v41  ;;  %v7589_v39 = vld [vmem:[#allocation166_spill] sm:$0xff]  ;;  %v7593_v42 = vld [vmem:[#allocation155_spill] sm:$0xff]  ;;  %v6547_v26 = vpop.f32.mrb[88].mxu1 }
 0x20e   : > { %v2786_v22 = vsub.f32 1.0, %v2722_v2  ;;  %v2404_v50 = vmul.f32 %v6093_v16, %v2340_v46  ;;  %v3039_v33 = vmul.f32 %v7582_v30, %v2975_v38  ;;  %v2974_v47 = vmul.f32 %v2910_v7, %v7583_v43  ;;  %v7592_v38 = vld [vmem:[#allocation145_spill] sm:$0xff] }
 0x20f   : > { %v2913_v21 = vadd.f32 1.0, %v2849_v40  ;;  %v2848_v1 = vmul.f32 %v2784_v18, %v7584_v61  ;;  %v2851_v34 = vmul.f32 %v2787_v53, %v7585_v8  ;;  %v2789_v10 = vsub.f32 1.0, %v2725_v55  ;;  %v7594_v53 = vld [vmem:[#allocation171_spill] sm:$0xff]  ;;  %v7595_v55 = vld [vmem:[#allocation184_spill] sm:$0xff]  ;;  %v7597_v61 = vld [vmem:[#allocation190_spill] sm:$0xff] }
 0x210   : > { %v2850_v0 = vmul.f32 %v2786_v22, %v7586_v52  ;;  %v2724_v23 = vmul.f32 %v6103_v35, %v2404_v50  ;;  %v3038_v16 = vmul.f32 %v2974_v47, %v7587_v44  ;;  %v1895_v56 = vmul.f32 1.0614054, %v6124_v57  ;;  %v7591_v35 = vld [vmem:[#allocation138_spill] sm:$0xff]  ;;  %v7596_v47 = vld [vmem:[#allocation212_spill] sm:$0xff] }
 0x211   : > { %v2977_v36 = vmul.f32 %v2913_v21, %v7588_v13  ;;  %v2912_v19 = vadd.f32 1.0, %v2848_v1  ;;  %v2915_v63 = vadd.f32 1.0, %v2851_v34  ;;  %v2853_v12 = vmul.f32 %v2789_v10, %v7589_v39  ;;  %v7598_v8 = vld [vmem:[#allocation192_spill] sm:$0xff]  ;;  %v7599_v34 = vld [vmem:[#allocation162_spill] sm:$0xff] }
 0x212   : > { %v2914_v3 = vadd.f32 1.0, %v2850_v0  ;;  %v2788_v27 = vsub.f32 1.0, %v2724_v23  ;;  %4510 = vmatprep.mubr.msk.f32.mxu0 %vm3151_vm0, %v3038_v16  ;;  %v1959_v46 = vadd.f32 -1.4531521, %v1895_v56  ;;  %v1894_v58 = vmul.f32 1.0614054, %v6140_v28 }
 0x213   : > { %v3041_v2 = vmul.f32 %v7590_v32, %v2977_v36  ;;  %v2976_v41 = vmul.f32 %v2912_v19, %v7591_v35  ;;  %4511 = vmatmul.mubr.msk.f32.gmra.mrb[48].mxu0 %vm3151_vm0, %v3039_v33  ;;  %v2979_v7 = vmul.f32 %v2915_v63, %v7592_v38  ;;  %v2917_v18 = vadd.f32 1.0, %v2853_v12  ;;  %v7600_v16 = vld [vmem:[#allocation224_spill] sm:$0xff]  ;;  %v7601_v36 = vld [vmem:[#allocation193_spill] sm:$0xff] }
 0x214   : > { %v2978_v40 = vmul.f32 %v2914_v3, %v7593_v42  ;;  %v2852_v22 = vmul.f32 %v2788_v27, %v7594_v53  ;;  %v2023_v30 = vmul.f32 %v6124_v57, %v1959_v46  ;;  %v1958_v43 = vadd.f32 -1.4531521, %v1894_v58  ;;  %v7602_v56 = vld [vmem:[#allocation169_spill] sm:$0xff]  ;;  %v7603_v3 = vld [vmem:[#allocation236_spill] sm:$0xff]  ;;  %v7605_v58 = vld [vmem:[#allocation195_spill] sm:$0xff] }
 0x215   : > { %v3040_v50 = vmul.f32 %v2976_v41, %v7595_v55  ;;  %v1897_v21 = vmul.f32 1.0614054, %v7596_v47  ;;  %v3043_v1 = vmul.f32 %v7597_v61, %v2979_v7  ;;  %v2981_v52 = vmul.f32 %v2917_v18, %v7599_v34  ;;  %v7604_v12 = vld [vmem:[#allocation29_spill] sm:$0xff]  ;;  %v7606_v42 = vld [vmem:[#allocation54_spill] sm:$0xff] }
 0x216   : > { %v3042_v33 = vmul.f32 %v2978_v40, %v7598_v8  ;;  %v2916_v0 = vadd.f32 1.0, %v2852_v22  ;;  %v2087_v10 = vadd.f32 1.4214138, %v2023_v30  ;;  %v2022_v23 = vmul.f32 %v6140_v28, %v1958_v43 }
 0x217   : > { %4513 = vmatprep.mubr.msk.f32.mxu0 %vm3151_vm0, %v3040_v50  ;;  %v1961_v44 = vadd.f32 -1.4531521, %v1897_v21  ;;  %v1896_v13 = vmul.f32 1.0614054, %v7600_v16  ;;  %v3045_v19 = vmul.f32 %v7601_v36, %v2981_v52  ;;  %v1899_v39 = vmul.f32 1.0614054, %v7603_v3 }
 0x218   : > { %4514 = vmatmul.mubr.msk.f32.gmra.mrb[50].mxu0 %vm3151_vm0, %v3041_v2  ;;  %v2980_v63 = vmul.f32 %v2916_v0, %v7602_v56  ;;  %v1898_v27 = vmul.f32 1.0614054, %v7604_v12  ;;  %v2151_v32 = vmul.f32 %v6124_v57, %v2087_v10  ;;  %v2086_v35 = vadd.f32 1.4214138, %v2022_v23  ;;  %v7607_v21 = vld [vmem:[#allocation245_spill] sm:$0xff] }
 0x219   : > { %4516 = vmatprep.mubr.msk.f32.mxu0 %vm3151_vm0, %v3042_v33  ;;  %v2025_v41 = vmul.f32 %v7596_v47, %v1961_v44  ;;  %v1960_v46 = vadd.f32 -1.4531521, %v1896_v13  ;;  %v1963_v7 = vadd.f32 -1.4531521, %v1899_v39  ;;  %v1901_v40 = vmul.f32 1.0614054, %v7606_v42 }
 0x21a   : > { %v3044_v38 = vmul.f32 %v2980_v63, %v7605_v58  ;;  %v1962_v2 = vadd.f32 -1.4531521, %v1898_v27  ;;  %v2215_v18 = vadd.f32 -0.28449672, %v2151_v32  ;;  %v2150_v53 = vmul.f32 %v6140_v28, %v2086_v35 }
 0x21b   : > { %v2089_v22 = vadd.f32 1.4214138, %v2025_v41  ;;  %v2024_v55 = vmul.f32 %v7600_v16, %v1960_v46  ;;  %v2027_v50 = vmul.f32 %v7603_v3, %v1963_v7  ;;  %v1965_v43 = vadd.f32 -1.4531521, %v1901_v40 }
 0x21c   : > { %4517 = vmatmul.mubr.msk.f32.gmra.mrb[52].mxu0 %vm3151_vm0, %v3043_v1  ;;  %v2026_v30 = vmul.f32 %v7604_v12, %v1962_v2  ;;  %v1900_v61 = vmul.f32 1.0614054, %v7607_v21  ;;  %v2279_v8 = vmul.f32 %v6124_v57, %v2215_v18  ;;  %v2214_v33 = vadd.f32 -0.28449672, %v2150_v53  ;;  %v7608_v18 = vld [vmem:[#allocation204_spill] sm:$0xff] }
 0x21d   : > { %4519 = vmatprep.mubr.msk.f32.mxu0 %vm3151_vm0, %v3044_v38  ;;  %v2153_v34 = vmul.f32 %v7596_v47, %v2089_v22  ;;  %v2088_v52 = vadd.f32 1.4214138, %v2024_v55  ;;  %v2091_v0 = vadd.f32 1.4214138, %v2027_v50  ;;  %v2029_v23 = vmul.f32 %v7606_v42, %v1965_v43 }
 0x21e   : > { %v2090_v10 = vadd.f32 1.4214138, %v2026_v30  ;;  %v1964_v1 = vadd.f32 -1.4531521, %v1900_v61  ;;  %v2343_v44 = vadd.f32 0.2548296, %v2279_v8  ;;  %v2278_v13 = vmul.f32 %v6140_v28, %v2214_v33 }
 0x21f   : > { %v2217_v36 = vadd.f32 -0.28449672, %v2153_v34  ;;  %v2152_v56 = vmul.f32 %v7600_v16, %v2088_v52  ;;  %v2155_v63 = vmul.f32 %v7603_v3, %v2091_v0  ;;  %v2093_v27 = vadd.f32 1.4214138, %v2029_v23  ;;  %v7609_v8 = vld [vmem:[#allocation210_spill] sm:$0xff]  ;;  %v6595_v0 = vpop.f32.mrb[89].mxu1 }
 0x220   : > { %4520 = vmatmul.mubr.msk.f32.gmra.mrb[54].mxu0 %vm3151_vm0, %v3045_v19  ;;  %v2154_v39 = vmul.f32 %v7604_v12, %v2090_v10  ;;  %v2028_v32 = vmul.f32 %v7607_v21, %v1964_v1  ;;  %v2407_v35 = vmul.f32 %v6124_v57, %v2343_v44  ;;  %v2342_v41 = vadd.f32 0.2548296, %v2278_v13  ;;  %v7610_v44 = vld [vmem:[#allocation179_spill] sm:$0xff] }
 0x221   : > { %v2281_v46 = vmul.f32 %v7596_v47, %v2217_v36  ;;  %v2216_v58 = vadd.f32 -0.28449672, %v2152_v56  ;;  %v2219_v38 = vadd.f32 -0.28449672, %v2155_v63  ;;  %v2157_v2 = vmul.f32 %v7606_v42, %v2093_v27  ;;  %v7611_v56 = vld [vmem:[#allocation219_spill] sm:$0xff]  ;;  %v6601_v27 = vpop.f32.mrb[90].mxu1 }
 0x222   : > { %v2218_v7 = vadd.f32 -0.28449672, %v2154_v39  ;;  %v2092_v40 = vadd.f32 1.4214138, %v2028_v32  ;;  %v2727_v19 = vmul.f32 %v7608_v18, %v2407_v35  ;;  %v2406_v53 = vmul.f32 %v6140_v28, %v2342_v41  ;;  %v6608_v18 = vpop.f32.mrb[91].mxu1 }
 0x223   : > { %v2345_v22 = vadd.f32 0.2548296, %v2281_v46  ;;  %v2280_v55 = vmul.f32 %v7600_v16, %v2216_v58  ;;  %v2283_v50 = vmul.f32 %v7603_v3, %v2219_v38  ;;  %v2221_v30 = vadd.f32 -0.28449672, %v2157_v2  ;;  %v7612_v58 = vld [vmem:[#allocation187_spill] sm:$0xff] }
 0x224   : > { %v2282_v57 = vmul.f32 %v7604_v12, %v2218_v7  ;;  %v2156_v43 = vmul.f32 %v7607_v21, %v2092_v40  ;;  %v2791_v61 = vsub.f32 1.0, %v2727_v19  ;;  %v2726_v33 = vmul.f32 %v7609_v8, %v2406_v53  ;;  %v7613_v2 = vld [vmem:[#allocation227_spill] sm:$0xff]  ;;  %v7614_v19 = vld [vmem:[#allocation22_spill] sm:$0xff]  ;;  %v6615_v8 = vpop.f32.mrb[92].mxu1 }
 0x225   : > { %v2409_v34 = vmul.f32 %v7596_v47, %v2345_v22  ;;  %v2344_v52 = vadd.f32 0.2548296, %v2280_v55  ;;  %v2347_v10 = vadd.f32 0.2548296, %v2283_v50  ;;  %v2285_v23 = vmul.f32 %v7606_v42, %v2221_v30  ;;  %v7616_v50 = vld [vmem:[#allocation176_spill] sm:$0xff]  ;;  %v7617_v30 = vld [vmem:[#allocation198_spill] sm:$0xff] }
 0x226   : > { %v2346_v28 = vadd.f32 0.2548296, %v2282_v57  ;;  %v2220_v1 = vadd.f32 -0.28449672, %v2156_v43  ;;  %v2855_v13 = vmul.f32 %v2791_v61, %v7610_v44  ;;  %v2790_v36 = vsub.f32 1.0, %v2726_v33  ;;  %v7620_v44 = vld [vmem:[#allocation183_spill] sm:$0xff] }
 0x227   : > { %v2729_v63 = vmul.f32 %v7611_v56, %v2409_v34  ;;  %v2408_v39 = vmul.f32 %v7600_v16, %v2344_v52  ;;  %v2411_v32 = vmul.f32 %v7603_v3, %v2347_v10  ;;  %v2349_v35 = vadd.f32 0.2548296, %v2285_v23  ;;  %v7615_v16 = vld [vmem:[#allocation244_spill] sm:$0xff]  ;;  %v7618_v52 = vld [vmem:[#allocation59_spill] sm:$0xff] }
 0x228   : > { %v2410_v47 = vmul.f32 %v7604_v12, %v2346_v28  ;;  %v2284_v41 = vmul.f32 %v7607_v21, %v2220_v1  ;;  %v2919_v46 = vadd.f32 1.0, %v2855_v13  ;;  %v2854_v38 = vmul.f32 %v2790_v36, %v7612_v58  ;;  %v7619_v23 = vld [vmem:[#allocation200_spill] sm:$0xff] }
 0x229   : > { %v2793_v7 = vsub.f32 1.0, %v2729_v63  ;;  %v2728_v40 = vmul.f32 %v7613_v2, %v2408_v39  ;;  %v2731_v53 = vmul.f32 %v7614_v19, %v2411_v32  ;;  %v2413_v55 = vmul.f32 %v7606_v42, %v2349_v35  ;;  %v7621_v36 = vld [vmem:[#allocation208_spill] sm:$0xff]  ;;  %v6622_v63 = vpop.f32.mrb[93].mxu1  ;;  %v7622_v39 = vld [vmem:[#allocation215_spill] sm:$0xff]  ;;  %v7626_v2 = vld [vmem:[#allocation194_spill] sm:$0xff] }
 0x22a   : > { %v2730_v22 = vmul.f32 %v7615_v16, %v2410_v47  ;;  %v2348_v3 = vadd.f32 0.2548296, %v2284_v41  ;;  %v2983_v12 = vmul.f32 %v2919_v46, %v7616_v50  ;;  %v2918_v57 = vadd.f32 1.0, %v2854_v38  ;;  %v7623_v47 = vld [vmem:[#allocation225_spill] sm:$0xff]  ;;  %v7624_v46 = vld [vmem:[#allocation247_spill] sm:$0xff]  ;;  %v6627_v38 = vpop.f32.mrb[94].mxu1 }
 0x22b   : > { %v2857_v43 = vmul.f32 %v2793_v7, %v7617_v30  ;;  %v2792_v61 = vsub.f32 1.0, %v2728_v40  ;;  %v2795_v33 = vsub.f32 1.0, %v2731_v53  ;;  %v2733_v10 = vmul.f32 %v7618_v52, %v2413_v55  ;;  %v7625_v7 = vld [vmem:[#allocation222_spill] sm:$0xff]  ;;  %v7627_v53 = vld [vmem:[#allocation17_spill] sm:$0xff] }
 0x22c   : > { %v2794_v34 = vsub.f32 1.0, %v2730_v22  ;;  %v2412_v28 = vmul.f32 %v7607_v21, %v2348_v3  ;;  %v3047_v1 = vmul.f32 %v7619_v23, %v2983_v12  ;;  %v2982_v13 = vmul.f32 %v2918_v57, %v7620_v44  ;;  %v6632_v22 = vpop.f32.mrb[95].mxu1  ;;  %v7628_v50 = vld [vmem:[#allocation233_spill] sm:$0xff]  ;;  %v7629_v30 = vld [vmem:[#allocation226_spill] sm:$0xff] }
 0x22d   : > { %v2921_v42 = vadd.f32 1.0, %v2857_v43  ;;  %v2856_v56 = vmul.f32 %v2792_v61, %v7621_v36  ;;  %v2859_v32 = vmul.f32 %v2795_v33, %v7622_v39  ;;  %v2797_v41 = vsub.f32 1.0, %v2733_v10  ;;  %v7630_v61 = vld [vmem:[#allocation202_spill] sm:$0xff]  ;;  %v7634_v36 = vld [vmem:[#allocation243_spill] sm:$0xff] }
 0x22e   : > { %v2858_v35 = vmul.f32 %v2794_v34, %v7623_v47  ;;  %v2732_v58 = vmul.f32 %v7624_v46, %v2412_v28  ;;  %v3046_v21 = vmul.f32 %v2982_v13, %v7625_v7  ;;  %v1903_v16 = vmul.f32 1.0614054, %v7627_v53  ;;  %v7631_v52 = vld [vmem:[#allocation26_spill] sm:$0xff]  ;;  %v7632_v28 = vld [vmem:[#allocation213_spill] sm:$0xff] }
 0x22f   : > { %v2985_v40 = vmul.f32 %v2921_v42, %v7626_v2  ;;  %v2920_v19 = vadd.f32 1.0, %v2856_v56  ;;  %v2923_v55 = vadd.f32 1.0, %v2859_v32  ;;  %v2861_v12 = vmul.f32 %v2797_v41, %v7628_v50  ;;  %v7633_v44 = vld [vmem:[#allocation218_spill] sm:$0xff]  ;;  %v7640_v50 = vld [vmem:[#allocation40_spill] sm:$0xff] }
 0x230   : > { %v2922_v3 = vadd.f32 1.0, %v2858_v35  ;;  %v2796_v57 = vsub.f32 1.0, %v2732_v58  ;;  %4522 = vmatprep.mubr.msk.f32.mxu0 %vm3151_vm0, %v3046_v21  ;;  %v1967_v34 = vadd.f32 -1.4531521, %v1903_v16  ;;  %v1902_v10 = vmul.f32 1.0614054, %v7631_v52 }
 0x231   : > { %v3049_v43 = vmul.f32 %v7629_v30, %v2985_v40  ;;  %v2984_v33 = vmul.f32 %v2920_v19, %v7630_v61  ;;  %4523 = vmatmul.mubr.msk.f32.gmra.mrb[56].mxu0 %vm3151_vm0, %v3047_v1  ;;  %v2987_v23 = vmul.f32 %v2923_v55, %v7632_v28  ;;  %v2925_v42 = vadd.f32 1.0, %v2861_v12  ;;  %v7635_v39 = vld [vmem:[#allocation70_spill] sm:$0xff]  ;;  %v7638_v21 = vld [vmem:[#allocation235_spill] sm:$0xff]  ;;  %v7642_v61 = vld [vmem:[#allocation237_spill] sm:$0xff] }
 0x232   : > { %v2986_v13 = vmul.f32 %v2922_v3, %v7633_v44  ;;  %v2860_v56 = vmul.f32 %v2796_v57, %v7634_v36  ;;  %v2031_v47 = vmul.f32 %v7627_v53, %v1967_v34  ;;  %v1966_v35 = vadd.f32 -1.4531521, %v1902_v10  ;;  %v7636_v41 = vld [vmem:[#allocation34_spill] sm:$0xff]  ;;  %v7641_v57 = vld [vmem:[#allocation239_spill] sm:$0xff]  ;;  %v7643_v34 = vld [vmem:[#allocation49_spill] sm:$0xff] }
 0x233   : > { %v3048_v32 = vmul.f32 %v2984_v33, %v7635_v39  ;;  %v1905_v46 = vmul.f32 1.0614054, %v7636_v41  ;;  %v7637_v58 = vld [vmem:[#allocation234_spill] sm:$0xff]  ;;  %v1904_v12 = vmul.f32 1.0614054, %v7640_v50  ;;  %v7644_v28 = vld [vmem:[#allocation57_spill] sm:$0xff] }
 0x234   : > { %v3051_v7 = vmul.f32 %v7637_v58, %v2987_v23  ;;  %v3050_v2 = vmul.f32 %v2986_v13, %v7638_v21  ;;  %v7639_v40 = vld [vmem:[#allocation230_spill] sm:$0xff]  ;;  %v2924_v19 = vadd.f32 1.0, %v2860_v56  ;;  %v2095_v16 = vadd.f32 1.4214138, %v2031_v47  ;;  %v7645_v56 = vld [vmem:[#allocation16_spill] sm:$0xff] }
 0x235   : > { %v2989_v1 = vmul.f32 %v2925_v42, %v7639_v40  ;;  %4525 = vmatprep.mubr.msk.f32.mxu0 %vm3151_vm0, %v3048_v32  ;;  %v2030_v55 = vmul.f32 %v7631_v52, %v1966_v35  ;;  %v1969_v3 = vadd.f32 -1.4531521, %v1905_v46  ;;  %v1907_v10 = vmul.f32 1.0614054, %v7643_v34  ;;  %v7646_v47 = vld [vmem:[#allocation66_spill] sm:$0xff] }
 0x236   : > { %4526 = vmatmul.mubr.msk.f32.gmra.mrb[58].mxu0 %vm3151_vm0, %v3049_v43  ;;  %v2988_v33 = vmul.f32 %v2924_v19, %v7642_v61  ;;  %v1906_v23 = vmul.f32 1.0614054, %v7644_v28  ;;  %v2159_v44 = vmul.f32 %v7627_v53, %v2095_v16  ;;  %v1968_v36 = vadd.f32 -1.4531521, %v1904_v12  ;;  %v7647_v16 = vld [vmem:[#allocation76_spill] sm:$0xff] }
 0x237   : > { %v3053_v30 = vmul.f32 %v7641_v57, %v2989_v1  ;;  %4528 = vmatprep.mubr.msk.f32.mxu0 %vm3151_vm0, %v3050_v2  ;;  %v2094_v13 = vadd.f32 1.4214138, %v2030_v55  ;;  %v2033_v42 = vmul.f32 %v7636_v41, %v1969_v3  ;;  %v1971_v32 = vadd.f32 -1.4531521, %v1907_v10 }
 0x238   : > { %v3052_v39 = vmul.f32 %v2988_v33, %v7645_v56  ;;  %v1970_v43 = vadd.f32 -1.4531521, %v1906_v23  ;;  %v1909_v35 = vmul.f32 1.0614054, %v7646_v47  ;;  %v2223_v46 = vadd.f32 -0.28449672, %v2159_v44 }
 0x239   : > { %v2158_v58 = vmul.f32 %v7631_v52, %v2094_v13  ;;  %v2097_v21 = vadd.f32 1.4214138, %v2033_v42  ;;  %v2032_v40 = vmul.f32 %v7640_v50, %v1968_v36  ;;  %v2035_v2 = vmul.f32 %v7643_v34, %v1971_v32 }
 0x23a   : > { %4529 = vmatmul.mubr.msk.f32.gmra.mrb[60].mxu0 %vm3151_vm0, %v3051_v7  ;;  %v2034_v1 = vmul.f32 %v7644_v28, %v1970_v43  ;;  %v1973_v19 = vadd.f32 -1.4531521, %v1909_v35  ;;  %v1908_v55 = vmul.f32 1.0614054, %v7647_v16  ;;  %v2287_v3 = vmul.f32 %v7627_v53, %v2223_v46 }
 0x23b   : > { %4531 = vmatprep.mubr.msk.f32.mxu0 %vm3151_vm0, %v3052_v39  ;;  %v2222_v12 = vadd.f32 -0.28449672, %v2158_v58  ;;  %v2161_v57 = vmul.f32 %v7636_v41, %v2097_v21  ;;  %v2096_v61 = vadd.f32 1.4214138, %v2032_v40  ;;  %v2099_v33 = vadd.f32 1.4214138, %v2035_v2 }
 0x23c   : > { %v2098_v10 = vadd.f32 1.4214138, %v2034_v1  ;;  %v2037_v23 = vmul.f32 %v7646_v47, %v1973_v19  ;;  %v1972_v7 = vadd.f32 -1.4531521, %v1908_v55  ;;  %v2351_v44 = vadd.f32 0.2548296, %v2287_v3 }
 0x23d   : > { %v2286_v13 = vmul.f32 %v7631_v52, %v2222_v12  ;;  %v2225_v42 = vadd.f32 -0.28449672, %v2161_v57  ;;  %v2160_v36 = vmul.f32 %v7640_v50, %v2096_v61  ;;  %v2163_v56 = vmul.f32 %v7643_v34, %v2099_v33  ;;  %v7648_v55 = vld [vmem:[#allocation20_spill] sm:$0xff] }
 0x23e   : > { %4532 = vmatmul.mubr.msk.f32.gmra.mrb[62].mxu0 %vm3151_vm0, %v3053_v30  ;;  %v2162_v39 = vmul.f32 %v7644_v28, %v2098_v10  ;;  %v2101_v32 = vadd.f32 1.4214138, %v2037_v23  ;;  %v2036_v43 = vmul.f32 %v7647_v16, %v1972_v7  ;;  %v2415_v35 = vmul.f32 %v7627_v53, %v2351_v44  ;;  %v7649_v7 = vld [vmem:[#allocation28_spill] sm:$0xff] }
 0x23f   : > { %v2350_v46 = vadd.f32 0.2548296, %v2286_v13  ;;  %v2289_v58 = vmul.f32 %v7636_v41, %v2225_v42  ;;  %v2224_v21 = vadd.f32 -0.28449672, %v2160_v36  ;;  %v2227_v40 = vadd.f32 -0.28449672, %v2163_v56 }
 0x240   : > { %v2226_v2 = vadd.f32 -0.28449672, %v2162_v39  ;;  %v2165_v1 = vmul.f32 %v7646_v47, %v2101_v32  ;;  %v2100_v19 = vadd.f32 1.4214138, %v2036_v43  ;;  %v2735_v30 = vmul.f32 %v7648_v55, %v2415_v35  ;;  %v7650_v32 = vld [vmem:[#allocation5_spill] sm:$0xff] }
 0x241   : > { %v2414_v3 = vmul.f32 %v7631_v52, %v2350_v46  ;;  %v2353_v12 = vadd.f32 0.2548296, %v2289_v58  ;;  %v2288_v57 = vmul.f32 %v7640_v50, %v2224_v21  ;;  %v2291_v61 = vmul.f32 %v7643_v34, %v2227_v40  ;;  %v7651_v46 = vld [vmem:[#allocation36_spill] sm:$0xff]  ;;  %v7652_v55 = vld [vmem:[#allocation9_spill] sm:$0xff] }
 0x242   : > { %v2290_v53 = vmul.f32 %v7644_v28, %v2226_v2  ;;  %v2229_v33 = vadd.f32 -0.28449672, %v2165_v1  ;;  %v2164_v10 = vmul.f32 %v7647_v16, %v2100_v19  ;;  %v2799_v23 = vsub.f32 1.0, %v2735_v30 }
 0x243   : > { %v2734_v44 = vmul.f32 %v7649_v7, %v2414_v3  ;;  %v2417_v13 = vmul.f32 %v7636_v41, %v2353_v12  ;;  %v2352_v42 = vadd.f32 0.2548296, %v2288_v57  ;;  %v2355_v36 = vadd.f32 0.2548296, %v2291_v61  ;;  %v7653_v12 = vld [vmem:[#allocation43_spill] sm:$0xff] }
 0x244   : > { %v2354_v56 = vadd.f32 0.2548296, %v2290_v53  ;;  %v2293_v52 = vmul.f32 %v7646_v47, %v2229_v33  ;;  %v2228_v39 = vadd.f32 -0.28449672, %v2164_v10  ;;  %v2863_v43 = vmul.f32 %v2799_v23, %v7650_v32  ;;  %v7654_v61 = vld [vmem:[#allocation51_spill] sm:$0xff]  ;;  %v7655_v33 = vld [vmem:[#allocation60_spill] sm:$0xff] }
 0x245   : > { %v2798_v35 = vsub.f32 1.0, %v2734_v44  ;;  %v2737_v58 = vmul.f32 %v7651_v46, %v2417_v13  ;;  %v2416_v21 = vmul.f32 %v7640_v50, %v2352_v42  ;;  %v2419_v40 = vmul.f32 %v7643_v34, %v2355_v36  ;;  %v7656_v7 = vld [vmem:[#allocation3_spill] sm:$0xff] }
 0x246   : > { %v2418_v2 = vmul.f32 %v7644_v28, %v2354_v56  ;;  %v2357_v1 = vadd.f32 0.2548296, %v2293_v52  ;;  %v2292_v41 = vmul.f32 %v7647_v16, %v2228_v39  ;;  %v2927_v19 = vadd.f32 1.0, %v2863_v43  ;;  %v7657_v28 = vld [vmem:[#allocation13_spill] sm:$0xff]  ;;  %v7660_v46 = vld [vmem:[#allocation7_spill] sm:$0xff] }
 0x247   : > { %v2862_v30 = vmul.f32 %v2798_v35, %v7652_v55  ;;  %v2801_v3 = vsub.f32 1.0, %v2737_v58  ;;  %v2736_v57 = vmul.f32 %v7653_v12, %v2416_v21  ;;  %v2739_v53 = vmul.f32 %v7654_v61, %v2419_v40  ;;  %v7658_v52 = vld [vmem:[#allocation69_spill] sm:$0xff] }
 0x248   : > { %v2738_v10 = vmul.f32 %v7655_v33, %v2418_v2  ;;  %v2421_v23 = vmul.f32 %v7646_v47, %v2357_v1  ;;  %v2356_v50 = vadd.f32 0.2548296, %v2292_v41  ;;  %v2991_v34 = vmul.f32 %v2927_v19, %v7656_v7  ;;  %v7659_v43 = vld [vmem:[#allocation241_spill] sm:$0xff]  ;;  %v7662_v2 = vld [vmem:[#allocation32_spill] sm:$0xff]  ;;  %v7663_v41 = vld [vmem:[#allocation38_spill] sm:$0xff] }
 0x249   : > { %v2926_v44 = vadd.f32 1.0, %v2862_v30  ;;  %v2865_v13 = vmul.f32 %v2801_v3, %v7657_v28  ;;  %v2800_v42 = vsub.f32 1.0, %v2736_v57  ;;  %v2803_v36 = vsub.f32 1.0, %v2739_v53  ;;  %v7661_v40 = vld [vmem:[#allocation21_spill] sm:$0xff]  ;;  %v7664_v30 = vld [vmem:[#allocation79_spill] sm:$0xff] }
 0x24a   : > { %v2802_v56 = vsub.f32 1.0, %v2738_v10  ;;  %v2741_v39 = vmul.f32 %v7658_v52, %v2421_v23  ;;  %v2420_v32 = vmul.f32 %v7647_v16, %v2356_v50  ;;  %v3055_v35 = vmul.f32 %v7659_v43, %v2991_v34  ;;  %v7665_v57 = vld [vmem:[#allocation11_spill] sm:$0xff]  ;;  %v7666_v16 = vld [vmem:[#allocation80_spill] sm:$0xff]  ;;  %v7667_v50 = vld [vmem:[#allocation46_spill] sm:$0xff] }
 0x24b   : > { %v2990_v58 = vmul.f32 %v2926_v44, %v7660_v46  ;;  %v2929_v21 = vadd.f32 1.0, %v2865_v13  ;;  %v2864_v47 = vmul.f32 %v2800_v42, %v7661_v40  ;;  %v2867_v1 = vmul.f32 %v2803_v36, %v7662_v2  ;;  %v7668_v28 = vld [vmem:[#allocation15_spill] sm:$0xff]  ;;  %v7669_v36 = vld [vmem:[#allocation90_spill] sm:$0xff]  ;;  %v7672_v46 = vld [vmem:[#allocation53_spill] sm:$0xff] }
 0x24c   : > { %v2866_v19 = vmul.f32 %v2802_v56, %v7663_v41  ;;  %v2805_v55 = vsub.f32 1.0, %v2741_v39  ;;  %v2740_v3 = vmul.f32 %v7664_v30, %v2420_v32  ;;  %v1911_v33 = vmul.f32 1.0614054, %v7666_v16  ;;  %v7671_v39 = vld [vmem:[#allocation35_spill] sm:$0xff] }
 0x24d   : > { %v3054_v12 = vmul.f32 %v2990_v58, %v6307_v37  ;;  %v2993_v61 = vmul.f32 %v2929_v21, %v7665_v57  ;;  %v2928_v53 = vadd.f32 1.0, %v2864_v47  ;;  %v2931_v10 = vadd.f32 1.0, %v2867_v1  ;;  %v7670_v37 = vld [vmem:[#allocation25_spill] sm:$0xff]  ;;  %v7673_v47 = vld [vmem:[#allocation98_spill] sm:$0xff]  ;;  %v7674_v1 = vld [vmem:[#allocation24_spill] sm:$0xff] }
 0x24e   : > { %v2930_v23 = vadd.f32 1.0, %v2866_v19  ;;  %v2869_v7 = vmul.f32 %v2805_v55, %v7667_v50  ;;  %v2804_v34 = vsub.f32 1.0, %v2740_v3  ;;  %v1975_v42 = vadd.f32 -1.4531521, %v1911_v33  ;;  %v7675_v55 = vld [vmem:[#allocation44_spill] sm:$0xff]  ;;  %v7677_v33 = vld [vmem:[#allocation50_spill] sm:$0xff] }
 0x24f   : > { %v3057_v44 = vmul.f32 %v6313_v5, %v2993_v61  ;;  %4534 = vmatprep.mubr.msk.f32.mxu0 %vm3151_vm0, %v3054_v12  ;;  %v2992_v13 = vmul.f32 %v2928_v53, %v7668_v28  ;;  %v1910_v56 = vmul.f32 1.0614054, %v7669_v36  ;;  %v2995_v52 = vmul.f32 %v2931_v10, %v7670_v37  ;;  %v7676_v61 = vld [vmem:[#allocation106_spill] sm:$0xff] }
 0x250   : > { %4535 = vmatmul.mubr.msk.f32.gmra.mrb[64].mxu0 %vm3151_vm0, %v3055_v35  ;;  %v2994_v32 = vmul.f32 %v2930_v23, %v7671_v39  ;;  %v2933_v43 = vadd.f32 1.0, %v2869_v7  ;;  %v2868_v58 = vmul.f32 %v2804_v34, %v7672_v46  ;;  %v2039_v5 = vmul.f32 %v7666_v16, %v1975_v42  ;;  %v7678_v23 = vld [vmem:[#allocation114_spill] sm:$0xff] }
 0x251   : > { %v3056_v21 = vmul.f32 %v2992_v13, %v6320_v24  ;;  %v1974_v40 = vadd.f32 -1.4531521, %v1910_v56  ;;  %v1913_v2 = vmul.f32 1.0614054, %v7673_v47  ;;  %v3059_v41 = vmul.f32 %v7674_v1, %v2995_v52  ;;  %v7680_v52 = vld [vmem:[#allocation125_spill] sm:$0xff] }
 0x252   : > { %v3058_v19 = vmul.f32 %v2994_v32, %v6334_v29  ;;  %v2997_v35 = vmul.f32 %v2933_v43, %v7675_v55  ;;  %v2932_v30 = vadd.f32 1.0, %v2868_v58  ;;  %v2103_v3 = vadd.f32 1.4214138, %v2039_v5  ;;  %v7679_v29 = vld [vmem:[#allocation118_spill] sm:$0xff] }
 0x253   : > { %4537 = vmatprep.mubr.msk.f32.mxu0 %vm3151_vm0, %v3056_v21  ;;  %v2038_v12 = vmul.f32 %v7669_v36, %v1974_v40  ;;  %v1977_v57 = vadd.f32 -1.4531521, %v1913_v2  ;;  %v1912_v24 = vmul.f32 1.0614054, %v7676_v61  ;;  %v1915_v50 = vmul.f32 1.0614054, %v7678_v23 }
 0x254   : > { %4538 = vmatmul.mubr.msk.f32.gmra.mrb[66].mxu0 %vm3151_vm0, %v3057_v44  ;;  %v3061_v53 = vmul.f32 %v6339_v17, %v2997_v35  ;;  %v2996_v10 = vmul.f32 %v2932_v30, %v7677_v33  ;;  %v1914_v7 = vmul.f32 1.0614054, %v7679_v29  ;;  %v2167_v34 = vmul.f32 %v7666_v16, %v2103_v3  ;;  %v7681_v40 = vld [vmem:[#allocation131_spill] sm:$0xff] }
 0x255   : > { %4540 = vmatprep.mubr.msk.f32.mxu0 %vm3151_vm0, %v3058_v19  ;;  %v2102_v28 = vadd.f32 1.4214138, %v2038_v12  ;;  %v2041_v13 = vmul.f32 %v7673_v47, %v1977_v57  ;;  %v1976_v42 = vadd.f32 -1.4531521, %v1912_v24  ;;  %v1979_v37 = vadd.f32 -1.4531521, %v1915_v50 }
 0x256   : > { %v3060_v56 = vmul.f32 %v2996_v10, %v6344_v15  ;;  %v1978_v44 = vadd.f32 -1.4531521, %v1914_v7  ;;  %v1917_v17 = vmul.f32 1.0614054, %v7680_v52  ;;  %v2231_v39 = vadd.f32 -0.28449672, %v2167_v34 }
 0x257   : > { %v2166_v32 = vmul.f32 %v7669_v36, %v2102_v28  ;;  %v2105_v43 = vadd.f32 1.4214138, %v2041_v13  ;;  %v2040_v46 = vmul.f32 %v7676_v61, %v1976_v42  ;;  %v2043_v58 = vmul.f32 %v7678_v23, %v1979_v37 }
 0x258   : > { %4541 = vmatmul.mubr.msk.f32.gmra.mrb[68].mxu0 %vm3151_vm0, %v3059_v41  ;;  %v2042_v21 = vmul.f32 %v7679_v29, %v1978_v44  ;;  %v1981_v5 = vadd.f32 -1.4531521, %v1917_v17  ;;  %v1916_v2 = vmul.f32 1.0614054, %v7681_v40  ;;  %v2295_v15 = vmul.f32 %v7666_v16, %v2231_v39 }
 0x259   : > { %4543 = vmatprep.mubr.msk.f32.mxu0 %vm3151_vm0, %v3060_v56  ;;  %v2230_v1 = vadd.f32 -0.28449672, %v2166_v32  ;;  %v2169_v19 = vmul.f32 %v7673_v47, %v2105_v43  ;;  %v2104_v55 = vadd.f32 1.4214138, %v2040_v46  ;;  %v2107_v35 = vadd.f32 1.4214138, %v2043_v58 }
 0x25a   : > { %v2106_v30 = vadd.f32 1.4214138, %v2042_v21  ;;  %v2045_v3 = vmul.f32 %v7680_v52, %v1981_v5  ;;  %v1980_v41 = vadd.f32 -1.4531521, %v1916_v2  ;;  %v2359_v12 = vadd.f32 0.2548296, %v2295_v15 }
 0x25b   : > { %v2294_v57 = vmul.f32 %v7669_v36, %v2230_v1  ;;  %v2233_v24 = vadd.f32 -0.28449672, %v2169_v19  ;;  %v2168_v33 = vmul.f32 %v7676_v61, %v2104_v55  ;;  %v2171_v10 = vmul.f32 %v7678_v23, %v2107_v35  ;;  %v7682_v32 = vld [vmem:[#allocation87_spill] sm:$0xff]  ;;  %v7683_v1 = vld [vmem:[#allocation92_spill] sm:$0xff] }
 0x25c   : > { %4544 = vmatmul.mubr.msk.f32.gmra.mrb[70].mxu0 %vm3151_vm0, %v3061_v53  ;;  %v2170_v50 = vmul.f32 %v7679_v29, %v2106_v30  ;;  %v2109_v7 = vadd.f32 1.4214138, %v2045_v3  ;;  %v2044_v34 = vmul.f32 %v7681_v40, %v1980_v41  ;;  %v2423_v28 = vmul.f32 %v7666_v16, %v2359_v12  ;;  %v7684_v12 = vld [vmem:[#allocation62_spill] sm:$0xff] }
 0x25d   : > { %v2358_v13 = vadd.f32 0.2548296, %v2294_v57  ;;  %v2297_v42 = vmul.f32 %v7673_v47, %v2233_v24  ;;  %v2232_v56 = vadd.f32 -0.28449672, %v2168_v33  ;;  %v2235_v37 = vadd.f32 -0.28449672, %v2171_v10 }
 0x25e   : > { %v2234_v44 = vadd.f32 -0.28449672, %v2170_v50  ;;  %v2173_v17 = vmul.f32 %v7680_v52, %v2109_v7  ;;  %v2108_v39 = vadd.f32 1.4214138, %v2044_v34  ;;  %v2743_v53 = vmul.f32 %v7682_v32, %v2423_v28  ;;  %v7685_v33 = vld [vmem:[#allocation101_spill] sm:$0xff] }
 0x25f   : > { %v2422_v43 = vmul.f32 %v7669_v36, %v2358_v13  ;;  %v2361_v46 = vadd.f32 0.2548296, %v2297_v42  ;;  %v2296_v58 = vmul.f32 %v7676_v61, %v2232_v56  ;;  %v2299_v21 = vmul.f32 %v7678_v23, %v2235_v37  ;;  %v7686_v42 = vld [vmem:[#allocation77_spill] sm:$0xff] }
 0x260   : > { %v2298_v16 = vmul.f32 %v7679_v29, %v2234_v44  ;;  %v2237_v5 = vadd.f32 -0.28449672, %v2173_v17  ;;  %v2172_v2 = vmul.f32 %v7681_v40, %v2108_v39  ;;  %v2807_v15 = vsub.f32 1.0, %v2743_v53  ;;  %v7687_v44 = vld [vmem:[#allocation108_spill] sm:$0xff]  ;;  %v7689_v53 = vld [vmem:[#allocation122_spill] sm:$0xff] }
 0x261   : > { %v2742_v19 = vmul.f32 %v7683_v1, %v2422_v43  ;;  %v2425_v55 = vmul.f32 %v7673_v47, %v2361_v46  ;;  %v2360_v35 = vadd.f32 0.2548296, %v2296_v58  ;;  %v2363_v30 = vadd.f32 0.2548296, %v2299_v21  ;;  %v7688_v39 = vld [vmem:[#allocation116_spill] sm:$0xff]  ;;  %v7690_v58 = vld [vmem:[#allocation58_spill] sm:$0xff] }
 0x262   : > { %v2362_v3 = vadd.f32 0.2548296, %v2298_v16  ;;  %v2301_v36 = vmul.f32 %v7680_v52, %v2237_v5  ;;  %v2236_v41 = vadd.f32 -0.28449672, %v2172_v2  ;;  %v2871_v57 = vmul.f32 %v2807_v15, %v7684_v12  ;;  %v7692_v1 = vld [vmem:[#allocation126_spill] sm:$0xff]  ;;  %v7695_v12 = vld [vmem:[#allocation96_spill] sm:$0xff] }
 0x263   : > { %v2806_v24 = vsub.f32 1.0, %v2742_v19  ;;  %v2745_v10 = vmul.f32 %v7685_v33, %v2425_v55  ;;  %v2424_v50 = vmul.f32 %v7676_v61, %v2360_v35  ;;  %v2427_v7 = vmul.f32 %v7678_v23, %v2363_v30  ;;  %v7693_v30 = vld [vmem:[#allocation65_spill] sm:$0xff] }
 0x264   : > { %v2426_v34 = vmul.f32 %v7679_v29, %v2362_v3  ;;  %v2365_v28 = vadd.f32 0.2548296, %v2301_v36  ;;  %v2300_v47 = vmul.f32 %v7681_v40, %v2236_v41  ;;  %v2935_v13 = vadd.f32 1.0, %v2871_v57  ;;  %v7691_v29 = vld [vmem:[#allocation83_spill] sm:$0xff] }
 0x265   : > { %v2870_v56 = vmul.f32 %v2806_v24, %v7686_v42  ;;  %v2809_v37 = vsub.f32 1.0, %v2745_v10  ;;  %v2744_v17 = vmul.f32 %v7687_v44, %v2424_v50  ;;  %v2747_v32 = vmul.f32 %v7688_v39, %v2427_v7  ;;  %v7694_v41 = vld [vmem:[#allocation91_spill] sm:$0xff]  ;;  %v7696_v24 = vld [vmem:[#allocation102_spill] sm:$0xff] }
 0x266   : > { %v2746_v43 = vmul.f32 %v7689_v53, %v2426_v34  ;;  %v2429_v46 = vmul.f32 %v7680_v52, %v2365_v28  ;;  %v2364_v61 = vadd.f32 0.2548296, %v2300_v47  ;;  %v2999_v23 = vmul.f32 %v2935_v13, %v7690_v58  ;;  %v7697_v50 = vld [vmem:[#allocation135_spill] sm:$0xff]  ;;  %v7698_v28 = vld [vmem:[#allocation81_spill] sm:$0xff] }
 0x267   : > { %v2934_v21 = vadd.f32 1.0, %v2870_v56  ;;  %v2873_v16 = vmul.f32 %v2809_v37, %v7691_v29  ;;  %v2808_v5 = vsub.f32 1.0, %v2744_v17  ;;  %v2811_v2 = vsub.f32 1.0, %v2747_v32  ;;  %v7700_v37 = vld [vmem:[#allocation112_spill] sm:$0xff]  ;;  %v7701_v32 = vld [vmem:[#allocation86_spill] sm:$0xff] }
 0x268   : > { %v2810_v15 = vsub.f32 1.0, %v2746_v43  ;;  %v2749_v19 = vmul.f32 %v7692_v1, %v2429_v46  ;;  %v2428_v55 = vmul.f32 %v7681_v40, %v2364_v61  ;;  %v3063_v35 = vmul.f32 %v6355_v54, %v2999_v23  ;;  %v7699_v40 = vld [vmem:[#allocation140_spill] sm:$0xff]  ;;  %v7702_v46 = vld [vmem:[#allocation150_spill] sm:$0xff] }
 0x269   : > { %v2998_v3 = vmul.f32 %v2934_v21, %v7693_v30  ;;  %v2937_v36 = vadd.f32 1.0, %v2873_v16  ;;  %v2872_v52 = vmul.f32 %v2808_v5, %v7694_v41  ;;  %v2875_v57 = vmul.f32 %v2811_v2, %v7695_v12  ;;  %v7704_v23 = vld [vmem:[#allocation100_spill] sm:$0xff]  ;;  %v7705_v16 = vld [vmem:[#allocation119_spill] sm:$0xff] }
 0x26a   : > { %v2874_v33 = vmul.f32 %v2810_v15, %v7696_v24  ;;  %v2813_v10 = vsub.f32 1.0, %v2749_v19  ;;  %v2748_v7 = vmul.f32 %v7697_v50, %v2428_v55  ;;  %v1919_v42 = vmul.f32 1.0614054, %v7699_v40  ;;  %v7706_v1 = vld [vmem:[#allocation156_spill] sm:$0xff] }
 0x26b   : > { %v3062_v34 = vmul.f32 %v2998_v3, %v6403_v62  ;;  %v3001_v47 = vmul.f32 %v2937_v36, %v7698_v28  ;;  %v2936_v13 = vadd.f32 1.0, %v2872_v52  ;;  %v2939_v54 = vadd.f32 1.0, %v2875_v57  ;;  %v7703_v62 = vld [vmem:[#allocation94_spill] sm:$0xff]  ;;  %v7707_v3 = vld [vmem:[#allocation105_spill] sm:$0xff]  ;;  %v7708_v57 = vld [vmem:[#allocation164_spill] sm:$0xff] }
 0x26c   : > { %v2938_v56 = vadd.f32 1.0, %v2874_v33  ;;  %v2877_v44 = vmul.f32 %v2813_v10, %v7700_v37  ;;  %v2812_v17 = vsub.f32 1.0, %v2748_v7  ;;  %v1983_v43 = vadd.f32 -1.4531521, %v1919_v42  ;;  %v7709_v33 = vld [vmem:[#allocation115_spill] sm:$0xff]  ;;  %v7712_v37 = vld [vmem:[#allocation188_spill] sm:$0xff] }
 0x26d   : > { %v3065_v39 = vmul.f32 %v6409_v59, %v3001_v47  ;;  %4546 = vmatprep.mubr.msk.f32.mxu0 %vm3151_vm0, %v3062_v34  ;;  %v3000_v53 = vmul.f32 %v2936_v13, %v7701_v32  ;;  %v1918_v61 = vmul.f32 1.0614054, %v7702_v46  ;;  %v3003_v58 = vmul.f32 %v2939_v54, %v7703_v62  ;;  %v7713_v62 = vld [vmem:[#allocation196_spill] sm:$0xff] }
 0x26e   : > { %4547 = vmatmul.mubr.msk.f32.gmra.mrb[72].mxu0 %vm3151_vm0, %v3063_v35  ;;  %v3002_v21 = vmul.f32 %v2938_v56, %v7704_v23  ;;  %v2941_v29 = vadd.f32 1.0, %v2877_v44  ;;  %v2876_v5 = vmul.f32 %v2812_v17, %v7705_v16  ;;  %v2047_v59 = vmul.f32 %v7699_v40, %v1983_v43 }
 0x26f   : > { %v3064_v2 = vmul.f32 %v3000_v53, %v6416_v31  ;;  %v1982_v15 = vadd.f32 -1.4531521, %v1918_v61  ;;  %v1921_v19 = vmul.f32 1.0614054, %v7706_v1  ;;  %v3067_v55 = vmul.f32 %v6423_v20, %v3003_v58  ;;  %v7710_v20 = vld [vmem:[#allocation170_spill] sm:$0xff] }
 0x270   : > { %v3066_v30 = vmul.f32 %v3002_v21, %v6430_v6  ;;  %v3005_v35 = vmul.f32 %v2941_v29, %v7707_v3  ;;  %v2940_v36 = vadd.f32 1.0, %v2876_v5  ;;  %v2111_v41 = vadd.f32 1.4214138, %v2047_v59  ;;  %v7711_v6 = vld [vmem:[#allocation178_spill] sm:$0xff] }
 0x271   : > { %4549 = vmatprep.mubr.msk.f32.mxu0 %vm3151_vm0, %v3064_v2  ;;  %v2046_v52 = vmul.f32 %v7702_v46, %v1982_v15  ;;  %v1985_v12 = vadd.f32 -1.4531521, %v1921_v19  ;;  %v1920_v31 = vmul.f32 1.0614054, %v7708_v57  ;;  %v1923_v50 = vmul.f32 1.0614054, %v7710_v20 }
 0x272   : > { %4550 = vmatmul.mubr.msk.f32.gmra.mrb[74].mxu0 %vm3151_vm0, %v3065_v39  ;;  %v3069_v24 = vmul.f32 %v6435_v48, %v3005_v35  ;;  %v3004_v10 = vmul.f32 %v2940_v36, %v7709_v33  ;;  %v1922_v7 = vmul.f32 1.0614054, %v7711_v6  ;;  %v2175_v34 = vmul.f32 %v7699_v40, %v2111_v41 }
 0x273   : > { %4552 = vmatprep.mubr.msk.f32.mxu0 %vm3151_vm0, %v3066_v30  ;;  %v2110_v28 = vadd.f32 1.4214138, %v2046_v52  ;;  %v2049_v47 = vmul.f32 %v7706_v1, %v1985_v12  ;;  %v1984_v13 = vadd.f32 -1.4531521, %v1920_v31  ;;  %v1987_v54 = vadd.f32 -1.4531521, %v1923_v50 }
 0x274   : > { %v3068_v42 = vmul.f32 %v3004_v10, %v6440_v49  ;;  %v1986_v56 = vadd.f32 -1.4531521, %v1922_v7  ;;  %v1925_v48 = vmul.f32 1.0614054, %v7712_v37  ;;  %v2239_v44 = vadd.f32 -0.28449672, %v2175_v34 }
 0x275   : > { %v2174_v17 = vmul.f32 %v7702_v46, %v2110_v28  ;;  %v2113_v39 = vadd.f32 1.4214138, %v2049_v47  ;;  %v2048_v32 = vmul.f32 %v7708_v57, %v1984_v13  ;;  %v2051_v53 = vmul.f32 %v7710_v20, %v1987_v54  ;;  %v7714_v28 = vld [vmem:[#allocation142_spill] sm:$0xff] }
 0x276   : > { %4553 = vmatmul.mubr.msk.f32.gmra.mrb[76].mxu0 %vm3151_vm0, %v3067_v55  ;;  %v2050_v43 = vmul.f32 %v7711_v6, %v1986_v56  ;;  %v1989_v61 = vadd.f32 -1.4531521, %v1925_v48  ;;  %v1924_v58 = vmul.f32 1.0614054, %v7713_v62  ;;  %v2303_v49 = vmul.f32 %v7699_v40, %v2239_v44 }
 0x277   : > { %4555 = vmatprep.mubr.msk.f32.mxu0 %vm3151_vm0, %v3068_v42  ;;  %v2238_v23 = vadd.f32 -0.28449672, %v2174_v17  ;;  %v2177_v21 = vmul.f32 %v7706_v1, %v2113_v39  ;;  %v2112_v29 = vadd.f32 1.4214138, %v2048_v32  ;;  %v2115_v16 = vadd.f32 1.4214138, %v2051_v53 }
 0x278   : > { %v2114_v5 = vadd.f32 1.4214138, %v2050_v43  ;;  %v2053_v2 = vmul.f32 %v7712_v37, %v1989_v61  ;;  %v1988_v59 = vadd.f32 -1.4531521, %v1924_v58  ;;  %v2367_v15 = vadd.f32 0.2548296, %v2303_v49 }
 0x279   : > { %v2302_v19 = vmul.f32 %v7702_v46, %v2238_v23  ;;  %v2241_v55 = vadd.f32 -0.28449672, %v2177_v21  ;;  %v2176_v30 = vmul.f32 %v7708_v57, %v2112_v29  ;;  %v2179_v3 = vmul.f32 %v7710_v20, %v2115_v16  ;;  %v7715_v17 = vld [vmem:[#allocation153_spill] sm:$0xff]  ;;  %v7716_v49 = vld [vmem:[#allocation124_spill] sm:$0xff] }
 0x27a   : > { %4556 = vmatmul.mubr.msk.f32.gmra.mrb[78].mxu0 %vm3151_vm0, %v3069_v24  ;;  %v2178_v35 = vmul.f32 %v7711_v6, %v2114_v5  ;;  %v2117_v36 = vadd.f32 1.4214138, %v2053_v2  ;;  %v2052_v41 = vmul.f32 %v7713_v62, %v1988_v59  ;;  %v2431_v52 = vmul.f32 %v7699_v40, %v2367_v15  ;;  %v7717_v29 = vld [vmem:[#allocation161_spill] sm:$0xff] }
 0x27b   : > { %v2366_v12 = vadd.f32 0.2548296, %v2302_v19  ;;  %v2305_v31 = vmul.f32 %v7706_v1, %v2241_v55  ;;  %v2240_v33 = vadd.f32 -0.28449672, %v2176_v30  ;;  %v2243_v10 = vadd.f32 -0.28449672, %v2179_v3 }
 0x27c   : > { %v2242_v50 = vadd.f32 -0.28449672, %v2178_v35  ;;  %v2181_v7 = vmul.f32 %v7712_v37, %v2117_v36  ;;  %v2116_v34 = vadd.f32 1.4214138, %v2052_v41  ;;  %v2751_v24 = vmul.f32 %v7714_v28, %v2431_v52  ;;  %v7718_v55 = vld [vmem:[#allocation129_spill] sm:$0xff] }
 0x27d   : > { %v2430_v47 = vmul.f32 %v7702_v46, %v2366_v12  ;;  %v2369_v13 = vadd.f32 0.2548296, %v2305_v31  ;;  %v2304_v42 = vmul.f32 %v7708_v57, %v2240_v33  ;;  %v2307_v54 = vmul.f32 %v7710_v20, %v2243_v10  ;;  %v7719_v35 = vld [vmem:[#allocation165_spill] sm:$0xff] }
 0x27e   : > { %v2306_v40 = vmul.f32 %v7711_v6, %v2242_v50  ;;  %v2245_v56 = vadd.f32 -0.28449672, %v2181_v7  ;;  %v2180_v48 = vmul.f32 %v7713_v62, %v2116_v34  ;;  %v2815_v44 = vsub.f32 1.0, %v2751_v24  ;;  %v7720_v41 = vld [vmem:[#allocation173_spill] sm:$0xff] }
 0x27f   : > { %v2750_v39 = vmul.f32 %v7715_v17, %v2430_v47  ;;  %v2433_v32 = vmul.f32 %v7706_v1, %v2369_v13  ;;  %v2368_v53 = vadd.f32 0.2548296, %v2304_v42  ;;  %v2371_v43 = vadd.f32 0.2548296, %v2307_v54  ;;  %v7721_v12 = vld [vmem:[#allocation181_spill] sm:$0xff]  ;;  %v7724_v47 = vld [vmem:[#allocation191_spill] sm:$0xff] }
 0x280   : > { %v2370_v61 = vadd.f32 0.2548296, %v2306_v40  ;;  %v2309_v46 = vmul.f32 %v7712_v37, %v2245_v56  ;;  %v2244_v58 = vadd.f32 -0.28449672, %v2180_v48  ;;  %v2879_v23 = vmul.f32 %v2815_v44, %v7716_v49  ;;  %v7722_v10 = vld [vmem:[#allocation121_spill] sm:$0xff]  ;;  %v7725_v40 = vld [vmem:[#allocation128_spill] sm:$0xff] }
 0x281   : > { %v2814_v21 = vsub.f32 1.0, %v2750_v39  ;;  %v2753_v16 = vmul.f32 %v7717_v29, %v2433_v32  ;;  %v2432_v5 = vmul.f32 %v7708_v57, %v2368_v53  ;;  %v2435_v2 = vmul.f32 %v7710_v20, %v2371_v43  ;;  %v7726_v44 = vld [vmem:[#allocation148_spill] sm:$0xff]  ;;  %v7727_v17 = vld [vmem:[#allocation157_spill] sm:$0xff]  ;;  %v7728_v32 = vld [vmem:[#allocation163_spill] sm:$0xff] }
 0x282   : > { %v2434_v59 = vmul.f32 %v7711_v6, %v2370_v61  ;;  %v2373_v15 = vadd.f32 0.2548296, %v2309_v46  ;;  %v2308_v1 = vmul.f32 %v7713_v62, %v2244_v58  ;;  %v2943_v19 = vadd.f32 1.0, %v2879_v23  ;;  %v7723_v6 = vld [vmem:[#allocation136_spill] sm:$0xff]  ;;  %v7729_v61 = vld [vmem:[#allocation201_spill] sm:$0xff]  ;;  %v7730_v49 = vld [vmem:[#allocation134_spill] sm:$0xff] }
 0x283   : > { %v2878_v30 = vmul.f32 %v2814_v21, %v7718_v55  ;;  %v2817_v3 = vsub.f32 1.0, %v2753_v16  ;;  %v2752_v36 = vmul.f32 %v7719_v35, %v2432_v5  ;;  %v2755_v52 = vmul.f32 %v7720_v41, %v2435_v2  ;;  %v7732_v5 = vld [vmem:[#allocation168_spill] sm:$0xff] }
 0x284   : > { %v2754_v31 = vmul.f32 %v7721_v12, %v2434_v59  ;;  %v2437_v33 = vmul.f32 %v7712_v37, %v2373_v15  ;;  %v2372_v57 = vadd.f32 0.2548296, %v2308_v1  ;;  %v3007_v20 = vmul.f32 %v2943_v19, %v7722_v10  ;;  %v7733_v1 = vld [vmem:[#allocation139_spill] sm:$0xff]  ;;  %v7737_v12 = vld [vmem:[#allocation174_spill] sm:$0xff]  ;;  %v7738_v10 = vld [vmem:[#allocation220_spill] sm:$0xff] }
 0x285   : > { %v2942_v50 = vadd.f32 1.0, %v2878_v30  ;;  %v2881_v7 = vmul.f32 %v2817_v3, %v7723_v6  ;;  %v2816_v34 = vsub.f32 1.0, %v2752_v36  ;;  %v2819_v28 = vsub.f32 1.0, %v2755_v52  ;;  %v7734_v30 = vld [vmem:[#allocation211_spill] sm:$0xff] }
 0x286   : > { %v2818_v24 = vsub.f32 1.0, %v2754_v31  ;;  %v2757_v13 = vmul.f32 %v7724_v47, %v2437_v33  ;;  %v2436_v42 = vmul.f32 %v7713_v62, %v2372_v57  ;;  %v3071_v54 = vmul.f32 %v6451_v11, %v3007_v20  ;;  %v7731_v62 = vld [vmem:[#allocation205_spill] sm:$0xff]  ;;  %v7736_v36 = vld [vmem:[#allocation159_spill] sm:$0xff] }
 0x287   : > { %v3006_v56 = vmul.f32 %v2942_v50, %v7725_v40  ;;  %v2945_v48 = vadd.f32 1.0, %v2881_v7  ;;  %v2880_v37 = vmul.f32 %v2816_v34, %v7726_v44  ;;  %v2883_v39 = vmul.f32 %v2819_v28, %v7727_v17  ;;  %v7739_v7 = vld [vmem:[#allocation167_spill] sm:$0xff]  ;;  %v7741_v40 = vld [vmem:[#allocation172_spill] sm:$0xff] }
 0x288   : > { %v2882_v53 = vmul.f32 %v2818_v24, %v7728_v32  ;;  %v2821_v43 = vsub.f32 1.0, %v2757_v13  ;;  %v2756_v46 = vmul.f32 %v7729_v61, %v2436_v42  ;;  %v1927_v29 = vmul.f32 1.0614054, %v7731_v62  ;;  %v7740_v42 = vld [vmem:[#allocation229_spill] sm:$0xff] }
 0x289   : > { %v3070_v58 = vmul.f32 %v3006_v56, %v6499_v25  ;;  %v3009_v23 = vmul.f32 %v2945_v48, %v7730_v49  ;;  %v2944_v21 = vadd.f32 1.0, %v2880_v37  ;;  %v2947_v11 = vadd.f32 1.0, %v2883_v39  ;;  %v7735_v25 = vld [vmem:[#allocation151_spill] sm:$0xff] }
 0x28a   : > { %v2946_v16 = vadd.f32 1.0, %v2882_v53  ;;  %v2885_v2 = vmul.f32 %v2821_v43, %v7732_v5  ;;  %v2820_v59 = vsub.f32 1.0, %v2756_v46  ;;  %v1991_v55 = vadd.f32 -1.4531521, %v1927_v29  ;;  %v7744_v46 = vld [vmem:[#allocation72_spill] sm:$0xff] }
 0x28b   : > { %v3073_v15 = vmul.f32 %v6505_v45, %v3009_v23  ;;  %4558 = vmatprep.mubr.msk.f32.mxu0 %vm3151_vm0, %v3070_v58  ;;  %v3008_v19 = vmul.f32 %v2944_v21, %v7733_v1  ;;  %v1926_v3 = vmul.f32 1.0614054, %v7734_v30  ;;  %v3011_v35 = vmul.f32 %v2947_v11, %v7735_v25  ;;  %v7745_v5 = vld [vmem:[#allocation248_spill] sm:$0xff] }
 0x28c   : > { %4559 = vmatmul.mubr.msk.f32.gmra.mrb[80].mxu0 %vm3151_vm0, %v3071_v54  ;;  %v3010_v41 = vmul.f32 %v2946_v16, %v7736_v36  ;;  %v2949_v52 = vadd.f32 1.0, %v2885_v2  ;;  %v2884_v31 = vmul.f32 %v2820_v59, %v7737_v12  ;;  %v2055_v45 = vmul.f32 %v7731_v62, %v1991_v55 }
 0x28d   : > { %v3072_v33 = vmul.f32 %v3008_v19, %v6512_v60  ;;  %v1990_v57 = vadd.f32 -1.4531521, %v1926_v3  ;;  %v1929_v20 = vmul.f32 1.0614054, %v7738_v10  ;;  %v3075_v50 = vmul.f32 %v6519_v14, %v3011_v35  ;;  %v7742_v14 = vld [vmem:[#allocation240_spill] sm:$0xff] }
 0x28e   : > { %v3074_v6 = vmul.f32 %v3010_v41, %v6526_v51  ;;  %v3013_v34 = vmul.f32 %v2949_v52, %v7739_v7  ;;  %v2948_v28 = vadd.f32 1.0, %v2884_v31  ;;  %v2119_v24 = vadd.f32 1.4214138, %v2055_v45  ;;  %v7743_v51 = vld [vmem:[#allocation37_spill] sm:$0xff] }
 0x28f   : > { %4561 = vmatprep.mubr.msk.f32.mxu0 %vm3151_vm0, %v3072_v33  ;;  %v2054_v47 = vmul.f32 %v7734_v30, %v1990_v57  ;;  %v1993_v13 = vadd.f32 -1.4531521, %v1929_v20  ;;  %v1928_v60 = vmul.f32 1.0614054, %v7740_v42  ;;  %v1931_v48 = vmul.f32 1.0614054, %v7742_v14 }
 0x290   : > { %4562 = vmatmul.mubr.msk.f32.gmra.mrb[82].mxu0 %vm3151_vm0, %v3073_v15  ;;  %v3077_v54 = vmul.f32 %v6531_v4, %v3013_v34  ;;  %v3012_v56 = vmul.f32 %v2948_v28, %v7741_v40  ;;  %v1930_v44 = vmul.f32 1.0614054, %v7743_v51  ;;  %v2183_v37 = vmul.f32 %v7731_v62, %v2119_v24 }
 0x291   : > { %4564 = vmatprep.mubr.msk.f32.mxu0 %vm3151_vm0, %v3074_v6  ;;  %v2118_v17 = vadd.f32 1.4214138, %v2054_v47  ;;  %v2057_v39 = vmul.f32 %v7738_v10, %v1993_v13  ;;  %v1992_v32 = vadd.f32 -1.4531521, %v1928_v60  ;;  %v1995_v43 = vadd.f32 -1.4531521, %v1931_v48 }
 0x292   : > { %v3076_v53 = vmul.f32 %v3012_v56, %v6536_v9  ;;  %v1994_v61 = vadd.f32 -1.4531521, %v1930_v44  ;;  %v1933_v4 = vmul.f32 1.0614054, %v7744_v46  ;;  %v2247_v58 = vadd.f32 -0.28449672, %v2183_v37 }
 0x293   : > { %v2182_v49 = vmul.f32 %v7734_v30, %v2118_v17  ;;  %v2121_v23 = vadd.f32 1.4214138, %v2057_v39  ;;  %v2056_v21 = vmul.f32 %v7740_v42, %v1992_v32  ;;  %v2059_v29 = vmul.f32 %v7742_v14, %v1995_v43  ;;  %v7746_v47 = vld [vmem:[#allocation206_spill] sm:$0xff]  ;;  %v7747_v56 = vld [vmem:[#allocation228_spill] sm:$0xff] }
 0x294   : > { %4565 = vmatmul.mubr.msk.f32.gmra.mrb[84].mxu0 %vm3151_vm0, %v3075_v50  ;;  %v2058_v11 = vmul.f32 %v7743_v51, %v1994_v61  ;;  %v1997_v16 = vadd.f32 -1.4531521, %v1933_v4  ;;  %v1932_v2 = vmul.f32 1.0614054, %v7745_v5  ;;  %v2311_v9 = vmul.f32 %v7731_v62, %v2247_v58  ;;  %v7748_v39 = vld [vmem:[#allocation214_spill] sm:$0xff] }
 0x295   : > { %4567 = vmatprep.mubr.msk.f32.mxu0 %vm3151_vm0, %v3076_v53  ;;  %v2246_v59 = vadd.f32 -0.28449672, %v2182_v49  ;;  %v2185_v15 = vmul.f32 %v7738_v10, %v2121_v23  ;;  %v2120_v1 = vadd.f32 1.4214138, %v2056_v21  ;;  %v2123_v19 = vadd.f32 1.4214138, %v2059_v29 }
 0x296   : > { %v2122_v55 = vadd.f32 1.4214138, %v2058_v11  ;;  %v2061_v3 = vmul.f32 %v7744_v46, %v1997_v16  ;;  %v1996_v25 = vadd.f32 -1.4531521, %v1932_v2  ;;  %v2375_v35 = vadd.f32 0.2548296, %v2311_v9 }
 0x297   : > { %v2310_v36 = vmul.f32 %v7734_v30, %v2246_v59  ;;  %v2249_v41 = vadd.f32 -0.28449672, %v2185_v15  ;;  %v2184_v52 = vmul.f32 %v7740_v42, %v2120_v1  ;;  %v2187_v12 = vmul.f32 %v7742_v14, %v2123_v19  ;;  %v7749_v61 = vld [vmem:[#allocation238_spill] sm:$0xff]  ;;  %v7751_v11 = vld [vmem:[#allocation223_spill] sm:$0xff]  ;;  %v7752_v19 = vld [vmem:[#allocation197_spill] sm:$0xff] }
 0x298   : > { %4568 = vmatmul.mubr.msk.f32.gmra.mrb[86].mxu0 %vm3151_vm0, %v3077_v54  ;;  %v2186_v31 = vmul.f32 %v7743_v51, %v2122_v55  ;;  %v2125_v33 = vadd.f32 1.4214138, %v2061_v3  ;;  %v2060_v45 = vmul.f32 %v7745_v5, %v1996_v25  ;;  %v2439_v57 = vmul.f32 %v7731_v62, %v2375_v35  ;;  %v7750_v23 = vld [vmem:[#allocation186_spill] sm:$0xff]  ;;  %v7753_v25 = vld [vmem:[#allocation231_spill] sm:$0xff] }
 0x299   : > { %v2374_v20 = vadd.f32 0.2548296, %v2310_v36  ;;  %v2313_v50 = vmul.f32 %v7738_v10, %v2249_v41  ;;  %v2248_v6 = vadd.f32 -0.28449672, %v2184_v52  ;;  %v2251_v7 = vadd.f32 -0.28449672, %v2187_v12 }
 0x29a   : > { %v2250_v34 = vadd.f32 -0.28449672, %v2186_v31  ;;  %v2189_v28 = vmul.f32 %v7744_v46, %v2125_v33  ;;  %v2124_v24 = vadd.f32 1.4214138, %v2060_v45  ;;  %v2759_v13 = vmul.f32 %v7746_v47, %v2439_v57  ;;  %v7754_v36 = vld [vmem:[#allocation242_spill] sm:$0xff]  ;;  %v7755_v52 = vld [vmem:[#allocation47_spill] sm:$0xff] }
 0x29b   : > { %v2438_v60 = vmul.f32 %v7734_v30, %v2374_v20  ;;  %v2377_v54 = vadd.f32 0.2548296, %v2313_v50  ;;  %v2312_v40 = vmul.f32 %v7740_v42, %v2248_v6  ;;  %vm1485_vm1 = vcmp.lt.f32.partialorder %v7747_v56, 0.0  ;;  %v7756_v33 = vld [vmem:[#allocation177_spill] sm:$0xff] }
 0x29c   : > { %v2315_v62 = vmul.f32 %v7742_v14, %v2251_v7  ;;  %v2314_v48 = vmul.f32 %v7743_v51, %v2250_v34  ;;  %v2253_v44 = vadd.f32 -0.28449672, %v2189_v28  ;;  %v2188_v37 = vmul.f32 %v7745_v5, %v2124_v24  ;;  %v7758_v7 = vld [vmem:[#allocation246_spill] sm:$0xff]  ;;  %v7759_v47 = vld [vmem:[#allocation189_spill] sm:$0xff] }
 0x29d   : > { %v2823_v17 = vsub.f32 1.0, %v2759_v13  ;;  %v2758_v32 = vmul.f32 %v7748_v39, %v2438_v60  ;;  %v2441_v53 = vmul.f32 %v7738_v10, %v2377_v54  ;;  %v2376_v43 = vadd.f32 0.2548296, %v2312_v40  ;;  %v7761_v40 = vld [vmem:[#allocation217_spill] sm:$0xff] }
 0x29e   : > { %vm1484_vm2 = vcmp.lt.f32.partialorder %v7749_v61, 0.0  ;;  %v2379_v30 = vadd.f32 0.2548296, %v2315_v62  ;;  %v2378_v4 = vadd.f32 0.2548296, %v2314_v48  ;;  %v2317_v58 = vmul.f32 %v7744_v46, %v2253_v44  ;;  %v7762_v48 = vld [vmem:[#allocation232_spill] sm:$0xff] }
 0x29f   : > { %v2252_v49 = vadd.f32 -0.28449672, %v2188_v37  ;;  %v2887_v21 = vmul.f32 %v2823_v17, %v7750_v23  ;;  %v2822_v29 = vsub.f32 1.0, %v2758_v32  ;;  %v2761_v16 = vmul.f32 %v7751_v11, %v2441_v53  ;;  %v7763_v17 = vld [vmem:[#allocation18_spill] sm:$0xff]  ;;  %v7767_v11 = vld [vmem:[#allocation207_spill] sm:$0xff] }
 0x2a0   : > { %v2440_v2 = vmul.f32 %v7740_v42, %v2376_v43  ;;  %v2443_v9 = vmul.f32 %v7742_v14, %v2379_v30  ;;  %v2442_v59 = vmul.f32 %v7743_v51, %v2378_v4  ;;  %v2381_v10 = vadd.f32 0.2548296, %v2317_v58  ;;  %v7757_v51 = vld [vmem:[#allocation203_spill] sm:$0xff] }
 0x2a1   : > { %v2316_v15 = vmul.f32 %v7745_v5, %v2252_v49  ;;  %v2951_v1 = vadd.f32 1.0, %v2887_v21  ;;  %v2886_v55 = vmul.f32 %v2822_v29, %v7752_v19  ;;  %v2825_v3 = vsub.f32 1.0, %v2761_v16  ;;  %v7765_v43 = vld [vmem:[#allocation199_spill] sm:$0xff]  ;;  %v7766_v21 = vld [vmem:[#allocation68_spill] sm:$0xff] }
 0x2a2   : > { %v2760_v35 = vmul.f32 %v7753_v25, %v2440_v2  ;;  %v2763_v41 = vmul.f32 %v7754_v36, %v2443_v9  ;;  %v2762_v12 = vmul.f32 %v7755_v52, %v2442_v59  ;;  %v2445_v31 = vmul.f32 %v7744_v46, %v2381_v10  ;;  %v7760_v46 = vld [vmem:[#allocation209_spill] sm:$0xff]  ;;  %v7768_v2 = vld [vmem:[#allocation216_spill] sm:$0xff]  ;;  %v3088_v19 = vld [vmem:[%s6962_s25 + $0x8] sm:$0xff] }
 0x2a3   : > { %v2380_v42 = vadd.f32 0.2548296, %v2316_v15  ;;  %v3015_v14 = vmul.f32 %v2951_v1, %v7756_v33  ;;  %v2950_v45 = vadd.f32 1.0, %v2886_v55  ;;  %v2889_v57 = vmul.f32 %v2825_v3, %v7757_v51  ;;  %v7769_v59 = vld [vmem:[#allocation221_spill] sm:$0xff]  ;;  %v3087_v55 = vld [vmem:[%s6962_s25] sm:$0xff]  ;;  %v7770_v61 = vld [vmem:[#allocation71_spill] sm:$0xff] }
 0x2a4   : > { %v2824_v20 = vsub.f32 1.0, %v2760_v35  ;;  %v2827_v50 = vsub.f32 1.0, %v2763_v41  ;;  %v2826_v6 = vsub.f32 1.0, %v2762_v12  ;;  %v2765_v34 = vmul.f32 %v7758_v7, %v2445_v31  ;;  %v3089_v33 = vld [vmem:[%s6962_s25 + $0x10] sm:$0xff] }
 0x2a5   : > { %v2444_v28 = vmul.f32 %v7745_v5, %v2380_v42  ;;  %v3079_v24 = vmul.f32 %v6547_v26, %v3015_v14  ;;  %v3014_v13 = vmul.f32 %v2950_v45, %v7759_v47  ;;  %v2953_v60 = vadd.f32 1.0, %v2889_v57  ;;  %v3090_v42 = vld [vmem:[%s6962_s25 + $0x18] sm:$0xff] }
 0x2a6   : > { %v2888_v54 = vmul.f32 %v2824_v20, %v7760_v46  ;;  %v2891_v62 = vmul.f32 %v2827_v50, %v7761_v40  ;;  %v2890_v44 = vmul.f32 %v2826_v6, %v7762_v48  ;;  %v2829_v37 = vsub.f32 1.0, %v2765_v34  ;;  %v3091_v50 = vld [vmem:[%s6962_s25 + $0x20] sm:$0xff] }
 0x2a7   : > { %v2764_v39 = vmul.f32 %v7763_v17, %v2444_v28  ;;  %v7764_v32 = vmov 1.0   ;;  %v3078_v5 = vmul.f32 %v3014_v13, %v6595_v0  ;;  %v3017_v26 = vmul.f32 %v2953_v60, %v7765_v43  ;;  %v3094_v28 = vld [vmem:[%s6962_s25 + $0x38] sm:$0xff]  ;;  %v3095_v40 = vld [vmem:[%s6962_s25 + $0x40] sm:$0xff] }
 0x2a8   : > { %v1549_v53 = vsel %vm1485_vm1, -1.0, %v7764_v32  ;;  %v2952_v30 = vadd.f32 1.0, %v2888_v54  ;;  %v2955_v4 = vadd.f32 1.0, %v2891_v62  ;;  %v2954_v58 = vadd.f32 1.0, %v2890_v44  ;;  %v3096_v54 = vld [vmem:[%s6962_s25 + $0x48] sm:$0xff]  ;;  %v3098_v17 = vld [vmem:[%s6962_s25 + $0x58] sm:$0xff] }
 0x2a9   : > { %v2893_v49 = vmul.f32 %v2829_v37, %v1549_v53  ;;  %v2828_v23 = vsub.f32 1.0, %v2764_v39  ;;  %v1357_v29 = vmul.f32 0.5, %v7766_v21  ;;  %v1548_v0 = vsel %vm1484_vm2, -1.0, %v7764_v32  ;;  %4570 = vmatprep.mubr.msk.f32.mxu0 %vm3151_vm0, %v3078_v5  ;;  %v3097_v39 = vld [vmem:[%s6962_s25 + $0x50] sm:$0xff]  ;;  %v3102_v21 = vld [vmem:[%s6962_s25 + $0x78] sm:$0xff] }
 0x2aa   : > { %v3081_v56 = vmul.f32 %v6601_v27, %v3017_v26  ;;  %v3016_v16 = vmul.f32 %v2952_v30, %v7767_v11  ;;  %4571 = vmatmul.mubr.msk.f32.gmra.mrb[88].mxu0 %vm3151_vm0, %v3079_v24  ;;  %v3019_v9 = vmul.f32 %v2955_v4, %v7768_v2  ;;  %v3018_v10 = vmul.f32 %v2954_v58, %v7769_v59  ;;  %v4488_v25 = vpop.f32.mrb[32].mxu0  ;;  %v3093_v24 = vld [vmem:[%s6962_s25 + $0x30] sm:$0xff]  ;;  %v3100_v26 = vld [vmem:[%s6962_s25 + $0x68] sm:$0xff]  ;;  %v3099_v30 = vld [vmem:[%s6962_s25 + $0x60] sm:$0xff] }
 0x2ab   : > { %v2957_v15 = vadd.f32 1.0, %v2893_v49  ;;  %v2892_v1 = vmul.f32 %v2828_v23, %v1548_v0  ;;  %v1356_v3 = vmul.f32 0.5, %v7770_v61  ;;  %vm3729_vm3 = vcmask 31744   ;;  %v3410_v12 = vpop.f32.mrb[33].mxu0  ;;  %v3104_v2 = vld [vmem:[%s6962_s25 + $0x88] sm:$0xff] }
 0x2ac   : > { %v3080_v27 = vmul.f32 %v3016_v16, %v6608_v18  ;;  %v3083_v35 = vmul.f32 %v6615_v8, %v3019_v9  ;;  %v3082_v36 = vmul.f32 %v3018_v10, %v6622_v63  ;;  %v3416_v18 = vadd.f32 %v4488_v25, %v3088_v19  ;;  %v3103_v9 = vld [vmem:[%s6962_s25 + $0x80] sm:$0xff]  ;;  %v3106_v19 = vld [vmem:[%s6962_s25 + $0x98] sm:$0xff] }
 0x2ad   : > { %v3021_v41 = vmul.f32 %v2957_v15, %v1357_v29  ;;  %v2956_v52 = vadd.f32 1.0, %v2892_v1  ;;  %v3411_v31 = vadd.f32 %v3410_v12, %v3087_v55  ;;  %v3101_v29 = vld [vmem:[%s6962_s25 + $0x70] sm:$0xff] }
 0x2ae   : > { %4573 = vmatprep.mubr.msk.f32.mxu0 %vm3151_vm0, %v3080_v27  ;;  %3731 = vst.msk [vmem:[%s6984_s28 + $0x8] sm:$0xff] %vm3729_vm3, %v3416_v18  ;;  %v3105_v55 = vld [vmem:[%s6962_s25 + $0x90] sm:$0xff] }
 0x2af   : > { %4574 = vmatmul.mubr.msk.f32.gmra.mrb[90].mxu0 %vm3151_vm0, %v3081_v56  ;;  %v3085_v8 = vmul.f32 %v6627_v38, %v3021_v41  ;;  %v3020_v63 = vmul.f32 %v2956_v52, %v1356_v3  ;;  %3730 = vst.msk [vmem:[%s6984_s28] sm:$0xff] %vm3729_vm3, %v3411_v31  ;;  %v4491_v14 = vpop.f32.mrb[34].mxu0  ;;  %v3092_v38 = vld [vmem:[%s6962_s25 + $0x28] sm:$0xff]  ;;  %v3110_v31 = vld [vmem:[%s6962_s25 + $0xb8] sm:$0xff] }
 0x2b0   : > { %4576 = vmatprep.mubr.msk.f32.mxu0 %vm3151_vm0, %v3082_v36  ;;  %v3426_v51 = vadd.f32 %v4491_v14, %v3090_v42  ;;  %v3420_v57 = vpop.f32.mrb[35].mxu0  ;;  %v3107_v36 = vld [vmem:[%s6962_s25 + $0xa0] sm:$0xff]  ;;  %v3109_v42 = vld [vmem:[%s6962_s25 + $0xb0] sm:$0xff] }
 0x2b1   : > { %v3084_v45 = vmul.f32 %v3020_v63, %v6632_v22  ;;  %v3421_v20 = vadd.f32 %v3420_v57, %v3089_v33 }
 0x2b2   : > { %3733 = vst.msk [vmem:[%s6984_s28 + $0x18] sm:$0xff] %vm3729_vm3, %v3426_v51  ;;  %v3111_v51 = vld [vmem:[%s6962_s25 + $0xc0] sm:$0xff] }
 0x2b3   : > { %4577 = vmatmul.mubr.msk.f32.gmra.mrb[92].mxu0 %vm3151_vm0, %v3083_v35  ;;  %3732 = vst.msk [vmem:[%s6984_s28 + $0x10] sm:$0xff] %vm3729_vm3, %v3421_v20  ;;  %v4494_v22 = vpop.f32.mrb[36].mxu0  ;;  %v3108_v35 = vld [vmem:[%s6962_s25 + $0xa8] sm:$0xff] }
 0x2b4   : > { %4579 = vmatprep.mubr.msk.f32.mxu0 %vm3151_vm0, %v3084_v45  ;;  %v3436_v6 = vadd.f32 %v4494_v22, %v3092_v38  ;;  %v3430_v7 = vpop.f32.mrb[37].mxu0  ;;  %v3112_v45 = vld [vmem:[%s6962_s25 + $0xc8] sm:$0xff]  ;;  %v3114_v22 = vld [vmem:[%s6962_s25 + $0xd8] sm:$0xff] }
 0x2b5   : > { %v3431_v34 = vadd.f32 %v3430_v7, %v3091_v50 }
 0x2b6   : > { %3735 = vst.msk [vmem:[%s6984_s28 + $0x28] sm:$0xff] %vm3729_vm3, %v3436_v6  ;;  %v3113_v6 = vld [vmem:[%s6962_s25 + $0xd0] sm:$0xff] }
 0x2b7   : > { %4580 = vmatmul.mubr.msk.f32.gmra.mrb[94].mxu0 %vm3151_vm0, %v3085_v8  ;;  %3734 = vst.msk [vmem:[%s6984_s28 + $0x20] sm:$0xff] %vm3729_vm3, %v3431_v34  ;;  %v4497_v47 = vpop.f32.mrb[38].mxu0 }
 0x2b8   : > { %v3446_v13 = vadd.f32 %v4497_v47, %v3094_v28  ;;  %v3440_v60 = vpop.f32.mrb[39].mxu0  ;;  %v3116_v47 = vld [vmem:[%s6962_s25 + $0xe8] sm:$0xff] }
 0x2b9   : > { %v3441_v46 = vadd.f32 %v3440_v60, %v3093_v24 }
 0x2ba   : > { %3737 = vst.msk [vmem:[%s6984_s28 + $0x38] sm:$0xff] %vm3729_vm3, %v3446_v13  ;;  %v3115_v13 = vld [vmem:[%s6962_s25 + $0xe0] sm:$0xff] }
 0x2bb   : > { %3736 = vst.msk [vmem:[%s6984_s28 + $0x30] sm:$0xff] %vm3729_vm3, %v3441_v46 }
 0x2c8   : > { %v4500_v62 = vpop.f32.mrb[40].mxu0 }
 0x2c9   : > { %v3456_v48 = vadd.f32 %v4500_v62, %v3096_v54  ;;  %v3450_v44 = vpop.f32.mrb[41].mxu0  ;;  %v3118_v62 = vld [vmem:[%s6962_s25 + $0xf8] sm:$0xff] }
 0x2ca   : > { %v3451_v37 = vadd.f32 %v3450_v44, %v3095_v40 }
 0x2cb   : > { %3739 = vst.msk [vmem:[%s6984_s28 + $0x48] sm:$0xff] %vm3729_vm3, %v3456_v48  ;;  %v3117_v48 = vld [vmem:[%s6962_s25 + $0xf0] sm:$0xff] }
 0x2cc   : > { %3738 = vst.msk [vmem:[%s6984_s28 + $0x40] sm:$0xff] %vm3729_vm3, %v3451_v37 }
 0x2cd   : > { %v4503_v32 = vpop.f32.mrb[42].mxu0 }
 0x2ce   : > { %v3466_v53 = vadd.f32 %v4503_v32, %v3098_v17  ;;  %v3460_v5 = vpop.f32.mrb[43].mxu0  ;;  %v3120_v32 = vld [vmem:[%s6962_s25 + $0x108] sm:$0xff] }
 0x2cf   : > { %v3461_v43 = vadd.f32 %v3460_v5, %v3097_v39 }
 0x2d0   : > { %3741 = vst.msk [vmem:[%s6984_s28 + $0x58] sm:$0xff] %vm3729_vm3, %v3466_v53  ;;  %v3119_v53 = vld [vmem:[%s6962_s25 + $0x100] sm:$0xff] }
 0x2d1   : > { %3740 = vst.msk [vmem:[%s6984_s28 + $0x50] sm:$0xff] %vm3729_vm3, %v3461_v43  ;;  %v4506_v4 = vpop.f32.mrb[44].mxu0 }
 0x2d2   : > { %v3476_v58 = vadd.f32 %v4506_v4, %v3100_v26  ;;  %v3470_v49 = vpop.f32.mrb[45].mxu0  ;;  %v3122_v4 = vld [vmem:[%s6962_s25 + $0x118] sm:$0xff] }
 0x2d3   : > { %v3471_v23 = vadd.f32 %v3470_v49, %v3099_v30 }
 0x2d4   : > { %3743 = vst.msk [vmem:[%s6984_s28 + $0x68] sm:$0xff] %vm3729_vm3, %v3476_v58  ;;  %v3121_v58 = vld [vmem:[%s6962_s25 + $0x110] sm:$0xff] }
 0x2d5   : > { %3742 = vst.msk [vmem:[%s6984_s28 + $0x60] sm:$0xff] %vm3729_vm3, %v3471_v23  ;;  %v4509_v0 = vpop.f32.mrb[46].mxu0 }
 0x2d6   : > { %v3486_v56 = vadd.f32 %v4509_v0, %v3102_v21  ;;  %v3480_v11 = vpop.f32.mrb[47].mxu0  ;;  %v3124_v0 = vld [vmem:[%s6962_s25 + $0x128] sm:$0xff] }
 0x2d7   : > { %v3481_v16 = vadd.f32 %v3480_v11, %v3101_v29 }
 0x2d8   : > { %3745 = vst.msk [vmem:[%s6984_s28 + $0x78] sm:$0xff] %vm3729_vm3, %v3486_v56  ;;  %v3123_v56 = vld [vmem:[%s6962_s25 + $0x120] sm:$0xff] }
 0x2d9   : > { %3744 = vst.msk [vmem:[%s6984_s28 + $0x70] sm:$0xff] %vm3729_vm3, %v3481_v16 }
 0x2e6   : > { %v4512_v59 = vpop.f32.mrb[48].mxu0 }
 0x2e7   : > { %v3496_v10 = vadd.f32 %v4512_v59, %v3104_v2  ;;  %v3490_v15 = vpop.f32.mrb[49].mxu0  ;;  %v3126_v59 = vld [vmem:[%s6962_s25 + $0x138] sm:$0xff] }
 0x2e8   : > { %v3491_v1 = vadd.f32 %v3490_v15, %v3103_v9 }
 0x2e9   : > { %3747 = vst.msk [vmem:[%s6984_s28 + $0x88] sm:$0xff] %vm3729_vm3, %v3496_v10  ;;  %v3125_v10 = vld [vmem:[%s6962_s25 + $0x130] sm:$0xff] }
 0x2ea   : > { %3746 = vst.msk [vmem:[%s6984_s28 + $0x80] sm:$0xff] %vm3729_vm3, %v3491_v1 }
 0x2eb   : > { %v4515_v61 = vpop.f32.mrb[50].mxu0 }
 0x2ec   : > { %v3506_v3 = vadd.f32 %v4515_v61, %v3106_v19  ;;  %v3500_v27 = vpop.f32.mrb[51].mxu0  ;;  %v3128_v61 = vld [vmem:[%s6962_s25 + $0x148] sm:$0xff] }
 0x2ed   : > { %v3501_v25 = vadd.f32 %v3500_v27, %v3105_v55 }
 0x2ee   : > { %3749 = vst.msk [vmem:[%s6984_s28 + $0x98] sm:$0xff] %vm3729_vm3, %v3506_v3  ;;  %v3127_v3 = vld [vmem:[%s6962_s25 + $0x140] sm:$0xff] }
 0x2ef   : > { %3748 = vst.msk [vmem:[%s6984_s28 + $0x90] sm:$0xff] %vm3729_vm3, %v3501_v25  ;;  %v4518_v41 = vpop.f32.mrb[52].mxu0 }
 0x2f0   : > { %v3516_v52 = vadd.f32 %v4518_v41, %v3108_v35  ;;  %v3510_v12 = vpop.f32.mrb[53].mxu0  ;;  %v3130_v41 = vld [vmem:[%s6962_s25 + $0x158] sm:$0xff] }
 0x2f1   : > { %v3511_v18 = vadd.f32 %v3510_v12, %v3107_v36 }
 0x2f2   : > { %3751 = vst.msk [vmem:[%s6984_s28 + $0xa8] sm:$0xff] %vm3729_vm3, %v3516_v52  ;;  %v3129_v52 = vld [vmem:[%s6962_s25 + $0x150] sm:$0xff] }
 0x2f3   : > { %3750 = vst.msk [vmem:[%s6984_s28 + $0xa0] sm:$0xff] %vm3729_vm3, %v3511_v18  ;;  %v4521_v8 = vpop.f32.mrb[54].mxu0 }
 0x2f4   : > { %v3526_v63 = vadd.f32 %v4521_v8, %v3110_v31  ;;  %v3520_v33 = vpop.f32.mrb[55].mxu0  ;;  %v3132_v8 = vld [vmem:[%s6962_s25 + $0x168] sm:$0xff] }
 0x2f5   : > { %v3521_v14 = vadd.f32 %v3520_v33, %v3109_v42 }
 0x2f6   : > { %3753 = vst.msk [vmem:[%s6984_s28 + $0xb8] sm:$0xff] %vm3729_vm3, %v3526_v63  ;;  %v3131_v63 = vld [vmem:[%s6962_s25 + $0x160] sm:$0xff] }
 0x2f7   : > { %3752 = vst.msk [vmem:[%s6984_s28 + $0xb0] sm:$0xff] %vm3729_vm3, %v3521_v14 }
 0x304   : > { %v4524_v57 = vpop.f32.mrb[56].mxu0 }
 0x305   : > { %v3536_v20 = vadd.f32 %v4524_v57, %v3112_v45  ;;  %v3530_v38 = vpop.f32.mrb[57].mxu0  ;;  %v3134_v57 = vld [vmem:[%s6962_s25 + $0x178] sm:$0xff] }
 0x306   : > { %v3531_v50 = vadd.f32 %v3530_v38, %v3111_v51 }
 0x307   : > { %3755 = vst.msk [vmem:[%s6984_s28 + $0xc8] sm:$0xff] %vm3729_vm3, %v3536_v20  ;;  %v3133_v20 = vld [vmem:[%s6962_s25 + $0x170] sm:$0xff] }
 0x308   : > { %3754 = vst.msk [vmem:[%s6984_s28 + $0xc0] sm:$0xff] %vm3729_vm3, %v3531_v50 }
 0x309   : > { %v4527_v7 = vpop.f32.mrb[58].mxu0 }
 0x30a   : > { %v3546_v34 = vadd.f32 %v4527_v7, %v3114_v22  ;;  %v3540_v28 = vpop.f32.mrb[59].mxu0  ;;  %v3136_v7 = vld [vmem:[%s6962_s25 + $0x188] sm:$0xff] }
 0x30b   : > { %v3541_v24 = vadd.f32 %v3540_v28, %v3113_v6 }
 0x30c   : > { %3757 = vst.msk [vmem:[%s6984_s28 + $0xd8] sm:$0xff] %vm3729_vm3, %v3546_v34  ;;  %v3135_v34 = vld [vmem:[%s6962_s25 + $0x180] sm:$0xff] }
 0x30d   : > { %3756 = vst.msk [vmem:[%s6984_s28 + $0xd0] sm:$0xff] %vm3729_vm3, %v3541_v24  ;;  %v4530_v60 = vpop.f32.mrb[60].mxu0 }
 0x30e   : > { %v3556_v46 = vadd.f32 %v4530_v60, %v3116_v47  ;;  %v3550_v54 = vpop.f32.mrb[61].mxu0  ;;  %v3138_v60 = vld [vmem:[%s6962_s25 + $0x198] sm:$0xff] }
 0x30f   : > { %v3551_v40 = vadd.f32 %v3550_v54, %v3115_v13 }
 0x310   : > { %3759 = vst.msk [vmem:[%s6984_s28 + $0xe8] sm:$0xff] %vm3729_vm3, %v3556_v46  ;;  %v3137_v46 = vld [vmem:[%s6962_s25 + $0x190] sm:$0xff] }
 0x311   : > { %3758 = vst.msk [vmem:[%s6984_s28 + $0xe0] sm:$0xff] %vm3729_vm3, %v3551_v40  ;;  %v4533_v44 = vpop.f32.mrb[62].mxu0 }
 0x312   : > { %v3566_v37 = vadd.f32 %v4533_v44, %v3118_v62  ;;  %v3560_v17 = vpop.f32.mrb[63].mxu0  ;;  %v3140_v44 = vld [vmem:[%s6962_s25 + $0x1a8] sm:$0xff] }
 0x313   : > { %v3561_v39 = vadd.f32 %v3560_v17, %v3117_v48 }
 0x314   : > { %3761 = vst.msk [vmem:[%s6984_s28 + $0xf8] sm:$0xff] %vm3729_vm3, %v3566_v37  ;;  %v3139_v37 = vld [vmem:[%s6962_s25 + $0x1a0] sm:$0xff] }
 0x315   : > { %3760 = vst.msk [vmem:[%s6984_s28 + $0xf0] sm:$0xff] %vm3729_vm3, %v3561_v39 }
 0x323   : > { %v4536_v5 = vpop.f32.mrb[64].mxu0 }
 0x324   : > { %v3576_v43 = vadd.f32 %v4536_v5, %v3120_v32  ;;  %v3570_v26 = vpop.f32.mrb[65].mxu0  ;;  %v3142_v5 = vld [vmem:[%s6962_s25 + $0x1b8] sm:$0xff] }
 0x325   : > { %v3571_v30 = vadd.f32 %v3570_v26, %v3119_v53 }
 0x326   : > { %3763 = vst.msk [vmem:[%s6984_s28 + $0x108] sm:$0xff] %vm3729_vm3, %v3576_v43  ;;  %v3141_v43 = vld [vmem:[%s6962_s25 + $0x1b0] sm:$0xff] }
 0x327   : > { %3762 = vst.msk [vmem:[%s6984_s28 + $0x100] sm:$0xff] %vm3729_vm3, %v3571_v30  ;;  %v4539_v49 = vpop.f32.mrb[66].mxu0 }
 0x328   : > { %v3586_v23 = vadd.f32 %v4539_v49, %v3122_v4  ;;  %v3580_v21 = vpop.f32.mrb[67].mxu0  ;;  %v3144_v49 = vld [vmem:[%s6962_s25 + $0x1c8] sm:$0xff] }
 0x329   : > { %v3581_v29 = vadd.f32 %v3580_v21, %v3121_v58 }
 0x32a   : > { %3765 = vst.msk [vmem:[%s6984_s28 + $0x118] sm:$0xff] %vm3729_vm3, %v3586_v23  ;;  %v3143_v23 = vld [vmem:[%s6962_s25 + $0x1c0] sm:$0xff] }
 0x32b   : > { %3764 = vst.msk [vmem:[%s6984_s28 + $0x110] sm:$0xff] %vm3729_vm3, %v3581_v29  ;;  %v4542_v11 = vpop.f32.mrb[68].mxu0 }
 0x32c   : > { %v3596_v16 = vadd.f32 %v4542_v11, %v3124_v0  ;;  %v3590_v2 = vpop.f32.mrb[69].mxu0  ;;  %v3146_v11 = vld [vmem:[%s6962_s25 + $0x1d8] sm:$0xff] }
 0x32d   : > { %v3591_v9 = vadd.f32 %v3590_v2, %v3123_v56 }
 0x32e   : > { %3767 = vst.msk [vmem:[%s6984_s28 + $0x128] sm:$0xff] %vm3729_vm3, %v3596_v16  ;;  %v3145_v16 = vld [vmem:[%s6962_s25 + $0x1d0] sm:$0xff] }
 0x32f   : > { %3766 = vst.msk [vmem:[%s6984_s28 + $0x120] sm:$0xff] %vm3729_vm3, %v3591_v9  ;;  %v4545_v15 = vpop.f32.mrb[70].mxu0 }
 0x330   : > { %v3606_v1 = vadd.f32 %v4545_v15, %v3126_v59  ;;  %v3600_v19 = vpop.f32.mrb[71].mxu0  ;;  %v3148_v15 = vld [vmem:[%s6962_s25 + $0x1e8] sm:$0xff] }
 0x331   : > { %v3601_v55 = vadd.f32 %v3600_v19, %v3125_v10 }
 0x332   : > { %3769 = vst.msk [vmem:[%s6984_s28 + $0x138] sm:$0xff] %vm3729_vm3, %v3606_v1  ;;  %v3147_v1 = vld [vmem:[%s6962_s25 + $0x1e0] sm:$0xff] }
 0x333   : > { %3768 = vst.msk [vmem:[%s6984_s28 + $0x130] sm:$0xff] %vm3729_vm3, %v3601_v55 }
 0x341   : > { %v4548_v27 = vpop.f32.mrb[72].mxu0 }
 0x342   : > { %v3616_v25 = vadd.f32 %v4548_v27, %v3128_v61  ;;  %v3610_v35 = vpop.f32.mrb[73].mxu0  ;;  %v3150_v27 = vld [vmem:[%s6962_s25 + $0x1f8] sm:$0xff] }
 0x343   : > { %v3611_v36 = vadd.f32 %v3610_v35, %v3127_v3 }
 0x344   : > { %3771 = vst.msk [vmem:[%s6984_s28 + $0x148] sm:$0xff] %vm3729_vm3, %v3616_v25  ;;  %v3149_v25 = vld [vmem:[%s6962_s25 + $0x1f0] sm:$0xff] }
 0x345   : > { %3770 = vst.msk [vmem:[%s6984_s28 + $0x140] sm:$0xff] %vm3729_vm3, %v3611_v36  ;;  %v4551_v12 = vpop.f32.mrb[74].mxu0 }
 0x346   : > { %v3626_v18 = vadd.f32 %v4551_v12, %v3130_v41  ;;  %v3620_v31 = vpop.f32.mrb[75].mxu0 }
 0x347   : > { %v3621_v42 = vadd.f32 %v3620_v31, %v3129_v52 }
 0x348   : > { %3773 = vst.msk [vmem:[%s6984_s28 + $0x158] sm:$0xff] %vm3729_vm3, %v3626_v18 }
 0x349   : > { %3772 = vst.msk [vmem:[%s6984_s28 + $0x150] sm:$0xff] %vm3729_vm3, %v3621_v42  ;;  %v4554_v33 = vpop.f32.mrb[76].mxu0 }
 0x34a   : > { %v3636_v14 = vadd.f32 %v4554_v33, %v3132_v8  ;;  %v3630_v45 = vpop.f32.mrb[77].mxu0 }
 0x34b   : > { %v3631_v51 = vadd.f32 %v3630_v45, %v3131_v63 }
 0x34c   : > { %3775 = vst.msk [vmem:[%s6984_s28 + $0x168] sm:$0xff] %vm3729_vm3, %v3636_v14 }
 0x34d   : > { %3774 = vst.msk [vmem:[%s6984_s28 + $0x160] sm:$0xff] %vm3729_vm3, %v3631_v51  ;;  %v4557_v38 = vpop.f32.mrb[78].mxu0 }
 0x34e   : > { %v3646_v50 = vadd.f32 %v4557_v38, %v3134_v57  ;;  %v3640_v22 = vpop.f32.mrb[79].mxu0 }
 0x34f   : > { %v3641_v6 = vadd.f32 %v3640_v22, %v3133_v20 }
 0x350   : > { %3777 = vst.msk [vmem:[%s6984_s28 + $0x178] sm:$0xff] %vm3729_vm3, %v3646_v50 }
 0x351   : > { %3776 = vst.msk [vmem:[%s6984_s28 + $0x170] sm:$0xff] %vm3729_vm3, %v3641_v6 }
 0x35f   : > { %v4560_v28 = vpop.f32.mrb[80].mxu0 }
 0x360   : > { %v3656_v24 = vadd.f32 %v4560_v28, %v3136_v7  ;;  %v3650_v47 = vpop.f32.mrb[81].mxu0 }
 0x361   : > { %v3651_v13 = vadd.f32 %v3650_v47, %v3135_v34 }
 0x362   : > { %3779 = vst.msk [vmem:[%s6984_s28 + $0x188] sm:$0xff] %vm3729_vm3, %v3656_v24 }
 0x363   : > { %3778 = vst.msk [vmem:[%s6984_s28 + $0x180] sm:$0xff] %vm3729_vm3, %v3651_v13  ;;  %v4563_v54 = vpop.f32.mrb[82].mxu0 }
 0x364   : > { %v3666_v40 = vadd.f32 %v4563_v54, %v3138_v60  ;;  %v3660_v62 = vpop.f32.mrb[83].mxu0 }
 0x365   : > { %v3661_v48 = vadd.f32 %v3660_v62, %v3137_v46 }
 0x366   : > { %3781 = vst.msk [vmem:[%s6984_s28 + $0x198] sm:$0xff] %vm3729_vm3, %v3666_v40 }
 0x367   : > { %3780 = vst.msk [vmem:[%s6984_s28 + $0x190] sm:$0xff] %vm3729_vm3, %v3661_v48  ;;  %v4566_v17 = vpop.f32.mrb[84].mxu0 }
 0x368   : > { %v3676_v39 = vadd.f32 %v4566_v17, %v3140_v44  ;;  %v3670_v32 = vpop.f32.mrb[85].mxu0 }
 0x369   : > { %v3671_v53 = vadd.f32 %v3670_v32, %v3139_v37 }
 0x36a   : > { %3783 = vst.msk [vmem:[%s6984_s28 + $0x1a8] sm:$0xff] %vm3729_vm3, %v3676_v39 }
 0x36b   : > { %3782 = vst.msk [vmem:[%s6984_s28 + $0x1a0] sm:$0xff] %vm3729_vm3, %v3671_v53  ;;  %v4569_v26 = vpop.f32.mrb[86].mxu0 }
 0x36c   : > { %v3686_v30 = vadd.f32 %v4569_v26, %v3142_v5  ;;  %v3680_v4 = vpop.f32.mrb[87].mxu0 }
 0x36d   : > { %v3681_v58 = vadd.f32 %v3680_v4, %v3141_v43 }
 0x36e   : > { %3785 = vst.msk [vmem:[%s6984_s28 + $0x1b8] sm:$0xff] %vm3729_vm3, %v3686_v30 }
 0x36f   : > { %3784 = vst.msk [vmem:[%s6984_s28 + $0x1b0] sm:$0xff] %vm3729_vm3, %v3681_v58 }
 0x37d   : > { %v4572_v21 = vpop.f32.mrb[88].mxu0 }
 0x37e   : > { %v3696_v29 = vadd.f32 %v4572_v21, %v3144_v49  ;;  %v3690_v0 = vpop.f32.mrb[89].mxu0 }
 0x37f   : > { %v3691_v56 = vadd.f32 %v3690_v0, %v3143_v23 }
 0x380   : > { %3787 = vst.msk [vmem:[%s6984_s28 + $0x1c8] sm:$0xff] %vm3729_vm3, %v3696_v29 }
 0x381   : > { %3786 = vst.msk [vmem:[%s6984_s28 + $0x1c0] sm:$0xff] %vm3729_vm3, %v3691_v56 }
 0x382   : > { %v4575_v2 = vpop.f32.mrb[90].mxu0 }
 0x383   : > { %v3706_v9 = vadd.f32 %v4575_v2, %v3146_v11  ;;  %v3700_v59 = vpop.f32.mrb[91].mxu0 }
 0x384   : > { %v3701_v10 = vadd.f32 %v3700_v59, %v3145_v16 }
 0x385   : > { %3789 = vst.msk [vmem:[%s6984_s28 + $0x1d8] sm:$0xff] %vm3729_vm3, %v3706_v9 }
 0x386   : > { %3788 = vst.msk [vmem:[%s6984_s28 + $0x1d0] sm:$0xff] %vm3729_vm3, %v3701_v10  ;;  %v4578_v19 = vpop.f32.mrb[92].mxu0 }
 0x387   : > { %v3716_v55 = vadd.f32 %v4578_v19, %v3148_v15  ;;  %v3710_v61 = vpop.f32.mrb[93].mxu0 }
 0x388   : > { %v3711_v3 = vadd.f32 %v3710_v61, %v3147_v1 }
 0x389   : > { %3791 = vst.msk [vmem:[%s6984_s28 + $0x1e8] sm:$0xff] %vm3729_vm3, %v3716_v55 }
 0x38a   : > { %3790 = vst.msk [vmem:[%s6984_s28 + $0x1e0] sm:$0xff] %vm3729_vm3, %v3711_v3  ;;  %v4581_v35 = vpop.f32.mrb[94].mxu0 }
 0x38b   : > { %v3726_v36 = vadd.f32 %v4581_v35, %v3150_v27  ;;  %v3720_v41 = vpop.f32.mrb[95].mxu0 }
 0x38c   : > { %v3721_v52 = vadd.f32 %v3720_v41, %v3149_v25 }
 0x38d   : > { %3793 = vst.msk [vmem:[%s6984_s28 + $0x1f8] sm:$0xff] %vm3729_vm3, %v3726_v36 }
 0x38e   : > { %3792 = vst.msk [vmem:[%s6984_s28 + $0x1f0] sm:$0xff] %vm3729_vm3, %v3721_v52 }
 0x38f PF: > { %s15_s18 = sadd.s32 1, %s4875_s18  }
 0x390   : > { %p12_p4 = scmp.ge.s32.totalorder %s15_s18, 6  }
 0x392   :  { %14 = sbr.rel (!%p12_p4) target bundleno = 1 (0x1), region = 73 }

</bundles_post_ra>
